<compile_context>
chip_gen: v7x
topology: tpu7x:2x2x1
jax: 0.10.0
libtpu: 0.0.40
codegen_flags: <defaults>
</compile_context>

<pallas_src>
import functools

import jax
import jax.numpy as jnp
from jax.experimental import pallas as pl
from jax.experimental.pallas import tpu as pltpu

EPS = 1e-5
_VMEM_LIMIT = 32 * 1024 * 1024


def _row_stats(y):
    """Per-channel partial (sum, sum of squares) of a (rows, C) f32 block."""
    return (jnp.sum(y, axis=0, keepdims=True),
            jnp.sum(y * y, axis=0, keepdims=True))


# --------------------- pass 1: conv1 (+ 1x1 downsample conv) -----------------
def _make_pass1_kernel(Ho, Wo, Cin, stride, has_ds):
    R = Ho * Wo

    def kernel(*refs):
        if has_ds:
            (x_ref, w1_ref, wd_ref,
             y1_ref, st1_ref, sc_ref, std_ref, pat_ref) = refs
        else:
            x_ref, w1_ref, y1_ref, st1_ref, pat_ref = refs

        # In-kernel im2col: pack the 9 (strided) taps into one (R, 9*Cin)
        # bf16 matrix so conv1 is a single GEMM with a deep contraction.
        center = None
        for dy in range(3):
            for dx in range(3):
                k = dy * 3 + dx
                if stride == 1:
                    tap = x_ref[0, dy:dy + Ho, dx:dx + Wo, :]
                else:
                    tap = x_ref[0, pl.ds(dy, Ho, stride=stride),
                                pl.ds(dx, Wo, stride=stride), :]
                tap = tap.reshape(R, Cin)
                pat_ref[:, k * Cin:(k + 1) * Cin] = tap
                if k == 4:                 # centre tap == strided identity
                    center = tap

        # conv1: ONE bf16 GEMM, f32 accumulation on the MXU.
        y1 = jnp.dot(pat_ref[...], w1_ref[...],
                     preferred_element_type=jnp.float32)
        y1_ref[0] = y1
        s, ss = _row_stats(y1)
        st1_ref[0, 0:1, :] = s
        st1_ref[0, 1:2, :] = ss

        if has_ds:                         # 1x1 strided conv on the centre tap
            sc = jnp.dot(center, wd_ref[...],
                         preferred_element_type=jnp.float32)
            sc_ref[0] = sc
            s, ss = _row_stats(sc)
            std_ref[0, 0:1, :] = s
            std_ref[0, 1:2, :] = ss

    return kernel


# --------------------- pass 2: BN1 + ReLU -> conv2 ---------------------------
def _make_pass2_kernel(Ho, Wo, Cout):
    R = Ho * Wo

    def kernel(y1_ref, s1_ref, b1_ref, w2_ref, y2_ref, st2_ref,
               pad_ref, pat_ref):
        # BN1 folded into scale/bias, then ReLU.
        out1 = jnp.maximum(y1_ref[0] * s1_ref[...] + b1_ref[...], 0.0)

        # Zero only the halo border (interior is fully overwritten each step).
        pad_ref[0:1, :, :] = jnp.zeros((1, Wo + 2, Cout), jnp.float32)
        pad_ref[Ho + 1:Ho + 2, :, :] = jnp.zeros((1, Wo + 2, Cout), jnp.float32)
        pad_ref[:, 0:1, :] = jnp.zeros((Ho + 2, 1, Cout), jnp.float32)
        pad_ref[:, Wo + 1:Wo + 2, :] = jnp.zeros((Ho + 2, 1, Cout), jnp.float32)
        pad_ref[1:Ho + 1, 1:Wo + 1, :] = out1.reshape(Ho, Wo, Cout)

        # Build the (R, 9*Cout) patch matrix once, then ONE bf16 GEMM.
        for dy in range(3):
            for dx in range(3):
                k = dy * 3 + dx
                pat_ref[:, k * Cout:(k + 1) * Cout] = (
                    pad_ref[dy:dy + Ho, dx:dx + Wo, :]
                    .reshape(R, Cout).astype(jnp.bfloat16))

        y2 = jnp.dot(pat_ref[...], w2_ref[...],
                     preferred_element_type=jnp.float32)
        y2_ref[0] = y2
        s, ss = _row_stats(y2)
        st2_ref[0, 0:1, :] = s
        st2_ref[0, 1:2, :] = ss

    return kernel


# --------------------- pass 3: BN2 + shortcut + ReLU -------------------------
def _make_pass3_kernel(has_ds):
    def kernel(*refs):
        if has_ds:
            y2_ref, sc_ref, s2_ref, b2_ref, sd_ref, bd_ref, o_ref = refs
            shortcut = sc_ref[0] * sd_ref[...] + bd_ref[...]
        else:
            y2_ref, sc_ref, s2_ref, b2_ref, o_ref = refs
            shortcut = sc_ref[0]
        o_ref[0] = jnp.maximum(
            y2_ref[0] * s2_ref[...] + b2_ref[...] + shortcut, 0.0)

    return kernel


def _bn_affine(partial_stats, gamma, beta, count):
    """Fold training-mode BatchNorm into per-channel scale and bias."""
    s = jnp.sum(partial_stats, axis=0)                  # (2, C)
    mean = s[0:1, :] / count
    var = jnp.maximum(s[1:2, :] / count - mean * mean, 0.0)
    scale = gamma.reshape(1, -1) * jax.lax.rsqrt(var + EPS)
    bias = beta.reshape(1, -1) - mean * scale
    return scale.astype(jnp.float32), bias.astype(jnp.float32)


@functools.partial(jax.jit, static_argnames=("stride",))
def residual_block_pallas(x_nchw, params, stride=1):
    """Forward pass of ResidualBlock. Input/output are NCHW like PyTorch."""
    N, Cin, H, W = x_nchw.shape
    Cout = params["w1"].shape[-1]
    has_ds = (stride != 1) or (Cin != Cout)
    Ho = (H - 1) // stride + 1
    Wo = (W - 1) // stride + 1
    R = Ho * Wo

    x = jnp.transpose(x_nchw, (0, 2, 3, 1)).astype(jnp.float32)       # NHWC
    xpad = jnp.pad(x, ((0, 0), (1, 1), (1, 1), (0, 0))).astype(jnp.bfloat16)

    w1 = params["w1"].reshape(9 * Cin, Cout).astype(jnp.bfloat16)      # HWIO
    w2 = params["w2"].reshape(9 * Cout, Cout).astype(jnp.bfloat16)

    cparams = pltpu.CompilerParams(dimension_semantics=("parallel",),
                                   vmem_limit_bytes=_VMEM_LIMIT)

    def img_spec(C):
        return pl.BlockSpec((1, R, C), lambda n: (n, 0, 0))

    stat_spec = pl.BlockSpec((1, 2, Cout), lambda n: (n, 0, 0))
    vec_spec = pl.BlockSpec((1, Cout), lambda n: (0, 0))

    # ---- pass 1: conv1 (+ downsample conv) + per-image partial BN stats -----
    in_specs1 = [pl.BlockSpec((1, H + 2, W + 2, Cin), lambda n: (n, 0, 0, 0)),
                 pl.BlockSpec((9 * Cin, Cout), lambda n: (0, 0))]
    inputs1 = [xpad, w1]
    out_shape1 = [jax.ShapeDtypeStruct((N, R, Cout), jnp.float32),
                  jax.ShapeDtypeStruct((N, 2, Cout), jnp.float32)]
    out_specs1 = [img_spec(Cout), stat_spec]
    if has_ds:
        wd = params["wd"].reshape(Cin, Cout).astype(jnp.bfloat16)
        inputs1.append(wd)
        in_specs1.append(pl.BlockSpec((Cin, Cout), lambda n: (0, 0)))
        out_shape1 += [jax.ShapeDtypeStruct((N, R, Cout), jnp.float32),
                       jax.ShapeDtypeStruct((N, 2, Cout), jnp.float32)]
        out_specs1 += [img_spec(Cout), stat_spec]

    res1 = pl.pallas_call(
        _make_pass1_kernel(Ho, Wo, Cin, stride, has_ds),
        grid=(N,),
        out_shape=tuple(out_shape1),
        in_specs=in_specs1,
        out_specs=tuple(out_specs1),
        scratch_shapes=[pltpu.VMEM((R, 9 * Cin), jnp.bfloat16)],
        compiler_params=cparams,
    )(*inputs1)
    if has_ds:
        y1, st1, sc_raw, stdn = res1
    else:
        y1, st1 = res1

    scale1, bias1 = _bn_affine(st1, params["g1"], params["b1"], N * R)

    # ---- pass 2: BN1 + ReLU -> conv2 + per-image partial BN2 stats ----------
    y2, st2 = pl.pallas_call(
        _make_pass2_kernel(Ho, Wo, Cout),
        grid=(N,),
        out_shape=(jax.ShapeDtypeStruct((N, R, Cout), jnp.float32),
                   jax.ShapeDtypeStruct((N, 2, Cout), jnp.float32)),
        in_specs=[img_spec(Cout), vec_spec, vec_spec,
                  pl.BlockSpec((9 * Cout, Cout), lambda n: (0, 0))],
        out_specs=(img_spec(Cout), stat_spec),
        scratch_shapes=[pltpu.VMEM((Ho + 2, Wo + 2, Cout), jnp.float32),
                        pltpu.VMEM((R, 9 * Cout), jnp.bfloat16)],
        compiler_params=cparams,
    )(y1, scale1, bias1, w2)

    scale2, bias2 = _bn_affine(st2, params["g2"], params["b2"], N * R)

    # ---- pass 3: BN2 + shortcut + ReLU ---------------------------------------
    if has_ds:
        scaled, biasd = _bn_affine(stdn, params["gd"], params["bd"], N * R)
        inputs3 = [y2, sc_raw, scale2, bias2, scaled, biasd]
        in_specs3 = [img_spec(Cout), img_spec(Cout),
                     vec_spec, vec_spec, vec_spec, vec_spec]
    else:
        identity = x.reshape(N, R, Cout)       # stride == 1 and Cin == Cout
        inputs3 = [y2, identity, scale2, bias2]
        in_specs3 = [img_spec(Cout), img_spec(Cout), vec_spec, vec_spec]

    out = pl.pallas_call(
        _make_pass3_kernel(has_ds),
        grid=(N,),
        out_shape=jax.ShapeDtypeStruct((N, R, Cout), jnp.float32),
        in_specs=in_specs3,
        out_specs=img_spec(Cout),
        compiler_params=cparams,
    )(*inputs3)

    out = out.reshape(N, Ho, Wo, Cout)
    return jnp.transpose(out, (0, 3, 1, 2))                            # NCHW


# ---------------------------- pure-JAX references ----------------------------
def _conv_ref(x, w_hwio, stride, bf16_ops):
    pad = w_hwio.shape[0] // 2
    if bf16_ops:
        x = x.astype(jnp.bfloat16)
        w_hwio = w_hwio.astype(jnp.bfloat16)
        prec = None
    else:
        prec = jax.lax.Precision.HIGHEST
    return jax.lax.conv_general_dilated(
        x, w_hwio, (stride, stride), [(pad, pad), (pad, pad)],
        dimension_numbers=("NHWC", "HWIO", "NHWC"),
        preferred_element_type=jnp.float32, precision=prec)


def _bn_ref(x, g, b):
    mean = jnp.mean(x, axis=(0, 1, 2), keepdims=True)
    var = jnp.mean((x - mean) ** 2, axis=(0, 1, 2), keepdims=True)
    return (x - mean) * jax.lax.rsqrt(var + EPS) * g + b


def residual_block_ref(x_nchw, params, stride=1, bf16_ops=False):
    N, Cin, H, W = x_nchw.shape
    Cout = params["w1"].shape[-1]
    has_ds = (stride != 1) or (Cin != Cout)
    x = jnp.transpose(x_nchw, (0, 2, 3, 1)).astype(jnp.float32)
    out = _bn_ref(_conv_ref(x, params["w1"], stride, bf16_ops),
                  params["g1"], params["b1"])
    out = jnp.maximum(out, 0.0)
    out = _bn_ref(_conv_ref(out, params["w2"], 1, bf16_ops),
                  params["g2"], params["b2"])
    if has_ds:
        idn = _bn_ref(_conv_ref(x, params["wd"], stride, bf16_ops),
                      params["gd"], params["bd"])
    else:
        idn = x
    return jnp.transpose(jnp.maximum(out + idn, 0.0), (0, 3, 1, 2))


if __name__ == "__main__":
    # Small shapes consistent with the module: stride=1, Cin != Cout so the
    # downsample (1x1 conv + BN) branch is exercised.
    N, Cin, Cout, H, W, stride = 2, 4, 8, 16, 16, 1

    key = jax.random.PRNGKey(0)
    ks = jax.random.split(key, 10)
    x = jax.random.normal(ks[0], (N, Cin, H, W), jnp.float32)

    params = {
        "w1": 0.2 * jax.random.normal(ks[1], (3, 3, Cin, Cout), jnp.float32),
        "w2": 0.2 * jax.random.normal(ks[2], (3, 3, Cout, Cout), jnp.float32),
        "wd": 0.2 * jax.random.normal(ks[3], (1, 1, Cin, Cout), jnp.float32),
        "g1": 1.0 + 0.1 * jax.random.normal(ks[4], (Cout,), jnp.float32),
        "b1": 0.1 * jax.random.normal(ks[5], (Cout,), jnp.float32),
        "g2": 1.0 + 0.1 * jax.random.normal(ks[6], (Cout,), jnp.float32),
        "b2": 0.1 * jax.random.normal(ks[7], (Cout,), jnp.float32),
        "gd": 1.0 + 0.1 * jax.random.normal(ks[8], (Cout,), jnp.float32),
        "bd": 0.1 * jax.random.normal(ks[9], (Cout,), jnp.float32),
    }

    out = residual_block_pallas(x, params, stride=stride)
    out = jax.block_until_ready(out)
    assert out.shape == (N, Cout, H, W), out.shape

    # Tight check against a reference using the same mixed precision
    # (bf16 GEMM operands, f32 accumulation / BN).
    ref_mp = residual_block_ref(x, params, stride=stride, bf16_ops=True)
    assert jnp.allclose(out, ref_mp, atol=2e-2, rtol=2e-2), (
        float(jnp.max(jnp.abs(out - ref_mp))))

    # Looser sanity check against the full-f32 reference (bf16 rounding only).
    ref_fp = residual_block_ref(x, params, stride=stride, bf16_ops=False)
    assert jnp.allclose(out, ref_fp, atol=1.5e-1, rtol=1.5e-1), (
        float(jnp.max(jnp.abs(out - ref_fp))))

    print("KERNEL_OK")
</pallas_src>

<mosaic_0001>
module attributes {stable_mosaic.version = 11 : i64} {
  func.func @kernel(%arg0: i32, %arg1: memref<1x18x18x4xbf16, #tpu.memory_space<vmem>>, %arg2: memref<36x8xbf16, #tpu.memory_space<vmem>>, %arg3: memref<4x8xbf16, #tpu.memory_space<vmem>>, %arg4: memref<1x256x8xf32, #tpu.memory_space<vmem>>, %arg5: memref<1x2x8xf32, #tpu.memory_space<vmem>>, %arg6: memref<1x256x8xf32, #tpu.memory_space<vmem>>, %arg7: memref<1x2x8xf32, #tpu.memory_space<vmem>>, %arg8: memref<256x36xbf16, #tpu.memory_space<vmem>>) attributes {dimension_semantics = [#tpu.dimension_semantics<parallel>], iteration_bounds = array<i64: 2>, scalar_prefetch = 0 : i64, scratch_operands = 1 : i64, tpu.core_type = #tpu.core_type<tc>, window_params = [{transform_indices = @transform_0, window_bounds = array<i64: 1, 18, 18, 4>}, {pipeline_mode = #tpu.pipeline_mode<synchronous>, transform_indices = @transform_1, window_bounds = array<i64: 36, 8>}, {pipeline_mode = #tpu.pipeline_mode<synchronous>, transform_indices = @transform_2, window_bounds = array<i64: 4, 8>}, {transform_indices = @transform_3, window_bounds = array<i64: 1, 256, 8>}, {transform_indices = @transform_4, window_bounds = array<i64: 1, 2, 8>}, {transform_indices = @transform_5, window_bounds = array<i64: 1, 256, 8>}, {transform_indices = @transform_6, window_bounds = array<i64: 1, 2, 8>}]} {
    %c0 = arith.constant 0 : index
    %c0_0 = arith.constant 0 : index
    %c0_1 = arith.constant 0 : index
    %c0_2 = arith.constant 0 : index
    %0 = vector.load %arg1[%c0, %c0_0, %c0_1, %c0_2] : memref<1x18x18x4xbf16, #tpu.memory_space<vmem>>, vector<1x16x16x4xbf16>
    %1 = vector.shape_cast %0 : vector<1x16x16x4xbf16> to vector<16x16x4xbf16>
    %2 = vector.shape_cast %1 : vector<16x16x4xbf16> to vector<256x4xbf16>
    %c0_3 = arith.constant 0 : index
    %c0_4 = arith.constant 0 : index
    %3 = vector.load %arg8[%c0_3, %c0_4] : memref<256x36xbf16, #tpu.memory_space<vmem>>, vector<256x4xbf16>
    tpu.vector_store %arg8[%c0_3, %c0_4], %2 {strides = array<i32>} : memref<256x36xbf16, #tpu.memory_space<vmem>>, vector<256x4xbf16>,
    %c0_5 = arith.constant 0 : index
    %c0_6 = arith.constant 0 : index
    %c1 = arith.constant 1 : index
    %c0_7 = arith.constant 0 : index
    %4 = vector.load %arg1[%c0_5, %c0_6, %c1, %c0_7] : memref<1x18x18x4xbf16, #tpu.memory_space<vmem>>, vector<1x16x16x4xbf16>
    %5 = vector.shape_cast %4 : vector<1x16x16x4xbf16> to vector<16x16x4xbf16>
    %6 = vector.shape_cast %5 : vector<16x16x4xbf16> to vector<256x4xbf16>
    %c0_8 = arith.constant 0 : index
    %c4 = arith.constant 4 : index
    %7 = vector.load %arg8[%c0_8, %c4] : memref<256x36xbf16, #tpu.memory_space<vmem>>, vector<256x4xbf16>
    tpu.vector_store %arg8[%c0_8, %c4], %6 {strides = array<i32>} : memref<256x36xbf16, #tpu.memory_space<vmem>>, vector<256x4xbf16>,
    %c0_9 = arith.constant 0 : index
    %c0_10 = arith.constant 0 : index
    %c2 = arith.constant 2 : index
    %c0_11 = arith.constant 0 : index
    %8 = vector.load %arg1[%c0_9, %c0_10, %c2, %c0_11] : memref<1x18x18x4xbf16, #tpu.memory_space<vmem>>, vector<1x16x16x4xbf16>
    %9 = vector.shape_cast %8 : vector<1x16x16x4xbf16> to vector<16x16x4xbf16>
    %10 = vector.shape_cast %9 : vector<16x16x4xbf16> to vector<256x4xbf16>
    %c0_12 = arith.constant 0 : index
    %c8 = arith.constant 8 : index
    %11 = vector.load %arg8[%c0_12, %c8] : memref<256x36xbf16, #tpu.memory_space<vmem>>, vector<256x4xbf16>
    tpu.vector_store %arg8[%c0_12, %c8], %10 {strides = array<i32>} : memref<256x36xbf16, #tpu.memory_space<vmem>>, vector<256x4xbf16>,
    %c0_13 = arith.constant 0 : index
    %c1_14 = arith.constant 1 : index
    %c0_15 = arith.constant 0 : index
    %c0_16 = arith.constant 0 : index
    %12 = vector.load %arg1[%c0_13, %c1_14, %c0_15, %c0_16] : memref<1x18x18x4xbf16, #tpu.memory_space<vmem>>, vector<1x16x16x4xbf16>
    %13 = vector.shape_cast %12 : vector<1x16x16x4xbf16> to vector<16x16x4xbf16>
    %14 = vector.shape_cast %13 : vector<16x16x4xbf16> to vector<256x4xbf16>
    %c0_17 = arith.constant 0 : index
    %c12 = arith.constant 12 : index
    %15 = vector.load %arg8[%c0_17, %c12] : memref<256x36xbf16, #tpu.memory_space<vmem>>, vector<256x4xbf16>
    tpu.vector_store %arg8[%c0_17, %c12], %14 {strides = array<i32>} : memref<256x36xbf16, #tpu.memory_space<vmem>>, vector<256x4xbf16>,
    %c0_18 = arith.constant 0 : index
    %c1_19 = arith.constant 1 : index
    %c1_20 = arith.constant 1 : index
    %c0_21 = arith.constant 0 : index
    %16 = vector.load %arg1[%c0_18, %c1_19, %c1_20, %c0_21] : memref<1x18x18x4xbf16, #tpu.memory_space<vmem>>, vector<1x16x16x4xbf16>
    %17 = vector.shape_cast %16 : vector<1x16x16x4xbf16> to vector<16x16x4xbf16>
    %18 = vector.shape_cast %17 : vector<16x16x4xbf16> to vector<256x4xbf16>
    %c0_22 = arith.constant 0 : index
    %c16 = arith.constant 16 : index
    %19 = vector.load %arg8[%c0_22, %c16] : memref<256x36xbf16, #tpu.memory_space<vmem>>, vector<256x4xbf16>
    tpu.vector_store %arg8[%c0_22, %c16], %18 {strides = array<i32>} : memref<256x36xbf16, #tpu.memory_space<vmem>>, vector<256x4xbf16>,
    %c0_23 = arith.constant 0 : index
    %c1_24 = arith.constant 1 : index
    %c2_25 = arith.constant 2 : index
    %c0_26 = arith.constant 0 : index
    %20 = vector.load %arg1[%c0_23, %c1_24, %c2_25, %c0_26] : memref<1x18x18x4xbf16, #tpu.memory_space<vmem>>, vector<1x16x16x4xbf16>
    %21 = vector.shape_cast %20 : vector<1x16x16x4xbf16> to vector<16x16x4xbf16>
    %22 = vector.shape_cast %21 : vector<16x16x4xbf16> to vector<256x4xbf16>
    %c0_27 = arith.constant 0 : index
    %c20 = arith.constant 20 : index
    %23 = vector.load %arg8[%c0_27, %c20] : memref<256x36xbf16, #tpu.memory_space<vmem>>, vector<256x4xbf16>
    tpu.vector_store %arg8[%c0_27, %c20], %22 {strides = array<i32>} : memref<256x36xbf16, #tpu.memory_space<vmem>>, vector<256x4xbf16>,
    %c0_28 = arith.constant 0 : index
    %c2_29 = arith.constant 2 : index
    %c0_30 = arith.constant 0 : index
    %c0_31 = arith.constant 0 : index
    %24 = vector.load %arg1[%c0_28, %c2_29, %c0_30, %c0_31] : memref<1x18x18x4xbf16, #tpu.memory_space<vmem>>, vector<1x16x16x4xbf16>
    %25 = vector.shape_cast %24 : vector<1x16x16x4xbf16> to vector<16x16x4xbf16>
    %26 = vector.shape_cast %25 : vector<16x16x4xbf16> to vector<256x4xbf16>
    %c0_32 = arith.constant 0 : index
    %c24 = arith.constant 24 : index
    %27 = vector.load %arg8[%c0_32, %c24] : memref<256x36xbf16, #tpu.memory_space<vmem>>, vector<256x4xbf16>
    tpu.vector_store %arg8[%c0_32, %c24], %26 {strides = array<i32>} : memref<256x36xbf16, #tpu.memory_space<vmem>>, vector<256x4xbf16>,
    %c0_33 = arith.constant 0 : index
    %c2_34 = arith.constant 2 : index
    %c1_35 = arith.constant 1 : index
    %c0_36 = arith.constant 0 : index
    %28 = vector.load %arg1[%c0_33, %c2_34, %c1_35, %c0_36] : memref<1x18x18x4xbf16, #tpu.memory_space<vmem>>, vector<1x16x16x4xbf16>
    %29 = vector.shape_cast %28 : vector<1x16x16x4xbf16> to vector<16x16x4xbf16>
    %30 = vector.shape_cast %29 : vector<16x16x4xbf16> to vector<256x4xbf16>
    %c0_37 = arith.constant 0 : index
    %c28 = arith.constant 28 : index
    %31 = vector.load %arg8[%c0_37, %c28] : memref<256x36xbf16, #tpu.memory_space<vmem>>, vector<256x4xbf16>
    tpu.vector_store %arg8[%c0_37, %c28], %30 {strides = array<i32>} : memref<256x36xbf16, #tpu.memory_space<vmem>>, vector<256x4xbf16>,
    %c0_38 = arith.constant 0 : index
    %c2_39 = arith.constant 2 : index
    %c2_40 = arith.constant 2 : index
    %c0_41 = arith.constant 0 : index
    %32 = vector.load %arg1[%c0_38, %c2_39, %c2_40, %c0_41] : memref<1x18x18x4xbf16, #tpu.memory_space<vmem>>, vector<1x16x16x4xbf16>
    %33 = vector.shape_cast %32 : vector<1x16x16x4xbf16> to vector<16x16x4xbf16>
    %34 = vector.shape_cast %33 : vector<16x16x4xbf16> to vector<256x4xbf16>
    %c0_42 = arith.constant 0 : index
    %c32 = arith.constant 32 : index
    %35 = vector.load %arg8[%c0_42, %c32] : memref<256x36xbf16, #tpu.memory_space<vmem>>, vector<256x4xbf16>
    tpu.vector_store %arg8[%c0_42, %c32], %34 {strides = array<i32>} : memref<256x36xbf16, #tpu.memory_space<vmem>>, vector<256x4xbf16>,
    %c0_43 = arith.constant 0 : index
    %c0_44 = arith.constant 0 : index
    %36 = vector.load %arg8[%c0_43, %c0_44] : memref<256x36xbf16, #tpu.memory_space<vmem>>, vector<256x36xbf16>
    %c0_45 = arith.constant 0 : index
    %c0_46 = arith.constant 0 : index
    %37 = vector.load %arg2[%c0_45, %c0_46] : memref<36x8xbf16, #tpu.memory_space<vmem>>, vector<36x8xbf16>
    %cst = arith.constant dense<0.000000e+00> : vector<256x8xf32>
    %38 = tpu.matmul %36, %37, %cst {dimension_numbers = #tpu.dot_dimension_numbers<[1], [0], [0], [1], [0, 0, 1, 1], [], []>} : vector<256x36xbf16>, vector<36x8xbf16>, vector<256x8xf32> -> vector<256x8xf32>
    %c0_47 = arith.constant 0 : index
    %c0_48 = arith.constant 0 : index
    %c0_49 = arith.constant 0 : index
    %39 = vector.load %arg4[%c0_47, %c0_48, %c0_49] : memref<1x256x8xf32, #tpu.memory_space<vmem>>, vector<1x256x8xf32>
    %40 = vector.shape_cast %39 : vector<1x256x8xf32> to vector<256x8xf32>
    %41 = vector.shape_cast %38 : vector<256x8xf32> to vector<1x256x8xf32>
    tpu.vector_store %arg4[%c0_47, %c0_48, %c0_49], %41 {strides = array<i32>} : memref<1x256x8xf32, #tpu.memory_space<vmem>>, vector<1x256x8xf32>,
    %cst_50 = arith.constant dense<0.000000e+00> : vector<8xf32>
    %42 = vector.multi_reduction <add>, %38, %cst_50 [0] : vector<256x8xf32> to vector<8xf32>
    %43 = vector.shape_cast %42 : vector<8xf32> to vector<1x8xf32>
    %44 = arith.mulf %38, %38 : vector<256x8xf32>
    %cst_51 = arith.constant dense<0.000000e+00> : vector<8xf32>
    %45 = vector.multi_reduction <add>, %44, %cst_51 [0] : vector<256x8xf32> to vector<8xf32>
    %46 = vector.shape_cast %45 : vector<8xf32> to vector<1x8xf32>
    %c0_52 = arith.constant 0 : index
    %c0_53 = arith.constant 0 : index
    %c0_54 = arith.constant 0 : index
    %47 = vector.load %arg5[%c0_52, %c0_53, %c0_54] : memref<1x2x8xf32, #tpu.memory_space<vmem>>, vector<1x1x8xf32>
    %48 = vector.shape_cast %47 : vector<1x1x8xf32> to vector<1x8xf32>
    %49 = vector.shape_cast %43 : vector<1x8xf32> to vector<1x1x8xf32>
    tpu.vector_store %arg5[%c0_52, %c0_53, %c0_54], %49 {strides = array<i32>} : memref<1x2x8xf32, #tpu.memory_space<vmem>>, vector<1x1x8xf32>,
    %c0_55 = arith.constant 0 : index
    %c1_56 = arith.constant 1 : index
    %c0_57 = arith.constant 0 : index
    %50 = vector.load %arg5[%c0_55, %c1_56, %c0_57] : memref<1x2x8xf32, #tpu.memory_space<vmem>>, vector<1x1x8xf32>
    %51 = vector.shape_cast %50 : vector<1x1x8xf32> to vector<1x8xf32>
    %52 = vector.shape_cast %46 : vector<1x8xf32> to vector<1x1x8xf32>
    tpu.vector_store %arg5[%c0_55, %c1_56, %c0_57], %52 {strides = array<i32>} : memref<1x2x8xf32, #tpu.memory_space<vmem>>, vector<1x1x8xf32>,
    %c0_58 = arith.constant 0 : index
    %c0_59 = arith.constant 0 : index
    %53 = vector.load %arg3[%c0_58, %c0_59] : memref<4x8xbf16, #tpu.memory_space<vmem>>, vector<4x8xbf16>
    %cst_60 = arith.constant dense<0.000000e+00> : vector<256x8xf32>
    %54 = tpu.matmul %18, %53, %cst_60 {dimension_numbers = #tpu.dot_dimension_numbers<[1], [0], [0], [1], [0, 0, 1, 1], [], []>} : vector<256x4xbf16>, vector<4x8xbf16>, vector<256x8xf32> -> vector<256x8xf32>
    %c0_61 = arith.constant 0 : index
    %c0_62 = arith.constant 0 : index
    %c0_63 = arith.constant 0 : index
    %55 = vector.load %arg6[%c0_61, %c0_62, %c0_63] : memref<1x256x8xf32, #tpu.memory_space<vmem>>, vector<1x256x8xf32>
    %56 = vector.shape_cast %55 : vector<1x256x8xf32> to vector<256x8xf32>
    %57 = vector.shape_cast %54 : vector<256x8xf32> to vector<1x256x8xf32>
    tpu.vector_store %arg6[%c0_61, %c0_62, %c0_63], %57 {strides = array<i32>} : memref<1x256x8xf32, #tpu.memory_space<vmem>>, vector<1x256x8xf32>,
    %cst_64 = arith.constant dense<0.000000e+00> : vector<8xf32>
    %58 = vector.multi_reduction <add>, %54, %cst_64 [0] : vector<256x8xf32> to vector<8xf32>
    %59 = vector.shape_cast %58 : vector<8xf32> to vector<1x8xf32>
    %60 = arith.mulf %54, %54 : vector<256x8xf32>
    %cst_65 = arith.constant dense<0.000000e+00> : vector<8xf32>
    %61 = vector.multi_reduction <add>, %60, %cst_65 [0] : vector<256x8xf32> to vector<8xf32>
    %62 = vector.shape_cast %61 : vector<8xf32> to vector<1x8xf32>
    %c0_66 = arith.constant 0 : index
    %c0_67 = arith.constant 0 : index
    %c0_68 = arith.constant 0 : index
    %63 = vector.load %arg7[%c0_66, %c0_67, %c0_68] : memref<1x2x8xf32, #tpu.memory_space<vmem>>, vector<1x1x8xf32>
    %64 = vector.shape_cast %63 : vector<1x1x8xf32> to vector<1x8xf32>
    %65 = vector.shape_cast %59 : vector<1x8xf32> to vector<1x1x8xf32>
    tpu.vector_store %arg7[%c0_66, %c0_67, %c0_68], %65 {strides = array<i32>} : memref<1x2x8xf32, #tpu.memory_space<vmem>>, vector<1x1x8xf32>,
    %c0_69 = arith.constant 0 : index
    %c1_70 = arith.constant 1 : index
    %c0_71 = arith.constant 0 : index
    %66 = vector.load %arg7[%c0_69, %c1_70, %c0_71] : memref<1x2x8xf32, #tpu.memory_space<vmem>>, vector<1x1x8xf32>
    %67 = vector.shape_cast %66 : vector<1x1x8xf32> to vector<1x8xf32>
    %68 = vector.shape_cast %62 : vector<1x8xf32> to vector<1x1x8xf32>
    tpu.vector_store %arg7[%c0_69, %c1_70, %c0_71], %68 {strides = array<i32>} : memref<1x2x8xf32, #tpu.memory_space<vmem>>, vector<1x1x8xf32>,
    return
  }
  func.func @transform_0(%arg0: i32) -> (i32, i32, i32, i32) {
    %c0_i32 = arith.constant 0 : i32
    %c0_i32_0 = arith.constant 0 : i32
    %c0_i32_1 = arith.constant 0 : i32
    %c0_i32_2 = arith.constant 0 : i32
    return %arg0, %c0_i32, %c0_i32_0, %c0_i32_1 : i32, i32, i32, i32
  }
  func.func @transform_1(%arg0: i32) -> (i32, i32) {
    %c0_i32 = arith.constant 0 : i32
    %c0_i32_0 = arith.constant 0 : i32
    %c0_i32_1 = arith.constant 0 : i32
    return %c0_i32, %c0_i32_0 : i32, i32
  }
  func.func @transform_2(%arg0: i32) -> (i32, i32) {
    %c0_i32 = arith.constant 0 : i32
    %c0_i32_0 = arith.constant 0 : i32
    %c0_i32_1 = arith.constant 0 : i32
    return %c0_i32, %c0_i32_0 : i32, i32
  }
  func.func @transform_3(%arg0: i32) -> (i32, i32, i32) {
    %c0_i32 = arith.constant 0 : i32
    %c0_i32_0 = arith.constant 0 : i32
    %c0_i32_1 = arith.constant 0 : i32
    return %arg0, %c0_i32, %c0_i32_0 : i32, i32, i32
  }
  func.func @transform_4(%arg0: i32) -> (i32, i32, i32) {
    %c0_i32 = arith.constant 0 : i32
    %c0_i32_0 = arith.constant 0 : i32
    %c0_i32_1 = arith.constant 0 : i32
    return %arg0, %c0_i32, %c0_i32_0 : i32, i32, i32
  }
  func.func @transform_5(%arg0: i32) -> (i32, i32, i32) {
    %c0_i32 = arith.constant 0 : i32
    %c0_i32_0 = arith.constant 0 : i32
    %c0_i32_1 = arith.constant 0 : i32
    return %arg0, %c0_i32, %c0_i32_0 : i32, i32, i32
  }
  func.func @transform_6(%arg0: i32) -> (i32, i32, i32) {
    %c0_i32 = arith.constant 0 : i32
    %c0_i32_0 = arith.constant 0 : i32
    %c0_i32_1 = arith.constant 0 : i32
    return %arg0, %c0_i32, %c0_i32_0 : i32, i32, i32
  }
}

module attributes {stable_mosaic.version = 11 : i64} {
  func.func @kernel(%arg0: i32, %arg1: memref<1x256x8xf32, #tpu.memory_space<vmem>>, %arg2: memref<1x8xf32, #tpu.memory_space<vmem>>, %arg3: memref<1x8xf32, #tpu.memory_space<vmem>>, %arg4: memref<72x8xbf16, #tpu.memory_space<vmem>>, %arg5: memref<1x256x8xf32, #tpu.memory_space<vmem>>, %arg6: memref<1x2x8xf32, #tpu.memory_space<vmem>>, %arg7: memref<18x18x8xf32, #tpu.memory_space<vmem>>, %arg8: memref<256x72xbf16, #tpu.memory_space<vmem>>) attributes {dimension_semantics = [#tpu.dimension_semantics<parallel>], iteration_bounds = array<i64: 2>, scalar_prefetch = 0 : i64, scratch_operands = 2 : i64, tpu.core_type = #tpu.core_type<tc>, window_params = [{transform_indices = @transform_0, window_bounds = array<i64: 1, 256, 8>}, {pipeline_mode = #tpu.pipeline_mode<synchronous>, transform_indices = @transform_1, window_bounds = array<i64: 1, 8>}, {pipeline_mode = #tpu.pipeline_mode<synchronous>, transform_indices = @transform_2, window_bounds = array<i64: 1, 8>}, {pipeline_mode = #tpu.pipeline_mode<synchronous>, transform_indices = @transform_3, window_bounds = array<i64: 72, 8>}, {transform_indices = @transform_4, window_bounds = array<i64: 1, 256, 8>}, {transform_indices = @transform_5, window_bounds = array<i64: 1, 2, 8>}]} {
    %c0 = arith.constant 0 : index
    %c0_0 = arith.constant 0 : index
    %c0_1 = arith.constant 0 : index
    %0 = vector.load %arg1[%c0, %c0_0, %c0_1] : memref<1x256x8xf32, #tpu.memory_space<vmem>>, vector<1x256x8xf32>
    %1 = vector.shape_cast %0 : vector<1x256x8xf32> to vector<256x8xf32>
    %c0_2 = arith.constant 0 : index
    %c0_3 = arith.constant 0 : index
    %2 = vector.load %arg2[%c0_2, %c0_3] : memref<1x8xf32, #tpu.memory_space<vmem>>, vector<1x8xf32>
    %3 = vector.broadcast %2 : vector<1x8xf32> to vector<256x8xf32>
    %4 = arith.mulf %1, %3 : vector<256x8xf32>
    %c0_4 = arith.constant 0 : index
    %c0_5 = arith.constant 0 : index
    %5 = vector.load %arg3[%c0_4, %c0_5] : memref<1x8xf32, #tpu.memory_space<vmem>>, vector<1x8xf32>
    %6 = vector.broadcast %5 : vector<1x8xf32> to vector<256x8xf32>
    %7 = arith.addf %4, %6 : vector<256x8xf32>
    %cst = arith.constant 0.000000e+00 : f32
    %8 = vector.broadcast %cst : f32 to vector<256x8xf32>
    %9 = arith.maximumf %7, %8 : vector<256x8xf32>
    %cst_6 = arith.constant 0.000000e+00 : f32
    %10 = vector.broadcast %cst_6 : f32 to vector<1x18x8xf32>
    %c0_7 = arith.constant 0 : index
    %c0_8 = arith.constant 0 : index
    %c0_9 = arith.constant 0 : index
    %11 = vector.load %arg7[%c0_7, %c0_8, %c0_9] : memref<18x18x8xf32, #tpu.memory_space<vmem>>, vector<1x18x8xf32>
    tpu.vector_store %arg7[%c0_7, %c0_8, %c0_9], %10 {strides = array<i32>} : memref<18x18x8xf32, #tpu.memory_space<vmem>>, vector<1x18x8xf32>,
    %cst_10 = arith.constant 0.000000e+00 : f32
    %12 = vector.broadcast %cst_10 : f32 to vector<1x18x8xf32>
    %c17 = arith.constant 17 : index
    %c0_11 = arith.constant 0 : index
    %c0_12 = arith.constant 0 : index
    %13 = vector.load %arg7[%c17, %c0_11, %c0_12] : memref<18x18x8xf32, #tpu.memory_space<vmem>>, vector<1x18x8xf32>
    tpu.vector_store %arg7[%c17, %c0_11, %c0_12], %12 {strides = array<i32>} : memref<18x18x8xf32, #tpu.memory_space<vmem>>, vector<1x18x8xf32>,
    %cst_13 = arith.constant 0.000000e+00 : f32
    %14 = vector.broadcast %cst_13 : f32 to vector<18x1x8xf32>
    %c0_14 = arith.constant 0 : index
    %c0_15 = arith.constant 0 : index
    %c0_16 = arith.constant 0 : index
    %15 = vector.load %arg7[%c0_14, %c0_15, %c0_16] : memref<18x18x8xf32, #tpu.memory_space<vmem>>, vector<18x1x8xf32>
    tpu.vector_store %arg7[%c0_14, %c0_15, %c0_16], %14 {strides = array<i32>} : memref<18x18x8xf32, #tpu.memory_space<vmem>>, vector<18x1x8xf32>,
    %cst_17 = arith.constant 0.000000e+00 : f32
    %16 = vector.broadcast %cst_17 : f32 to vector<18x1x8xf32>
    %c0_18 = arith.constant 0 : index
    %c17_19 = arith.constant 17 : index
    %c0_20 = arith.constant 0 : index
    %17 = vector.load %arg7[%c0_18, %c17_19, %c0_20] : memref<18x18x8xf32, #tpu.memory_space<vmem>>, vector<18x1x8xf32>
    tpu.vector_store %arg7[%c0_18, %c17_19, %c0_20], %16 {strides = array<i32>} : memref<18x18x8xf32, #tpu.memory_space<vmem>>, vector<18x1x8xf32>,
    %18 = vector.shape_cast %9 : vector<256x8xf32> to vector<16x16x8xf32>
    %c1 = arith.constant 1 : index
    %c1_21 = arith.constant 1 : index
    %c0_22 = arith.constant 0 : index
    %19 = vector.load %arg7[%c1, %c1_21, %c0_22] : memref<18x18x8xf32, #tpu.memory_space<vmem>>, vector<16x16x8xf32>
    tpu.vector_store %arg7[%c1, %c1_21, %c0_22], %18 {strides = array<i32>} : memref<18x18x8xf32, #tpu.memory_space<vmem>>, vector<16x16x8xf32>,
    %c0_23 = arith.constant 0 : index
    %c0_24 = arith.constant 0 : index
    %c0_25 = arith.constant 0 : index
    %20 = vector.load %arg7[%c0_23, %c0_24, %c0_25] : memref<18x18x8xf32, #tpu.memory_space<vmem>>, vector<16x16x8xf32>
    %21 = vector.shape_cast %20 : vector<16x16x8xf32> to vector<256x8xf32>
    %22 = arith.truncf %21 : vector<256x8xf32> to vector<256x8xbf16>
    %c0_26 = arith.constant 0 : index
    %c0_27 = arith.constant 0 : index
    %23 = vector.load %arg8[%c0_26, %c0_27] : memref<256x72xbf16, #tpu.memory_space<vmem>>, vector<256x8xbf16>
    tpu.vector_store %arg8[%c0_26, %c0_27], %22 {strides = array<i32>} : memref<256x72xbf16, #tpu.memory_space<vmem>>, vector<256x8xbf16>,
    %c0_28 = arith.constant 0 : index
    %c1_29 = arith.constant 1 : index
    %c0_30 = arith.constant 0 : index
    %24 = vector.load %arg7[%c0_28, %c1_29, %c0_30] : memref<18x18x8xf32, #tpu.memory_space<vmem>>, vector<16x16x8xf32>
    %25 = vector.shape_cast %24 : vector<16x16x8xf32> to vector<256x8xf32>
    %26 = arith.truncf %25 : vector<256x8xf32> to vector<256x8xbf16>
    %c0_31 = arith.constant 0 : index
    %c8 = arith.constant 8 : index
    %27 = vector.load %arg8[%c0_31, %c8] : memref<256x72xbf16, #tpu.memory_space<vmem>>, vector<256x8xbf16>
    tpu.vector_store %arg8[%c0_31, %c8], %26 {strides = array<i32>} : memref<256x72xbf16, #tpu.memory_space<vmem>>, vector<256x8xbf16>,
    %c0_32 = arith.constant 0 : index
    %c2 = arith.constant 2 : index
    %c0_33 = arith.constant 0 : index
    %28 = vector.load %arg7[%c0_32, %c2, %c0_33] : memref<18x18x8xf32, #tpu.memory_space<vmem>>, vector<16x16x8xf32>
    %29 = vector.shape_cast %28 : vector<16x16x8xf32> to vector<256x8xf32>
    %30 = arith.truncf %29 : vector<256x8xf32> to vector<256x8xbf16>
    %c0_34 = arith.constant 0 : index
    %c16 = arith.constant 16 : index
    %31 = vector.load %arg8[%c0_34, %c16] : memref<256x72xbf16, #tpu.memory_space<vmem>>, vector<256x8xbf16>
    tpu.vector_store %arg8[%c0_34, %c16], %30 {strides = array<i32>} : memref<256x72xbf16, #tpu.memory_space<vmem>>, vector<256x8xbf16>,
    %c1_35 = arith.constant 1 : index
    %c0_36 = arith.constant 0 : index
    %c0_37 = arith.constant 0 : index
    %32 = vector.load %arg7[%c1_35, %c0_36, %c0_37] : memref<18x18x8xf32, #tpu.memory_space<vmem>>, vector<16x16x8xf32>
    %33 = vector.shape_cast %32 : vector<16x16x8xf32> to vector<256x8xf32>
    %34 = arith.truncf %33 : vector<256x8xf32> to vector<256x8xbf16>
    %c0_38 = arith.constant 0 : index
    %c24 = arith.constant 24 : index
    %35 = vector.load %arg8[%c0_38, %c24] : memref<256x72xbf16, #tpu.memory_space<vmem>>, vector<256x8xbf16>
    tpu.vector_store %arg8[%c0_38, %c24], %34 {strides = array<i32>} : memref<256x72xbf16, #tpu.memory_space<vmem>>, vector<256x8xbf16>,
    %c1_39 = arith.constant 1 : index
    %c1_40 = arith.constant 1 : index
    %c0_41 = arith.constant 0 : index
    %36 = vector.load %arg7[%c1_39, %c1_40, %c0_41] : memref<18x18x8xf32, #tpu.memory_space<vmem>>, vector<16x16x8xf32>
    %37 = vector.shape_cast %36 : vector<16x16x8xf32> to vector<256x8xf32>
    %38 = arith.truncf %37 : vector<256x8xf32> to vector<256x8xbf16>
    %c0_42 = arith.constant 0 : index
    %c32 = arith.constant 32 : index
    %39 = vector.load %arg8[%c0_42, %c32] : memref<256x72xbf16, #tpu.memory_space<vmem>>, vector<256x8xbf16>
    tpu.vector_store %arg8[%c0_42, %c32], %38 {strides = array<i32>} : memref<256x72xbf16, #tpu.memory_space<vmem>>, vector<256x8xbf16>,
    %c1_43 = arith.constant 1 : index
    %c2_44 = arith.constant 2 : index
    %c0_45 = arith.constant 0 : index
    %40 = vector.load %arg7[%c1_43, %c2_44, %c0_45] : memref<18x18x8xf32, #tpu.memory_space<vmem>>, vector<16x16x8xf32>
    %41 = vector.shape_cast %40 : vector<16x16x8xf32> to vector<256x8xf32>
    %42 = arith.truncf %41 : vector<256x8xf32> to vector<256x8xbf16>
    %c0_46 = arith.constant 0 : index
    %c40 = arith.constant 40 : index
    %43 = vector.load %arg8[%c0_46, %c40] : memref<256x72xbf16, #tpu.memory_space<vmem>>, vector<256x8xbf16>
    tpu.vector_store %arg8[%c0_46, %c40], %42 {strides = array<i32>} : memref<256x72xbf16, #tpu.memory_space<vmem>>, vector<256x8xbf16>,
    %c2_47 = arith.constant 2 : index
    %c0_48 = arith.constant 0 : index
    %c0_49 = arith.constant 0 : index
    %44 = vector.load %arg7[%c2_47, %c0_48, %c0_49] : memref<18x18x8xf32, #tpu.memory_space<vmem>>, vector<16x16x8xf32>
    %45 = vector.shape_cast %44 : vector<16x16x8xf32> to vector<256x8xf32>
    %46 = arith.truncf %45 : vector<256x8xf32> to vector<256x8xbf16>
    %c0_50 = arith.constant 0 : index
    %c48 = arith.constant 48 : index
    %47 = vector.load %arg8[%c0_50, %c48] : memref<256x72xbf16, #tpu.memory_space<vmem>>, vector<256x8xbf16>
    tpu.vector_store %arg8[%c0_50, %c48], %46 {strides = array<i32>} : memref<256x72xbf16, #tpu.memory_space<vmem>>, vector<256x8xbf16>,
    %c2_51 = arith.constant 2 : index
    %c1_52 = arith.constant 1 : index
    %c0_53 = arith.constant 0 : index
    %48 = vector.load %arg7[%c2_51, %c1_52, %c0_53] : memref<18x18x8xf32, #tpu.memory_space<vmem>>, vector<16x16x8xf32>
    %49 = vector.shape_cast %48 : vector<16x16x8xf32> to vector<256x8xf32>
    %50 = arith.truncf %49 : vector<256x8xf32> to vector<256x8xbf16>
    %c0_54 = arith.constant 0 : index
    %c56 = arith.constant 56 : index
    %51 = vector.load %arg8[%c0_54, %c56] : memref<256x72xbf16, #tpu.memory_space<vmem>>, vector<256x8xbf16>
    tpu.vector_store %arg8[%c0_54, %c56], %50 {strides = array<i32>} : memref<256x72xbf16, #tpu.memory_space<vmem>>, vector<256x8xbf16>,
    %c2_55 = arith.constant 2 : index
    %c2_56 = arith.constant 2 : index
    %c0_57 = arith.constant 0 : index
    %52 = vector.load %arg7[%c2_55, %c2_56, %c0_57] : memref<18x18x8xf32, #tpu.memory_space<vmem>>, vector<16x16x8xf32>
    %53 = vector.shape_cast %52 : vector<16x16x8xf32> to vector<256x8xf32>
    %54 = arith.truncf %53 : vector<256x8xf32> to vector<256x8xbf16>
    %c0_58 = arith.constant 0 : index
    %c64 = arith.constant 64 : index
    %55 = vector.load %arg8[%c0_58, %c64] : memref<256x72xbf16, #tpu.memory_space<vmem>>, vector<256x8xbf16>
    tpu.vector_store %arg8[%c0_58, %c64], %54 {strides = array<i32>} : memref<256x72xbf16, #tpu.memory_space<vmem>>, vector<256x8xbf16>,
    %c0_59 = arith.constant 0 : index
    %c0_60 = arith.constant 0 : index
    %56 = vector.load %arg8[%c0_59, %c0_60] : memref<256x72xbf16, #tpu.memory_space<vmem>>, vector<256x72xbf16>
    %c0_61 = arith.constant 0 : index
    %c0_62 = arith.constant 0 : index
    %57 = vector.load %arg4[%c0_61, %c0_62] : memref<72x8xbf16, #tpu.memory_space<vmem>>, vector<72x8xbf16>
    %cst_63 = arith.constant dense<0.000000e+00> : vector<256x8xf32>
    %58 = tpu.matmul %56, %57, %cst_63 {dimension_numbers = #tpu.dot_dimension_numbers<[1], [0], [0], [1], [0, 0, 1, 1], [], []>} : vector<256x72xbf16>, vector<72x8xbf16>, vector<256x8xf32> -> vector<256x8xf32>
    %c0_64 = arith.constant 0 : index
    %c0_65 = arith.constant 0 : index
    %c0_66 = arith.constant 0 : index
    %59 = vector.load %arg5[%c0_64, %c0_65, %c0_66] : memref<1x256x8xf32, #tpu.memory_space<vmem>>, vector<1x256x8xf32>
    %60 = vector.shape_cast %59 : vector<1x256x8xf32> to vector<256x8xf32>
    %61 = vector.shape_cast %58 : vector<256x8xf32> to vector<1x256x8xf32>
    tpu.vector_store %arg5[%c0_64, %c0_65, %c0_66], %61 {strides = array<i32>} : memref<1x256x8xf32, #tpu.memory_space<vmem>>, vector<1x256x8xf32>,
    %cst_67 = arith.constant dense<0.000000e+00> : vector<8xf32>
    %62 = vector.multi_reduction <add>, %58, %cst_67 [0] : vector<256x8xf32> to vector<8xf32>
    %63 = vector.shape_cast %62 : vector<8xf32> to vector<1x8xf32>
    %64 = arith.mulf %58, %58 : vector<256x8xf32>
    %cst_68 = arith.constant dense<0.000000e+00> : vector<8xf32>
    %65 = vector.multi_reduction <add>, %64, %cst_68 [0] : vector<256x8xf32> to vector<8xf32>
    %66 = vector.shape_cast %65 : vector<8xf32> to vector<1x8xf32>
    %c0_69 = arith.constant 0 : index
    %c0_70 = arith.constant 0 : index
    %c0_71 = arith.constant 0 : index
    %67 = vector.load %arg6[%c0_69, %c0_70, %c0_71] : memref<1x2x8xf32, #tpu.memory_space<vmem>>, vector<1x1x8xf32>
    %68 = vector.shape_cast %67 : vector<1x1x8xf32> to vector<1x8xf32>
    %69 = vector.shape_cast %63 : vector<1x8xf32> to vector<1x1x8xf32>
    tpu.vector_store %arg6[%c0_69, %c0_70, %c0_71], %69 {strides = array<i32>} : memref<1x2x8xf32, #tpu.memory_space<vmem>>, vector<1x1x8xf32>,
    %c0_72 = arith.constant 0 : index
    %c1_73 = arith.constant 1 : index
    %c0_74 = arith.constant 0 : index
    %70 = vector.load %arg6[%c0_72, %c1_73, %c0_74] : memref<1x2x8xf32, #tpu.memory_space<vmem>>, vector<1x1x8xf32>
    %71 = vector.shape_cast %70 : vector<1x1x8xf32> to vector<1x8xf32>
    %72 = vector.shape_cast %66 : vector<1x8xf32> to vector<1x1x8xf32>
    tpu.vector_store %arg6[%c0_72, %c1_73, %c0_74], %72 {strides = array<i32>} : memref<1x2x8xf32, #tpu.memory_space<vmem>>, vector<1x1x8xf32>,
    return
  }
  func.func @transform_0(%arg0: i32) -> (i32, i32, i32) {
    %c0_i32 = arith.constant 0 : i32
    %c0_i32_0 = arith.constant 0 : i32
    %c0_i32_1 = arith.constant 0 : i32
    return %arg0, %c0_i32, %c0_i32_0 : i32, i32, i32
  }
  func.func @transform_1(%arg0: i32) -> (i32, i32) {
    %c0_i32 = arith.constant 0 : i32
    %c0_i32_0 = arith.constant 0 : i32
    %c0_i32_1 = arith.constant 0 : i32
    return %c0_i32, %c0_i32_0 : i32, i32
  }
  func.func @transform_2(%arg0: i32) -> (i32, i32) {
    %c0_i32 = arith.constant 0 : i32
    %c0_i32_0 = arith.constant 0 : i32
    %c0_i32_1 = arith.constant 0 : i32
    return %c0_i32, %c0_i32_0 : i32, i32
  }
  func.func @transform_3(%arg0: i32) -> (i32, i32) {
    %c0_i32 = arith.constant 0 : i32
    %c0_i32_0 = arith.constant 0 : i32
    %c0_i32_1 = arith.constant 0 : i32
    return %c0_i32, %c0_i32_0 : i32, i32
  }
  func.func @transform_4(%arg0: i32) -> (i32, i32, i32) {
    %c0_i32 = arith.constant 0 : i32
    %c0_i32_0 = arith.constant 0 : i32
    %c0_i32_1 = arith.constant 0 : i32
    return %arg0, %c0_i32, %c0_i32_0 : i32, i32, i32
  }
  func.func @transform_5(%arg0: i32) -> (i32, i32, i32) {
    %c0_i32 = arith.constant 0 : i32
    %c0_i32_0 = arith.constant 0 : i32
    %c0_i32_1 = arith.constant 0 : i32
    return %arg0, %c0_i32, %c0_i32_0 : i32, i32, i32
  }
}

module attributes {stable_mosaic.version = 11 : i64} {
  func.func @kernel(%arg0: i32, %arg1: memref<1x256x8xf32, #tpu.memory_space<vmem>>, %arg2: memref<1x256x8xf32, #tpu.memory_space<vmem>>, %arg3: memref<1x8xf32, #tpu.memory_space<vmem>>, %arg4: memref<1x8xf32, #tpu.memory_space<vmem>>, %arg5: memref<1x8xf32, #tpu.memory_space<vmem>>, %arg6: memref<1x8xf32, #tpu.memory_space<vmem>>, %arg7: memref<1x256x8xf32, #tpu.memory_space<vmem>>) attributes {dimension_semantics = [#tpu.dimension_semantics<parallel>], iteration_bounds = array<i64: 2>, scalar_prefetch = 0 : i64, scratch_operands = 0 : i64, tpu.core_type = #tpu.core_type<tc>, window_params = [{transform_indices = @transform_0, window_bounds = array<i64: 1, 256, 8>}, {transform_indices = @transform_1, window_bounds = array<i64: 1, 256, 8>}, {pipeline_mode = #tpu.pipeline_mode<synchronous>, transform_indices = @transform_2, window_bounds = array<i64: 1, 8>}, {pipeline_mode = #tpu.pipeline_mode<synchronous>, transform_indices = @transform_3, window_bounds = array<i64: 1, 8>}, {pipeline_mode = #tpu.pipeline_mode<synchronous>, transform_indices = @transform_4, window_bounds = array<i64: 1, 8>}, {pipeline_mode = #tpu.pipeline_mode<synchronous>, transform_indices = @transform_5, window_bounds = array<i64: 1, 8>}, {transform_indices = @transform_6, window_bounds = array<i64: 1, 256, 8>}]} {
    %c0 = arith.constant 0 : index
    %c0_0 = arith.constant 0 : index
    %c0_1 = arith.constant 0 : index
    %0 = vector.load %arg2[%c0, %c0_0, %c0_1] : memref<1x256x8xf32, #tpu.memory_space<vmem>>, vector<1x256x8xf32>
    %1 = vector.shape_cast %0 : vector<1x256x8xf32> to vector<256x8xf32>
    %c0_2 = arith.constant 0 : index
    %c0_3 = arith.constant 0 : index
    %2 = vector.load %arg5[%c0_2, %c0_3] : memref<1x8xf32, #tpu.memory_space<vmem>>, vector<1x8xf32>
    %3 = vector.broadcast %2 : vector<1x8xf32> to vector<256x8xf32>
    %4 = arith.mulf %1, %3 : vector<256x8xf32>
    %c0_4 = arith.constant 0 : index
    %c0_5 = arith.constant 0 : index
    %5 = vector.load %arg6[%c0_4, %c0_5] : memref<1x8xf32, #tpu.memory_space<vmem>>, vector<1x8xf32>
    %6 = vector.broadcast %5 : vector<1x8xf32> to vector<256x8xf32>
    %7 = arith.addf %4, %6 : vector<256x8xf32>
    %c0_6 = arith.constant 0 : index
    %c0_7 = arith.constant 0 : index
    %c0_8 = arith.constant 0 : index
    %8 = vector.load %arg1[%c0_6, %c0_7, %c0_8] : memref<1x256x8xf32, #tpu.memory_space<vmem>>, vector<1x256x8xf32>
    %9 = vector.shape_cast %8 : vector<1x256x8xf32> to vector<256x8xf32>
    %c0_9 = arith.constant 0 : index
    %c0_10 = arith.constant 0 : index
    %10 = vector.load %arg3[%c0_9, %c0_10] : memref<1x8xf32, #tpu.memory_space<vmem>>, vector<1x8xf32>
    %11 = vector.broadcast %10 : vector<1x8xf32> to vector<256x8xf32>
    %12 = arith.mulf %9, %11 : vector<256x8xf32>
    %c0_11 = arith.constant 0 : index
    %c0_12 = arith.constant 0 : index
    %13 = vector.load %arg4[%c0_11, %c0_12] : memref<1x8xf32, #tpu.memory_space<vmem>>, vector<1x8xf32>
    %14 = vector.broadcast %13 : vector<1x8xf32> to vector<256x8xf32>
    %15 = arith.addf %12, %14 : vector<256x8xf32>
    %16 = arith.addf %15, %7 : vector<256x8xf32>
    %cst = arith.constant 0.000000e+00 : f32
    %17 = vector.broadcast %cst : f32 to vector<256x8xf32>
    %18 = arith.maximumf %16, %17 : vector<256x8xf32>
    %c0_13 = arith.constant 0 : index
    %c0_14 = arith.constant 0 : index
    %c0_15 = arith.constant 0 : index
    %19 = vector.load %arg7[%c0_13, %c0_14, %c0_15] : memref<1x256x8xf32, #tpu.memory_space<vmem>>, vector<1x256x8xf32>
    %20 = vector.shape_cast %19 : vector<1x256x8xf32> to vector<256x8xf32>
    %21 = vector.shape_cast %18 : vector<256x8xf32> to vector<1x256x8xf32>
    tpu.vector_store %arg7[%c0_13, %c0_14, %c0_15], %21 {strides = array<i32>} : memref<1x256x8xf32, #tpu.memory_space<vmem>>, vector<1x256x8xf32>,
    return
  }
  func.func @transform_0(%arg0: i32) -> (i32, i32, i32) {
    %c0_i32 = arith.constant 0 : i32
    %c0_i32_0 = arith.constant 0 : i32
    %c0_i32_1 = arith.constant 0 : i32
    return %arg0, %c0_i32, %c0_i32_0 : i32, i32, i32
  }
  func.func @transform_1(%arg0: i32) -> (i32, i32, i32) {
    %c0_i32 = arith.constant 0 : i32
    %c0_i32_0 = arith.constant 0 : i32
    %c0_i32_1 = arith.constant 0 : i32
    return %arg0, %c0_i32, %c0_i32_0 : i32, i32, i32
  }
  func.func @transform_2(%arg0: i32) -> (i32, i32) {
    %c0_i32 = arith.constant 0 : i32
    %c0_i32_0 = arith.constant 0 : i32
    %c0_i32_1 = arith.constant 0 : i32
    return %c0_i32, %c0_i32_0 : i32, i32
  }
  func.func @transform_3(%arg0: i32) -> (i32, i32) {
    %c0_i32 = arith.constant 0 : i32
    %c0_i32_0 = arith.constant 0 : i32
    %c0_i32_1 = arith.constant 0 : i32
    return %c0_i32, %c0_i32_0 : i32, i32
  }
  func.func @transform_4(%arg0: i32) -> (i32, i32) {
    %c0_i32 = arith.constant 0 : i32
    %c0_i32_0 = arith.constant 0 : i32
    %c0_i32_1 = arith.constant 0 : i32
    return %c0_i32, %c0_i32_0 : i32, i32
  }
  func.func @transform_5(%arg0: i32) -> (i32, i32) {
    %c0_i32 = arith.constant 0 : i32
    %c0_i32_0 = arith.constant 0 : i32
    %c0_i32_1 = arith.constant 0 : i32
    return %c0_i32, %c0_i32_0 : i32, i32
  }
  func.func @transform_6(%arg0: i32) -> (i32, i32, i32) {
    %c0_i32 = arith.constant 0 : i32
    %c0_i32_0 = arith.constant 0 : i32
    %c0_i32_1 = arith.constant 0 : i32
    return %arg0, %c0_i32, %c0_i32_0 : i32, i32, i32
  }
}

</mosaic_0001>

<bundles_post_ra>
// kernel: residual_block_pallas.5
= control target key start
LH: loop header
LB: loop body
LE: loop exit
PB: predicated region body
PF: predicated region fallthrough
CT: control target
= control target key end

     0   :  { %s727_s21 = smov 0   ;;  %s1034_s0 = inlined_call_operand.vmem [shape: f32[2,256,8], index: 0, kind: input, shape index: {}]   ;;  %s1035_s1 = inlined_call_operand.vmem [shape: f32[2,256,8], index: 1, kind: input, shape index: {}]   ;;  %s1036_s2 = inlined_call_operand.vmem [shape: f32[1,8], index: 2, kind: input, shape index: {}]   ;;  %s1037_s3 = inlined_call_operand.vmem [shape: f32[1,8], index: 3, kind: input, shape index: {}]   ;;  %s1038_s4 = inlined_call_operand.vmem [shape: f32[1,8], index: 4, kind: input, shape index: {}]   ;;  %s1039_s5 = inlined_call_operand.vmem [shape: f32[1,8], index: 5, kind: input, shape index: {}]   ;;  %s1040_s6 = inlined_call_operand.vmem [shape: f32[2,256,8], index: 6, kind: output, shape index: {}]  }
   0x1 LB: > { %s656_s22 = sadd.s32 4294967295, %s690_s21   ;;  %p660_p0 = scmp.ge.s32.totalorder %s690_s21, 1  ;;  %s690_s21 = sphi %s727_s21, %s16_s21  }
   0x2   : > { %p222_p1 = scmp.lt.s32.totalorder %s690_s21, 3 }
   0x4   : > { %p223_p2 = pnand %p660_p0, %p222_p1 }
   0x5   : > { %p257_p3 = scmp.lt.s32.totalorder (!%p223_p2), %s656_s22, 1  ;;  %v740_v0 = vld [vmem:[%s1038_s4] ss:$0 sm:$0xff] (!%p223_p2)  ;;  %vm556_vm0 = vcmask (!%p223_p2), 64512  }
   0x6   : > { %226 = sbr.rel (%p223_p2) target bundleno = 71 (0x47), region = 44  ;;  %v745_v1 = vld [vmem:[%s1036_s2] ss:$0 sm:$0xff] (!%p223_p2) }
   0x7   : > { %v762_v2 = vld [vmem:[%s1039_s5] ss:$0 sm:$0xff] (!%p223_p2) }
   0x8   : > { %v767_v3 = vld [vmem:[%s1037_s3] ss:$0 sm:$0xff] (!%p223_p2) }
   0xd   : > { %s1042_s22 = smov (!%p257_p3, %s656_s22), 1 }
   0xe   : > { %s735_s23 = sshll.u32 %s1042_s22, 8 }
   0xf   : > { %s751_s30 = scalar_lea.vmem %s1034_s0, %s735_s23  ;;  %s757_s9 = scalar_lea.vmem %s1035_s1, %s735_s23 }
  0x10   : > { %v272_v4 = vld [vmem:[%s757_s9] sm:$0xff]  ;;  %v273_v6 = vld [vmem:[%s757_s9 + $0x8] sm:$0xff]  ;;  %v274_v11 = vld [vmem:[%s757_s9 + $0x10] sm:$0xff]  ;;  %s802_s16 = scalar_lea.vmem %s1040_s6, %s735_s23 }
  0x11   : > { %v382_v5 = vld [vmem:[%s751_s30] sm:$0xff]  ;;  %v311_v7 = vmul.f32 %v740_v0, %v272_v4  ;;  %v312_v9 = vmul.f32 %v740_v0, %v273_v6  ;;  %v383_v10 = vld [vmem:[%s751_s30 + $0x8] sm:$0xff]  ;;  %v384_v12 = vld [vmem:[%s751_s30 + $0x10] sm:$0xff]  ;;  %v313_v14 = vmul.f32 %v740_v0, %v274_v11 }
  0x12   : > { %v421_v8 = vmul.f32 %v745_v1, %v382_v5  ;;  %v422_v13 = vmul.f32 %v745_v1, %v383_v10  ;;  %v423_v15 = vmul.f32 %v745_v1, %v384_v12  ;;  %v275_v16 = vld [vmem:[%s757_s9 + $0x18] sm:$0xff]  ;;  %v276_v18 = vld [vmem:[%s757_s9 + $0x20] sm:$0xff]  ;;  %v277_v24 = vld [vmem:[%s757_s9 + $0x28] sm:$0xff] }
  0x13   : > { %v385_v17 = vld [vmem:[%s751_s30 + $0x18] sm:$0xff]  ;;  %v350_v19 = vadd.f32 %v762_v2, %v311_v7  ;;  %v351_v21 = vadd.f32 %v762_v2, %v312_v9  ;;  %v314_v22 = vmul.f32 %v740_v0, %v275_v16  ;;  %v386_v23 = vld [vmem:[%s751_s30 + $0x20] sm:$0xff]  ;;  %v352_v26 = vadd.f32 %v762_v2, %v313_v14  ;;  %v387_v29 = vld [vmem:[%s751_s30 + $0x28] sm:$0xff] }
  0x14   : > { %v460_v20 = vadd.f32 %v767_v3, %v421_v8  ;;  %v461_v25 = vadd.f32 %v767_v3, %v422_v13  ;;  %v462_v27 = vadd.f32 %v767_v3, %v423_v15  ;;  %v424_v28 = vmul.f32 %v745_v1, %v385_v17  ;;  %v278_v38 = vld [vmem:[%s757_s9 + $0x30] sm:$0xff]  ;;  %v279_v44 = vld [vmem:[%s757_s9 + $0x38] sm:$0xff]  ;;  %v280_v46 = vld [vmem:[%s757_s9 + $0x40] sm:$0xff] }
  0x15   : > { %v353_v31 = vadd.f32 %v762_v2, %v314_v22  ;;  %v315_v32 = vmul.f32 %v740_v0, %v276_v18  ;;  %v425_v33 = vmul.f32 %v745_v1, %v386_v23  ;;  %v316_v37 = vmul.f32 %v740_v0, %v277_v24  ;;  %v388_v39 = vld [vmem:[%s751_s30 + $0x30] sm:$0xff]  ;;  %v389_v45 = vld [vmem:[%s751_s30 + $0x38] sm:$0xff]  ;;  %v390_v55 = vld [vmem:[%s751_s30 + $0x40] sm:$0xff] }
  0x16   : > { %v492_v30 = vadd.f32 %v460_v20, %v350_v19  ;;  %v493_v34 = vadd.f32 %v461_v25, %v351_v21  ;;  %v494_v35 = vadd.f32 %v462_v27, %v352_v26  ;;  %v463_v36 = vadd.f32 %v767_v3, %v424_v28  ;;  %v281_v60 = vld [vmem:[%s757_s9 + $0x48] sm:$0xff]  ;;  %v282_v6 = vld [vmem:[%s757_s9 + $0x50] sm:$0xff]  ;;  %v283_v12 = vld [vmem:[%s757_s9 + $0x58] sm:$0xff] }
  0x17   : > { %v354_v41 = vadd.f32 %v762_v2, %v315_v32  ;;  %v464_v42 = vadd.f32 %v767_v3, %v425_v33  ;;  %v426_v43 = vmul.f32 %v745_v1, %v387_v29  ;;  %v355_v50 = vadd.f32 %v762_v2, %v316_v37  ;;  %v391_v61 = vld [vmem:[%s751_s30 + $0x48] sm:$0xff]  ;;  %v392_v7 = vld [vmem:[%s751_s30 + $0x50] sm:$0xff]  ;;  %v393_v21 = vld [vmem:[%s751_s30 + $0x58] sm:$0xff] }
  0x18   : > { %v524_v40 = vmax.f32 %v492_v30, 0.0  ;;  %v525_v47 = vmax.f32 %v493_v34, 0.0  ;;  %v526_v48 = vmax.f32 %v494_v35, 0.0  ;;  %v495_v49 = vadd.f32 %v463_v36, %v353_v31  ;;  %v284_v22 = vld [vmem:[%s757_s9 + $0x60] sm:$0xff]  ;;  %v285_v28 = vld [vmem:[%s757_s9 + $0x68] sm:$0xff] }
  0x19   : > { %v496_v51 = vadd.f32 %v464_v42, %v354_v41  ;;  %v465_v52 = vadd.f32 %v767_v3, %v426_v43  ;;  %v317_v53 = vmul.f32 %v740_v0, %v278_v38  ;;  %v427_v54 = vmul.f32 %v745_v1, %v388_v39  ;;  %v394_v27 = vld [vmem:[%s751_s30 + $0x60] sm:$0xff]  ;;  %v395_v33 = vld [vmem:[%s751_s30 + $0x68] sm:$0xff]  ;;  %v286_v38 = vld [vmem:[%s757_s9 + $0x70] sm:$0xff] }
  0x1a   : > { %557 = vst.msk [vmem:[%s802_s16] sm:$0xff] %vm556_vm0, %v524_v40  ;;  %558 = vst.msk [vmem:[%s802_s16 + $0x8] sm:$0xff] %vm556_vm0, %v525_v47  ;;  %v527_v56 = vmax.f32 %v495_v49, 0.0  ;;  %v318_v57 = vmul.f32 %v740_v0, %v279_v44  ;;  %v428_v58 = vmul.f32 %v745_v1, %v389_v45  ;;  %v319_v59 = vmul.f32 %v740_v0, %v280_v46  ;;  %v396_v43 = vld [vmem:[%s751_s30 + $0x70] sm:$0xff]  ;;  %v287_v44 = vld [vmem:[%s757_s9 + $0x78] sm:$0xff] }
  0x1b   : > { %559 = vst.msk [vmem:[%s802_s16 + $0x10] sm:$0xff] %vm556_vm0, %v526_v48  ;;  %v528_v62 = vmax.f32 %v496_v51, 0.0  ;;  %v497_v63 = vadd.f32 %v465_v52, %v355_v50  ;;  %v356_v4 = vadd.f32 %v762_v2, %v317_v53  ;;  %v466_v5 = vadd.f32 %v767_v3, %v427_v54  ;;  %v397_v49 = vld [vmem:[%s751_s30 + $0x78] sm:$0xff]  ;;  %v288_v50 = vld [vmem:[%s757_s9 + $0x80] sm:$0xff] }
  0x1c   : > { %560 = vst.msk [vmem:[%s802_s16 + $0x18] sm:$0xff] %vm556_vm0, %v527_v56  ;;  %v357_v8 = vadd.f32 %v762_v2, %v318_v57  ;;  %v467_v9 = vadd.f32 %v767_v3, %v428_v58  ;;  %v358_v10 = vadd.f32 %v762_v2, %v319_v59  ;;  %v429_v11 = vmul.f32 %v745_v1, %v390_v55  ;;  %v398_v59 = vld [vmem:[%s751_s30 + $0x80] sm:$0xff] }
  0x1d   : > { %561 = vst.msk [vmem:[%s802_s16 + $0x20] sm:$0xff] %vm556_vm0, %v528_v62  ;;  %v529_v13 = vmax.f32 %v497_v63, 0.0  ;;  %v498_v14 = vadd.f32 %v466_v5, %v356_v4  ;;  %v320_v15 = vmul.f32 %v740_v0, %v281_v60  ;;  %v430_v16 = vmul.f32 %v745_v1, %v391_v61  ;;  %v289_v4 = vld [vmem:[%s757_s9 + $0x88] sm:$0xff] }
  0x1e   : > { %v499_v17 = vadd.f32 %v467_v9, %v357_v8  ;;  %v468_v18 = vadd.f32 %v767_v3, %v429_v11  ;;  %v321_v19 = vmul.f32 %v740_v0, %v282_v6  ;;  %v431_v20 = vmul.f32 %v745_v1, %v392_v7  ;;  %v399_v5 = vld [vmem:[%s751_s30 + $0x88] sm:$0xff]  ;;  %v400_v11 = vld [vmem:[%s751_s30 + $0x90] sm:$0xff] }
  0x1f   : > { %562 = vst.msk [vmem:[%s802_s16 + $0x28] sm:$0xff] %vm556_vm0, %v529_v13  ;;  %v530_v23 = vmax.f32 %v498_v14, 0.0  ;;  %v359_v24 = vadd.f32 %v762_v2, %v320_v15  ;;  %v469_v25 = vadd.f32 %v767_v3, %v430_v16  ;;  %v322_v26 = vmul.f32 %v740_v0, %v283_v12  ;;  %v291_v16 = vld [vmem:[%s757_s9 + $0x98] sm:$0xff] }
  0x20   : > { %v531_v29 = vmax.f32 %v499_v17, 0.0  ;;  %v500_v30 = vadd.f32 %v468_v18, %v358_v10  ;;  %v360_v31 = vadd.f32 %v762_v2, %v321_v19  ;;  %v470_v32 = vadd.f32 %v767_v3, %v431_v20  ;;  %v290_v10 = vld [vmem:[%s757_s9 + $0x90] sm:$0xff] }
  0x21   : > { %563 = vst.msk [vmem:[%s802_s16 + $0x30] sm:$0xff] %vm556_vm0, %v530_v23  ;;  %v501_v34 = vadd.f32 %v469_v25, %v359_v24  ;;  %v361_v35 = vadd.f32 %v762_v2, %v322_v26  ;;  %v432_v36 = vmul.f32 %v745_v1, %v393_v21  ;;  %v323_v37 = vmul.f32 %v740_v0, %v284_v22  ;;  %v401_v25 = vld [vmem:[%s751_s30 + $0x98] sm:$0xff]  ;;  %v292_v26 = vld [vmem:[%s757_s9 + $0xa0] sm:$0xff] }
  0x22   : > { %564 = vst.msk [vmem:[%s802_s16 + $0x38] sm:$0xff] %vm556_vm0, %v531_v29  ;;  %v532_v39 = vmax.f32 %v500_v30, 0.0  ;;  %v502_v40 = vadd.f32 %v470_v32, %v360_v31  ;;  %v433_v41 = vmul.f32 %v745_v1, %v394_v27  ;;  %v324_v42 = vmul.f32 %v740_v0, %v285_v28  ;;  %v402_v31 = vld [vmem:[%s751_s30 + $0xa0] sm:$0xff]  ;;  %v293_v32 = vld [vmem:[%s757_s9 + $0xa8] sm:$0xff] }
  0x23   : > { %v533_v45 = vmax.f32 %v501_v34, 0.0  ;;  %v471_v46 = vadd.f32 %v767_v3, %v432_v36  ;;  %v362_v47 = vadd.f32 %v762_v2, %v323_v37  ;;  %v434_v48 = vmul.f32 %v745_v1, %v395_v33  ;;  %v403_v37 = vld [vmem:[%s751_s30 + $0xa8] sm:$0xff] }
  0x24   : > { %565 = vst.msk [vmem:[%s802_s16 + $0x40] sm:$0xff] %vm556_vm0, %v532_v39  ;;  %v534_v51 = vmax.f32 %v502_v40, 0.0  ;;  %v472_v52 = vadd.f32 %v767_v3, %v433_v41  ;;  %v363_v53 = vadd.f32 %v762_v2, %v324_v42  ;;  %v325_v54 = vmul.f32 %v740_v0, %v286_v38  ;;  %v294_v42 = vld [vmem:[%s757_s9 + $0xb0] sm:$0xff] }
  0x25   : > { %566 = vst.msk [vmem:[%s802_s16 + $0x48] sm:$0xff] %vm556_vm0, %v533_v45  ;;  %v503_v55 = vadd.f32 %v471_v46, %v361_v35  ;;  %v473_v56 = vadd.f32 %v767_v3, %v434_v48  ;;  %v435_v57 = vmul.f32 %v745_v1, %v396_v43  ;;  %v326_v58 = vmul.f32 %v740_v0, %v287_v44  ;;  %v295_v48 = vld [vmem:[%s757_s9 + $0xb8] sm:$0xff] }
  0x26   : > { %567 = vst.msk [vmem:[%s802_s16 + $0x50] sm:$0xff] %vm556_vm0, %v534_v51  ;;  %v504_v60 = vadd.f32 %v472_v52, %v362_v47  ;;  %v364_v61 = vadd.f32 %v762_v2, %v325_v54  ;;  %v436_v62 = vmul.f32 %v745_v1, %v397_v49  ;;  %v327_v63 = vmul.f32 %v740_v0, %v288_v50  ;;  %v404_v47 = vld [vmem:[%s751_s30 + $0xb0] sm:$0xff]  ;;  %v296_v54 = vld [vmem:[%s757_s9 + $0xc0] sm:$0xff] }
  0x27   : > { %v535_v6 = vmax.f32 %v503_v55, 0.0  ;;  %v505_v7 = vadd.f32 %v473_v56, %v363_v53  ;;  %v474_v8 = vadd.f32 %v767_v3, %v435_v57  ;;  %v365_v9 = vadd.f32 %v762_v2, %v326_v58  ;;  %v405_v53 = vld [vmem:[%s751_s30 + $0xb8] sm:$0xff] }
  0x28   : > { %v536_v12 = vmax.f32 %v504_v60, 0.0  ;;  %v475_v13 = vadd.f32 %v767_v3, %v436_v62  ;;  %v366_v14 = vadd.f32 %v762_v2, %v327_v63  ;;  %v437_v15 = vmul.f32 %v745_v1, %v398_v59  ;;  %v406_v63 = vld [vmem:[%s751_s30 + $0xc0] sm:$0xff] }
  0x29   : > { %568 = vst.msk [vmem:[%s802_s16 + $0x58] sm:$0xff] %vm556_vm0, %v535_v6  ;;  %v537_v17 = vmax.f32 %v505_v7, 0.0  ;;  %v506_v18 = vadd.f32 %v474_v8, %v364_v61  ;;  %v328_v19 = vmul.f32 %v740_v0, %v289_v4  ;;  %v438_v20 = vmul.f32 %v745_v1, %v399_v5  ;;  %v297_v8 = vld [vmem:[%s757_s9 + $0xc8] sm:$0xff] }
  0x2a   : > { %569 = vst.msk [vmem:[%s802_s16 + $0x60] sm:$0xff] %vm556_vm0, %v536_v12  ;;  %v507_v21 = vadd.f32 %v475_v13, %v365_v9  ;;  %v476_v22 = vadd.f32 %v767_v3, %v437_v15  ;;  %v329_v23 = vmul.f32 %v740_v0, %v290_v10  ;;  %v439_v24 = vmul.f32 %v745_v1, %v400_v11  ;;  %v407_v9 = vld [vmem:[%s751_s30 + $0xc8] sm:$0xff]  ;;  %v408_v15 = vld [vmem:[%s751_s30 + $0xd0] sm:$0xff] }
  0x2b   : > { %570 = vst.msk [vmem:[%s802_s16 + $0x68] sm:$0xff] %vm556_vm0, %v537_v17  ;;  %v538_v27 = vmax.f32 %v506_v18, 0.0  ;;  %v367_v28 = vadd.f32 %v762_v2, %v328_v19  ;;  %v477_v29 = vadd.f32 %v767_v3, %v438_v20  ;;  %v330_v30 = vmul.f32 %v740_v0, %v291_v16  ;;  %v299_v20 = vld [vmem:[%s757_s9 + $0xd8] sm:$0xff] }
  0x2c   : > { %v539_v33 = vmax.f32 %v507_v21, 0.0  ;;  %v508_v34 = vadd.f32 %v476_v22, %v366_v14  ;;  %v368_v35 = vadd.f32 %v762_v2, %v329_v23  ;;  %v478_v36 = vadd.f32 %v767_v3, %v439_v24  ;;  %v298_v14 = vld [vmem:[%s757_s9 + $0xd0] sm:$0xff] }
  0x2d   : > { %571 = vst.msk [vmem:[%s802_s16 + $0x70] sm:$0xff] %vm556_vm0, %v538_v27  ;;  %v509_v38 = vadd.f32 %v477_v29, %v367_v28  ;;  %v369_v39 = vadd.f32 %v762_v2, %v330_v30  ;;  %v440_v40 = vmul.f32 %v745_v1, %v401_v25  ;;  %v331_v41 = vmul.f32 %v740_v0, %v292_v26  ;;  %v409_v29 = vld [vmem:[%s751_s30 + $0xd8] sm:$0xff]  ;;  %v300_v30 = vld [vmem:[%s757_s9 + $0xe0] sm:$0xff] }
  0x2e   : > { %572 = vst.msk [vmem:[%s802_s16 + $0x78] sm:$0xff] %vm556_vm0, %v539_v33  ;;  %v540_v43 = vmax.f32 %v508_v34, 0.0  ;;  %v510_v44 = vadd.f32 %v478_v36, %v368_v35  ;;  %v441_v45 = vmul.f32 %v745_v1, %v402_v31  ;;  %v332_v46 = vmul.f32 %v740_v0, %v293_v32  ;;  %v410_v35 = vld [vmem:[%s751_s30 + $0xe0] sm:$0xff]  ;;  %v301_v36 = vld [vmem:[%s757_s9 + $0xe8] sm:$0xff] }
  0x2f   : > { %v541_v49 = vmax.f32 %v509_v38, 0.0  ;;  %v479_v50 = vadd.f32 %v767_v3, %v440_v40  ;;  %v370_v51 = vadd.f32 %v762_v2, %v331_v41  ;;  %v442_v52 = vmul.f32 %v745_v1, %v403_v37  ;;  %v411_v41 = vld [vmem:[%s751_s30 + $0xe8] sm:$0xff] }
  0x30   : > { %573 = vst.msk [vmem:[%s802_s16 + $0x80] sm:$0xff] %vm556_vm0, %v540_v43  ;;  %v542_v55 = vmax.f32 %v510_v44, 0.0  ;;  %v480_v56 = vadd.f32 %v767_v3, %v441_v45  ;;  %v371_v57 = vadd.f32 %v762_v2, %v332_v46  ;;  %v333_v58 = vmul.f32 %v740_v0, %v294_v42  ;;  %v302_v46 = vld [vmem:[%s757_s9 + $0xf0] sm:$0xff] }
  0x31   : > { %574 = vst.msk [vmem:[%s802_s16 + $0x88] sm:$0xff] %vm556_vm0, %v541_v49  ;;  %v511_v59 = vadd.f32 %v479_v50, %v369_v39  ;;  %v481_v60 = vadd.f32 %v767_v3, %v442_v52  ;;  %v443_v61 = vmul.f32 %v745_v1, %v404_v47  ;;  %v334_v62 = vmul.f32 %v740_v0, %v295_v48  ;;  %v303_v52 = vld [vmem:[%s757_s9 + $0xf8] sm:$0xff] }
  0x32   : > { %575 = vst.msk [vmem:[%s802_s16 + $0x90] sm:$0xff] %vm556_vm0, %v542_v55  ;;  %v512_v4 = vadd.f32 %v480_v56, %v370_v51  ;;  %v372_v5 = vadd.f32 %v762_v2, %v333_v58  ;;  %v444_v6 = vmul.f32 %v745_v1, %v405_v53  ;;  %v335_v7 = vmul.f32 %v740_v0, %v296_v54  ;;  %v412_v51 = vld [vmem:[%s751_s30 + $0xf0] sm:$0xff] }
  0x33   : > { %v543_v10 = vmax.f32 %v511_v59, 0.0  ;;  %v513_v11 = vadd.f32 %v481_v60, %v371_v57  ;;  %v482_v12 = vadd.f32 %v767_v3, %v443_v61  ;;  %v373_v13 = vadd.f32 %v762_v2, %v334_v62  ;;  %v413_v57 = vld [vmem:[%s751_s30 + $0xf8] sm:$0xff] }
  0x34   : > { %v544_v16 = vmax.f32 %v512_v4, 0.0  ;;  %v483_v17 = vadd.f32 %v767_v3, %v444_v6  ;;  %v374_v18 = vadd.f32 %v762_v2, %v335_v7  ;;  %v445_v19 = vmul.f32 %v745_v1, %v406_v63 }
  0x35   : > { %576 = vst.msk [vmem:[%s802_s16 + $0x98] sm:$0xff] %vm556_vm0, %v543_v10  ;;  %v545_v21 = vmax.f32 %v513_v11, 0.0  ;;  %v514_v22 = vadd.f32 %v482_v12, %v372_v5  ;;  %v336_v23 = vmul.f32 %v740_v0, %v297_v8  ;;  %v446_v24 = vmul.f32 %v745_v1, %v407_v9 }
  0x36   : > { %577 = vst.msk [vmem:[%s802_s16 + $0xa0] sm:$0xff] %vm556_vm0, %v544_v16  ;;  %v515_v25 = vadd.f32 %v483_v17, %v373_v13  ;;  %v484_v26 = vadd.f32 %v767_v3, %v445_v19  ;;  %v337_v27 = vmul.f32 %v740_v0, %v298_v14  ;;  %v447_v28 = vmul.f32 %v745_v1, %v408_v15 }
  0x37   : > { %578 = vst.msk [vmem:[%s802_s16 + $0xa8] sm:$0xff] %vm556_vm0, %v545_v21  ;;  %v546_v31 = vmax.f32 %v514_v22, 0.0  ;;  %v375_v32 = vadd.f32 %v762_v2, %v336_v23  ;;  %v485_v33 = vadd.f32 %v767_v3, %v446_v24  ;;  %v338_v34 = vmul.f32 %v740_v0, %v299_v20 }
  0x38   : > { %v547_v37 = vmax.f32 %v515_v25, 0.0  ;;  %v516_v38 = vadd.f32 %v484_v26, %v374_v18  ;;  %v376_v39 = vadd.f32 %v762_v2, %v337_v27  ;;  %v486_v40 = vadd.f32 %v767_v3, %v447_v28 }
  0x39   : > { %579 = vst.msk [vmem:[%s802_s16 + $0xb0] sm:$0xff] %vm556_vm0, %v546_v31  ;;  %v517_v42 = vadd.f32 %v485_v33, %v375_v32  ;;  %v377_v43 = vadd.f32 %v762_v2, %v338_v34  ;;  %v448_v44 = vmul.f32 %v745_v1, %v409_v29  ;;  %v339_v45 = vmul.f32 %v740_v0, %v300_v30 }
  0x3a   : > { %580 = vst.msk [vmem:[%s802_s16 + $0xb8] sm:$0xff] %vm556_vm0, %v547_v37  ;;  %v548_v47 = vmax.f32 %v516_v38, 0.0  ;;  %v518_v48 = vadd.f32 %v486_v40, %v376_v39  ;;  %v449_v49 = vmul.f32 %v745_v1, %v410_v35  ;;  %v340_v50 = vmul.f32 %v740_v0, %v301_v36 }
  0x3b   : > { %v549_v53 = vmax.f32 %v517_v42, 0.0  ;;  %v487_v54 = vadd.f32 %v767_v3, %v448_v44  ;;  %v378_v55 = vadd.f32 %v762_v2, %v339_v45  ;;  %v450_v56 = vmul.f32 %v745_v1, %v411_v41 }
  0x3c   : > { %581 = vst.msk [vmem:[%s802_s16 + $0xc0] sm:$0xff] %vm556_vm0, %v548_v47  ;;  %v550_v58 = vmax.f32 %v518_v48, 0.0  ;;  %v488_v59 = vadd.f32 %v767_v3, %v449_v49  ;;  %v379_v60 = vadd.f32 %v762_v2, %v340_v50  ;;  %v341_v61 = vmul.f32 %v740_v0, %v302_v46 }
  0x3d   : > { %582 = vst.msk [vmem:[%s802_s16 + $0xc8] sm:$0xff] %vm556_vm0, %v549_v53  ;;  %v519_v62 = vadd.f32 %v487_v54, %v377_v43  ;;  %v489_v63 = vadd.f32 %v767_v3, %v450_v56  ;;  %v451_v4 = vmul.f32 %v745_v1, %v412_v51  ;;  %v342_v5 = vmul.f32 %v740_v0, %v303_v52 }
  0x3e   : > { %583 = vst.msk [vmem:[%s802_s16 + $0xd0] sm:$0xff] %vm556_vm0, %v550_v58  ;;  %v520_v6 = vadd.f32 %v488_v59, %v378_v55  ;;  %v380_v7 = vadd.f32 %v762_v2, %v341_v61  ;;  %v452_v8 = vmul.f32 %v745_v1, %v413_v57 }
  0x3f   : > { %v551_v9 = vmax.f32 %v519_v62, 0.0  ;;  %v521_v10 = vadd.f32 %v489_v63, %v379_v60  ;;  %v490_v11 = vadd.f32 %v767_v3, %v451_v4  ;;  %v381_v12 = vadd.f32 %v762_v2, %v342_v5 }
  0x40   : > { %v552_v13 = vmax.f32 %v520_v6, 0.0  ;;  %v491_v14 = vadd.f32 %v767_v3, %v452_v8 }
  0x41   : > { %584 = vst.msk [vmem:[%s802_s16 + $0xd8] sm:$0xff] %vm556_vm0, %v551_v9  ;;  %v553_v0 = vmax.f32 %v521_v10, 0.0  ;;  %v522_v15 = vadd.f32 %v490_v11, %v380_v7 }
  0x42   : > { %585 = vst.msk [vmem:[%s802_s16 + $0xe0] sm:$0xff] %vm556_vm0, %v552_v13  ;;  %v523_v16 = vadd.f32 %v491_v14, %v381_v12 }
  0x43   : > { %586 = vst.msk [vmem:[%s802_s16 + $0xe8] sm:$0xff] %vm556_vm0, %v553_v0  ;;  %v554_v1 = vmax.f32 %v522_v15, 0.0 }
  0x44   : > { %v555_v17 = vmax.f32 %v523_v16, 0.0 }
  0x45   : > { %587 = vst.msk [vmem:[%s802_s16 + $0xf0] sm:$0xff] %vm556_vm0, %v554_v1 }
  0x46   : > { %588 = vst.msk [vmem:[%s802_s16 + $0xf8] sm:$0xff] %vm556_vm0, %v555_v17 }
  0x47 PF: > { %s16_s21 = sadd.s32 1, %s690_s21  }
  0x48   : > { %p13_p4 = scmp.ge.s32.totalorder %s16_s21, 4  }
  0x4a   :  { %15 = sbr.rel (!%p13_p4) target bundleno = 1 (0x1), region = 77 }

// kernel: residual_block_pallas.4
= control target key start
LH: loop header
LB: loop body
LE: loop exit
PB: predicated region body
PF: predicated region fallthrough
CT: control target
= control target key end

     0   :  { %s2292_s18 = smov 0   ;;  %s3009_s0 = inlined_call_operand.vmem [shape: f32[2,256,8], index: 0, kind: input, shape index: {}]   ;;  %s3010_s1 = inlined_call_operand.vmem [shape: f32[1,8], index: 1, kind: input, shape index: {}]   ;;  %s3011_s2 = inlined_call_operand.vmem [shape: f32[1,8], index: 2, kind: input, shape index: {}]   ;;  %s3012_s3 = inlined_call_operand.vmem [shape: bf16[72,8], index: 3, kind: input, shape index: {}]   ;;  %s3013_s4 = inlined_call_operand.vmem [shape: f32[2,256,8], index: 4, kind: output, shape index: {0}]   ;;  %s3014_s5 = inlined_call_operand.vmem [shape: f32[2,2,8], index: 5, kind: output, shape index: {1}]  }
   0x1 LB: > { %s2111_s19 = sadd.s32 4294967295, %s2251_s18   ;;  %p2115_p0 = scmp.ge.s32.totalorder %s2251_s18, 1  ;;  %s2251_s18 = sphi %s2292_s18, %s16_s18  }
   0x2   : > { %p190_p1 = scmp.lt.s32.totalorder %s2251_s18, 3 }
   0x4   : > { %p191_p2 = pnand %p2115_p0, %p190_p1 }
   0x5   : > { %vm379_vm0 = vcmask (!%p191_p2), 64512   ;;  %vm382_vm1 = vcmask (!%p191_p2), 58368   ;;  %vm388_vm2 = vcmask (!%p191_p2), 57344   ;;  %v2253_v0 = vmov (!%p191_p2), 0.0   ;;  %p222_p3 = scmp.lt.s32.totalorder (!%p191_p2), %s2111_s19, 1  ;;  %s2254_s28 = smov (!%p191_p2), 8  }
   0x6   : > { %194 = sbr.rel (%p191_p2) target bundleno = 648 (0x288), region = 36  ;;  %380 = vst.msk [vmem:[#allocation2] sm:$0xff] (!%p191_p2), %vm379_vm0, %v2253_v0  ;;  %381 = vst.msk [vmem:[#allocation2 + $0x8] sm:$0xff] (!%p191_p2), %vm379_vm0, %v2253_v0  ;;  %v2350_v1 = vld [vmem:[%s3010_s1] ss:$0 sm:$0xff] (!%p191_p2)  ;;  %s2255_s29 = smov (!%p191_p2), 16  }
   0x7   : > { %383 = vst.msk [vmem:[#allocation2 + $0x10] sm:$0x3] (!%p191_p2), %vm382_vm1, %v2253_v0  ;;  %387 = vst.msk [vmem:[#allocation2 + $0x1a8] sm:$0x3] (!%p191_p2), %vm382_vm1, %v2253_v0  ;;  %v2362_v2 = vld [vmem:[%s3011_s2] ss:$0 sm:$0xff] (!%p191_p2) }
   0x8   : > { %385 = vst.msk [vmem:[#allocation2 + $0x198] sm:$0xff] (!%p191_p2), %vm379_vm0, %v2253_v0  ;;  %386 = vst.msk [vmem:[#allocation2 + $0x1a0] sm:$0xff] (!%p191_p2), %vm379_vm0, %v2253_v0  ;;  %s2256_s30 = smov (!%p191_p2), 24   ;;  %s2257_s6 = smov (!%p191_p2), 32   ;;  %vm1656_vm3 = vcmask (!%p191_p2), 1043456   ;;  %vm634_vm4 = vcmask (!%p191_p2), 130112  }
   0x9   : > { %390 = vst.msk [vmem:[#allocation2 + $0x18] sm:$0x1] (!%p191_p2), %vm388_vm2, %v2253_v0  ;;  %391 = vst.msk [vmem:[#allocation2 + $0x30] sm:$0x1] (!%p191_p2), %vm388_vm2, %v2253_v0  ;;  %s2258_s7 = smov (!%p191_p2), 40   ;;  %s2259_s10 = smov (!%p191_p2), 48  }
   0xa   : > { %392 = vst.msk [vmem:[#allocation2 + $0x48] sm:$0x1] (!%p191_p2), %vm388_vm2, %v2253_v0  ;;  %393 = vst.msk [vmem:[#allocation2 + $0x60] sm:$0x1] (!%p191_p2), %vm388_vm2, %v2253_v0  ;;  %s2260_s15 = smov (!%p191_p2), 56   ;;  %s2261_s21 = smov (!%p191_p2), 64  }
   0xb   : > { %394 = vst.msk [vmem:[#allocation2 + $0x78] sm:$0x1] (!%p191_p2), %vm388_vm2, %v2253_v0  ;;  %395 = vst.msk [vmem:[#allocation2 + $0x90] sm:$0x1] (!%p191_p2), %vm388_vm2, %v2253_v0  ;;  %vm763_vm5 = vcmask (!%p191_p2), 195712   ;;  %vm892_vm6 = vcmask (!%p191_p2), 261312  }
   0xc   : > { %396 = vst.msk [vmem:[#allocation2 + $0xa8] sm:$0x1] (!%p191_p2), %vm388_vm2, %v2253_v0  ;;  %397 = vst.msk [vmem:[#allocation2 + $0xc0] sm:$0x1] (!%p191_p2), %vm388_vm2, %v2253_v0  ;;  %vm1021_vm7 = vcmask (!%p191_p2), 326912   ;;  %vm1150_vm8 = vcmask (!%p191_p2), 392512  }
   0xd   : > { %398 = vst.msk [vmem:[#allocation2 + $0xd8] sm:$0x1] %vm388_vm2, %v2253_v0  ;;  %399 = vst.msk [vmem:[#allocation2 + $0xf0] sm:$0x1] %vm388_vm2, %v2253_v0  ;;  %s3016_s19 = smov (!%p222_p3, %s2111_s19), 1  ;;  %v522_v6 = vld [vmem:[#allocation2 + $0x1] sm:$0xff] }
   0xe   : > { %400 = vst.msk [vmem:[#allocation2 + $0x108] sm:$0x1] %vm388_vm2, %v2253_v0  ;;  %401 = vst.msk [vmem:[#allocation2 + $0x120] sm:$0x1] %vm388_vm2, %v2253_v0  ;;  %s2146_s20 = sshll.u32 %s3016_s19, 8  ;;  %v523_v7 = vld [vmem:[#allocation2 + $0x9] sm:$0xff] }
   0xf   : > { %402 = vst.msk [vmem:[#allocation2 + $0x138] sm:$0x1] %vm388_vm2, %v2253_v0  ;;  %403 = vst.msk [vmem:[#allocation2 + $0x150] sm:$0x1] %vm388_vm2, %v2253_v0  ;;  %s2357_s25 = scalar_lea.vmem %s3009_s0, %s2146_s20  ;;  %v651_v8 = vld [vmem:[#allocation2 + $0x2] sm:$0xff]  ;;  %v554_v12 = vpack.c.bf16 %v523_v7, %v522_v6  ;;  %vm1280_vm9 = vcmask 458112   ;;  %s2866_s26 = scalar_lea.vmem %s3013_s4, %s2146_s20 }
  0x10   : > { %404 = vst.msk [vmem:[#allocation2 + $0x168] sm:$0x1] %vm388_vm2, %v2253_v0  ;;  %405 = vst.msk [vmem:[#allocation2 + $0x180] sm:$0x1] %vm388_vm2, %v2253_v0  ;;  %v237_v3 = vld [vmem:[%s2357_s25] sm:$0xff]  ;;  %v238_v4 = vld [vmem:[%s2357_s25 + $0x8] sm:$0xff] }
  0x11   : > { %408 = vst.msk [vmem:[#allocation2 + $0x29] sm:$0x1] %vm388_vm2, %v2253_v0  ;;  %409 = vst.msk [vmem:[#allocation2 + $0x41] sm:$0x1] %vm388_vm2, %v2253_v0  ;;  %v239_v5 = vld [vmem:[%s2357_s25 + $0x10] sm:$0xff]  ;;  %v276_v9 = vmul.f32 %v2350_v1, %v237_v3  ;;  %v277_v10 = vmul.f32 %v2350_v1, %v238_v4  ;;  %v240_v14 = vld [vmem:[%s2357_s25 + $0x18] sm:$0xff]  ;;  %586 = vrot.lane.b32.xlu0 %v554_v12, %s2254_s28 }
  0x12   : > { %410 = vst.msk [vmem:[#allocation2 + $0x59] sm:$0x1] %vm388_vm2, %v2253_v0  ;;  %411 = vst.msk [vmem:[#allocation2 + $0x71] sm:$0x1] %vm388_vm2, %v2253_v0  ;;  %v278_v11 = vmul.f32 %v2350_v1, %v239_v5  ;;  %v241_v15 = vld [vmem:[%s2357_s25 + $0x20] sm:$0xff]  ;;  %v279_v19 = vmul.f32 %v2350_v1, %v240_v14  ;;  %v242_v20 = vld [vmem:[%s2357_s25 + $0x28] sm:$0xff] }
  0x13   : > { %412 = vst.msk [vmem:[#allocation2 + $0x89] sm:$0x1] %vm388_vm2, %v2253_v0  ;;  %413 = vst.msk [vmem:[#allocation2 + $0xa1] sm:$0x1] %vm388_vm2, %v2253_v0  ;;  %v315_v17 = vadd.f32 %v2362_v2, %v276_v9  ;;  %v316_v18 = vadd.f32 %v2362_v2, %v277_v10  ;;  %v243_v21 = vld [vmem:[%s2357_s25 + $0x30] sm:$0xff]  ;;  %v244_v22 = vld [vmem:[%s2357_s25 + $0x38] sm:$0xff]  ;;  %v280_v24 = vmul.f32 %v2350_v1, %v241_v15 }
  0x14   : > { %414 = vst.msk [vmem:[#allocation2 + $0xb9] sm:$0x1] %vm388_vm2, %v2253_v0  ;;  %415 = vst.msk [vmem:[#allocation2 + $0xd1] sm:$0x1] %vm388_vm2, %v2253_v0  ;;  %v317_v23 = vadd.f32 %v2362_v2, %v278_v11  ;;  %v281_v25 = vmul.f32 %v2350_v1, %v242_v20  ;;  %v282_v26 = vmul.f32 %v2350_v1, %v243_v21  ;;  %v245_v27 = vld [vmem:[%s2357_s25 + $0x40] sm:$0xff]  ;;  %v246_v28 = vld [vmem:[%s2357_s25 + $0x48] sm:$0xff] }
  0x15   : > { %416 = vst.msk [vmem:[#allocation2 + $0xe9] sm:$0x1] %vm388_vm2, %v2253_v0  ;;  %417 = vst.msk [vmem:[#allocation2 + $0x101] sm:$0x1] %vm388_vm2, %v2253_v0  ;;  %v347_v29 = vmax.f32 %v315_v17, 0.0  ;;  %v348_v30 = vmax.f32 %v316_v18, 0.0  ;;  %v318_v31 = vadd.f32 %v2362_v2, %v279_v19  ;;  %v283_v32 = vmul.f32 %v2350_v1, %v244_v22 }
  0x16   : > { %418 = vst.msk [vmem:[#allocation2 + $0x119] sm:$0x1] %vm388_vm2, %v2253_v0  ;;  %419 = vst.msk [vmem:[#allocation2 + $0x131] sm:$0x1] %vm388_vm2, %v2253_v0  ;;  %v247_v33 = vld [vmem:[%s2357_s25 + $0x50] sm:$0xff]  ;;  %v349_v34 = vmax.f32 %v317_v23, 0.0  ;;  %v319_v35 = vadd.f32 %v2362_v2, %v280_v24  ;;  %v320_v36 = vadd.f32 %v2362_v2, %v281_v25  ;;  %v321_v37 = vadd.f32 %v2362_v2, %v282_v26 }
  0x17   : > { %420 = vst.msk [vmem:[#allocation2 + $0x149] sm:$0x1] %vm388_vm2, %v2253_v0  ;;  %421 = vst.msk [vmem:[#allocation2 + $0x161] sm:$0x1] %vm388_vm2, %v2253_v0  ;;  %v248_v38 = vld [vmem:[%s2357_s25 + $0x58] sm:$0xff]  ;;  %v350_v39 = vmax.f32 %v318_v31, 0.0  ;;  %v322_v40 = vadd.f32 %v2362_v2, %v283_v32  ;;  %v284_v41 = vmul.f32 %v2350_v1, %v245_v27  ;;  %v285_v42 = vmul.f32 %v2350_v1, %v246_v28 }
  0x18   : > { %422 = vst.msk [vmem:[#allocation2 + $0x179] sm:$0x1] %vm388_vm2, %v2253_v0  ;;  %423 = vst.msk [vmem:[#allocation2 + $0x191] sm:$0x1] %vm388_vm2, %v2253_v0  ;;  %v249_v43 = vld [vmem:[%s2357_s25 + $0x60] sm:$0xff]  ;;  %v250_v44 = vld [vmem:[%s2357_s25 + $0x68] sm:$0xff]  ;;  %v286_v49 = vmul.f32 %v2350_v1, %v247_v33  ;;  %v287_v54 = vmul.f32 %v2350_v1, %v248_v38 }
  0x19   : > { %424 = vst.msk [vmem:[#allocation2 + $0x1a9] sm:$0x1] %vm388_vm2, %v2253_v0  ;;  %389 = vst.msk [vmem:[#allocation2] sm:$0x1] %vm388_vm2, %v2253_v0  ;;  %v251_v45 = vld [vmem:[%s2357_s25 + $0x70] sm:$0xff]  ;;  %v351_v46 = vmax.f32 %v319_v35, 0.0  ;;  %v323_v52 = vadd.f32 %v2362_v2, %v284_v41  ;;  %v324_v53 = vadd.f32 %v2362_v2, %v285_v42  ;;  %v288_v56 = vmul.f32 %v2350_v1, %v249_v43 }
  0x1a   : > { %407 = vst.msk [vmem:[#allocation2 + $0x11] sm:$0x1] %vm388_vm2, %v2253_v0  ;;  %406 = vst.msk [vmem:[#allocation2 + $0x198] sm:$0x1] %vm388_vm2, %v2253_v0  ;;  %v352_v47 = vmax.f32 %v320_v36, 0.0  ;;  %v353_v48 = vmax.f32 %v321_v37, 0.0  ;;  %v325_v55 = vadd.f32 %v2362_v2, %v286_v49  ;;  %v289_v57 = vmul.f32 %v2350_v1, %v250_v44 }
  0x1b   : > { %426 = vst.msk [vmem:[#allocation2 + $0x19] sm:$0xff] %vm379_vm0, %v347_v29  ;;  %427 = vst.msk [vmem:[#allocation2 + $0x21] sm:$0xff] %vm379_vm0, %v348_v30  ;;  %v252_v50 = vld [vmem:[%s2357_s25 + $0x78] sm:$0xff]  ;;  %v354_v51 = vmax.f32 %v322_v40, 0.0  ;;  %v290_v58 = vmul.f32 %v2350_v1, %v251_v45  ;;  %v459_v59 = vld [vmem:[#allocation2 + $0x8] sm:$0xff]  ;;  %v355_v62 = vmax.f32 %v323_v52, 0.0  ;;  %v326_v0 = vadd.f32 %v2362_v2, %v287_v54 }
  0x1c   : > { %428 = vst.msk [vmem:[#allocation2 + $0x31] sm:$0xff] %vm379_vm0, %v349_v34  ;;  %429 = vst.msk [vmem:[#allocation2 + $0x39] sm:$0xff] %vm379_vm0, %v350_v39  ;;  %v253_v61 = vld [vmem:[%s2357_s25 + $0x80] sm:$0xff]  ;;  %v356_v63 = vmax.f32 %v324_v53, 0.0  ;;  %v291_v3 = vmul.f32 %v2350_v1, %v252_v50  ;;  %v254_v4 = vld [vmem:[%s2357_s25 + $0x88] sm:$0xff]  ;;  %v357_v5 = vmax.f32 %v325_v55, 0.0  ;;  %v327_v6 = vadd.f32 %v2362_v2, %v288_v56 }
  0x1d   : > { %430 = vst.msk [vmem:[#allocation2 + $0x49] sm:$0xff] %vm379_vm0, %v351_v46  ;;  %431 = vst.msk [vmem:[#allocation2 + $0x51] sm:$0xff] %vm379_vm0, %v352_v47  ;;  %v328_v7 = vadd.f32 %v2362_v2, %v289_v57  ;;  %v358_v9 = vmax.f32 %v326_v0, 0.0  ;;  %v292_v12 = vmul.f32 %v2350_v1, %v253_v61  ;;  %v293_v20 = vmul.f32 %v2350_v1, %v254_v4  ;;  %v256_v32 = vld [vmem:[%s2357_s25 + $0x98] sm:$0xff]  ;;  %s2120_s20 = sshll.u32 %s3016_s19, 1 }
  0x1e   : > { %432 = vst.msk [vmem:[#allocation2 + $0x61] sm:$0xff] %vm379_vm0, %v353_v48  ;;  %433 = vst.msk [vmem:[#allocation2 + $0x69] sm:$0xff] %vm379_vm0, %v354_v51  ;;  %v330_v10 = vadd.f32 %v2362_v2, %v291_v3  ;;  %v359_v17 = vmax.f32 %v327_v6, 0.0  ;;  %v295_v42 = vmul.f32 %v2350_v1, %v256_v32  ;;  %v2240_v3 = vld [vmem:[%s3012_s3] sm:$0xff]   ;;  %vm1409_vm10 = vcmask 523712  }
  0x1f   : > { %434 = vst.msk [vmem:[#allocation2 + $0x79] sm:$0xff] %vm379_vm0, %v355_v62  ;;  %435 = vst.msk [vmem:[#allocation2 + $0x81] sm:$0xff] %vm379_vm0, %v356_v63  ;;  %v360_v18 = vmax.f32 %v328_v7, 0.0  ;;  %v331_v26 = vadd.f32 %v2362_v2, %v292_v12  ;;  %v332_v31 = vadd.f32 %v2362_v2, %v293_v20  ;;  %v2241_v7 = vld [vmem:[%s3012_s3 + $0x8] sm:$0xff]   ;;  %2169 = vmatprep.subr.bf16.mxu0 %v2240_v3  ;;  %2211 = vmatprep.subr.bf16.mxu1 %v2240_v3  ;;  %vm1538_vm11 = vcmask 589312  }
  0x20   : > { %v458_v60 = vld [vmem:[#allocation2] sm:$0xff]  ;;  %436 = vst.msk [vmem:[#allocation2 + $0x91] sm:$0xff] %vm379_vm0, %v357_v5  ;;  %437 = vst.msk [vmem:[#allocation2 + $0x99] sm:$0xff] %vm379_vm0, %v358_v9  ;;  %v362_v25 = vmax.f32 %v330_v10, 0.0  ;;  %v334_v47 = vadd.f32 %v2362_v2, %v295_v42  ;;  %2170 = vmatpush3.bf16.msra.mxu0 %v2240_v3  ;;  %v258_v10 = vld [vmem:[%s2357_s25 + $0xa8] sm:$0xff]  ;;  %2216 = vmatpush3.bf16.msra.mxu1 %v2240_v3  ;;  %vm1607_vm12 = vcmask 588800  }
  0x21   : > { %v652_v13 = vld [vmem:[#allocation2 + $0xa] sm:$0xff]  ;;  %v490_v11 = vpack.c.bf16 %v459_v59, %v458_v60  ;;  %438 = vst.msk [vmem:[#allocation2 + $0xa9] sm:$0xff] %vm379_vm0, %v359_v17  ;;  %439 = vst.msk [vmem:[#allocation2 + $0xb1] sm:$0xff] %vm379_vm0, %v360_v18  ;;  %v363_v34 = vmax.f32 %v331_v26, 0.0  ;;  %v364_v38 = vmax.f32 %v332_v31, 0.0  ;;  %v257_v9 = vld [vmem:[%s2357_s25 + $0xa0] sm:$0xff]  ;;  %2171 = vmatprep.subr.bf16.mxu0 %v2241_v7  ;;  %2212 = vmatprep.subr.bf16.mxu1 %v2241_v7 }
  0x22   : > { %v683_v16 = vpack.c.bf16 %v652_v13, %v651_v8  ;;  %v329_v8 = vadd.f32 %v2362_v2, %v290_v58  ;;  %v255_v13 = vld [vmem:[%s2357_s25 + $0x90] sm:$0xff]  ;;  %v524_v14 = vld [vmem:[#allocation2 + $0x19] sm:$0xff]  ;;  %v525_v15 = vld [vmem:[#allocation2 + $0x21] sm:$0xff]  ;;  %441 = vst.msk [vmem:[#allocation2 + $0xc9] sm:$0xff] %vm379_vm0, %v362_v25  ;;  %v366_v55 = vmax.f32 %v334_v47, 0.0  ;;  %v296_v12 = vmul.f32 %v2350_v1, %v257_v9 }
  0x23   : > { %v555_v21 = vpack.c.bf16 %v525_v15, %v524_v14  ;;  %v654_v22 = vld [vmem:[#allocation2 + $0x22] sm:$0xff]  ;;  %v780_v23 = vld [vmem:[#allocation2 + $0x18] sm:$0xff]  ;;  %506 = vst.msk [vmem:[#allocation3] sm:$0xff] %vm379_vm0, %v490_v11  ;;  %v782_v29 = vld [vmem:[#allocation2 + $0x30] sm:$0xff]  ;;  %v294_v35 = vmul.f32 %v2350_v1, %v255_v13  ;;  %v297_v13 = vmul.f32 %v2350_v1, %v258_v10 }
  0x24   : > { %715 = vrot.lane.b32.xlu1 %v683_v16, %s2255_s29  ;;  %v653_v16 = vld [vmem:[#allocation2 + $0x1a] sm:$0xff]  ;;  %v361_v19 = vmax.f32 %v329_v8, 0.0  ;;  %v1170_v36 = vld [vmem:[#allocation2 + $0x48] sm:$0xff]  ;;  %v1171_v37 = vld [vmem:[#allocation2 + $0x50] sm:$0xff]  ;;  %442 = vst.msk [vmem:[#allocation2 + $0xd9] sm:$0xff] %vm379_vm0, %v363_v34  ;;  %v335_v18 = vadd.f32 %v2362_v2, %v296_v12  ;;  %2172 = vmatpush3.bf16.msra.mxu0 %v2241_v7 }
  0x25   : > { %v781_v24 = vld [vmem:[#allocation2 + $0x20] sm:$0xff]  ;;  %v684_v27 = vpack.c.bf16 %v654_v22, %v653_v16  ;;  %v783_v30 = vld [vmem:[#allocation2 + $0x38] sm:$0xff]  ;;  %588 = vrot.lane.b32.xlu0 %v555_v21, %s2254_s28  ;;  %v2443_v41 = vpack.c.bf16 %v1171_v37, %v1170_v36  ;;  %v333_v43 = vadd.f32 %v2362_v2, %v294_v35  ;;  %v787_v45 = vld [vmem:[#allocation2 + $0x68] sm:$0xff]  ;;  %443 = vst.msk [vmem:[#allocation2 + $0xe1] sm:$0xff] %vm379_vm0, %v364_v38 }
  0x26   : > { %v812_v28 = vpack.c.bf16 %v781_v24, %v780_v23  ;;  %440 = vst.msk [vmem:[#allocation2 + $0xc1] sm:$0xff] %vm379_vm0, %v361_v19  ;;  %v813_v33 = vpack.c.bf16 %v783_v30, %v782_v29  ;;  %v911_v39 = vld [vmem:[#allocation2 + $0x31] sm:$0xff]  ;;  %v912_v40 = vld [vmem:[#allocation2 + $0x39] sm:$0xff]  ;;  %445 = vst.msk [vmem:[#allocation2 + $0xf9] sm:$0xff] %vm379_vm0, %v366_v55  ;;  %v336_v19 = vadd.f32 %v2362_v2, %v297_v13  ;;  %v367_v23 = vmax.f32 %v335_v18, 0.0 }
  0x27   : > { %v786_v44 = vld [vmem:[#allocation2 + $0x60] sm:$0xff]  ;;  %v365_v48 = vmax.f32 %v333_v43, 0.0  ;;  %509 = vst.msk [vmem:[#allocation3 + $0x18] sm:$0xff] %vm379_vm0, %v2443_v41  ;;  %v2457_v49 = vpack.c.bf16 %v912_v40, %v911_v39  ;;  %v1174_v50 = vld [vmem:[#allocation2 + $0x78] sm:$0xff]  ;;  %v790_v56 = vld [vmem:[#allocation2 + $0x90] sm:$0xff]  ;;  %2217 = vmatpush3.bf16.msra.mxu1 %v2241_v7 }
  0x28   : > { %717 = vrot.lane.b32.xlu1 %v684_v27, %s2255_s29  ;;  %507 = vst.msk [vmem:[#allocation3 + $0x8] sm:$0xff] %vm379_vm0, %v812_v28  ;;  %508 = vst.msk [vmem:[#allocation3 + $0x10] sm:$0xff] %vm379_vm0, %v813_v33  ;;  %v2451_v46 = vpack.c.bf16 %v787_v45, %v786_v44  ;;  %v1175_v51 = vld [vmem:[#allocation2 + $0x80] sm:$0xff]  ;;  %v1040_v52 = vld [vmem:[#allocation2 + $0x32] sm:$0xff]  ;;  %v368_v24 = vmax.f32 %v336_v19, 0.0 }
  0x29   : > { %844 = vrot.lane.b32.xlu0 %v812_v28, %s2256_s30  ;;  %v1041_v53 = vld [vmem:[#allocation2 + $0x3a] sm:$0xff]  ;;  %v2459_v54 = vpack.c.bf16 %v1175_v51, %v1174_v50  ;;  %444 = vst.msk [vmem:[#allocation2 + $0xf1] sm:$0xff] %vm379_vm0, %v365_v48  ;;  %v1178_v60 = vld [vmem:[#allocation2 + $0xa8] sm:$0xff]  ;;  %v1179_v61 = vld [vmem:[#allocation2 + $0xb0] sm:$0xff] }
  0x2a   : > { %510 = vst.msk [vmem:[#allocation3 + $0x20] sm:$0xff] %vm379_vm0, %v2451_v46  ;;  %v791_v57 = vld [vmem:[#allocation2 + $0x98] sm:$0xff]  ;;  %v2472_v59 = vpack.c.bf16 %v1041_v53, %v1040_v52  ;;  %v2474_v62 = vpack.c.bf16 %v1179_v61, %v1178_v60  ;;  %v1299_v63 = vld [vmem:[#allocation2 + $0x49] sm:$0xff]  ;;  %446 = vst.msk [vmem:[#allocation2 + $0x109] sm:$0xff] %vm379_vm0, %v367_v23 }
  0x2b   : > { %v2465_v58 = vpack.c.bf16 %v791_v57, %v790_v56  ;;  %511 = vst.msk [vmem:[#allocation3 + $0x28] sm:$0xff] %vm379_vm0, %v2459_v54  ;;  %v1300_v0 = vld [vmem:[#allocation2 + $0x51] sm:$0xff]  ;;  %447 = vst.msk [vmem:[#allocation2 + $0x111] sm:$0xff] %vm379_vm0, %v368_v24  ;;  %v2244_v30 = vld [vmem:[%s3012_s3 + $0x20] ss:$0 sps:$4 sm:$0xff]  }
  0x2c   : > { %846 = vrot.lane.b32.xlu1 %v813_v33, %s2256_s30  ;;  %513 = vst.msk [vmem:[#allocation3 + $0x38] sm:$0xff] %vm379_vm0, %v2474_v62  ;;  %v2494_v8 = vpack.c.bf16 %v1300_v0, %v1299_v63  ;;  %v2242_v11 = vld [vmem:[%s3012_s3 + $0x10] sm:$0xff]   ;;  %v260_v15 = vld [vmem:[%s2357_s25 + $0xb8] sm:$0xff]  ;;  %v1658_v31 = vsel %vm1656_vm3, %v2244_v30, 0  ;;  %v915_v34 = vld [vmem:[#allocation2 + $0x61] sm:$0xff] }
  0x2d   : > { %973 = vrot.lane.b32.xlu0 %v555_v21, %s2257_s6  ;;  %512 = vst.msk [vmem:[#allocation3 + $0x30] sm:$0xff] %vm379_vm0, %v2465_v58  ;;  %v259_v14 = vld [vmem:[%s2357_s25 + $0xb0] sm:$0xff]  ;;  %v299_v21 = vmul.f32 %v2350_v1, %v260_v15  ;;  %2173 = vmatprep.subr.bf16.mxu0 %v2242_v11  ;;  %v2243_v22 = vld [vmem:[%s3012_s3 + $0x18] sm:$0xff]   ;;  %v261_v38 = vld [vmem:[%s2357_s25 + $0xc0] sm:$0xff] }
  0x2e   : > { %v1428_v16 = vld [vmem:[#allocation2 + $0x4a] sm:$0xff]  ;;  %v1429_v17 = vld [vmem:[#allocation2 + $0x52] sm:$0xff]  ;;  %v298_v20 = vmul.f32 %v2350_v1, %v259_v14  ;;  %2213 = vmatprep.subr.bf16.mxu1 %v2242_v11  ;;  %2174 = vmatpush3.bf16.msra.mxu0 %v2242_v11  ;;  %v300_v42 = vmul.f32 %v2350_v1, %v261_v38  ;;  %v1304_v55 = vld [vmem:[#allocation2 + $0x81] sm:$0xff] }
  0x2f   : > { %v1459_v26 = vpack.c.bf16 %v1429_v17, %v1428_v16  ;;  %2175 = vmatprep.subr.bf16.mxu0 %v2243_v22  ;;  %2218 = vmatpush3.bf16.msra.mxu1 %v2242_v11  ;;  %v916_v35 = vld [vmem:[#allocation2 + $0x69] sm:$0xff]  ;;  %v1303_v53 = vld [vmem:[#allocation2 + $0x79] sm:$0xff]  ;;  %v919_v13 = vld [vmem:[#allocation2 + $0x91] sm:$0xff] }
  0x30   : > { %975 = vrot.lane.b32.xlu1 %v2457_v49, %s2257_s6  ;;  %v798_v4 = vld [vmem:[#allocation2 + $0xf0] sm:$0xff]  ;;  %v799_v5 = vld [vmem:[#allocation2 + $0xf8] sm:$0xff]  ;;  %v337_v25 = vadd.f32 %v2362_v2, %v298_v20  ;;  %2214 = vmatprep.subr.bf16.mxu1 %v2243_v22  ;;  %v262_v39 = vld [vmem:[%s2357_s25 + $0xc8] sm:$0xff]  ;;  %v944_v45 = vpack.c.bf16 %v916_v35, %v915_v34  ;;  %v339_v47 = vadd.f32 %v2362_v2, %v300_v42 }
  0x31   : > { %1102 = vrot.lane.b32.xlu0 %v684_v27, %s2258_s7  ;;  %v2487_v6 = vpack.c.bf16 %v799_v5, %v798_v4  ;;  %v338_v27 = vadd.f32 %v2362_v2, %v299_v21  ;;  %v1186_v32 = vld [vmem:[#allocation2 + $0x108] sm:$0xff]  ;;  %v301_v43 = vmul.f32 %v2350_v1, %v262_v39  ;;  %v263_v61 = vld [vmem:[%s2357_s25 + $0xd0] sm:$0xff]  ;;  %v264_v63 = vld [vmem:[%s2357_s25 + $0xd8] sm:$0xff] }
  0x32   : > { %v369_v28 = vmax.f32 %v337_v25, 0.0  ;;  %2176 = vmatpush3.bf16.msra.mxu0 %v2243_v22  ;;  %v1045_v50 = vld [vmem:[#allocation2 + $0x6a] sm:$0xff]  ;;  %v371_v51 = vmax.f32 %v339_v47, 0.0  ;;  %v1432_v0 = vld [vmem:[#allocation2 + $0x7a] sm:$0xff]  ;;  %v302_v3 = vmul.f32 %v2350_v1, %v263_v61  ;;  %v303_v4 = vmul.f32 %v2350_v1, %v264_v63  ;;  %v1048_v25 = vld [vmem:[#allocation2 + $0x92] sm:$0xff] }
  0x33   : > { %516 = vst.msk [vmem:[#allocation3 + $0x50] sm:$0xff] %vm379_vm0, %v2487_v6  ;;  %v370_v29 = vmax.f32 %v338_v27, 0.0  ;;  %2221 = vmatprep.subr.msk.bf16.mxu0 %vm1656_vm3, %v2244_v30  ;;  %2219 = vmatpush3.bf16.msra.mxu1 %v2243_v22  ;;  %v340_v48 = vadd.f32 %v2362_v2, %v301_v43  ;;  %v265_v11 = vld [vmem:[%s2357_s25 + $0xe0] sm:$0xff]  ;;  %v266_v12 = vld [vmem:[%s2357_s25 + $0xe8] sm:$0xff]  ;;  %v268_v34 = vld [vmem:[%s2357_s25 + $0xf8] sm:$0xff] }
  0x34   : > { %1104 = vrot.lane.b32.xlu1 %v2472_v59, %s2258_s7  ;;  %448 = vst.msk [vmem:[#allocation2 + $0x121] sm:$0xff] %vm379_vm0, %v369_v28  ;;  %2222 = vmatprep.subr.msk.bf16.mxu1 %vm1656_vm3, %v2244_v30  ;;  %450 = vst.msk [vmem:[#allocation2 + $0x139] sm:$0xff] %vm379_vm0, %v371_v51  ;;  %v341_v5 = vadd.f32 %v2362_v2, %v302_v3  ;;  %v342_v7 = vadd.f32 %v2362_v2, %v303_v4  ;;  %v920_v16 = vld [vmem:[#allocation2 + $0x99] sm:$0xff]  ;;  %v1307_v27 = vld [vmem:[#allocation2 + $0xa9] sm:$0xff] }
  0x35   : > { %1232 = vrot.lane.b32.xlu0 %v813_v33, %s2259_s10  ;;  %449 = vst.msk [vmem:[#allocation2 + $0x129] sm:$0xff] %vm379_vm0, %v370_v29  ;;  %v1187_v33 = vld [vmem:[#allocation2 + $0x110] sm:$0xff]  ;;  %v372_v52 = vmax.f32 %v340_v48, 0.0  ;;  %v304_v14 = vmul.f32 %v2350_v1, %v265_v11  ;;  %v305_v15 = vmul.f32 %v2350_v1, %v266_v12  ;;  %v946_v22 = vpack.c.bf16 %v920_v16, %v919_v13  ;;  %v795_v47 = vld [vmem:[#allocation2 + $0xc8] sm:$0xff]  ;;  %v1183_v61 = vld [vmem:[#allocation2 + $0xe0] sm:$0xff] }
  0x36   : > { %v2537_v36 = vpack.c.bf16 %v1187_v33, %v1186_v32  ;;  %2178 = vmatpush3.bf16.msra.mxu0 %v1658_v31  ;;  %v373_v9 = vmax.f32 %v341_v5, 0.0  ;;  %v374_v10 = vmax.f32 %v342_v7, 0.0  ;;  %v1308_v28 = vld [vmem:[#allocation2 + $0xb1] sm:$0xff]  ;;  %v307_v39 = vmul.f32 %v2350_v1, %v268_v34  ;;  %v923_v48 = vld [vmem:[#allocation2 + $0xc1] sm:$0xff]  ;;  %v1311_v4 = vld [vmem:[#allocation2 + $0xd9] sm:$0xff] }
  0x37   : > { %2220 = vmatpush3.bf16.msra.mxu1 %v1658_v31  ;;  %451 = vst.msk [vmem:[#allocation2 + $0x141] sm:$0xff] %vm379_vm0, %v372_v52  ;;  %v343_v20 = vadd.f32 %v2362_v2, %v304_v14  ;;  %v344_v21 = vadd.f32 %v2362_v2, %v305_v15  ;;  %v1334_v32 = vpack.c.bf16 %v1308_v28, %v1307_v27  ;;  %v267_v33 = vld [vmem:[%s2357_s25 + $0xf0] sm:$0xff]  ;;  %v1052_v52 = vld [vmem:[#allocation2 + $0xc2] sm:$0xff]  ;;  %v476_v63 = vld [vmem:[#allocation2 + $0xd8] sm:$0xff] }
  0x38   : > { %1234 = vrot.lane.b32.xlu1 %v2443_v41, %s2259_s10  ;;  %517 = vst.msk [vmem:[#allocation3 + $0x58] sm:$0xff] %vm379_vm0, %v2537_v36  ;;  %452 = vst.msk [vmem:[#allocation2 + $0x151] sm:$0xff] %vm379_vm0, %v373_v9  ;;  %v1436_v35 = vld [vmem:[#allocation2 + $0xaa] sm:$0xff]  ;;  %v306_v38 = vmul.f32 %v2350_v1, %v267_v33  ;;  %v794_v1 = vld [vmem:[#allocation2 + $0xc0] sm:$0xff] }
  0x39   : > { %1361 = vrot.lane.b32.xlu0 %v2457_v49, %s2260_s15  ;;  %453 = vst.msk [vmem:[#allocation2 + $0x159] sm:$0xff] %vm379_vm0, %v374_v10  ;;  %v375_v23 = vmax.f32 %v343_v20, 0.0  ;;  %v376_v24 = vmax.f32 %v344_v21, 0.0  ;;  %v1312_v5 = vld [vmem:[#allocation2 + $0xe1] sm:$0xff]  ;;  %v927_v21 = vld [vmem:[#allocation2 + $0xf1] sm:$0xff]  ;;  %v1315_v33 = vld [vmem:[#allocation2 + $0x109] sm:$0xff] }
  0x3a   : > { %v1336_v7 = vpack.c.bf16 %v1312_v5, %v1311_v4  ;;  %v1440_v10 = vld [vmem:[#allocation2 + $0xda] sm:$0xff]  ;;  %v1441_v11 = vld [vmem:[#allocation2 + $0xe2] sm:$0xff]  ;;  %v1316_v34 = vld [vmem:[#allocation2 + $0x111] sm:$0xff] }
  0x3b   : > { %v802_v37 = vld [vmem:[#allocation2 + $0x120] sm:$0xff]  ;;  %v1190_v56 = vld [vmem:[#allocation2 + $0x138] sm:$0xff]  ;;  %454 = vst.msk [vmem:[#allocation2 + $0x169] sm:$0xff] %vm379_vm0, %v375_v23  ;;  %455 = vst.msk [vmem:[#allocation2 + $0x171] sm:$0xff] %vm379_vm0, %v376_v24  ;;  %v1465_v14 = vpack.c.bf16 %v1441_v11, %v1440_v10 }
  0x3c   : > { %1363 = vrot.lane.b32.xlu1 %v2494_v8, %s2260_s15  ;;  %v803_v40 = vld [vmem:[#allocation2 + $0x128] sm:$0xff] }
  0x3d   : > { %1490 = vrot.lane.b32.xlu0 %v2472_v59, %s2261_s21  ;;  %v2547_v44 = vpack.c.bf16 %v803_v40, %v802_v37  ;;  %v1437_v37 = vld [vmem:[#allocation2 + $0xb2] sm:$0xff]  ;;  %v346_v40 = vadd.f32 %v2362_v2, %v307_v39 }
  0x3e   : > { %v1191_v57 = vld [vmem:[#allocation2 + $0x140] sm:$0xff]  ;;  %v1463_v42 = vpack.c.bf16 %v1437_v37, %v1436_v35  ;;  %v1338_v37 = vpack.c.bf16 %v1316_v34, %v1315_v33 }
  0x3f   : > { %518 = vst.msk [vmem:[#allocation3 + $0x60] sm:$0xff] %vm379_vm0, %v2547_v44  ;;  %v2566_v60 = vpack.c.bf16 %v1191_v57, %v1190_v56  ;;  %v806_v17 = vld [vmem:[#allocation2 + $0x150] sm:$0xff]  ;;  %v475_v56 = vld [vmem:[#allocation2 + $0xc8] sm:$0xff] }
  0x40   : > { %590 = vrot.lane.b32.xlu1 %v2457_v49, %s2254_s28  ;;  %v1044_v49 = vld [vmem:[#allocation2 + $0x62] sm:$0xff]  ;;  %v807_v18 = vld [vmem:[#allocation2 + $0x158] sm:$0xff] }
  0x41   : > { %1492 = vrot.lane.b32.xlu0 %v1459_v26, %s2261_s21  ;;  %519 = vst.msk [vmem:[#allocation3 + $0x68] sm:$0xff] %vm379_vm0, %v2566_v60  ;;  %v2590_v19 = vpack.c.bf16 %v807_v18, %v806_v17  ;;  %v1449_v10 = vld [vmem:[#allocation2 + $0x142] sm:$0xff] }
  0x42   : > { %v1194_v29 = vld [vmem:[#allocation2 + $0x168] sm:$0xff]  ;;  %v1195_v30 = vld [vmem:[#allocation2 + $0x170] sm:$0xff] }
  0x43   : > { %520 = vst.msk [vmem:[#allocation3 + $0x70] sm:$0xff] %vm379_vm0, %v2590_v19  ;;  %v2606_v31 = vpack.c.bf16 %v1195_v30, %v1194_v29 }
  0x44   : > { %592 = vrot.lane.b32.xlu1 %v2494_v8, %s2254_s28 }
  0x45   : > { %719 = vrot.lane.b32.xlu0 %v2472_v59, %s2255_s29  ;;  %v1332_v59 = vpack.c.bf16 %v1304_v55, %v1303_v53  ;;  %521 = vst.msk [vmem:[#allocation3 + $0x78] sm:$0xff] %vm379_vm0, %v2606_v31  ;;  %v474_v55 = vld [vmem:[#allocation2 + $0xc0] sm:$0xff] }
  0x48   : > { %721 = vrot.lane.b32.xlu1 %v1459_v26, %s2255_s29 }
  0x49   : > { %848 = vrot.lane.b32.xlu0 %v2443_v41, %s2256_s30  ;;  %v1073_v41 = vpack.c.bf16 %v1045_v50, %v1044_v49  ;;  %v924_v49 = vld [vmem:[#allocation2 + $0xc9] sm:$0xff] }
  0x4a   : > { %v948_v50 = vpack.c.bf16 %v924_v49, %v923_v48 }
  0x4c   : > { %850 = vrot.lane.b32.xlu1 %v2451_v46, %s2256_s30 }
  0x4d   : > { %977 = vrot.lane.b32.xlu0 %v2494_v8, %s2257_s6 }
  0x50   : > { %979 = vrot.lane.b32.xlu1 %v944_v45, %s2257_s6 }
  0x51   : > { %1106 = vrot.lane.b32.xlu0 %v1459_v26, %s2258_s7  ;;  %v1049_v26 = vld [vmem:[#allocation2 + $0x9a] sm:$0xff] }
  0x54   : > { %1108 = vrot.lane.b32.xlu1 %v1073_v41, %s2258_s7 }
  0x55   : > { %1236 = vrot.lane.b32.xlu0 %v2451_v46, %s2259_s10  ;;  %v1433_v46 = vld [vmem:[#allocation2 + $0x82] sm:$0xff] }
  0x56   : > { %v1461_v8 = vpack.c.bf16 %v1433_v46, %v1432_v0  ;;  %v477_v0 = vld [vmem:[#allocation2 + $0xe0] sm:$0xff] }
  0x57   : > { %v499_v3 = vpack.c.bf16 %v477_v0, %v476_v63  ;;  %v1319_v0 = vld [vmem:[#allocation2 + $0x139] sm:$0xff] }
  0x58   : > { %1238 = vrot.lane.b32.xlu1 %v2459_v54, %s2259_s10 }
  0x59   : > { %1365 = vrot.lane.b32.xlu0 %v944_v45, %s2260_s15  ;;  %515 = vst.msk [vmem:[#allocation3 + $0x48] sm:$0xff] %vm379_vm0, %v499_v3 }
  0x5c   : > { %1367 = vrot.lane.b32.xlu1 %v1332_v59, %s2260_s15 }
  0x5d   : > { %1494 = vrot.lane.b32.xlu0 %v1073_v41, %s2261_s21 }
  0x60   : > { %594 = vrot.lane.b32.xlu1 %v944_v45, %s2254_s28  ;;  %v378_v45 = vmax.f32 %v346_v40, 0.0  ;;  %v1444_v40 = vld [vmem:[#allocation2 + $0x10a] sm:$0xff] }
  0x61   : > { %1496 = vrot.lane.b32.xlu0 %v1461_v8, %s2261_s21 }
  0x62   : > { %457 = vst.msk [vmem:[#allocation2 + $0x189] sm:$0xff] %vm379_vm0, %v378_v45 }
  0x64   : > { %596 = vrot.lane.b32.xlu1 %v1332_v59, %s2254_s28 }
  0x65   : > { %723 = vrot.lane.b32.xlu0 %v1073_v41, %s2255_s29  ;;  %v1053_v41 = vld [vmem:[#allocation2 + $0xca] sm:$0xff] }
  0x66   : > { %v1077_v57 = vpack.c.bf16 %v1053_v41, %v1052_v52  ;;  %v932_v52 = vld [vmem:[#allocation2 + $0x129] sm:$0xff] }
  0x68   : > { %725 = vrot.lane.b32.xlu1 %v1461_v8, %s2255_s29 }
  0x69   : > { %852 = vrot.lane.b32.xlu0 %v2459_v54, %s2256_s30  ;;  %v1075_v54 = vpack.c.bf16 %v1049_v26, %v1048_v25  ;;  %v1056_v26 = vld [vmem:[#allocation2 + $0xf2] sm:$0xff] }
  0x6c   : > { %854 = vrot.lane.b32.xlu1 %v2465_v58, %s2256_s30 }
  0x6d   : > { %981 = vrot.lane.b32.xlu0 %v1332_v59, %s2257_s6  ;;  %v1182_v59 = vld [vmem:[#allocation2 + $0xd8] sm:$0xff] }
  0x6e   : > { %v1207_v46 = vpack.c.bf16 %v1183_v61, %v1182_v59 }
  0x70   : > { %983 = vrot.lane.b32.xlu1 %v946_v22, %s2257_s6 }
  0x71   : > { %1110 = vrot.lane.b32.xlu0 %v1461_v8, %s2258_s7 }
  0x74   : > { %1112 = vrot.lane.b32.xlu1 %v1075_v54, %s2258_s7 }
  0x75   : > { %1240 = vrot.lane.b32.xlu0 %v2465_v58, %s2259_s10  ;;  %v345_v58 = vadd.f32 %v2362_v2, %v306_v38  ;;  %v819_v2 = vpack.c.bf16 %v795_v47, %v794_v1 }
  0x77   : > { %v377_v43 = vmax.f32 %v345_v58, 0.0 }
  0x78   : > { %1242 = vrot.lane.b32.xlu1 %v2474_v62, %s2259_s10 }
  0x79   : > { %1369 = vrot.lane.b32.xlu0 %v946_v22, %s2260_s15  ;;  %456 = vst.msk [vmem:[#allocation2 + $0x181] sm:$0xff] %vm379_vm0, %v377_v43 }
  0x7c   : > { %1371 = vrot.lane.b32.xlu1 %v1334_v32, %s2260_s15 }
  0x7d   : > { %1498 = vrot.lane.b32.xlu0 %v1075_v54, %s2261_s21 }
  0x80   : > { %598 = vrot.lane.b32.xlu1 %v946_v22, %s2254_s28  ;;  %v928_v22 = vld [vmem:[#allocation2 + $0xf9] sm:$0xff] }
  0x81   : > { %1500 = vrot.lane.b32.xlu0 %v1463_v42, %s2261_s21  ;;  %v950_v24 = vpack.c.bf16 %v928_v22, %v927_v21  ;;  %v936_v21 = vld [vmem:[#allocation2 + $0x159] sm:$0xff] }
  0x83   : > { %v587_v51 = vpop.permute.xlu0 %586 }
  0x84   : > { %600 = vrot.lane.b32.xlu1 %v1334_v32, %s2254_s28  ;;  %635 = vst.msk [vmem:[#allocation3] sm:$0xff] %vm634_vm4, %v587_v51  ;;  %v931_v51 = vld [vmem:[#allocation2 + $0x121] sm:$0xff] }
  0x85   : > { %727 = vrot.lane.b32.xlu0 %v1075_v54, %s2255_s29  ;;  %v1057_v54 = vld [vmem:[#allocation2 + $0xfa] sm:$0xff] }
  0x86   : > { %v1079_v28 = vpack.c.bf16 %v1057_v54, %v1056_v26  ;;  %v1065_v26 = vld [vmem:[#allocation2 + $0x15a] sm:$0xff] }
  0x88   : > { %729 = vrot.lane.b32.xlu1 %v1463_v42, %s2255_s29 }
  0x89   : > { %856 = vrot.lane.b32.xlu0 %v2474_v62, %s2256_s30  ;;  %v498_v62 = vpack.c.bf16 %v475_v56, %v474_v55  ;;  %v1060_v56 = vld [vmem:[#allocation2 + $0x122] sm:$0xff] }
  0x8b   : > { %514 = vst.msk [vmem:[#allocation3 + $0x40] sm:$0xff] %vm379_vm0, %v498_v62 }
  0x8c   : > { %858 = vrot.lane.b32.xlu1 %v819_v2, %s2256_s30 }
  0x8d   : > { %985 = vrot.lane.b32.xlu0 %v1334_v32, %s2257_s6 }
  0x90   : > { %987 = vrot.lane.b32.xlu1 %v948_v50, %s2257_s6 }
  0x91   : > { %1114 = vrot.lane.b32.xlu0 %v1463_v42, %s2258_s7 }
  0x94   : > { %1116 = vrot.lane.b32.xlu1 %v1077_v57, %s2258_s7 }
  0x95   : > { %1244 = vrot.lane.b32.xlu0 %v819_v2, %s2259_s10 }
  0x96   : > { %v716_v53 = vpop.permute.xlu1 %715 }
  0x97   : > { %764 = vst.msk [vmem:[#allocation3] sm:$0xff] %vm763_vm5, %v716_v53  ;;  %v589_v8 = vpop.permute.xlu0 %588  ;;  %v952_v53 = vpack.c.bf16 %v932_v52, %v931_v51  ;;  %v939_v51 = vld [vmem:[#allocation2 + $0x181] sm:$0xff]  ;;  %v940_v52 = vld [vmem:[#allocation2 + $0x189] sm:$0xff] }
  0x98   : > { %1246 = vrot.lane.b32.xlu1 %v1207_v46, %s2259_s10  ;;  %636 = vst.msk [vmem:[#allocation3 + $0x8] sm:$0xff] %vm634_vm4, %v589_v8 }
  0x99   : > { %1373 = vrot.lane.b32.xlu0 %v948_v50, %s2260_s15 }
  0x9a   : > { %v718_v9 = vpop.permute.xlu1 %717 }
  0x9b   : > { %765 = vst.msk [vmem:[#allocation3 + $0x8] sm:$0xff] %vm763_vm5, %v718_v9  ;;  %v845_v12 = vpop.permute.xlu0 %844  ;;  %v1448_v9 = vld [vmem:[#allocation2 + $0x13a] sm:$0xff] }
  0x9c   : > { %1375 = vrot.lane.b32.xlu1 %v1336_v7, %s2260_s15  ;;  %893 = vst.msk [vmem:[#allocation3] sm:$0xff] %vm892_vm6, %v845_v12 }
  0x9d   : > { %1502 = vrot.lane.b32.xlu0 %v1077_v57, %s2261_s21 }
  0x9e   : > { %v847_v13 = vpop.permute.xlu1 %846 }
  0x9f   : > { %894 = vst.msk [vmem:[#allocation3 + $0x8] sm:$0xff] %vm892_vm6, %v847_v13  ;;  %v974_v15 = vpop.permute.xlu0 %973  ;;  %v1469_v13 = vpack.c.bf16 %v1449_v10, %v1448_v9  ;;  %v1456_v10 = vld [vmem:[#allocation2 + $0x19a] sm:$0xff] }
  0xa0   : > { %602 = vrot.lane.b32.xlu1 %v948_v50, %s2254_s28  ;;  %1022 = vst.msk [vmem:[#allocation3] sm:$0xff] %vm1021_vm7, %v974_v15 }
  0xa1   : > { %1504 = vrot.lane.b32.xlu0 %v1465_v14, %s2261_s21 }
  0xa2   : > { %v976_v16 = vpop.permute.xlu1 %975 }
  0xa3   : > { %1023 = vst.msk [vmem:[#allocation3 + $0x8] sm:$0xff] %vm1021_vm7, %v976_v16  ;;  %v1103_v17 = vpop.permute.xlu0 %1102 }
  0xa4   : > { %604 = vrot.lane.b32.xlu1 %v1336_v7, %s2254_s28  ;;  %1151 = vst.msk [vmem:[#allocation3] sm:$0xff] %vm1150_vm8, %v1103_v17 }
  0xa5   : > { %731 = vrot.lane.b32.xlu0 %v1077_v57, %s2255_s29  ;;  %v1061_v57 = vld [vmem:[#allocation2 + $0x12a] sm:$0xff] }
  0xa6   : > { %v1105_v18 = vpop.permute.xlu1 %1104  ;;  %v1081_v59 = vpack.c.bf16 %v1061_v57, %v1060_v56  ;;  %v1068_v56 = vld [vmem:[#allocation2 + $0x182] sm:$0xff]  ;;  %v1069_v57 = vld [vmem:[#allocation2 + $0x18a] sm:$0xff] }
  0xa7   : > { %1152 = vst.msk [vmem:[#allocation3 + $0x8] sm:$0xff] %vm1150_vm8, %v1105_v18  ;;  %v1233_v20 = vpop.permute.xlu0 %1232 }
  0xa8   : > { %733 = vrot.lane.b32.xlu1 %v1465_v14, %s2255_s29  ;;  %1281 = vst.msk [vmem:[#allocation3] sm:$0xff] %vm1280_vm9, %v1233_v20  ;;  %v935_v20 = vld [vmem:[#allocation2 + $0x151] sm:$0xff] }
  0xa9   : > { %860 = vrot.lane.b32.xlu0 %v1207_v46, %s2256_s30  ;;  %v1320_v46 = vld [vmem:[#allocation2 + $0x141] sm:$0xff] }
  0xaa   : > { %v1235_v23 = vpop.permute.xlu1 %1234  ;;  %v1340_v4 = vpack.c.bf16 %v1320_v46, %v1319_v0 }
  0xab   : > { %1282 = vst.msk [vmem:[#allocation3 + $0x8] sm:$0xff] %vm1280_vm9, %v1235_v23  ;;  %v1362_v25 = vpop.permute.xlu0 %1361  ;;  %v954_v23 = vpack.c.bf16 %v936_v21, %v935_v20 }
  0xac   : > { %862 = vrot.lane.b32.xlu1 %v2487_v6, %s2256_s30  ;;  %1410 = vst.msk [vmem:[#allocation3] sm:$0xff] %vm1409_vm10, %v1362_v25  ;;  %v1064_v25 = vld [vmem:[#allocation2 + $0x152] sm:$0xff] }
  0xad   : > { %989 = vrot.lane.b32.xlu0 %v1336_v7, %s2257_s6 }
  0xae   : > { %v1364_v27 = vpop.permute.xlu1 %1363 }
  0xaf   : > { %1411 = vst.msk [vmem:[#allocation3 + $0x8] sm:$0xff] %vm1409_vm10, %v1364_v27  ;;  %v1491_v29 = vpop.permute.xlu0 %1490  ;;  %v1083_v27 = vpack.c.bf16 %v1065_v26, %v1064_v25 }
  0xb0   : > { %991 = vrot.lane.b32.xlu1 %v950_v24, %s2257_s6  ;;  %1539 = vst.msk [vmem:[#allocation3] sm:$0xff] %vm1538_vm11, %v1491_v29 }
  0xb1   : > { %1118 = vrot.lane.b32.xlu0 %v1465_v14, %s2258_s7 }
  0xb2   : > { %v591_v30 = vpop.permute.xlu1 %590 }
  0xb3   : > { %637 = vst.msk [vmem:[#allocation3 + $0x10] sm:$0xff] %vm634_vm4, %v591_v30  ;;  %v1493_v32 = vpop.permute.xlu0 %1492  ;;  %v1323_v30 = vld [vmem:[#allocation2 + $0x169] sm:$0xff] }
  0xb4   : > { %1120 = vrot.lane.b32.xlu1 %v1079_v28, %s2258_s7  ;;  %1540 = vst.msk [vmem:[#allocation3 + $0x8] sm:$0xff] %vm1538_vm11, %v1493_v32  ;;  %v1324_v32 = vld [vmem:[#allocation2 + $0x171] sm:$0xff] }
  0xb5   : > { %1248 = vrot.lane.b32.xlu0 %v2487_v6, %s2259_s10  ;;  %v1445_v6 = vld [vmem:[#allocation2 + $0x112] sm:$0xff]  ;;  %v1342_v34 = vpack.c.bf16 %v1324_v32, %v1323_v30 }
  0xb6   : > { %v593_v35 = vpop.permute.xlu1 %592  ;;  %v1467_v1 = vpack.c.bf16 %v1445_v6, %v1444_v40 }
  0xb7   : > { %638 = vst.msk [vmem:[#allocation3 + $0x18] sm:$0xff] %vm634_vm4, %v593_v35  ;;  %v720_v38 = vpop.permute.xlu0 %719  ;;  %v1555_v39 = vld [vmem:[#allocation3] sm:$0xff] }
  0xb8   : > { %1250 = vrot.lane.b32.xlu1 %v2537_v36, %s2259_s10  ;;  %766 = vst.msk [vmem:[#allocation3 + $0x10] sm:$0xff] %vm763_vm5, %v720_v38  ;;  %2179 = vmatprep.mubr.msk.bf16.mxu0 %vm1607_vm12, %v1555_v39  ;;  %v1452_v39 = vld [vmem:[#allocation2 + $0x16a] sm:$0xff] }
  0xb9   : > { %1377 = vrot.lane.b32.xlu0 %v950_v24, %s2260_s15 }
  0xba   : > { %v722_v58 = vpop.permute.xlu1 %721 }
  0xbb   : > { %767 = vst.msk [vmem:[#allocation3 + $0x18] sm:$0xff] %vm763_vm5, %v722_v58  ;;  %v849_v42 = vpop.permute.xlu0 %848  ;;  %v1556_v43 = vld [vmem:[#allocation3 + $0x8] sm:$0xff] }
  0xbc   : > { %1379 = vrot.lane.b32.xlu1 %v1338_v37, %s2260_s15  ;;  %895 = vst.msk [vmem:[#allocation3 + $0x10] sm:$0xff] %vm892_vm6, %v849_v42  ;;  %2180 = vmatmul.mubr.msk.bf16.vlgmr.msra.gmra.mrb[0].mxu0 %vm1607_vm12, %v1556_v43  ;;  %v1453_v58 = vld [vmem:[#allocation2 + $0x172] sm:$0xff] }
  0xbd   : > { %1506 = vrot.lane.b32.xlu0 %v1079_v28, %s2261_s21  ;;  %v1471_v42 = vpack.c.bf16 %v1453_v58, %v1452_v39 }
  0xbe   : > { %v851_v45 = vpop.permute.xlu1 %850 }
  0xbf   : > { %896 = vst.msk [vmem:[#allocation3 + $0x18] sm:$0xff] %vm892_vm6, %v851_v45  ;;  %v978_v47 = vpop.permute.xlu0 %977 }
  0xc0   : > { %606 = vrot.lane.b32.xlu1 %v950_v24, %s2254_s28  ;;  %1024 = vst.msk [vmem:[#allocation3 + $0x10] sm:$0xff] %vm1021_vm7, %v978_v47  ;;  %v810_v47 = vld [vmem:[#allocation2 + $0x180] sm:$0xff] }
  0xc1   : > { %1508 = vrot.lane.b32.xlu0 %v1467_v1, %s2261_s21 }
  0xc2   : > { %v980_v2 = vpop.permute.xlu1 %979 }
  0xc3   : > { %1025 = vst.msk [vmem:[#allocation3 + $0x18] sm:$0xff] %vm1021_vm7, %v980_v2  ;;  %v1107_v48 = vpop.permute.xlu0 %1106  ;;  %v811_v2 = vld [vmem:[#allocation2 + $0x188] sm:$0xff] }
  0xc4   : > { %608 = vrot.lane.b32.xlu1 %v1338_v37, %s2254_s28  ;;  %1153 = vst.msk [vmem:[#allocation3 + $0x10] sm:$0xff] %vm1150_vm8, %v1107_v48 }
  0xc5   : > { %735 = vrot.lane.b32.xlu0 %v1079_v28, %s2255_s29 }
  0xc6   : > { %v1109_v49 = vpop.permute.xlu1 %1108 }
  0xc7   : > { %1154 = vst.msk [vmem:[#allocation3 + $0x18] sm:$0xff] %vm1150_vm8, %v1109_v49  ;;  %v1237_v50 = vpop.permute.xlu0 %1236  ;;  %v827_v49 = vpack.c.bf16 %v811_v2, %v810_v47 }
  0xc8   : > { %737 = vrot.lane.b32.xlu1 %v1467_v1, %s2255_s29  ;;  %1283 = vst.msk [vmem:[#allocation3 + $0x10] sm:$0xff] %vm1280_vm9, %v1237_v50 }
  0xc9   : > { %864 = vrot.lane.b32.xlu0 %v2537_v36, %s2256_s30 }
  0xca   : > { %v1239_v41 = vpop.permute.xlu1 %1238 }
  0xcb   : > { %1284 = vst.msk [vmem:[#allocation3 + $0x18] sm:$0xff] %vm1280_vm9, %v1239_v41  ;;  %v1366_v55 = vpop.permute.xlu0 %1365 }
  0xcc   : > { %866 = vrot.lane.b32.xlu1 %v2547_v44, %s2256_s30  ;;  %1412 = vst.msk [vmem:[#allocation3 + $0x10] sm:$0xff] %vm1409_vm10, %v1366_v55 }
  0xcd   : > { %993 = vrot.lane.b32.xlu0 %v1338_v37, %s2257_s6 }
  0xce   : > { %v1368_v62 = vpop.permute.xlu1 %1367 }
  0xcf   : > { %1413 = vst.msk [vmem:[#allocation3 + $0x18] sm:$0xff] %vm1409_vm10, %v1368_v62  ;;  %v1495_v61 = vpop.permute.xlu0 %1494 }
  0xd0   : > { %995 = vrot.lane.b32.xlu1 %v952_v53, %s2257_s6  ;;  %1541 = vst.msk [vmem:[#allocation3 + $0x10] sm:$0xff] %vm1538_vm11, %v1495_v61 }
  0xd1   : > { %1122 = vrot.lane.b32.xlu0 %v1467_v1, %s2258_s7 }
  0xd2   : > { %v595_v36 = vpop.permute.xlu1 %594 }
  0xd3   : > { %639 = vst.msk [vmem:[#allocation3 + $0x20] sm:$0xff] %vm634_vm4, %v595_v36  ;;  %v1497_v63 = vpop.permute.xlu0 %1496  ;;  %v1198_v36 = vld [vmem:[#allocation2 + $0x198] sm:$0xff] }
  0xd4   : > { %1124 = vrot.lane.b32.xlu1 %v1081_v59, %s2258_s7  ;;  %1542 = vst.msk [vmem:[#allocation3 + $0x18] sm:$0xff] %vm1538_vm11, %v1497_v63  ;;  %v1199_v63 = vld [vmem:[#allocation2 + $0x1a0] sm:$0xff] }
  0xd5   : > { %1252 = vrot.lane.b32.xlu0 %v2547_v44, %s2259_s10  ;;  %v1215_v0 = vpack.c.bf16 %v1199_v63, %v1198_v36 }
  0xd6   : > { %v597_v3 = vpop.permute.xlu1 %596 }
  0xd7   : > { %640 = vst.msk [vmem:[#allocation3 + $0x28] sm:$0xff] %vm634_vm4, %v597_v3  ;;  %v724_v5 = vpop.permute.xlu0 %723  ;;  %v1557_v7 = vld [vmem:[#allocation3 + $0x10] sm:$0xff] }
  0xd8   : > { %1254 = vrot.lane.b32.xlu1 %v2566_v60, %s2259_s10  ;;  %768 = vst.msk [vmem:[#allocation3 + $0x20] sm:$0xff] %vm763_vm5, %v724_v5  ;;  %2183 = vmatprep.mubr.msk.bf16.mxu0 %vm1607_vm12, %v1557_v7  ;;  %v1327_v3 = vld [vmem:[#allocation2 + $0x199] sm:$0xff] }
  0xd9   : > { %1381 = vrot.lane.b32.xlu0 %v952_v53, %s2260_s15 }
  0xda   : > { %v726_v8 = vpop.permute.xlu1 %725 }
  0xdb   : > { %769 = vst.msk [vmem:[#allocation3 + $0x28] sm:$0xff] %vm763_vm5, %v726_v8  ;;  %v853_v44 = vpop.permute.xlu0 %852  ;;  %v1558_v11 = vld [vmem:[#allocation3 + $0x18] sm:$0xff] }
  0xdc   : > { %1383 = vrot.lane.b32.xlu1 %v1340_v4, %s2260_s15  ;;  %897 = vst.msk [vmem:[#allocation3 + $0x20] sm:$0xff] %vm892_vm6, %v853_v44  ;;  %2184 = vmatmul.mubr.msk.bf16.gmra.mrb[4].mxu0 %vm1607_vm12, %v1558_v11  ;;  %v1457_v44 = vld [vmem:[#allocation2 + $0x1a2] sm:$0xff] }
  0xdd   : > { %1510 = vrot.lane.b32.xlu0 %v1081_v59, %s2261_s21 }
  0xde   : > { %v855_v12 = vpop.permute.xlu1 %854 }
  0xdf   : > { %898 = vst.msk [vmem:[#allocation3 + $0x28] sm:$0xff] %vm892_vm6, %v855_v12  ;;  %v982_v14 = vpop.permute.xlu0 %981  ;;  %v1473_v12 = vpack.c.bf16 %v1457_v44, %v1456_v10 }
  0xe0   : > { %610 = vrot.lane.b32.xlu1 %v952_v53, %s2254_s28  ;;  %1026 = vst.msk [vmem:[#allocation3 + $0x20] sm:$0xff] %vm1021_vm7, %v982_v14  ;;  %v956_v53 = vpack.c.bf16 %v940_v52, %v939_v51 }
  0xe1   : > { %1512 = vrot.lane.b32.xlu0 %v1469_v13, %s2261_s21 }
  0xe2   : > { %v984_v15 = vpop.permute.xlu1 %983 }
  0xe3   : > { %1027 = vst.msk [vmem:[#allocation3 + $0x28] sm:$0xff] %vm1021_vm7, %v984_v15  ;;  %v1111_v16 = vpop.permute.xlu0 %1110 }
  0xe4   : > { %612 = vrot.lane.b32.xlu1 %v1340_v4, %s2254_s28  ;;  %1155 = vst.msk [vmem:[#allocation3 + $0x20] sm:$0xff] %vm1150_vm8, %v1111_v16 }
  0xe5   : > { %739 = vrot.lane.b32.xlu0 %v1081_v59, %s2255_s29  ;;  %v1085_v59 = vpack.c.bf16 %v1069_v57, %v1068_v56 }
  0xe6   : > { %v1113_v17 = vpop.permute.xlu1 %1112 }
  0xe7   : > { %1156 = vst.msk [vmem:[#allocation3 + $0x28] sm:$0xff] %vm1150_vm8, %v1113_v17  ;;  %v1241_v18 = vpop.permute.xlu0 %1240 }
  0xe8   : > { %741 = vrot.lane.b32.xlu1 %v1469_v13, %s2255_s29  ;;  %1285 = vst.msk [vmem:[#allocation3 + $0x20] sm:$0xff] %vm1280_vm9, %v1241_v18 }
  0xe9   : > { %868 = vrot.lane.b32.xlu0 %v2566_v60, %s2256_s30 }
  0xea   : > { %v1243_v22 = vpop.permute.xlu1 %1242 }
  0xeb   : > { %1286 = vst.msk [vmem:[#allocation3 + $0x28] sm:$0xff] %vm1280_vm9, %v1243_v22  ;;  %v1370_v24 = vpop.permute.xlu0 %1369 }
  0xec   : > { %870 = vrot.lane.b32.xlu1 %v2590_v19, %s2256_s30  ;;  %1414 = vst.msk [vmem:[#allocation3 + $0x20] sm:$0xff] %vm1409_vm10, %v1370_v24 }
  0xed   : > { %997 = vrot.lane.b32.xlu0 %v1340_v4, %s2257_s6  ;;  %v1328_v4 = vld [vmem:[#allocation2 + $0x1a1] sm:$0xff] }
  0xee   : > { %v1372_v54 = vpop.permute.xlu1 %1371  ;;  %v1344_v7 = vpack.c.bf16 %v1328_v4, %v1327_v3 }
  0xef   : > { %1415 = vst.msk [vmem:[#allocation3 + $0x28] sm:$0xff] %vm1409_vm10, %v1372_v54  ;;  %v1499_v28 = vpop.permute.xlu0 %1498 }
  0xf0   : > { %999 = vrot.lane.b32.xlu1 %v954_v23, %s2257_s6  ;;  %1543 = vst.msk [vmem:[#allocation3 + $0x20] sm:$0xff] %vm1538_vm11, %v1499_v28 }
  0xf1   : > { %1126 = vrot.lane.b32.xlu0 %v1469_v13, %s2258_s7 }
  0xf2   : > { %v599_v60 = vpop.permute.xlu1 %598 }
  0xf3   : > { %641 = vst.msk [vmem:[#allocation3 + $0x30] sm:$0xff] %vm634_vm4, %v599_v60  ;;  %v1501_v29 = vpop.permute.xlu0 %1500 }
  0xf4   : > { %1128 = vrot.lane.b32.xlu1 %v1083_v27, %s2258_s7  ;;  %1544 = vst.msk [vmem:[#allocation3 + $0x28] sm:$0xff] %vm1538_vm11, %v1501_v29 }
  0xf5   : > { %1256 = vrot.lane.b32.xlu0 %v2590_v19, %s2259_s10 }
  0xf6   : > { %v601_v33 = vpop.permute.xlu1 %600 }
  0xf7   : > { %642 = vst.msk [vmem:[#allocation3 + $0x38] sm:$0xff] %vm634_vm4, %v601_v33  ;;  %v728_v35 = vpop.permute.xlu0 %727  ;;  %v1559_v37 = vld [vmem:[#allocation3 + $0x20] sm:$0xff] }
  0xf8   : > { %1258 = vrot.lane.b32.xlu1 %v2606_v31, %s2259_s10  ;;  %770 = vst.msk [vmem:[#allocation3 + $0x30] sm:$0xff] %vm763_vm5, %v728_v35  ;;  %2187 = vmatprep.mubr.msk.bf16.mxu0 %vm1607_vm12, %v1559_v37 }
  0xf9   : > { %1385 = vrot.lane.b32.xlu0 %v954_v23, %s2260_s15 }
  0xfa   : > { %v730_v38 = vpop.permute.xlu1 %729 }
  0xfb   : > { %771 = vst.msk [vmem:[#allocation3 + $0x38] sm:$0xff] %vm763_vm5, %v730_v38  ;;  %v857_v19 = vpop.permute.xlu0 %856  ;;  %v1560_v40 = vld [vmem:[#allocation3 + $0x28] sm:$0xff] }
  0xfc   : > { %1387 = vrot.lane.b32.xlu1 %v1342_v34, %s2260_s15  ;;  %899 = vst.msk [vmem:[#allocation3 + $0x30] sm:$0xff] %vm892_vm6, %v857_v19  ;;  %2188 = vmatmul.mubr.msk.bf16.gmra.mrb[8].mxu0 %vm1607_vm12, %v1560_v40 }
  0xfd   : > { %1514 = vrot.lane.b32.xlu0 %v1083_v27, %s2261_s21 }
  0xfe   : > { %v859_v6 = vpop.permute.xlu1 %858 }
  0xff   : > { %900 = vst.msk [vmem:[#allocation3 + $0x38] sm:$0xff] %vm892_vm6, %v859_v6  ;;  %v986_v43 = vpop.permute.xlu0 %985 }
 0x100   : > { %614 = vrot.lane.b32.xlu1 %v954_v23, %s2254_s28  ;;  %1028 = vst.msk [vmem:[#allocation3 + $0x30] sm:$0xff] %vm1021_vm7, %v986_v43 }
 0x101   : > { %1516 = vrot.lane.b32.xlu0 %v1471_v42, %s2261_s21 }
 0x102   : > { %v988_v45 = vpop.permute.xlu1 %987 }
 0x103   : > { %1029 = vst.msk [vmem:[#allocation3 + $0x38] sm:$0xff] %vm1021_vm7, %v988_v45  ;;  %v1115_v1 = vpop.permute.xlu0 %1114 }
 0x104   : > { %616 = vrot.lane.b32.xlu1 %v1342_v34, %s2254_s28  ;;  %1157 = vst.msk [vmem:[#allocation3 + $0x30] sm:$0xff] %vm1150_vm8, %v1115_v1 }
 0x105   : > { %743 = vrot.lane.b32.xlu0 %v1083_v27, %s2255_s29 }
 0x106   : > { %v1117_v48 = vpop.permute.xlu1 %1116 }
 0x107   : > { %1158 = vst.msk [vmem:[#allocation3 + $0x38] sm:$0xff] %vm1150_vm8, %v1117_v48  ;;  %v1245_v50 = vpop.permute.xlu0 %1244 }
 0x108   : > { %745 = vrot.lane.b32.xlu1 %v1471_v42, %s2255_s29  ;;  %1287 = vst.msk [vmem:[#allocation3 + $0x30] sm:$0xff] %vm1280_vm9, %v1245_v50  ;;  %s235_s29 = scalar_lea.vmem %s3014_s5, %s2120_s20 }
 0x109   : > { %872 = vrot.lane.b32.xlu0 %v2606_v31, %s2256_s30 }
 0x10a   : > { %v1247_v41 = vpop.permute.xlu1 %1246 }
 0x10b   : > { %1288 = vst.msk [vmem:[#allocation3 + $0x38] sm:$0xff] %vm1280_vm9, %v1247_v41  ;;  %v1374_v55 = vpop.permute.xlu0 %1373 }
 0x10c   : > { %874 = vrot.lane.b32.xlu1 %v827_v49, %s2256_s30  ;;  %1416 = vst.msk [vmem:[#allocation3 + $0x30] sm:$0xff] %vm1409_vm10, %v1374_v55 }
 0x10d   : > { %1001 = vrot.lane.b32.xlu0 %v1342_v34, %s2257_s6 }
 0x10e   : > { %v1376_v62 = vpop.permute.xlu1 %1375 }
 0x10f   : > { %1417 = vst.msk [vmem:[#allocation3 + $0x38] sm:$0xff] %vm1409_vm10, %v1376_v62  ;;  %v1503_v61 = vpop.permute.xlu0 %1502 }
 0x110   : > { %1003 = vrot.lane.b32.xlu1 %v956_v53, %s2257_s6  ;;  %1545 = vst.msk [vmem:[#allocation3 + $0x30] sm:$0xff] %vm1538_vm11, %v1503_v61 }
 0x111   : > { %1130 = vrot.lane.b32.xlu0 %v1471_v42, %s2258_s7 }
 0x112   : > { %v603_v31 = vpop.permute.xlu1 %602 }
 0x113   : > { %643 = vst.msk [vmem:[#allocation3 + $0x40] sm:$0xff] %vm634_vm4, %v603_v31  ;;  %v1505_v46 = vpop.permute.xlu0 %1504 }
 0x114   : > { %1132 = vrot.lane.b32.xlu1 %v1085_v59, %s2258_s7  ;;  %1546 = vst.msk [vmem:[#allocation3 + $0x38] sm:$0xff] %vm1538_vm11, %v1505_v46 }
 0x115   : > { %1260 = vrot.lane.b32.xlu0 %v827_v49, %s2259_s10 }
 0x116   : > { %v605_v5 = vpop.permute.xlu1 %604 }
 0x117   : > { %644 = vst.msk [vmem:[#allocation3 + $0x48] sm:$0xff] %vm634_vm4, %v605_v5  ;;  %v732_v8 = vpop.permute.xlu0 %731  ;;  %v1561_v9 = vld [vmem:[#allocation3 + $0x30] sm:$0xff] }
 0x118   : > { %1262 = vrot.lane.b32.xlu1 %v1215_v0, %s2259_s10  ;;  %772 = vst.msk [vmem:[#allocation3 + $0x40] sm:$0xff] %vm763_vm5, %v732_v8  ;;  %2191 = vmatprep.mubr.msk.bf16.mxu0 %vm1607_vm12, %v1561_v9 }
 0x119   : > { %1389 = vrot.lane.b32.xlu0 %v956_v53, %s2260_s15 }
 0x11a   : > { %v734_v11 = vpop.permute.xlu1 %733 }
 0x11b   : > { %773 = vst.msk [vmem:[#allocation3 + $0x48] sm:$0xff] %vm763_vm5, %v734_v11  ;;  %v861_v13 = vpop.permute.xlu0 %860  ;;  %v1562_v14 = vld [vmem:[#allocation3 + $0x38] sm:$0xff] }
 0x11c   : > { %1391 = vrot.lane.b32.xlu1 %v1344_v7, %s2260_s15  ;;  %901 = vst.msk [vmem:[#allocation3 + $0x40] sm:$0xff] %vm892_vm6, %v861_v13  ;;  %2192 = vmatmul.mubr.msk.bf16.gmra.mrb[12].mxu0 %vm1607_vm12, %v1562_v14 }
 0x11d   : > { %1518 = vrot.lane.b32.xlu0 %v1085_v59, %s2261_s21 }
 0x11e   : > { %v863_v15 = vpop.permute.xlu1 %862 }
 0x11f   : > { %902 = vst.msk [vmem:[#allocation3 + $0x48] sm:$0xff] %vm892_vm6, %v863_v15  ;;  %v990_v16 = vpop.permute.xlu0 %989 }
 0x120   : > { %1520 = vrot.lane.b32.xlu1 %v1473_v12, %s2261_s21  ;;  %1030 = vst.msk [vmem:[#allocation3 + $0x40] sm:$0xff] %vm1021_vm7, %v990_v16 }
 0x122   : > { %v992_v17 = vpop.permute.xlu1 %991 }
 0x123   : > { %1031 = vst.msk [vmem:[#allocation3 + $0x48] sm:$0xff] %vm1021_vm7, %v992_v17  ;;  %v1119_v18 = vpop.permute.xlu0 %1118 }
 0x124   : > { %1159 = vst.msk [vmem:[#allocation3 + $0x40] sm:$0xff] %vm1150_vm8, %v1119_v18 }
 0x126   : > { %v1121_v20 = vpop.permute.xlu1 %1120 }
 0x127   : > { %1160 = vst.msk [vmem:[#allocation3 + $0x48] sm:$0xff] %vm1150_vm8, %v1121_v20  ;;  %v1249_v21 = vpop.permute.xlu0 %1248 }
 0x128   : > { %1289 = vst.msk [vmem:[#allocation3 + $0x40] sm:$0xff] %vm1280_vm9, %v1249_v21 }
 0x12a   : > { %v1251_v22 = vpop.permute.xlu1 %1250 }
 0x12b   : > { %1290 = vst.msk [vmem:[#allocation3 + $0x48] sm:$0xff] %vm1280_vm9, %v1251_v22  ;;  %v1378_v23 = vpop.permute.xlu0 %1377 }
 0x12c   : > { %1418 = vst.msk [vmem:[#allocation3 + $0x40] sm:$0xff] %vm1409_vm10, %v1378_v23 }
 0x12e   : > { %v1380_v24 = vpop.permute.xlu1 %1379 }
 0x12f   : > { %1419 = vst.msk [vmem:[#allocation3 + $0x48] sm:$0xff] %vm1409_vm10, %v1380_v24  ;;  %v1507_v25 = vpop.permute.xlu0 %1506 }
 0x130   : > { %1547 = vst.msk [vmem:[#allocation3 + $0x40] sm:$0xff] %vm1538_vm11, %v1507_v25 }
 0x132   : > { %v607_v26 = vpop.permute.xlu1 %606 }
 0x133   : > { %645 = vst.msk [vmem:[#allocation3 + $0x50] sm:$0xff] %vm634_vm4, %v607_v26  ;;  %v1509_v54 = vpop.permute.xlu0 %1508 }
 0x134   : > { %1548 = vst.msk [vmem:[#allocation3 + $0x48] sm:$0xff] %vm1538_vm11, %v1509_v54 }
 0x136   : > { %v609_v27 = vpop.permute.xlu1 %608 }
 0x137   : > { %646 = vst.msk [vmem:[#allocation3 + $0x58] sm:$0xff] %vm634_vm4, %v609_v27  ;;  %v736_v28 = vpop.permute.xlu0 %735  ;;  %v1563_v60 = vld [vmem:[#allocation3 + $0x40] sm:$0xff] }
 0x138   : > { %774 = vst.msk [vmem:[#allocation3 + $0x50] sm:$0xff] %vm763_vm5, %v736_v28  ;;  %2195 = vmatprep.mubr.msk.bf16.mxu1 %vm1607_vm12, %v1563_v60 }
 0x13a   : > { %v738_v29 = vpop.permute.xlu1 %737 }
 0x13b   : > { %775 = vst.msk [vmem:[#allocation3 + $0x58] sm:$0xff] %vm763_vm5, %v738_v29  ;;  %v865_v30 = vpop.permute.xlu0 %864  ;;  %v1564_v32 = vld [vmem:[#allocation3 + $0x48] sm:$0xff] }
 0x13c   : > { %903 = vst.msk [vmem:[#allocation3 + $0x50] sm:$0xff] %vm892_vm6, %v865_v30  ;;  %2196 = vmatmul.mubr.msk.bf16.vlgmr.msra.gmra.mrb[0].mxu1 %vm1607_vm12, %v1564_v32 }
 0x13e   : > { %v867_v33 = vpop.permute.xlu1 %866 }
 0x13f   : > { %904 = vst.msk [vmem:[#allocation3 + $0x58] sm:$0xff] %vm892_vm6, %v867_v33  ;;  %v994_v34 = vpop.permute.xlu0 %993 }
 0x140   : > { %1032 = vst.msk [vmem:[#allocation3 + $0x50] sm:$0xff] %vm1021_vm7, %v994_v34 }
 0x142   : > { %v996_v35 = vpop.permute.xlu1 %995 }
 0x143   : > { %1033 = vst.msk [vmem:[#allocation3 + $0x58] sm:$0xff] %vm1021_vm7, %v996_v35  ;;  %v1123_v37 = vpop.permute.xlu0 %1122 }
 0x144   : > { %1161 = vst.msk [vmem:[#allocation3 + $0x50] sm:$0xff] %vm1150_vm8, %v1123_v37 }
 0x146   : > { %v1125_v38 = vpop.permute.xlu1 %1124 }
 0x147   : > { %1162 = vst.msk [vmem:[#allocation3 + $0x58] sm:$0xff] %vm1150_vm8, %v1125_v38  ;;  %v1253_v39 = vpop.permute.xlu0 %1252 }
 0x148   : > { %1291 = vst.msk [vmem:[#allocation3 + $0x50] sm:$0xff] %vm1280_vm9, %v1253_v39 }
 0x14a   : > { %v1255_v58 = vpop.permute.xlu1 %1254 }
 0x14b   : > { %1292 = vst.msk [vmem:[#allocation3 + $0x58] sm:$0xff] %vm1280_vm9, %v1255_v58  ;;  %v1382_v19 = vpop.permute.xlu0 %1381 }
 0x14c   : > { %1420 = vst.msk [vmem:[#allocation3 + $0x50] sm:$0xff] %vm1409_vm10, %v1382_v19 }
 0x14e   : > { %v1384_v40 = vpop.permute.xlu1 %1383 }
 0x14f   : > { %1421 = vst.msk [vmem:[#allocation3 + $0x58] sm:$0xff] %vm1409_vm10, %v1384_v40  ;;  %v1511_v6 = vpop.permute.xlu0 %1510 }
 0x150   : > { %1549 = vst.msk [vmem:[#allocation3 + $0x50] sm:$0xff] %vm1538_vm11, %v1511_v6 }
 0x152   : > { %v611_v42 = vpop.permute.xlu1 %610 }
 0x153   : > { %647 = vst.msk [vmem:[#allocation3 + $0x60] sm:$0xff] %vm634_vm4, %v611_v42  ;;  %v1513_v43 = vpop.permute.xlu0 %1512 }
 0x154   : > { %1550 = vst.msk [vmem:[#allocation3 + $0x58] sm:$0xff] %vm1538_vm11, %v1513_v43 }
 0x156   : > { %v613_v45 = vpop.permute.xlu1 %612 }
 0x157   : > { %648 = vst.msk [vmem:[#allocation3 + $0x68] sm:$0xff] %vm634_vm4, %v613_v45  ;;  %v740_v1 = vpop.permute.xlu0 %739  ;;  %v1565_v47 = vld [vmem:[#allocation3 + $0x50] sm:$0xff] }
 0x158   : > { %776 = vst.msk [vmem:[#allocation3 + $0x60] sm:$0xff] %vm763_vm5, %v740_v1  ;;  %2199 = vmatprep.mubr.msk.bf16.mxu1 %vm1607_vm12, %v1565_v47 }
 0x15a   : > { %v742_v2 = vpop.permute.xlu1 %741 }
 0x15b   : > { %777 = vst.msk [vmem:[#allocation3 + $0x68] sm:$0xff] %vm763_vm5, %v742_v2  ;;  %v869_v48 = vpop.permute.xlu0 %868  ;;  %v1566_v49 = vld [vmem:[#allocation3 + $0x58] sm:$0xff] }
 0x15c   : > { %905 = vst.msk [vmem:[#allocation3 + $0x60] sm:$0xff] %vm892_vm6, %v869_v48  ;;  %2200 = vmatmul.mubr.msk.bf16.gmra.mrb[4].mxu1 %vm1607_vm12, %v1566_v49 }
 0x15e   : > { %v871_v50 = vpop.permute.xlu1 %870 }
 0x15f   : > { %906 = vst.msk [vmem:[#allocation3 + $0x68] sm:$0xff] %vm892_vm6, %v871_v50  ;;  %v998_v51 = vpop.permute.xlu0 %997 }
 0x160   : > { %1034 = vst.msk [vmem:[#allocation3 + $0x60] sm:$0xff] %vm1021_vm7, %v998_v51 }
 0x162   : > { %v1000_v52 = vpop.permute.xlu1 %999 }
 0x163   : > { %1035 = vst.msk [vmem:[#allocation3 + $0x68] sm:$0xff] %vm1021_vm7, %v1000_v52  ;;  %v1127_v41 = vpop.permute.xlu0 %1126 }
 0x164   : > { %1163 = vst.msk [vmem:[#allocation3 + $0x60] sm:$0xff] %vm1150_vm8, %v1127_v41 }
 0x166   : > { %v1129_v53 = vpop.permute.xlu1 %1128 }
 0x167   : > { %1164 = vst.msk [vmem:[#allocation3 + $0x68] sm:$0xff] %vm1150_vm8, %v1129_v53  ;;  %v1257_v55 = vpop.permute.xlu0 %1256 }
 0x168   : > { %1293 = vst.msk [vmem:[#allocation3 + $0x60] sm:$0xff] %vm1280_vm9, %v1257_v55 }
 0x16a   : > { %v1259_v56 = vpop.permute.xlu1 %1258 }
 0x16b   : > { %1294 = vst.msk [vmem:[#allocation3 + $0x68] sm:$0xff] %vm1280_vm9, %v1259_v56  ;;  %v1386_v57 = vpop.permute.xlu0 %1385 }
 0x16c   : > { %1422 = vst.msk [vmem:[#allocation3 + $0x60] sm:$0xff] %vm1409_vm10, %v1386_v57 }
 0x16e   : > { %v1388_v62 = vpop.permute.xlu1 %1387 }
 0x16f   : > { %1423 = vst.msk [vmem:[#allocation3 + $0x68] sm:$0xff] %vm1409_vm10, %v1388_v62  ;;  %v1515_v59 = vpop.permute.xlu0 %1514 }
 0x170   : > { %1551 = vst.msk [vmem:[#allocation3 + $0x60] sm:$0xff] %vm1538_vm11, %v1515_v59 }
 0x172   : > { %v615_v61 = vpop.permute.xlu1 %614 }
 0x173   : > { %649 = vst.msk [vmem:[#allocation3 + $0x70] sm:$0xff] %vm634_vm4, %v615_v61  ;;  %v1517_v36 = vpop.permute.xlu0 %1516 }
 0x174   : > { %1552 = vst.msk [vmem:[#allocation3 + $0x68] sm:$0xff] %vm1538_vm11, %v1517_v36 }
 0x176   : > { %v617_v63 = vpop.permute.xlu1 %616 }
 0x177   : > { %650 = vst.msk [vmem:[#allocation3 + $0x78] sm:$0xff] %vm634_vm4, %v617_v63  ;;  %v744_v31 = vpop.permute.xlu0 %743  ;;  %v1567_v0 = vld [vmem:[#allocation3 + $0x60] sm:$0xff] }
 0x178   : > { %778 = vst.msk [vmem:[#allocation3 + $0x70] sm:$0xff] %vm763_vm5, %v744_v31  ;;  %2203 = vmatprep.mubr.msk.bf16.mxu1 %vm1607_vm12, %v1567_v0 }
 0x17a   : > { %v746_v46 = vpop.permute.xlu1 %745 }
 0x17b   : > { %779 = vst.msk [vmem:[#allocation3 + $0x78] sm:$0xff] %vm763_vm5, %v746_v46  ;;  %v873_v3 = vpop.permute.xlu0 %872  ;;  %v1568_v4 = vld [vmem:[#allocation3 + $0x68] sm:$0xff] }
 0x17c   : > { %907 = vst.msk [vmem:[#allocation3 + $0x70] sm:$0xff] %vm892_vm6, %v873_v3  ;;  %2204 = vmatmul.mubr.msk.bf16.gmra.mrb[8].mxu1 %vm1607_vm12, %v1568_v4 }
 0x17e   : > { %v875_v5 = vpop.permute.xlu1 %874 }
 0x17f   : > { %908 = vst.msk [vmem:[#allocation3 + $0x78] sm:$0xff] %vm892_vm6, %v875_v5  ;;  %v1002_v7 = vpop.permute.xlu0 %1001 }
 0x180   : > { %1036 = vst.msk [vmem:[#allocation3 + $0x70] sm:$0xff] %vm1021_vm7, %v1002_v7 }
 0x182   : > { %v1004_v8 = vpop.permute.xlu1 %1003 }
 0x183   : > { %1037 = vst.msk [vmem:[#allocation3 + $0x78] sm:$0xff] %vm1021_vm7, %v1004_v8  ;;  %v1131_v9 = vpop.permute.xlu0 %1130 }
 0x184   : > { %1165 = vst.msk [vmem:[#allocation3 + $0x70] sm:$0xff] %vm1150_vm8, %v1131_v9 }
 0x186   : > { %v1133_v10 = vpop.permute.xlu1 %1132 }
 0x187   : > { %1166 = vst.msk [vmem:[#allocation3 + $0x78] sm:$0xff] %vm1150_vm8, %v1133_v10  ;;  %v1261_v44 = vpop.permute.xlu0 %1260 }
 0x188   : > { %1295 = vst.msk [vmem:[#allocation3 + $0x70] sm:$0xff] %vm1280_vm9, %v1261_v44 }
 0x18a   : > { %v1263_v11 = vpop.permute.xlu1 %1262 }
 0x18b   : > { %1296 = vst.msk [vmem:[#allocation3 + $0x78] sm:$0xff] %vm1280_vm9, %v1263_v11  ;;  %v1390_v12 = vpop.permute.xlu0 %1389 }
 0x18c   : > { %1424 = vst.msk [vmem:[#allocation3 + $0x70] sm:$0xff] %vm1409_vm10, %v1390_v12 }
 0x18e   : > { %v1392_v13 = vpop.permute.xlu1 %1391 }
 0x18f   : > { %1425 = vst.msk [vmem:[#allocation3 + $0x78] sm:$0xff] %vm1409_vm10, %v1392_v13  ;;  %v1519_v14 = vpop.permute.xlu0 %1518  ;;  %v2181_v15 = vpop.f32.mrb[0].mxu0 }
 0x190   : > { %1553 = vst.msk [vmem:[#allocation3 + $0x70] sm:$0xff] %vm1538_vm11, %v1519_v14  ;;  %v1694_v17 = vpop.f32.mrb[1].mxu0  ;;  %v1924_v22 = vmul.f32 %v2181_v15, %v2181_v15  ;;  %v1856_v54 = vsel %vm379_vm0, %v2181_v15, 0.0 }
 0x191   : > { %1823 = vst.msk [vmem:[%s2866_s26 + $0x10] sm:$0xff] %vm379_vm0, %v2181_v15  ;;  %1821 = vst.msk [vmem:[%s2866_s26] sm:$0xff] %vm379_vm0, %v1694_v17  ;;  %v1922_v18 = vmul.f32 %v1694_v17, %v1694_v17  ;;  %v2182_v20 = vpop.f32.mrb[2].mxu0  ;;  %v1853_v23 = vsel %vm379_vm0, %v1694_v17, 0.0 }
 0x192   : > { %v1521_v16 = vpop.permute.xlu1 %1520  ;;  %1824 = vst.msk [vmem:[%s2866_s26 + $0x18] sm:$0xff] %vm379_vm0, %v2182_v20  ;;  %v1697_v21 = vpop.f32.mrb[3].mxu0  ;;  %v1925_v28 = vmul.f32 %v2182_v20, %v2182_v20  ;;  %v1957_v32 = vsel %vm379_vm0, %v1924_v22, 0.0  ;;  %v1858_v33 = vsel %vm379_vm0, %v2182_v20, 0.0 }
 0x193   : > { %1554 = vst.msk [vmem:[#allocation3 + $0x78] sm:$0xff] %vm1538_vm11, %v1521_v16  ;;  %v1854_v24 = vsel %vm379_vm0, %v1697_v21, 0.0  ;;  %v1923_v25 = vmul.f32 %v1697_v21, %v1697_v21  ;;  %v1954_v27 = vsel %vm379_vm0, %v1922_v18, 0.0 }
 0x194   : > { %1822 = vst.msk [vmem:[%s2866_s26 + $0x8] sm:$0xff] %vm379_vm0, %v1697_v21  ;;  %v1855_v26 = vadd.f32 %v1854_v24, %v1853_v23  ;;  %v1959_v39 = vsel %vm379_vm0, %v1925_v28, 0.0 }
 0x195   : > { %v1955_v60 = vsel %vm379_vm0, %v1923_v25, 0.0 }
 0x196   : > { %v1857_v29 = vadd.f32 %v1856_v54, %v1855_v26  ;;  %v1956_v30 = vadd.f32 %v1955_v60, %v1954_v27 }
 0x197   : > { %v1569_v34 = vld [vmem:[#allocation3 + $0x70] sm:$0xff] }
 0x198   : > { %v1958_v35 = vadd.f32 %v1957_v32, %v1956_v30  ;;  %2207 = vmatprep.mubr.msk.bf16.mxu1 %vm1607_vm12, %v1569_v34  ;;  %v1859_v38 = vadd.f32 %v1858_v33, %v1857_v29 }
 0x19a   : > { %v1570_v37 = vld [vmem:[#allocation3 + $0x78] sm:$0xff]  ;;  %v1960_v58 = vadd.f32 %v1959_v39, %v1958_v35 }
 0x19b   : > { %2208 = vmatmul.mubr.msk.bf16.gmra.mrb[12].mxu1 %vm1607_vm12, %v1570_v37 }
 0x1af   : > { %v2185_v19 = vpop.f32.mrb[4].mxu0 }
 0x1b0   : > { %1827 = vst.msk [vmem:[%s2866_s26 + $0x30] sm:$0xff] %vm379_vm0, %v2185_v19  ;;  %v1710_v40 = vpop.f32.mrb[5].mxu0  ;;  %v1928_v47 = vmul.f32 %v2185_v19, %v2185_v19  ;;  %v1864_v52 = vsel %vm379_vm0, %v2185_v19, 0.0 }
 0x1b1   : > { %1825 = vst.msk [vmem:[%s2866_s26 + $0x20] sm:$0xff] %vm379_vm0, %v1710_v40  ;;  %v1860_v6 = vsel %vm379_vm0, %v1710_v40, 0.0  ;;  %v1926_v42 = vmul.f32 %v1710_v40, %v1710_v40  ;;  %v2186_v43 = vpop.f32.mrb[6].mxu0 }
 0x1b2   : > { %v1861_v45 = vadd.f32 %v1860_v6, %v1859_v38  ;;  %1828 = vst.msk [vmem:[%s2866_s26 + $0x38] sm:$0xff] %vm379_vm0, %v2186_v43  ;;  %v1713_v1 = vpop.f32.mrb[7].mxu0  ;;  %v1929_v41 = vmul.f32 %v2186_v43, %v2186_v43  ;;  %v1965_v57 = vsel %vm379_vm0, %v1928_v47, 0.0  ;;  %v1866_v62 = vsel %vm379_vm0, %v2186_v43, 0.0 }
 0x1b3   : > { %v1961_v2 = vsel %vm379_vm0, %v1926_v42, 0.0  ;;  %1826 = vst.msk [vmem:[%s2866_s26 + $0x28] sm:$0xff] %vm379_vm0, %v1713_v1  ;;  %v1862_v48 = vsel %vm379_vm0, %v1713_v1, 0.0  ;;  %v1927_v49 = vmul.f32 %v1713_v1, %v1713_v1 }
 0x1b4   : > { %v1962_v50 = vadd.f32 %v1961_v2, %v1960_v58  ;;  %v1863_v51 = vadd.f32 %v1862_v48, %v1861_v45  ;;  %v1967_v36 = vsel %vm379_vm0, %v1929_v41, 0.0 }
 0x1b5   : > { %v1963_v53 = vsel %vm379_vm0, %v1927_v49, 0.0 }
 0x1b6   : > { %v1865_v55 = vadd.f32 %v1864_v52, %v1863_v51  ;;  %v1964_v56 = vadd.f32 %v1963_v53, %v1962_v50 }
 0x1b8   : > { %v1966_v59 = vadd.f32 %v1965_v57, %v1964_v56  ;;  %v1867_v61 = vadd.f32 %v1866_v62, %v1865_v55 }
 0x1ba   : > { %v1968_v63 = vadd.f32 %v1967_v36, %v1966_v59 }
 0x1cf   : > { %v2189_v31 = vpop.f32.mrb[8].mxu0 }
 0x1d0   : > { %1831 = vst.msk [vmem:[%s2866_s26 + $0x50] sm:$0xff] %vm379_vm0, %v2189_v31  ;;  %v1726_v0 = vpop.f32.mrb[9].mxu0  ;;  %v1932_v8 = vmul.f32 %v2189_v31, %v2189_v31  ;;  %v1872_v13 = vsel %vm379_vm0, %v2189_v31, 0.0 }
 0x1d1   : > { %1829 = vst.msk [vmem:[%s2866_s26 + $0x40] sm:$0xff] %vm379_vm0, %v1726_v0  ;;  %v1868_v46 = vsel %vm379_vm0, %v1726_v0, 0.0  ;;  %v1930_v3 = vmul.f32 %v1726_v0, %v1726_v0  ;;  %v2190_v4 = vpop.f32.mrb[10].mxu0 }
 0x1d2   : > { %v1869_v5 = vadd.f32 %v1868_v46, %v1867_v61  ;;  %1832 = vst.msk [vmem:[%s2866_s26 + $0x58] sm:$0xff] %vm379_vm0, %v2190_v4  ;;  %v1729_v7 = vpop.f32.mrb[11].mxu0  ;;  %v1933_v14 = vmul.f32 %v2190_v4, %v2190_v4  ;;  %v1973_v18 = vsel %vm379_vm0, %v1932_v8, 0.0  ;;  %v1874_v20 = vsel %vm379_vm0, %v2190_v4, 0.0 }
 0x1d3   : > { %v1969_v9 = vsel %vm379_vm0, %v1930_v3, 0.0  ;;  %1830 = vst.msk [vmem:[%s2866_s26 + $0x48] sm:$0xff] %vm379_vm0, %v1729_v7  ;;  %v1870_v10 = vsel %vm379_vm0, %v1729_v7, 0.0  ;;  %v1931_v44 = vmul.f32 %v1729_v7, %v1729_v7 }
 0x1d4   : > { %v1970_v11 = vadd.f32 %v1969_v9, %v1968_v63  ;;  %v1871_v12 = vadd.f32 %v1870_v10, %v1869_v5  ;;  %v1975_v23 = vsel %vm379_vm0, %v1933_v14, 0.0 }
 0x1d5   : > { %v1971_v15 = vsel %vm379_vm0, %v1931_v44, 0.0 }
 0x1d6   : > { %v1873_v16 = vadd.f32 %v1872_v13, %v1871_v12  ;;  %v1972_v17 = vadd.f32 %v1971_v15, %v1970_v11 }
 0x1d8   : > { %v1974_v21 = vadd.f32 %v1973_v18, %v1972_v17  ;;  %v1875_v22 = vadd.f32 %v1874_v20, %v1873_v16 }
 0x1da   : > { %v1976_v24 = vadd.f32 %v1975_v23, %v1974_v21 }
 0x1ef   : > { %v2193_v25 = vpop.f32.mrb[12].mxu0 }
 0x1f0   : > { %1835 = vst.msk [vmem:[%s2866_s26 + $0x70] sm:$0xff] %vm379_vm0, %v2193_v25  ;;  %v1742_v26 = vpop.f32.mrb[13].mxu0  ;;  %v1936_v30 = vmul.f32 %v2193_v25, %v2193_v25  ;;  %v1880_v38 = vsel %vm379_vm0, %v2193_v25, 0.0 }
 0x1f1   : > { %1833 = vst.msk [vmem:[%s2866_s26 + $0x60] sm:$0xff] %vm379_vm0, %v1742_v26  ;;  %v1876_v54 = vsel %vm379_vm0, %v1742_v26, 0.0  ;;  %v1934_v27 = vmul.f32 %v1742_v26, %v1742_v26  ;;  %v2194_v28 = vpop.f32.mrb[14].mxu0 }
 0x1f2   : > { %v1877_v60 = vadd.f32 %v1876_v54, %v1875_v22  ;;  %1836 = vst.msk [vmem:[%s2866_s26 + $0x78] sm:$0xff] %vm379_vm0, %v2194_v28  ;;  %v1745_v29 = vpop.f32.mrb[15].mxu0  ;;  %v1937_v39 = vmul.f32 %v2194_v28, %v2194_v28  ;;  %v1981_v6 = vsel %vm379_vm0, %v1936_v30, 0.0  ;;  %v1882_v42 = vsel %vm379_vm0, %v2194_v28, 0.0 }
 0x1f3   : > { %v1977_v32 = vsel %vm379_vm0, %v1934_v27, 0.0  ;;  %1834 = vst.msk [vmem:[%s2866_s26 + $0x68] sm:$0xff] %vm379_vm0, %v1745_v29  ;;  %v1878_v33 = vsel %vm379_vm0, %v1745_v29, 0.0  ;;  %v1935_v34 = vmul.f32 %v1745_v29, %v1745_v29 }
 0x1f4   : > { %v1978_v35 = vadd.f32 %v1977_v32, %v1976_v24  ;;  %v1879_v37 = vadd.f32 %v1878_v33, %v1877_v60  ;;  %v1983_v1 = vsel %vm379_vm0, %v1937_v39, 0.0 }
 0x1f5   : > { %v1979_v58 = vsel %vm379_vm0, %v1935_v34, 0.0 }
 0x1f6   : > { %v1881_v19 = vadd.f32 %v1880_v38, %v1879_v37  ;;  %v1980_v40 = vadd.f32 %v1979_v58, %v1978_v35 }
 0x1f8   : > { %v1982_v43 = vadd.f32 %v1981_v6, %v1980_v40  ;;  %v1883_v45 = vadd.f32 %v1882_v42, %v1881_v19 }
 0x1fa   : > { %v1984_v47 = vadd.f32 %v1983_v1, %v1982_v43 }
 0x20f   : > { %v2197_v2 = vpop.f32.mrb[0].mxu1 }
 0x210   : > { %1839 = vst.msk [vmem:[%s2866_s26 + $0x90] sm:$0xff] %vm379_vm0, %v2197_v2  ;;  %v1758_v48 = vpop.f32.mrb[1].mxu1  ;;  %v1940_v53 = vmul.f32 %v2197_v2, %v2197_v2  ;;  %v1888_v61 = vsel %vm379_vm0, %v2197_v2, 0.0 }
 0x211   : > { %1837 = vst.msk [vmem:[%s2866_s26 + $0x80] sm:$0xff] %vm379_vm0, %v1758_v48  ;;  %v1884_v49 = vsel %vm379_vm0, %v1758_v48, 0.0  ;;  %v1938_v50 = vmul.f32 %v1758_v48, %v1758_v48  ;;  %v2198_v51 = vpop.f32.mrb[2].mxu1 }
 0x212   : > { %v1885_v52 = vadd.f32 %v1884_v49, %v1883_v45  ;;  %1840 = vst.msk [vmem:[%s2866_s26 + $0x98] sm:$0xff] %vm379_vm0, %v2198_v51  ;;  %v1761_v41 = vpop.f32.mrb[3].mxu1  ;;  %v1941_v36 = vmul.f32 %v2198_v51, %v2198_v51  ;;  %v1989_v46 = vsel %vm379_vm0, %v1940_v53, 0.0  ;;  %v1890_v3 = vsel %vm379_vm0, %v2198_v51, 0.0 }
 0x213   : > { %v1985_v55 = vsel %vm379_vm0, %v1938_v50, 0.0  ;;  %1838 = vst.msk [vmem:[%s2866_s26 + $0x88] sm:$0xff] %vm379_vm0, %v1761_v41  ;;  %v1886_v56 = vsel %vm379_vm0, %v1761_v41, 0.0  ;;  %v1939_v57 = vmul.f32 %v1761_v41, %v1761_v41 }
 0x214   : > { %v1986_v62 = vadd.f32 %v1985_v55, %v1984_v47  ;;  %v1887_v59 = vadd.f32 %v1886_v56, %v1885_v52  ;;  %v1991_v7 = vsel %vm379_vm0, %v1941_v36, 0.0 }
 0x215   : > { %v1987_v63 = vsel %vm379_vm0, %v1939_v57, 0.0 }
 0x216   : > { %v1889_v31 = vadd.f32 %v1888_v61, %v1887_v59  ;;  %v1988_v0 = vadd.f32 %v1987_v63, %v1986_v62 }
 0x218   : > { %v1990_v4 = vadd.f32 %v1989_v46, %v1988_v0  ;;  %v1891_v5 = vadd.f32 %v1890_v3, %v1889_v31 }
 0x21a   : > { %v1992_v8 = vadd.f32 %v1991_v7, %v1990_v4 }
 0x22f   : > { %v2201_v9 = vpop.f32.mrb[4].mxu1 }
 0x230   : > { %1843 = vst.msk [vmem:[%s2866_s26 + $0xb0] sm:$0xff] %vm379_vm0, %v2201_v9  ;;  %v1774_v10 = vpop.f32.mrb[5].mxu1  ;;  %v1944_v15 = vmul.f32 %v2201_v9, %v2201_v9  ;;  %v1896_v22 = vsel %vm379_vm0, %v2201_v9, 0.0 }
 0x231   : > { %1841 = vst.msk [vmem:[%s2866_s26 + $0xa0] sm:$0xff] %vm379_vm0, %v1774_v10  ;;  %v1892_v44 = vsel %vm379_vm0, %v1774_v10, 0.0  ;;  %v1942_v11 = vmul.f32 %v1774_v10, %v1774_v10  ;;  %v2202_v12 = vpop.f32.mrb[6].mxu1 }
 0x232   : > { %v1893_v13 = vadd.f32 %v1892_v44, %v1891_v5  ;;  %1844 = vst.msk [vmem:[%s2866_s26 + $0xb8] sm:$0xff] %vm379_vm0, %v2202_v12  ;;  %v1777_v14 = vpop.f32.mrb[7].mxu1  ;;  %v1945_v23 = vmul.f32 %v2202_v12, %v2202_v12  ;;  %v1997_v54 = vsel %vm379_vm0, %v1944_v15, 0.0  ;;  %v1898_v27 = vsel %vm379_vm0, %v2202_v12, 0.0 }
 0x233   : > { %v1993_v16 = vsel %vm379_vm0, %v1942_v11, 0.0  ;;  %1842 = vst.msk [vmem:[%s2866_s26 + $0xa8] sm:$0xff] %vm379_vm0, %v1777_v14  ;;  %v1894_v17 = vsel %vm379_vm0, %v1777_v14, 0.0  ;;  %v1943_v18 = vmul.f32 %v1777_v14, %v1777_v14 }
 0x234   : > { %v1994_v20 = vadd.f32 %v1993_v16, %v1992_v8  ;;  %v1895_v21 = vadd.f32 %v1894_v17, %v1893_v13  ;;  %v1999_v29 = vsel %vm379_vm0, %v1945_v23, 0.0 }
 0x235   : > { %v1995_v24 = vsel %vm379_vm0, %v1943_v18, 0.0 }
 0x236   : > { %v1897_v25 = vadd.f32 %v1896_v22, %v1895_v21  ;;  %v1996_v26 = vadd.f32 %v1995_v24, %v1994_v20 }
 0x238   : > { %v1998_v28 = vadd.f32 %v1997_v54, %v1996_v26  ;;  %v1899_v60 = vadd.f32 %v1898_v27, %v1897_v25 }
 0x23a   : > { %v2000_v30 = vadd.f32 %v1999_v29, %v1998_v28 }
 0x24f   : > { %v2205_v32 = vpop.f32.mrb[8].mxu1 }
 0x250   : > { %1847 = vst.msk [vmem:[%s2866_s26 + $0xd0] sm:$0xff] %vm379_vm0, %v2205_v32  ;;  %v1790_v33 = vpop.f32.mrb[9].mxu1  ;;  %v1948_v58 = vmul.f32 %v2205_v32, %v2205_v32  ;;  %v1904_v45 = vsel %vm379_vm0, %v2205_v32, 0.0 }
 0x251   : > { %1845 = vst.msk [vmem:[%s2866_s26 + $0xc0] sm:$0xff] %vm379_vm0, %v1790_v33  ;;  %v1900_v34 = vsel %vm379_vm0, %v1790_v33, 0.0  ;;  %v1946_v35 = vmul.f32 %v1790_v33, %v1790_v33  ;;  %v2206_v37 = vpop.f32.mrb[10].mxu1 }
 0x252   : > { %v1901_v38 = vadd.f32 %v1900_v34, %v1899_v60  ;;  %1848 = vst.msk [vmem:[%s2866_s26 + $0xd8] sm:$0xff] %vm379_vm0, %v2206_v37  ;;  %v1793_v39 = vpop.f32.mrb[11].mxu1  ;;  %v1949_v1 = vmul.f32 %v2206_v37, %v2206_v37  ;;  %v2005_v49 = vsel %vm379_vm0, %v1948_v58, 0.0  ;;  %v1906_v50 = vsel %vm379_vm0, %v2206_v37, 0.0 }
 0x253   : > { %v2001_v19 = vsel %vm379_vm0, %v1946_v35, 0.0  ;;  %1846 = vst.msk [vmem:[%s2866_s26 + $0xc8] sm:$0xff] %vm379_vm0, %v1793_v39  ;;  %v1902_v40 = vsel %vm379_vm0, %v1793_v39, 0.0  ;;  %v1947_v6 = vmul.f32 %v1793_v39, %v1793_v39 }
 0x254   : > { %v2002_v42 = vadd.f32 %v2001_v19, %v2000_v30  ;;  %v1903_v43 = vadd.f32 %v1902_v40, %v1901_v38  ;;  %v2007_v41 = vsel %vm379_vm0, %v1949_v1, 0.0 }
 0x255   : > { %v2003_v47 = vsel %vm379_vm0, %v1947_v6, 0.0 }
 0x256   : > { %v1905_v2 = vadd.f32 %v1904_v45, %v1903_v43  ;;  %v2004_v48 = vadd.f32 %v2003_v47, %v2002_v42 }
 0x258   : > { %v2006_v51 = vadd.f32 %v2005_v49, %v2004_v48  ;;  %v1907_v52 = vadd.f32 %v1906_v50, %v1905_v2 }
 0x25a   : > { %v2008_v53 = vadd.f32 %v2007_v41, %v2006_v51 }
 0x26e   : > { %v2209_v55 = vpop.f32.mrb[12].mxu1 }
 0x26f   : > { %1851 = vst.msk [vmem:[%s2866_s26 + $0xf0] sm:$0xff] %vm379_vm0, %v2209_v55  ;;  %v1806_v56 = vpop.f32.mrb[13].mxu1  ;;  %v1952_v63 = vmul.f32 %v2209_v55, %v2209_v55  ;;  %v1912_v5 = vsel %vm379_vm0, %v2209_v55, 0.0 }
 0x270   : > { %1849 = vst.msk [vmem:[%s2866_s26 + $0xe0] sm:$0xff] %vm379_vm0, %v1806_v56  ;;  %v1908_v57 = vsel %vm379_vm0, %v1806_v56, 0.0  ;;  %v1950_v62 = vmul.f32 %v1806_v56, %v1806_v56  ;;  %v2210_v59 = vpop.f32.mrb[14].mxu1 }
 0x271   : > { %v1909_v61 = vadd.f32 %v1908_v57, %v1907_v52  ;;  %1852 = vst.msk [vmem:[%s2866_s26 + $0xf8] sm:$0xff] %vm379_vm0, %v2210_v59  ;;  %v1809_v36 = vpop.f32.mrb[15].mxu1  ;;  %v1953_v7 = vmul.f32 %v2210_v59, %v2210_v59  ;;  %v2013_v44 = vsel %vm379_vm0, %v1952_v63, 0.0  ;;  %v1914_v11 = vsel %vm379_vm0, %v2210_v59, 0.0 }
 0x272   : > { %v2009_v31 = vsel %vm379_vm0, %v1950_v62, 0.0  ;;  %1850 = vst.msk [vmem:[%s2866_s26 + $0xe8] sm:$0xff] %vm379_vm0, %v1809_v36  ;;  %v1910_v0 = vsel %vm379_vm0, %v1809_v36, 0.0  ;;  %v1951_v46 = vmul.f32 %v1809_v36, %v1809_v36 }
 0x273   : > { %v2010_v3 = vadd.f32 %v2009_v31, %v2008_v53  ;;  %v1911_v4 = vadd.f32 %v1910_v0, %v1909_v61  ;;  %v2015_v14 = vsel %vm379_vm0, %v1953_v7, 0.0 }
 0x274   : > { %v2011_v8 = vsel %vm379_vm0, %v1951_v46, 0.0 }
 0x275   : > { %v1913_v9 = vadd.f32 %v1912_v5, %v1911_v4  ;;  %v2012_v10 = vadd.f32 %v2011_v8, %v2010_v3 }
 0x277   : > { %v1915_v12 = vadd.f32 %v1914_v11, %v1913_v9  ;;  %v2014_v13 = vadd.f32 %v2013_v44, %v2012_v10 }
 0x279   : > { %v1916_v15 = vrot.slane %v1915_v12, 4  ;;  %v2016_v16 = vadd.f32 %v2015_v14, %v2014_v13 }
 0x27b   : > { %v1917_v17 = vadd.f32 %v1916_v15, %v1915_v12  ;;  %v2017_v18 = vrot.slane %v2016_v16, 4 }
 0x27d   : > { %v1918_v20 = vrot.slane %v1917_v17, 2  ;;  %v2018_v21 = vadd.f32 %v2017_v18, %v2016_v16 }
 0x27f   : > { %v1919_v22 = vadd.f32 %v1918_v20, %v1917_v17  ;;  %v2019_v23 = vrot.slane %v2018_v21, 2 }
 0x281   : > { %v1920_v24 = vrot.slane %v1919_v22, 1  ;;  %v2020_v25 = vadd.f32 %v2019_v23, %v2018_v21 }
 0x283   : > { %v1921_v26 = vadd.f32 %v1920_v24, %v1919_v22  ;;  %v2021_v54 = vrot.slane %v2020_v25, 1 }
 0x285   : > { %v2022_v27 = vadd.f32 %v2021_v54, %v2020_v25  ;;  %2023 = vst.msk [vmem:[%s235_s29] sm:$0x1] %vm388_vm2, %v1921_v26 }
 0x287   : > { %2024 = vst.msk [vmem:[%s235_s29 + $0x1] sm:$0x1] %vm388_vm2, %v2022_v27 }
 0x288 PF: > { %s16_s18 = sadd.s32 1, %s2251_s18  }
 0x289   : > { %p13_p4 = scmp.ge.s32.totalorder %s16_s18, 4  }
 0x28b   :  { %15 = sbr.rel (!%p13_p4) target bundleno = 1 (0x1), region = 81 }

// kernel: residual_block_pallas.3
= control target key start
LH: loop header
LB: loop body
LE: loop exit
PB: predicated region body
PF: predicated region fallthrough
CT: control target
= control target key end

     0   :  { %s5142_s21 = smov 0   ;;  %s6614_s0 = inlined_call_operand.vmem [shape: bf16[2,18,18,4], index: 0, kind: input, shape index: {}]   ;;  %s6615_s1 = inlined_call_operand.vmem [shape: bf16[36,8], index: 1, kind: input, shape index: {}]   ;;  %s6616_s2 = inlined_call_operand.vmem [shape: bf16[4,8], index: 2, kind: input, shape index: {}]   ;;  %s6617_s3 = inlined_call_operand.vmem [shape: f32[2,256,8], index: 3, kind: output, shape index: {0}]   ;;  %s6618_s4 = inlined_call_operand.vmem [shape: f32[2,2,8], index: 4, kind: output, shape index: {1}]   ;;  %s6619_s5 = inlined_call_operand.vmem [shape: f32[2,256,8], index: 5, kind: output, shape index: {2}]   ;;  %s6620_s6 = inlined_call_operand.vmem [shape: f32[2,2,8], index: 6, kind: output, shape index: {3}]  }
   0x1 LB: > { %s4414_s22 = sadd.s32 4294967295, %s5097_s21   ;;  %p4418_p0 = scmp.ge.s32.totalorder %s5097_s21, 1  ;;  %s5097_s21 = sphi %s5142_s21, %s17_s21  }
   0x2   : > { %p219_p1 = scmp.lt.s32.totalorder %s5097_s21, 3 }
   0x4   : > { %p220_p2 = pnand %p4418_p0, %p219_p1 }
   0x5   : > { %p262_p3 = scmp.lt.s32.totalorder (!%p220_p2), %s4414_s22, 1  ;;  %vm1075_vm0 = vcmask (!%p220_p2), 1042432   ;;  %vm1076_vm1 = vcmask (!%p220_p2), 1046532   ;;  %s5099_s27 = smov (!%p220_p2), 12   ;;  %vm479_vm3 = vsmask.f32 (!%p220_p2), 3328 }
   0x6   : > { %223 = sbr.rel (%p220_p2) target bundleno = 675 (0x2a3), region = 32  ;;  %vm5158_vm2 = vmor (!%p220_p2), %vm1075_vm0, %vm1076_vm1  ;;  %vm480_vm4 = vsmask.f32 (!%p220_p2), 7440  ;;  %s5100_s28 = smov (!%p220_p2), 20   ;;  %vm414_vm6 = vcmask (!%p220_p2), 31744   ;;  %vm962_vm7 = vcmask (!%p220_p2), 64544  }
   0x7   : > { %s5101_s29 = smov (!%p220_p2), 8   ;;  %vm5199_vm5 = vmor (!%p220_p2), %vm479_vm3, %vm480_vm4  ;;  %s5102_s30 = smov (!%p220_p2), 4   ;;  %vm1286_vm8 = vcmask (!%p220_p2), 97344   ;;  %vm1464_vm9 = vcmask (!%p220_p2), 130144   ;;  %vm2009_vm10 = vcmask (!%p220_p2), 162944   ;;  %vm2330_vm11 = vcmask (!%p220_p2), 195744  }
   0x8   : > { %s5103_s7 = smov (!%p220_p2), 16   ;;  %s5104_s8 = smov (!%p220_p2), 24   ;;  %vm2508_vm12 = vcmask (!%p220_p2), 228544   ;;  %vm3053_vm13 = vcmask (!%p220_p2), 261344   ;;  %vm3374_vm14 = vcmask (!%p220_p2), 294144   ;;  %vm3476_vm15 = vcmask (!%p220_p2), 1041408  }
   0x9   : > { %s5105_s9 = smov (!%p220_p2), 28   ;;  %s5106_s10 = smov (!%p220_p2), 32   ;;  %vm3427_vm0 = vcmask (!%p220_p2), 293888   ;;  %vm3641_vm1 = vcmask (!%p220_p2), 64512  }
   0xd   : > { %s6626_s22 = smov (!%p262_p3, %s4414_s22), 1 }
   0xe   : > { %s5023_s23 = smul.u32 216, %s6626_s22  ;;  %s4911_s19 = sshll.u32 %s6626_s22, 8 }
   0xf   : > { %s6301_s24 = scalar_lea.vmem %s6617_s3, %s4911_s19 }
  0x10   : > { %s5156_s26 = scalar_lea.vmem %s6614_s0, %s5023_s23 }
  0x11   : > { %v5040_v1 = vld [vmem:[%s5156_s26 + $0x18] sm:$0xff]   ;;  %v5041_v2 = vld [vmem:[%s5156_s26 + $0xc] sm:$0xff]   ;;  %v4604_v5 = vld [vmem:[%s5156_s26 + $0x14] sm:$0x1] }
  0x12   : > { %1418 = vrot.lane.b32.xlu1 %v5040_v1, %s5099_s27  ;;  %v4602_v3 = vld [vmem:[%s5156_s26 + $0xc] sm:$0xe]  ;;  %v4603_v4 = vld [vmem:[%s5156_s26 + $0x10] sm:$0xf]  ;;  %1416 = vrot.lane.b32.xlu0 %v5041_v2, %s5099_s27  ;;  %v2127_v8 = vrot.slane %v4604_v5, 5 }
  0x13   : > { %v4650_v6 = vrot.slane %v4602_v3, 9  ;;  %v2124_v7 = vrot.slane %v4603_v4, 5  ;;  %v979_v9 = vld [vmem:[%s5156_s26] sm:$0xe]  ;;  %v980_v10 = vld [vmem:[%s5156_s26 + $0x4] sm:$0xf] }
  0x14   : > { %v981_v11 = vld [vmem:[%s5156_s26 + $0x8] sm:$0x1]  ;;  %v4458_v12 = vrot.slane %v979_v9, 9  ;;  %v1080_v15 = vrot.slane %v980_v10, 5  ;;  %v982_v17 = vld [vmem:[%s5156_s26 + $0xc] sm:$0xe] }
  0x15   : > { %v2125_v13 = vsel %vm5158_vm2, %v4650_v6, %v2124_v7  ;;  %v2126_v14 = vrot.slane %v2124_v7, 4  ;;  %v1083_v16 = vrot.slane %v981_v11, 5  ;;  %v983_v18 = vld [vmem:[%s5156_s26 + $0x10] sm:$0xf]  ;;  %v984_v19 = vld [vmem:[%s5156_s26 + $0x14] sm:$0x1] }
  0x16   : > { %v4459_v20 = vrot.slane %v982_v17, 9  ;;  %v1081_v22 = vsel %vm5158_vm2, %v4458_v12, %v1080_v15  ;;  %v1082_v23 = vrot.slane %v1080_v15, 4  ;;  %v1087_v24 = vrot.slane %v983_v18, 5  ;;  %v431_v25 = vld [vmem:[%s5156_s26] sm:$0xf] }
  0x17   : > { %v2128_v21 = vsel %vm5158_vm2, %v2126_v14, %v2127_v8  ;;  %v432_v26 = vld [vmem:[%s5156_s26 + $0x4] sm:$0xf]  ;;  %v1090_v28 = vrot.slane %v984_v19, 5  ;;  %v433_v29 = vld [vmem:[%s5156_s26 + $0x8] sm:$0x1]  ;;  %v483_v30 = vshrl.u32 %v431_v25, 16 }
  0x18   : > { %v4666_v27 = vcombine.low %v2125_v13, %v2128_v21  ;;  %v486_v31 = vshll.u32 %v431_v25, 16  ;;  %v1084_v32 = vsel %vm5158_vm2, %v1082_v23, %v1083_v16  ;;  %v1088_v33 = vsel %vm5158_vm2, %v4459_v20, %v1087_v24  ;;  %v4605_v36 = vld [vmem:[%s5156_s26 + $0x18] sm:$0xe]  ;;  %v4606_v37 = vld [vmem:[%s5156_s26 + $0x1c] sm:$0xf] }
  0x19   : > { %v1089_v34 = vrot.slane %v1087_v24, 4  ;;  %v492_v35 = vshll.u32 %v432_v26, 16  ;;  %v4474_v38 = vcombine.low %v1081_v22, %v1084_v32  ;;  %v485_v39 = vrot.slane %v483_v30, 4  ;;  %v4607_v42 = vld [vmem:[%s5156_s26 + $0x20] sm:$0x1] }
  0x1a   : > { %2282 = vrot.lane.b32.xlu0 %v4666_v27, %s5100_s28  ;;  %v488_v40 = vrot.slane %v486_v31, 5  ;;  %v496_v41 = vshrl.u32 %v432_v26, 16  ;;  %v502_v45 = vshll.u32 %v433_v29, 16  ;;  %v4651_v46 = vrot.slane %v4605_v36, 9  ;;  %v434_v47 = vld [vmem:[%s5156_s26 + $0xc] sm:$0xf] }
  0x1b   : > { %v1091_v43 = vsel %vm5158_vm2, %v1089_v34, %v1090_v28  ;;  %v494_v44 = vrot.slane %v492_v35, 5  ;;  %1238 = vrot.lane.b32.xlu1 %v4474_v38, %s5101_s29  ;;  %v2131_v51 = vrot.slane %v4606_v37, 5  ;;  %v435_v52 = vld [vmem:[%s5156_s26 + $0x10] sm:$0xf]  ;;  %v2134_v55 = vrot.slane %v4607_v42, 5 }
  0x1c   : > { %v4475_v48 = vcombine.low %v1088_v33, %v1091_v43  ;;  %v489_v49 = vor.u32 %v488_v40, %v485_v39  ;;  %v498_v50 = vrot.slane %v496_v41, 4  ;;  %v504_v54 = vrot.slane %v502_v45, 5  ;;  %v436_v56 = vld [vmem:[%s5156_s26 + $0x14] sm:$0x1]  ;;  %v4541_v63 = vld [vmem:[%s5156_s26 + $0x18] sm:$0xf] }
  0x1d   : > { %v507_v57 = vshrl.u32 %v434_v47, 16  ;;  %v510_v58 = vshll.u32 %v434_v47, 16  ;;  %v2132_v61 = vsel %vm5158_vm2, %v4651_v46, %v2131_v51  ;;  %v2133_v62 = vrot.slane %v2131_v51, 4  ;;  %v4542_v5 = vld [vmem:[%s5156_s26 + $0x1c] sm:$0xf] }
  0x1e   : > { %v490_v59 = vrot.slane %v489_v49, 4  ;;  %v499_v60 = vor.u32 %v498_v50, %v494_v44  ;;  %v516_v3 = vshll.u32 %v435_v52, 16  ;;  %v520_v4 = vshrl.u32 %v435_v52, 16  ;;  %v4543_v10 = vld [vmem:[%s5156_s26 + $0x20] sm:$0x1] }
  0x1f   : > { %v509_v1 = vrot.slane %v507_v57, 4  ;;  %v512_v2 = vrot.slane %v510_v58, 5  ;;  %1240 = vrot.lane.b32.xlu1 %v4475_v48, %s5101_s29  ;;  %v2135_v8 = vsel %vm5158_vm2, %v2133_v62, %v2134_v55  ;;  %v526_v9 = vshll.u32 %v436_v56, 16  ;;  %v4538_v11 = vld [vmem:[%s5156_s26 + $0xc] sm:$0xf] }
  0x20   : > { %v495_v6 = vsel %vm5199_vm5, %v490_v59, %v494_v44  ;;  %v500_v7 = vrot.slane %v499_v60, 4  ;;  %v4667_v12 = vcombine.low %v2132_v61, %v2135_v8  ;;  %v518_v14 = vrot.slane %v516_v3, 5  ;;  %v4539_v28 = vld [vmem:[%s5156_s26 + $0x10] sm:$0xf]  ;;  %v4540_v32 = vld [vmem:[%s5156_s26 + $0x14] sm:$0x1] }
  0x21   : > { %v513_v13 = vor.u32 %v512_v2, %v509_v1  ;;  %v522_v15 = vrot.slane %v520_v4, 4  ;;  %v528_v17 = vrot.slane %v526_v9, 5  ;;  %v1554_v18 = vshrl.u32 %v4541_v63, 16  ;;  %v4730_v38 = vld [vmem:[%s5156_s26 + $0x18] sm:$0xf] }
  0x22   : > { %v505_v16 = vsel %vm5199_vm5, %v500_v7, %v504_v54  ;;  %v1557_v19 = vshll.u32 %v4541_v63, 16  ;;  %v1563_v23 = vshll.u32 %v4542_v5, 16  ;;  %v1567_v26 = vshrl.u32 %v4542_v5, 16  ;;  %v4731_v47 = vld [vmem:[%s5156_s26 + $0x1c] sm:$0xf] }
  0x23   : > { %v4442_v20 = vcombine.low %v495_v6, %v505_v16  ;;  %v514_v21 = vrot.slane %v513_v13, 4  ;;  %v523_v22 = vor.u32 %v522_v15, %v518_v14  ;;  %2284 = vrot.lane.b32.xlu1 %v4667_v12, %s5100_s28  ;;  %v1556_v24 = vrot.slane %v1554_v18, 4  ;;  %v4732_v56 = vld [vmem:[%s5156_s26 + $0x20] sm:$0x1]  ;;  %v4733_v62 = vld [vmem:[%s5156_s26 + $0x24] sm:$0xf] }
  0x24   : > { %v1559_v25 = vrot.slane %v1557_v19, 5  ;;  %v1573_v27 = vshll.u32 %v4543_v10, 16  ;;  %v1565_v31 = vrot.slane %v1563_v23, 5  ;;  %v1530_v33 = vshrl.u32 %v4538_v11, 16  ;;  %v4734_v4 = vld [vmem:[%s5156_s26 + $0x28] sm:$0xf] }
  0x25   : > { %914 = vrot.lane.b32.xlu0 %v4442_v20, %s5102_s30  ;;  %v519_v29 = vsel %vm5199_vm5, %v514_v21, %v518_v14  ;;  %v524_v30 = vrot.slane %v523_v22, 4  ;;  %v1569_v35 = vrot.slane %v1567_v26, 4  ;;  %v1533_v37 = vshll.u32 %v4538_v11, 16  ;;  %v4735_v12 = vld [vmem:[%s5156_s26 + $0x2c] sm:$0x1]  ;;  %v5043_v16 = vld [vmem:[%s5156_s26 + $0x24] sm:$0xff]  }
  0x26   : > { %v1560_v34 = vor.u32 %v1559_v25, %v1556_v24  ;;  %v1575_v36 = vrot.slane %v1573_v27, 5  ;;  %v1532_v40 = vrot.slane %v1530_v33, 4  ;;  %v1539_v41 = vshll.u32 %v4539_v28, 16  ;;  %v4794_v14 = vld [vmem:[%s5156_s26 + $0x18] sm:$0xe] }
  0x27   : > { %v529_v39 = vsel %vm5199_vm5, %v524_v30, %v528_v17  ;;  %v1543_v42 = vshrl.u32 %v4539_v28, 16  ;;  %v1570_v45 = vor.u32 %v1569_v35, %v1565_v31  ;;  %v1535_v46 = vrot.slane %v1533_v37, 5  ;;  %v4795_v20 = vld [vmem:[%s5156_s26 + $0x1c] sm:$0xf]  ;;  %v4796_v25 = vld [vmem:[%s5156_s26 + $0x20] sm:$0x1] }
  0x28   : > { %v4443_v43 = vcombine.low %v519_v29, %v529_v39  ;;  %v1561_v44 = vrot.slane %v1560_v34, 4  ;;  %v1541_v48 = vrot.slane %v1539_v41, 5  ;;  %v1549_v50 = vshll.u32 %v4540_v32, 16  ;;  %v437_v30 = vld [vmem:[%s5156_s26 + $0x18] sm:$0xf] }
  0x29   : > { %v1545_v49 = vrot.slane %v1543_v42, 4  ;;  %v2574_v51 = vshrl.u32 %v4730_v38, 16  ;;  %v1571_v54 = vrot.slane %v1570_v45, 4  ;;  %v1536_v55 = vor.u32 %v1535_v46, %v1532_v40  ;;  %v439_v41 = vld [vmem:[%s5156_s26 + $0x20] sm:$0x1] }
  0x2a   : > { %916 = vrot.lane.b32.xlu0 %v4443_v43, %s5102_s30  ;;  %v1566_v52 = vsel %vm5199_vm5, %v1561_v44, %v1565_v31  ;;  %v2577_v57 = vshll.u32 %v4730_v38, 16  ;;  %v1551_v59 = vrot.slane %v1549_v50, 5  ;;  %v2583_v61 = vshll.u32 %v4731_v47, 16  ;;  %v5042_v31 = vld [vmem:[%s5156_s26 + $0x18] sm:$0xff]   ;;  %v4797_v42 = vld [vmem:[%s5156_s26 + $0x24] sm:$0xe] }
  0x2b   : > { %v1546_v58 = vor.u32 %v1545_v49, %v1541_v48  ;;  %v2576_v60 = vrot.slane %v2574_v51, 4  ;;  %v1576_v63 = vsel %vm5199_vm5, %v1571_v54, %v1575_v36  ;;  %v1537_v1 = vrot.slane %v1536_v55, 4  ;;  %v438_v36 = vld [vmem:[%s5156_s26 + $0x1c] sm:$0xf]  ;;  %v440_v54 = vld [vmem:[%s5156_s26 + $0x24] sm:$0xf] }
  0x2c   : > { %v2579_v2 = vrot.slane %v2577_v57, 5  ;;  %v2587_v3 = vshrl.u32 %v4731_v47, 16  ;;  %v5235_v5 = vcombine.low %v1566_v52, %v1576_v63  ;;  %v2585_v7 = vrot.slane %v2583_v61, 5  ;;  %v4798_v47 = vld [vmem:[%s5156_s26 + $0x28] sm:$0xf] }
  0x2d   : > { %v1547_v6 = vrot.slane %v1546_v58, 4  ;;  %v2593_v8 = vshll.u32 %v4732_v56, 16  ;;  %v1542_v9 = vsel %vm5199_vm5, %v1537_v1, %v1541_v48  ;;  %v2598_v13 = vshrl.u32 %v4733_v62, 16  ;;  %v4799_v48 = vld [vmem:[%s5156_s26 + $0x2c] sm:$0x1] }
  0x2e   : > { %v2580_v10 = vor.u32 %v2579_v2, %v2576_v60  ;;  %v2589_v11 = vrot.slane %v2587_v3, 4  ;;  %1963 = vrot.lane.b32.xlu1 %v5235_v5, %s5103_s7  ;;  %v2601_v18 = vshll.u32 %v4733_v62, 16  ;;  %v2607_v19 = vshll.u32 %v4734_v4, 16 }
  0x2f   : > { %v1552_v15 = vsel %vm5199_vm5, %v1547_v6, %v1551_v59  ;;  %v2595_v17 = vrot.slane %v2593_v8, 5  ;;  %v2600_v24 = vrot.slane %v2598_v13, 4  ;;  %v2611_v28 = vshrl.u32 %v4734_v4, 16  ;;  %v442_v13 = vld [vmem:[%s5156_s26 + $0x2c] sm:$0x1] }
  0x30   : > { %v5247_v21 = vcombine.low %v1542_v9, %v1552_v15  ;;  %v2581_v22 = vrot.slane %v2580_v10, 4  ;;  %v2590_v23 = vor.u32 %v2589_v11, %v2585_v7  ;;  %v2603_v26 = vrot.slane %v2601_v18, 5  ;;  %v441_v9 = vld [vmem:[%s5156_s26 + $0x28] sm:$0xf]  ;;  %v985_v15 = vld [vmem:[%s5156_s26 + $0x18] sm:$0xe] }
  0x31   : > { %v2609_v27 = vrot.slane %v2607_v19, 5  ;;  %v2617_v29 = vshll.u32 %v4735_v12, 16  ;;  %v4842_v34 = vrot.slane %v4794_v14, 9  ;;  %v3168_v35 = vrot.slane %v4795_v20, 5  ;;  %v986_v20 = vld [vmem:[%s5156_s26 + $0x1c] sm:$0xf] }
  0x32   : > { %1961 = vrot.lane.b32.xlu0 %v5247_v21, %s5103_s7  ;;  %v2586_v32 = vsel %vm5199_vm5, %v2581_v22, %v2585_v7  ;;  %v2591_v33 = vrot.slane %v2590_v23, 4  ;;  %2462 = vrot.lane.b32.xlu1 %v5043_v16, %s5104_s8  ;;  %v2604_v37 = vor.u32 %v2603_v26, %v2600_v24  ;;  %v2613_v38 = vrot.slane %v2611_v28, 4  ;;  %v987_v26 = vld [vmem:[%s5156_s26 + $0x20] sm:$0x1] }
  0x33   : > { %v2619_v39 = vrot.slane %v2617_v29, 5  ;;  %v3171_v40 = vrot.slane %v4796_v25, 5  ;;  %v3169_v44 = vsel %vm5158_vm2, %v4842_v34, %v3168_v35  ;;  %v3170_v45 = vrot.slane %v3168_v35, 4  ;;  %4989 = vmatprep.mubr.msk.bf16.mxu1 %vm414_vm6, %v5247_v21 }
  0x34   : > { %v2596_v43 = vsel %vm5199_vm5, %v2591_v33, %v2595_v17  ;;  %v531_v46 = vshrl.u32 %v437_v30, 16  ;;  %v2605_v50 = vrot.slane %v2604_v37, 4  ;;  %v2614_v51 = vor.u32 %v2613_v38, %v2609_v27  ;;  %v990_v37 = vld [vmem:[%s5156_s26 + $0x2c] sm:$0x1]  ;;  %v4544_v38 = vld [vmem:[%s5156_s26 + $0x24] sm:$0xf] }
  0x35   : > { %v4778_v49 = vcombine.low %v2586_v32, %v2596_v43  ;;  %v534_v52 = vshll.u32 %v437_v30, 16  ;;  %v3172_v55 = vsel %vm5158_vm2, %v3170_v45, %v3171_v40  ;;  %v540_v57 = vshll.u32 %v438_v36, 16  ;;  %v989_v32 = vld [vmem:[%s5156_s26 + $0x28] sm:$0xf] }
  0x36   : > { %2460 = vrot.lane.b32.xlu0 %v5042_v31, %s5104_s8  ;;  %v533_v56 = vrot.slane %v531_v46, 4  ;;  %v544_v58 = vshrl.u32 %v438_v36, 16  ;;  %v2610_v59 = vsel %vm5199_vm5, %v2605_v50, %v2609_v27  ;;  %v2615_v60 = vrot.slane %v2614_v51, 4  ;;  %v988_v31 = vld [vmem:[%s5156_s26 + $0x24] sm:$0xe] }
  0x37   : > { %v4858_v61 = vcombine.low %v3169_v44, %v3172_v55  ;;  %v536_v62 = vrot.slane %v534_v52, 5  ;;  %v542_v63 = vrot.slane %v540_v57, 5  ;;  %v550_v2 = vshll.u32 %v439_v41, 16  ;;  %v4545_v43 = vld [vmem:[%s5156_s26 + $0x28] sm:$0xf]  ;;  %v5060_v57 = vld [vmem:[%s6615_s1] sm:$0xff]  }
  0x38   : > { %v546_v1 = vrot.slane %v544_v58, 4  ;;  %v4843_v3 = vrot.slane %v4797_v42, 9  ;;  %v2620_v4 = vsel %vm5199_vm5, %v2615_v60, %v2619_v39  ;;  %v3175_v7 = vrot.slane %v4798_v47, 5  ;;  %4949 = vmatprep.subr.bf16.mxu0 %v5060_v57 }
  0x39   : > { %v537_v6 = vor.u32 %v536_v62, %v533_v56  ;;  %v3178_v8 = vrot.slane %v4799_v48, 5  ;;  %v4779_v10 = vcombine.low %v2610_v59, %v2620_v4  ;;  %v552_v12 = vrot.slane %v550_v2, 5  ;;  %v4547_v4 = vld [vmem:[%s5156_s26 + $0x30] sm:$0xf]  ;;  %4950 = vmatpush3.bf16.msra.mxu0 %v5060_v57 }
  0x3a   : > { %3005 = vrot.lane.b32.xlu0 %v4778_v49, %s5105_s9  ;;  %v547_v11 = vor.u32 %v546_v1, %v542_v63  ;;  %v555_v14 = vshrl.u32 %v440_v54, 16  ;;  %v3176_v17 = vsel %vm5158_vm2, %v4843_v3, %v3175_v7  ;;  %v3177_v18 = vrot.slane %v3175_v7, 4 }
  0x3b   : > { %v538_v16 = vrot.slane %v537_v6, 4  ;;  %v558_v19 = vshll.u32 %v440_v54, 16  ;;  %3007 = vrot.lane.b32.xlu1 %v4779_v10, %s5105_s9  ;;  %v564_v24 = vshll.u32 %v441_v9, 16  ;;  %v568_v25 = vshrl.u32 %v441_v9, 16  ;;  %v4548_v6 = vld [vmem:[%s5156_s26 + $0x34] sm:$0xf] }
  0x3c   : > { %v548_v22 = vrot.slane %v547_v11, 4  ;;  %v557_v23 = vrot.slane %v555_v14, 4  ;;  %v3179_v28 = vsel %vm5158_vm2, %v3177_v18, %v3178_v8  ;;  %v574_v30 = vshll.u32 %v442_v13, 16  ;;  %v5044_v10 = vld [vmem:[%s5156_s26 + $0x24] sm:$0xff]  }
  0x3d   : > { %v543_v27 = vsel %vm5199_vm5, %v538_v16, %v542_v63  ;;  %v560_v29 = vrot.slane %v558_v19, 5  ;;  %v4859_v34 = vcombine.low %v3176_v17, %v3179_v28  ;;  %v566_v35 = vrot.slane %v564_v24, 5  ;;  %v4608_v13 = vld [vmem:[%s5156_s26 + $0x24] sm:$0xe]  ;;  %v4609_v18 = vld [vmem:[%s5156_s26 + $0x28] sm:$0xf] }
  0x3e   : > { %3326 = vrot.lane.b32.xlu0 %v4858_v61, %s5106_s10  ;;  %v553_v33 = vsel %vm5199_vm5, %v548_v22, %v552_v12  ;;  %v570_v36 = vrot.slane %v568_v25, 4  ;;  %v576_v41 = vrot.slane %v574_v30, 5  ;;  %v4460_v42 = vrot.slane %v985_v15, 9  ;;  %v4546_v61 = vld [vmem:[%s5156_s26 + $0x2c] sm:$0x1] }
  0x3f   : > { %v4444_v39 = vcombine.low %v543_v27, %v553_v33  ;;  %v561_v40 = vor.u32 %v560_v29, %v557_v23  ;;  %v1094_v45 = vrot.slane %v986_v20, 5  ;;  %v1097_v46 = vrot.slane %v987_v26, 5  ;;  %v4549_v12 = vld [vmem:[%s5156_s26 + $0x38] sm:$0x1]  ;;  %v4610_v19 = vld [vmem:[%s5156_s26 + $0x2c] sm:$0x1] }
  0x40   : > { %v571_v44 = vor.u32 %v570_v36, %v566_v35  ;;  %v4461_v47 = vrot.slane %v988_v31, 9  ;;  %v1101_v49 = vrot.slane %v989_v32, 5  ;;  %v1104_v50 = vrot.slane %v990_v37, 5  ;;  %v4611_v25 = vld [vmem:[%s5156_s26 + $0x30] sm:$0xe]  ;;  %v5062_v36 = vld [vmem:[%s6615_s1 + $0x8] sm:$0xff]  }
  0x41   : > { %918 = vrot.lane.b32.xlu1 %v4444_v39, %s5102_s30  ;;  %v562_v48 = vrot.slane %v561_v40, 4  ;;  %v1578_v51 = vshrl.u32 %v4544_v38, 16  ;;  %v1095_v54 = vsel %vm5158_vm2, %v4460_v42, %v1094_v45  ;;  %v1096_v55 = vrot.slane %v1094_v45, 4  ;;  %v4612_v30 = vld [vmem:[%s5156_s26 + $0x34] sm:$0xf]  ;;  %4951 = vmatprep.subr.bf16.mxu0 %v5062_v36 }
  0x42   : > { %3328 = vrot.lane.b32.xlu0 %v4859_v34, %s5106_s10  ;;  %v572_v52 = vrot.slane %v571_v44, 4  ;;  %v1581_v56 = vshll.u32 %v4544_v38, 16  ;;  %v1102_v59 = vsel %vm5158_vm2, %v4461_v47, %v1101_v49  ;;  %v1103_v60 = vrot.slane %v1101_v49, 4  ;;  %4952 = vmatpush3.bf16.msra.mxu0 %v5062_v36 }
  0x43   : > { %v567_v58 = vsel %vm5199_vm5, %v562_v48, %v566_v35  ;;  %v1580_v62 = vrot.slane %v1578_v51, 4  ;;  %v1098_v1 = vsel %vm5158_vm2, %v1096_v55, %v1097_v46  ;;  %v1587_v3 = vshll.u32 %v4545_v43, 16  ;;  %v4613_v35 = vld [vmem:[%s5156_s26 + $0x38] sm:$0x1] }
  0x44   : > { %v577_v63 = vsel %vm5199_vm5, %v572_v52, %v576_v41  ;;  %v1583_v2 = vrot.slane %v1581_v56, 5  ;;  %v4476_v8 = vcombine.low %v1095_v54, %v1098_v1  ;;  %v1105_v9 = vsel %vm5158_vm2, %v1103_v60, %v1104_v50  ;;  %v5045_v41 = vld [vmem:[%s5156_s26 + $0x30] sm:$0xff]  }
  0x45   : > { %v4445_v7 = vcombine.low %v567_v58, %v577_v63  ;;  %v1591_v11 = vshrl.u32 %v4545_v43, 16  ;;  %v4477_v14 = vcombine.low %v1102_v59, %v1105_v9  ;;  %v1589_v16 = vrot.slane %v1587_v3, 5  ;;  %v4736_v50 = vld [vmem:[%s5156_s26 + $0x30] sm:$0xf]  ;;  %v4737_v56 = vld [vmem:[%s5156_s26 + $0x34] sm:$0xf] }
  0x46   : > { %v1584_v15 = vor.u32 %v1583_v2, %v1580_v62  ;;  %v1597_v17 = vshll.u32 %v4546_v61, 16  ;;  %1242 = vrot.lane.b32.xlu0 %v4476_v8, %s5101_s29  ;;  %v1602_v22 = vshrl.u32 %v4547_v4, 16  ;;  %v1605_v23 = vshll.u32 %v4547_v4, 16  ;;  %v4738_v63 = vld [vmem:[%s5156_s26 + $0x38] sm:$0x1] }
  0x47   : > { %920 = vrot.lane.b32.xlu1 %v4445_v7, %s5102_s30  ;;  %v1593_v20 = vrot.slane %v1591_v11, 4  ;;  %v1611_v24 = vshll.u32 %v4548_v6, 16  ;;  %v1615_v28 = vshrl.u32 %v4548_v6, 16  ;;  %v1621_v29 = vshll.u32 %v4549_v12, 16  ;;  %v4739_v3 = vld [vmem:[%s5156_s26 + $0x3c] sm:$0xf] }
  0x48   : > { %v1585_v26 = vrot.slane %v1584_v15, 4  ;;  %v1599_v27 = vrot.slane %v1597_v17, 5  ;;  %v1604_v32 = vrot.slane %v1602_v22, 4  ;;  %v1607_v33 = vrot.slane %v1605_v23, 5  ;;  %v4740_v9 = vld [vmem:[%s5156_s26 + $0x40] sm:$0xf] }
  0x49   : > { %v1594_v31 = vor.u32 %v1593_v20, %v1589_v16  ;;  %v1613_v34 = vrot.slane %v1611_v24, 5  ;;  %v1617_v38 = vrot.slane %v1615_v28, 4  ;;  %v1623_v39 = vrot.slane %v1621_v29, 5  ;;  %v4800_v15 = vld [vmem:[%s5156_s26 + $0x30] sm:$0xe] }
  0x4a   : > { %v1590_v37 = vsel %vm5199_vm5, %v1585_v26, %v1589_v16  ;;  %v4652_v40 = vrot.slane %v4608_v13, 9  ;;  %1420 = vrot.lane.b32.xlu0 %v5044_v10, %s5099_s27  ;;  %v1608_v43 = vor.u32 %v1607_v33, %v1604_v32  ;;  %v2138_v44 = vrot.slane %v4609_v18, 5  ;;  %v4741_v10 = vld [vmem:[%s5156_s26 + $0x44] sm:$0x1]  ;;  %v4801_v16 = vld [vmem:[%s5156_s26 + $0x34] sm:$0xf] }
  0x4b   : > { %1244 = vrot.lane.b32.xlu1 %v4477_v14, %s5101_s29  ;;  %v1595_v42 = vrot.slane %v1594_v31, 4  ;;  %v2141_v45 = vrot.slane %v4610_v19, 5  ;;  %v1618_v46 = vor.u32 %v1617_v38, %v1613_v34  ;;  %v4653_v47 = vrot.slane %v4611_v25, 9  ;;  %v4802_v22 = vld [vmem:[%s5156_s26 + $0x38] sm:$0x1]  ;;  %v5046_v23 = vld [vmem:[%s5156_s26 + $0x30] sm:$0xff]  }
  0x4c   : > { %v2145_v48 = vrot.slane %v4612_v30, 5  ;;  %v2148_v49 = vrot.slane %v4613_v35, 5  ;;  %v1609_v52 = vrot.slane %v1608_v43, 4  ;;  %v2139_v54 = vsel %vm5158_vm2, %v4652_v40, %v2138_v44  ;;  %v443_v28 = vld [vmem:[%s5156_s26 + $0x30] sm:$0xf] }
  0x4d   : > { %v1600_v51 = vsel %vm5199_vm5, %v1595_v42, %v1599_v27  ;;  %v2140_v55 = vrot.slane %v2138_v44, 4  ;;  %v1619_v58 = vrot.slane %v1618_v46, 4  ;;  %v2622_v1 = vshrl.u32 %v4736_v50, 16  ;;  %v5047_v42 = vld [vmem:[%s5156_s26 + $0x3c] sm:$0xff]  }
  0x4e   : > { %v5339_v57 = vcombine.low %v1590_v37, %v1600_v51  ;;  %v2146_v59 = vsel %vm5158_vm2, %v4653_v47, %v2145_v48  ;;  %v2147_v60 = vrot.slane %v2145_v48, 4  ;;  %v1614_v61 = vsel %vm5199_vm5, %v1609_v52, %v1613_v34 }
  0x4f   : > { %1422 = vrot.lane.b32.xlu1 %v5045_v41, %s5099_s27  ;;  %v2142_v62 = vsel %vm5158_vm2, %v2140_v55, %v2141_v45  ;;  %v2625_v2 = vshll.u32 %v4736_v50, 16  ;;  %v1624_v4 = vsel %vm5199_vm5, %v1619_v58, %v1623_v39  ;;  %v2631_v8 = vshll.u32 %v4737_v56, 16  ;;  %v444_v41 = vld [vmem:[%s5156_s26 + $0x34] sm:$0xf]  ;;  %v445_v50 = vld [vmem:[%s5156_s26 + $0x38] sm:$0x1] }
  0x50   : > { %1965 = vrot.lane.b32.xlu0 %v5339_v57, %s5103_s7  ;;  %v4668_v6 = vcombine.low %v2139_v54, %v2142_v62  ;;  %v2149_v7 = vsel %vm5158_vm2, %v2147_v60, %v2148_v49  ;;  %v5358_v11 = vcombine.low %v1614_v61, %v1624_v4  ;;  %v2624_v13 = vrot.slane %v2622_v1, 4  ;;  %v4803_v58 = vld [vmem:[%s5156_s26 + $0x3c] sm:$0xe]  ;;  %v4805_v1 = vld [vmem:[%s5156_s26 + $0x44] sm:$0x1] }
  0x51   : > { %v4669_v12 = vcombine.low %v2146_v59, %v2149_v7  ;;  %v2627_v14 = vrot.slane %v2625_v2, 5  ;;  %v2633_v17 = vrot.slane %v2631_v8, 5  ;;  %v2635_v18 = vshrl.u32 %v4737_v56, 16  ;;  %v446_v7 = vld [vmem:[%s5156_s26 + $0x3c] sm:$0xf] }
  0x52   : > { %v2641_v19 = vshll.u32 %v4738_v63, 16  ;;  %v2646_v20 = vshrl.u32 %v4739_v3, 16  ;;  %v2649_v25 = vshll.u32 %v4739_v3, 16  ;;  %v2655_v26 = vshll.u32 %v4740_v9, 16  ;;  %v4804_v63 = vld [vmem:[%s5156_s26 + $0x40] sm:$0xf] }
  0x53   : > { %1967 = vrot.lane.b32.xlu1 %v5358_v11, %s5103_s7  ;;  %v2628_v24 = vor.u32 %v2627_v14, %v2624_v13  ;;  %v2659_v27 = vshrl.u32 %v4740_v9, 16  ;;  %v2637_v29 = vrot.slane %v2635_v18, 4  ;;  %v2665_v32 = vshll.u32 %v4741_v10, 16  ;;  %v447_v13 = vld [vmem:[%s5156_s26 + $0x40] sm:$0xf] }
  0x54   : > { %2286 = vrot.lane.b32.xlu0 %v4668_v6, %s5100_s28  ;;  %v2643_v30 = vrot.slane %v2641_v19, 5  ;;  %v2648_v31 = vrot.slane %v2646_v20, 4  ;;  %v2651_v34 = vrot.slane %v2649_v25, 5  ;;  %v2657_v35 = vrot.slane %v2655_v26, 5  ;;  %v448_v18 = vld [vmem:[%s5156_s26 + $0x44] sm:$0x1] }
  0x55   : > { %v2629_v33 = vrot.slane %v2628_v24, 4  ;;  %v2661_v36 = vrot.slane %v2659_v27, 4  ;;  %v2638_v37 = vor.u32 %v2637_v29, %v2633_v17  ;;  %v2667_v38 = vrot.slane %v2665_v32, 5  ;;  %v991_v24 = vld [vmem:[%s5156_s26 + $0x30] sm:$0xe] }
  0x56   : > { %v4844_v39 = vrot.slane %v4800_v15, 9  ;;  %v3182_v40 = vrot.slane %v4801_v16, 5  ;;  %v2652_v44 = vor.u32 %v2651_v34, %v2648_v31  ;;  %v3185_v46 = vrot.slane %v4802_v22, 5  ;;  %v992_v29 = vld [vmem:[%s5156_s26 + $0x34] sm:$0xf] }
  0x57   : > { %2288 = vrot.lane.b32.xlu1 %v4669_v12, %s5100_s28  ;;  %v2634_v43 = vsel %vm5199_vm5, %v2629_v33, %v2633_v17  ;;  %v2662_v45 = vor.u32 %v2661_v36, %v2657_v35  ;;  %v2639_v47 = vrot.slane %v2638_v37, 4  ;;  %v579_v51 = vshrl.u32 %v443_v28, 16 }
  0x58   : > { %2464 = vrot.lane.b32.xlu0 %v5046_v23, %s5104_s8  ;;  %v3183_v48 = vsel %vm5158_vm2, %v4844_v39, %v3182_v40  ;;  %v3184_v49 = vrot.slane %v3182_v40, 4  ;;  %v2653_v52 = vrot.slane %v2652_v44, 4  ;;  %v582_v55 = vshll.u32 %v443_v28, 16  ;;  %v994_v39 = vld [vmem:[%s5156_s26 + $0x3c] sm:$0xe] }
  0x59   : > { %v2663_v54 = vrot.slane %v2662_v45, 4  ;;  %v588_v56 = vshll.u32 %v444_v41, 16  ;;  %v2644_v59 = vsel %vm5199_vm5, %v2639_v47, %v2643_v30  ;;  %v581_v61 = vrot.slane %v579_v51, 4  ;;  %v993_v30 = vld [vmem:[%s5156_s26 + $0x38] sm:$0x1] }
  0x5a   : > { %v3186_v60 = vsel %vm5158_vm2, %v3184_v49, %v3185_v46  ;;  %v592_v62 = vshrl.u32 %v444_v41, 16  ;;  %v4780_v2 = vcombine.low %v2634_v43, %v2644_v59  ;;  %v2658_v3 = vsel %vm5199_vm5, %v2653_v52, %v2657_v35  ;;  %v995_v44 = vld [vmem:[%s5156_s26 + $0x40] sm:$0xf]  ;;  %v996_v45 = vld [vmem:[%s5156_s26 + $0x44] sm:$0x1] }
  0x5b   : > { %2466 = vrot.lane.b32.xlu1 %v5047_v42, %s5104_s8  ;;  %v2668_v4 = vsel %vm5199_vm5, %v2663_v54, %v2667_v38  ;;  %v4860_v6 = vcombine.low %v3183_v48, %v3186_v60  ;;  %v584_v9 = vrot.slane %v582_v55, 5  ;;  %v590_v10 = vrot.slane %v588_v56, 5  ;;  %v4550_v46 = vld [vmem:[%s5156_s26 + $0x3c] sm:$0xf]  ;;  %v4551_v60 = vld [vmem:[%s5156_s26 + $0x40] sm:$0xf] }
  0x5c   : > { %v4781_v8 = vcombine.low %v2658_v3, %v2668_v4  ;;  %v594_v12 = vrot.slane %v592_v62, 4  ;;  %3009 = vrot.lane.b32.xlu0 %v4780_v2, %s5105_s9  ;;  %v598_v14 = vshll.u32 %v445_v50, 16  ;;  %v4845_v15 = vrot.slane %v4803_v58, 9  ;;  %v4552_v2 = vld [vmem:[%s5156_s26 + $0x44] sm:$0x1] }
  0x5d   : > { %v3189_v16 = vrot.slane %v4804_v63, 5  ;;  %v3192_v17 = vrot.slane %v4805_v1, 5  ;;  %v585_v19 = vor.u32 %v584_v9, %v581_v61  ;;  %v603_v22 = vshrl.u32 %v446_v7, 16  ;;  %v4553_v9 = vld [vmem:[%s5156_s26 + $0x48] sm:$0xf] }
  0x5e   : > { %v595_v20 = vor.u32 %v594_v12, %v590_v10  ;;  %v606_v23 = vshll.u32 %v446_v7, 16  ;;  %v600_v25 = vrot.slane %v598_v14, 5  ;;  %v612_v28 = vshll.u32 %v447_v13, 16 }
  0x5f   : > { %3011 = vrot.lane.b32.xlu1 %v4781_v8, %s5105_s9  ;;  %v3190_v26 = vsel %vm5158_vm2, %v4845_v15, %v3189_v16  ;;  %v3191_v27 = vrot.slane %v3189_v16, 4  ;;  %v586_v31 = vrot.slane %v585_v19, 4  ;;  %v605_v33 = vrot.slane %v603_v22, 4  ;;  %v4554_v15 = vld [vmem:[%s5156_s26 + $0x4c] sm:$0xf] }
  0x60   : > { %v596_v32 = vrot.slane %v595_v20, 4  ;;  %v608_v34 = vrot.slane %v606_v23, 5  ;;  %3330 = vrot.lane.b32.xlu0 %v4860_v6, %s5106_s10  ;;  %v614_v36 = vrot.slane %v612_v28, 5  ;;  %v616_v37 = vshrl.u32 %v447_v13, 16  ;;  %v4555_v20 = vld [vmem:[%s5156_s26 + $0x50] sm:$0x1] }
  0x61   : > { %v3193_v35 = vsel %vm5158_vm2, %v3191_v27, %v3192_v17  ;;  %v622_v38 = vshll.u32 %v448_v18, 16  ;;  %v591_v40 = vsel %vm5199_vm5, %v586_v31, %v590_v10  ;;  %v4462_v50 = vrot.slane %v991_v24, 9  ;;  %v4614_v22 = vld [vmem:[%s5156_s26 + $0x3c] sm:$0xe]  ;;  %v4615_v28 = vld [vmem:[%s5156_s26 + $0x40] sm:$0xf] }
  0x62   : > { %v601_v41 = vsel %vm5199_vm5, %v596_v32, %v600_v25  ;;  %v4861_v42 = vcombine.low %v3190_v26, %v3193_v35  ;;  %v609_v43 = vor.u32 %v608_v34, %v605_v33  ;;  %v618_v48 = vrot.slane %v616_v37, 4  ;;  %v5048_v25 = vld [vmem:[%s5156_s26 + $0x3c] sm:$0xff]   ;;  %v4617_v34 = vld [vmem:[%s5156_s26 + $0x48] sm:$0xe] }
  0x63   : > { %v4446_v47 = vcombine.low %v591_v40, %v601_v41  ;;  %v624_v49 = vrot.slane %v622_v38, 5  ;;  %v1108_v52 = vrot.slane %v992_v29, 5  ;;  %v1111_v54 = vrot.slane %v993_v30, 5  ;;  %v4616_v29 = vld [vmem:[%s5156_s26 + $0x44] sm:$0x1] }
  0x64   : > { %v610_v51 = vrot.slane %v609_v43, 4  ;;  %v4463_v55 = vrot.slane %v994_v39, 9  ;;  %3332 = vrot.lane.b32.xlu0 %v4861_v42, %s5106_s10  ;;  %v619_v56 = vor.u32 %v618_v48, %v614_v36  ;;  %v1115_v58 = vrot.slane %v995_v44, 5  ;;  %v4618_v39 = vld [vmem:[%s5156_s26 + $0x4c] sm:$0xf] }
  0x65   : > { %922 = vrot.lane.b32.xlu1 %v4446_v47, %s5102_s30  ;;  %v1118_v59 = vrot.slane %v996_v45, 5  ;;  %v1626_v61 = vshrl.u32 %v4550_v46, 16  ;;  %v1109_v63 = vsel %vm5158_vm2, %v4462_v50, %v1108_v52  ;;  %v1110_v1 = vrot.slane %v1108_v52, 4  ;;  %v4619_v44 = vld [vmem:[%s5156_s26 + $0x50] sm:$0x1] }
  0x66   : > { %v615_v62 = vsel %vm5199_vm5, %v610_v51, %v614_v36  ;;  %v1629_v3 = vshll.u32 %v4550_v46, 16  ;;  %v620_v4 = vrot.slane %v619_v56, 4  ;;  %v1116_v6 = vsel %vm5158_vm2, %v4463_v55, %v1115_v58 }
  0x67   : > { %v1117_v7 = vrot.slane %v1115_v58, 4  ;;  %v1628_v8 = vrot.slane %v1626_v61, 4  ;;  %v1112_v10 = vsel %vm5158_vm2, %v1110_v1, %v1111_v54  ;;  %v1635_v13 = vshll.u32 %v4551_v60, 16  ;;  %v5049_v54 = vld [vmem:[%s5156_s26 + $0x48] sm:$0xff]  }
  0x68   : > { %v1631_v12 = vrot.slane %v1629_v3, 5  ;;  %v1639_v14 = vshrl.u32 %v4551_v60, 16  ;;  %v625_v16 = vsel %vm5199_vm5, %v620_v4, %v624_v49  ;;  %v4478_v17 = vcombine.low %v1109_v63, %v1112_v10  ;;  %v4742_v60 = vld [vmem:[%s5156_s26 + $0x48] sm:$0xf]  ;;  %v4744_v3 = vld [vmem:[%s5156_s26 + $0x50] sm:$0x1] }
  0x69   : > { %v1119_v18 = vsel %vm5158_vm2, %v1117_v7, %v1118_v59  ;;  %v1645_v19 = vshll.u32 %v4552_v2, 16  ;;  %v4447_v23 = vcombine.low %v615_v62, %v625_v16  ;;  %v1637_v27 = vrot.slane %v1635_v13, 5  ;;  %v4743_v2 = vld [vmem:[%s5156_s26 + $0x4c] sm:$0xf] }
  0x6a   : > { %v4479_v24 = vcombine.low %v1116_v6, %v1119_v18  ;;  %v1632_v26 = vor.u32 %v1631_v12, %v1628_v8  ;;  %1246 = vrot.lane.b32.xlu0 %v4478_v17, %s5101_s29  ;;  %v1641_v30 = vrot.slane %v1639_v14, 4  ;;  %v1650_v32 = vshrl.u32 %v4553_v9, 16 }
  0x6b   : > { %v1647_v31 = vrot.slane %v1645_v19, 5  ;;  %v1653_v33 = vshll.u32 %v4553_v9, 16  ;;  %924 = vrot.lane.b32.xlu1 %v4447_v23, %s5102_s30  ;;  %v1659_v36 = vshll.u32 %v4554_v15, 16  ;;  %v1663_v37 = vshrl.u32 %v4554_v15, 16  ;;  %v4745_v9 = vld [vmem:[%s5156_s26 + $0x54] sm:$0xf] }
  0x6c   : > { %v1633_v35 = vrot.slane %v1632_v26, 4  ;;  %v1669_v38 = vshll.u32 %v4555_v20, 16  ;;  %v1642_v40 = vor.u32 %v1641_v30, %v1637_v27  ;;  %v1652_v41 = vrot.slane %v1650_v32, 4  ;;  %v4746_v19 = vld [vmem:[%s5156_s26 + $0x58] sm:$0xf] }
  0x6d   : > { %v1655_v42 = vrot.slane %v1653_v33, 5  ;;  %v4654_v43 = vrot.slane %v4614_v22, 9  ;;  %v1661_v46 = vrot.slane %v1659_v36, 5  ;;  %v1665_v47 = vrot.slane %v1663_v37, 4  ;;  %v4806_v30 = vld [vmem:[%s5156_s26 + $0x48] sm:$0xe] }
  0x6e   : > { %v1638_v45 = vsel %vm5199_vm5, %v1633_v35, %v1637_v27  ;;  %v1671_v48 = vrot.slane %v1669_v38, 5  ;;  %1424 = vrot.lane.b32.xlu0 %v5048_v25, %s5099_s27  ;;  %v1643_v49 = vrot.slane %v1642_v40, 4  ;;  %v2152_v51 = vrot.slane %v4615_v28, 5  ;;  %v4747_v25 = vld [vmem:[%s5156_s26 + $0x5c] sm:$0x1] }
  0x6f   : > { %v1656_v50 = vor.u32 %v1655_v42, %v1652_v41  ;;  %v2155_v52 = vrot.slane %v4616_v29, 5  ;;  %1248 = vrot.lane.b32.xlu1 %v4479_v24, %s5101_s29  ;;  %v1666_v55 = vor.u32 %v1665_v47, %v1661_v46  ;;  %v4655_v56 = vrot.slane %v4617_v34, 9  ;;  %v4807_v36 = vld [vmem:[%s5156_s26 + $0x4c] sm:$0xf]  ;;  %v4808_v41 = vld [vmem:[%s5156_s26 + $0x50] sm:$0x1] }
  0x70   : > { %v2159_v58 = vrot.slane %v4618_v39, 5  ;;  %v2162_v59 = vrot.slane %v4619_v44, 5  ;;  %v1648_v61 = vsel %vm5199_vm5, %v1643_v49, %v1647_v31  ;;  %v2153_v63 = vsel %vm5158_vm2, %v4654_v43, %v2152_v51  ;;  %v5050_v31 = vld [vmem:[%s5156_s26 + $0x48] sm:$0xff]  }
  0x71   : > { %v1657_v62 = vrot.slane %v1656_v50, 4  ;;  %v2154_v1 = vrot.slane %v2152_v51, 4  ;;  %v5450_v4 = vcombine.low %v1638_v45, %v1648_v61  ;;  %v1667_v6 = vrot.slane %v1666_v55, 4  ;;  %v450_v51 = vld [vmem:[%s5156_s26 + $0x4c] sm:$0xf] }
  0x72   : > { %v2160_v7 = vsel %vm5158_vm2, %v4655_v56, %v2159_v58  ;;  %v2161_v8 = vrot.slane %v2159_v58, 4  ;;  %v2670_v13 = vshrl.u32 %v4742_v60, 16  ;;  %v2673_v14 = vshll.u32 %v4742_v60, 16  ;;  %v5051_v58 = vld [vmem:[%s5156_s26 + $0x54] sm:$0xff]  }
  0x73   : > { %v1662_v10 = vsel %vm5199_vm5, %v1657_v62, %v1661_v46  ;;  %v2156_v12 = vsel %vm5158_vm2, %v2154_v1, %v2155_v52  ;;  %1426 = vrot.lane.b32.xlu1 %v5049_v54, %s5099_s27  ;;  %1969 = vrot.lane.b32.xlu0 %v5450_v4, %s5103_s7  ;;  %v1672_v15 = vsel %vm5199_vm5, %v1667_v6, %v1671_v48  ;;  %v2679_v18 = vshll.u32 %v4743_v2, 16  ;;  %v449_v46 = vld [vmem:[%s5156_s26 + $0x48] sm:$0xf]  ;;  %v451_v62 = vld [vmem:[%s5156_s26 + $0x50] sm:$0x1] }
  0x74   : > { %v4670_v16 = vcombine.low %v2153_v63, %v2156_v12  ;;  %v2163_v17 = vsel %vm5158_vm2, %v2161_v8, %v2162_v59  ;;  %v5467_v20 = vcombine.low %v1662_v10, %v1672_v15  ;;  %v2672_v23 = vrot.slane %v2670_v13, 4  ;;  %v4809_v1 = vld [vmem:[%s5156_s26 + $0x54] sm:$0xe] }
  0x75   : > { %v4671_v22 = vcombine.low %v2160_v7, %v2163_v17  ;;  %v2675_v24 = vrot.slane %v2673_v14, 5  ;;  %v2681_v26 = vrot.slane %v2679_v18, 5  ;;  %v2683_v27 = vshrl.u32 %v4743_v2, 16  ;;  %v4810_v2 = vld [vmem:[%s5156_s26 + $0x58] sm:$0xf] }
  0x76   : > { %v2689_v28 = vshll.u32 %v4744_v3, 16  ;;  %v2694_v29 = vshrl.u32 %v4745_v9, 16  ;;  %v2697_v33 = vshll.u32 %v4745_v9, 16  ;;  %v2703_v34 = vshll.u32 %v4746_v19, 16  ;;  %v4811_v9 = vld [vmem:[%s5156_s26 + $0x5c] sm:$0x1] }
  0x77   : > { %v2676_v32 = vor.u32 %v2675_v24, %v2672_v23  ;;  %v2707_v35 = vshrl.u32 %v4746_v19, 16  ;;  %1971 = vrot.lane.b32.xlu1 %v5467_v20, %s5103_s7  ;;  %2290 = vrot.lane.b32.xlu0 %v4670_v16, %s5100_s28  ;;  %v2685_v37 = vrot.slane %v2683_v27, 4  ;;  %v2713_v40 = vshll.u32 %v4747_v25, 16  ;;  %v452_v19 = vld [vmem:[%s5156_s26 + $0x54] sm:$0xf] }
  0x78   : > { %v2691_v38 = vrot.slane %v2689_v28, 5  ;;  %v2696_v39 = vrot.slane %v2694_v29, 4  ;;  %v2699_v43 = vrot.slane %v2697_v33, 5  ;;  %v2705_v44 = vrot.slane %v2703_v34, 5  ;;  %v454_v33 = vld [vmem:[%s5156_s26 + $0x5c] sm:$0x1] }
  0x79   : > { %v2677_v42 = vrot.slane %v2676_v32, 4  ;;  %v2709_v45 = vrot.slane %v2707_v35, 4  ;;  %v2686_v47 = vor.u32 %v2685_v37, %v2681_v26  ;;  %v2715_v48 = vrot.slane %v2713_v40, 5 }
  0x7a   : > { %v4846_v49 = vrot.slane %v4806_v30, 9  ;;  %v3196_v50 = vrot.slane %v4807_v36, 5  ;;  %v2700_v54 = vor.u32 %v2699_v43, %v2696_v39  ;;  %v3199_v56 = vrot.slane %v4808_v41, 5  ;;  %v997_v36 = vld [vmem:[%s5156_s26 + $0x48] sm:$0xe] }
  0x7b   : > { %v2682_v52 = vsel %vm5199_vm5, %v2677_v42, %v2681_v26  ;;  %v2710_v55 = vor.u32 %v2709_v45, %v2705_v44  ;;  %2292 = vrot.lane.b32.xlu1 %v4671_v22, %s5100_s28  ;;  %2468 = vrot.lane.b32.xlu0 %v5050_v31, %s5104_s8  ;;  %v2687_v59 = vrot.slane %v2686_v47, 4  ;;  %v627_v63 = vshrl.u32 %v449_v46, 16  ;;  %v453_v26 = vld [vmem:[%s5156_s26 + $0x58] sm:$0xf]  ;;  %v998_v41 = vld [vmem:[%s5156_s26 + $0x4c] sm:$0xf] }
  0x7c   : > { %v3197_v60 = vsel %vm5158_vm2, %v4846_v49, %v3196_v50  ;;  %v3198_v61 = vrot.slane %v3196_v50, 4  ;;  %v2701_v3 = vrot.slane %v2700_v54, 4  ;;  %v630_v7 = vshll.u32 %v449_v46, 16  ;;  %v999_v42 = vld [vmem:[%s5156_s26 + $0x50] sm:$0x1] }
  0x7d   : > { %v2711_v6 = vrot.slane %v2710_v55, 4  ;;  %v636_v8 = vshll.u32 %v450_v51, 16  ;;  %v2692_v10 = vsel %vm5199_vm5, %v2687_v59, %v2691_v38  ;;  %v629_v13 = vrot.slane %v627_v63, 4  ;;  %v1000_v43 = vld [vmem:[%s5156_s26 + $0x54] sm:$0xe] }
  0x7e   : > { %v3200_v12 = vsel %vm5158_vm2, %v3198_v61, %v3199_v56  ;;  %v640_v14 = vshrl.u32 %v450_v51, 16  ;;  %v4782_v15 = vcombine.low %v2682_v52, %v2692_v10  ;;  %v2706_v16 = vsel %vm5199_vm5, %v2701_v3, %v2705_v44  ;;  %v1002_v59 = vld [vmem:[%s5156_s26 + $0x5c] sm:$0x1] }
  0x7f   : > { %v2716_v17 = vsel %vm5199_vm5, %v2711_v6, %v2715_v48  ;;  %v4862_v18 = vcombine.low %v3197_v60, %v3200_v12  ;;  %2470 = vrot.lane.b32.xlu1 %v5051_v58, %s5104_s8  ;;  %v632_v23 = vrot.slane %v630_v7, 5  ;;  %v638_v24 = vrot.slane %v636_v8, 5  ;;  %v1001_v58 = vld [vmem:[%s5156_s26 + $0x58] sm:$0xf]  ;;  %v4556_v60 = vld [vmem:[%s5156_s26 + $0x54] sm:$0xf] }
  0x80   : > { %v4783_v22 = vcombine.low %v2706_v16, %v2716_v17  ;;  %v642_v25 = vrot.slane %v640_v14, 4  ;;  %3013 = vrot.lane.b32.xlu0 %v4782_v15, %s5105_s9  ;;  %v646_v27 = vshll.u32 %v451_v62, 16  ;;  %v4847_v28 = vrot.slane %v4809_v1, 9  ;;  %v4557_v8 = vld [vmem:[%s5156_s26 + $0x58] sm:$0xf] }
  0x81   : > { %v3203_v29 = vrot.slane %v4810_v2, 5  ;;  %v3206_v30 = vrot.slane %v4811_v9, 5  ;;  %v633_v31 = vor.u32 %v632_v23, %v629_v13  ;;  %v651_v34 = vshrl.u32 %v452_v19, 16  ;;  %v4558_v13 = vld [vmem:[%s5156_s26 + $0x5c] sm:$0x1] }
  0x82   : > { %v643_v32 = vor.u32 %v642_v25, %v638_v24  ;;  %v654_v35 = vshll.u32 %v452_v19, 16  ;;  %v648_v37 = vrot.slane %v646_v27, 5  ;;  %v660_v40 = vshll.u32 %v453_v26, 16 }
  0x83   : > { %v3204_v38 = vsel %vm5158_vm2, %v4847_v28, %v3203_v29  ;;  %v3205_v39 = vrot.slane %v3203_v29, 4  ;;  %3015 = vrot.lane.b32.xlu1 %v4783_v22, %s5105_s9  ;;  %v634_v44 = vrot.slane %v633_v31, 4  ;;  %v653_v46 = vrot.slane %v651_v34, 4 }
  0x84   : > { %v644_v45 = vrot.slane %v643_v32, 4  ;;  %v656_v47 = vrot.slane %v654_v35, 5  ;;  %3334 = vrot.lane.b32.xlu0 %v4862_v18, %s5106_s10  ;;  %v662_v49 = vrot.slane %v660_v40, 5  ;;  %v664_v50 = vshrl.u32 %v453_v26, 16  ;;  %v5528_v19 = vpop.permute.xlu1 %1418  ;;  %v4559_v26 = vld [vmem:[%s5156_s26 + $0x60] sm:$0xf]  ;;  %v5533_v27 = vpop.permute.xlu0 %1416 }
  0x85   : > { %v3207_v48 = vsel %vm5158_vm2, %v3205_v39, %v3206_v30  ;;  %v670_v51 = vshll.u32 %v454_v33, 16  ;;  %v639_v52 = vsel %vm5199_vm5, %v634_v44, %v638_v24  ;;  %v4464_v1 = vrot.slane %v997_v36, 9  ;;  %v4560_v32 = vld [vmem:[%s5156_s26 + $0x64] sm:$0xf]  ;;  %v4621_v44 = vld [vmem:[%s5156_s26 + $0x58] sm:$0xf] }
  0x86   : > { %v649_v54 = vsel %vm5199_vm5, %v644_v45, %v648_v37  ;;  %v4863_v55 = vcombine.low %v3204_v38, %v3207_v48  ;;  %v657_v56 = vor.u32 %v656_v47, %v653_v46  ;;  %v666_v62 = vrot.slane %v664_v50, 4  ;;  %v4561_v37 = vld [vmem:[%s5156_s26 + $0x68] sm:$0x1]  ;;  %v4620_v38 = vld [vmem:[%s5156_s26 + $0x54] sm:$0xe] }
  0x87   : > { %v4448_v61 = vcombine.low %v639_v52, %v649_v54  ;;  %v672_v63 = vrot.slane %v670_v51, 5  ;;  %v1122_v3 = vrot.slane %v998_v41, 5  ;;  %v1125_v6 = vrot.slane %v999_v42, 5  ;;  %v5052_v41 = vld [vmem:[%s5156_s26 + $0x54] sm:$0xff]   ;;  %v4622_v45 = vld [vmem:[%s5156_s26 + $0x5c] sm:$0x1] }
  0x88   : > { %v658_v2 = vrot.slane %v657_v56, 4  ;;  %v4465_v7 = vrot.slane %v1000_v43, 9  ;;  %3336 = vrot.lane.b32.xlu0 %v4863_v55, %s5106_s10  ;;  %v667_v9 = vor.u32 %v666_v62, %v662_v49  ;;  %v1129_v10 = vrot.slane %v1001_v58, 5  ;;  %v4623_v50 = vld [vmem:[%s5156_s26 + $0x60] sm:$0xe] }
  0x89   : > { %926 = vrot.lane.b32.xlu1 %v4448_v61, %s5102_s30  ;;  %v1132_v12 = vrot.slane %v1002_v59, 5  ;;  %v1674_v14 = vshrl.u32 %v4556_v60, 16  ;;  %v1123_v16 = vsel %vm5158_vm2, %v4464_v1, %v1122_v3  ;;  %v1124_v17 = vrot.slane %v1122_v3, 4  ;;  %v4624_v56 = vld [vmem:[%s5156_s26 + $0x64] sm:$0xf] }
  0x8a   : > { %v663_v15 = vsel %vm5199_vm5, %v658_v2, %v662_v49  ;;  %v1677_v18 = vshll.u32 %v4556_v60, 16  ;;  %v668_v22 = vrot.slane %v667_v9, 4  ;;  %v1130_v23 = vsel %vm5158_vm2, %v4465_v7, %v1129_v10 }
  0x8b   : > { %v1131_v24 = vrot.slane %v1129_v10, 4  ;;  %v1676_v25 = vrot.slane %v1674_v14, 4  ;;  %v1126_v28 = vsel %vm5158_vm2, %v1124_v17, %v1125_v6  ;;  %v1683_v30 = vshll.u32 %v4557_v8, 16  ;;  %v5053_v14 = vld [vmem:[%s5156_s26 + $0x60] sm:$0xff]  }
  0x8c   : > { %v1679_v29 = vrot.slane %v1677_v18, 5  ;;  %v1687_v31 = vshrl.u32 %v4557_v8, 16  ;;  %v673_v33 = vsel %vm5199_vm5, %v668_v22, %v672_v63  ;;  %v4480_v34 = vcombine.low %v1123_v16, %v1126_v28  ;;  %v4625_v63 = vld [vmem:[%s5156_s26 + $0x68] sm:$0x1]  ;;  %v5554_v1 = vpop.permute.xlu0 %2282  ;;  %v4749_v22 = vld [vmem:[%s5156_s26 + $0x64] sm:$0xf] }
  0x8d   : > { %v1133_v35 = vsel %vm5158_vm2, %v1131_v24, %v1132_v12  ;;  %v1693_v36 = vshll.u32 %v4558_v13, 16  ;;  %v4449_v39 = vcombine.low %v663_v15, %v673_v33  ;;  %v1685_v43 = vrot.slane %v1683_v30, 5  ;;  %v5551_v58 = vpop.permute.xlu1 %1238  ;;  %v4748_v13 = vld [vmem:[%s5156_s26 + $0x60] sm:$0xf] }
  0x8e   : > { %v4481_v40 = vcombine.low %v1130_v23, %v1133_v35  ;;  %v1680_v42 = vor.u32 %v1679_v29, %v1676_v25  ;;  %1250 = vrot.lane.b32.xlu0 %v4480_v34, %s5101_s29  ;;  %v1689_v46 = vrot.slane %v1687_v31, 4  ;;  %v1698_v48 = vshrl.u32 %v4559_v26, 16  ;;  %v4750_v35 = vld [vmem:[%s5156_s26 + $0x68] sm:$0x1] }
  0x8f   : > { %v1695_v47 = vrot.slane %v1693_v36, 5  ;;  %v1701_v49 = vshll.u32 %v4559_v26, 16  ;;  %928 = vrot.lane.b32.xlu1 %v4449_v39, %s5102_s30  ;;  %v1707_v52 = vshll.u32 %v4560_v32, 16  ;;  %v1711_v54 = vshrl.u32 %v4560_v32, 16 }
  0x90   : > { %v1681_v51 = vrot.slane %v1680_v42, 4  ;;  %v1717_v55 = vshll.u32 %v4561_v37, 16  ;;  %v1690_v59 = vor.u32 %v1689_v46, %v1685_v43  ;;  %v1700_v60 = vrot.slane %v1698_v48, 4 }
  0x91   : > { %v1703_v61 = vrot.slane %v1701_v49, 5  ;;  %v4656_v62 = vrot.slane %v4620_v38, 9  ;;  %v1709_v3 = vrot.slane %v1707_v52, 5  ;;  %v1713_v6 = vrot.slane %v1711_v54, 4  ;;  %v5573_v32 = vpop.permute.xlu1 %1240  ;;  %v4751_v38 = vld [vmem:[%s5156_s26 + $0x6c] sm:$0xf] }
  0x92   : > { %v1686_v2 = vsel %vm5199_vm5, %v1681_v51, %v1685_v43  ;;  %v1719_v7 = vrot.slane %v1717_v55, 5  ;;  %1428 = vrot.lane.b32.xlu0 %v5052_v41, %s5099_s27  ;;  %v1691_v8 = vrot.slane %v1690_v59, 4  ;;  %v2166_v10 = vrot.slane %v4621_v44, 5  ;;  %v4752_v44 = vld [vmem:[%s5156_s26 + $0x70] sm:$0xf]  ;;  %v5061_v52 = vld [vmem:[%s5156_s26 + $0x18] sm:$0xff]  }
  0x93   : > { %v1704_v9 = vor.u32 %v1703_v61, %v1700_v60  ;;  %v2169_v12 = vrot.slane %v4622_v45, 5  ;;  %1252 = vrot.lane.b32.xlu1 %v4481_v40, %s5101_s29  ;;  %v1714_v15 = vor.u32 %v1713_v6, %v1709_v3  ;;  %v4657_v16 = vrot.slane %v4623_v50, 9  ;;  %v4753_v49 = vld [vmem:[%s5156_s26 + $0x74] sm:$0x1]  ;;  %v5056_v50 = vld [vmem:[%s5156_s26] sm:$0xff]   ;;  %v5057_v51 = vld [vmem:[%s5156_s26 + $0xc] sm:$0xff]  }
  0x94   : > { %v2173_v17 = vrot.slane %v4624_v56, 5  ;;  %v2176_v18 = vrot.slane %v4625_v63, 5  ;;  %v1696_v23 = vsel %vm5199_vm5, %v1691_v8, %v1695_v47  ;;  %v2167_v25 = vsel %vm5158_vm2, %v4656_v62, %v2166_v10  ;;  %v5063_v54 = vld [vmem:[%s5156_s26 + $0x24] sm:$0xff]   ;;  %v5069_v55 = vld [vmem:[%s5156_s26 + $0x30] sm:$0xff]   ;;  %v5070_v56 = vld [vmem:[%s5156_s26 + $0x3c] sm:$0xff]   ;;  %415 = vst.msk [vmem:[#allocation2] sm:$0xff] %vm414_vm6, %v5056_v50 }
  0x95   : > { %v1705_v24 = vrot.slane %v1704_v9, 4  ;;  %v2168_v26 = vrot.slane %v2166_v10, 4  ;;  %v5567_v28 = vcombine.low %v1686_v2, %v1696_v23  ;;  %v1715_v29 = vrot.slane %v1714_v15, 4  ;;  %v5075_v59 = vld [vmem:[%s5156_s26 + $0x48] sm:$0xff]   ;;  %v5054_v60 = vld [vmem:[%s5156_s26 + $0x60] sm:$0xff]   ;;  %v5076_v10 = vld [vmem:[%s5156_s26 + $0x54] sm:$0xff]  }
  0x96   : > { %v5571_v30 = vsel %vm5158_vm2, %v4657_v16, %v2173_v17  ;;  %v2175_v31 = vrot.slane %v2173_v17, 4  ;;  %v2718_v36 = vshrl.u32 %v4748_v13, 16  ;;  %v2721_v37 = vshll.u32 %v4748_v13, 16  ;;  %v4812_v9 = vld [vmem:[%s5156_s26 + $0x60] sm:$0xe]  ;;  %v5611_v17 = vpop.permute.xlu1 %2284  ;;  %416 = vst.msk [vmem:[#allocation2 + $0x8] sm:$0xff] %vm414_vm6, %v5057_v51 }
  0x97   : > { %v1710_v33 = vsel %vm5199_vm5, %v1705_v24, %v1709_v3  ;;  %v2170_v34 = vsel %vm5158_vm2, %v2168_v26, %v2169_v12  ;;  %v5581_v39 = vpop.permute.xlu0 %914  ;;  %1430 = vrot.lane.b32.xlu1 %v5053_v14, %s5099_s27  ;;  %1973 = vrot.lane.b32.xlu0 %v5567_v28, %s5103_s7  ;;  %v1720_v40 = vsel %vm5199_vm5, %v1715_v29, %v1719_v7  ;;  %v2727_v43 = vshll.u32 %v4749_v22, 16  ;;  %v4813_v16 = vld [vmem:[%s5156_s26 + $0x64] sm:$0xf]  ;;  %v4817_v50 = vld [vmem:[%s5156_s26 + $0x74] sm:$0x1] }
  0x98   : > { %v4672_v41 = vcombine.low %v2167_v25, %v2170_v34  ;;  %v2177_v42 = vsel %vm5158_vm2, %v2175_v31, %v2176_v18  ;;  %v5591_v45 = vcombine.low %v1710_v33, %v1720_v40  ;;  %v2720_v47 = vrot.slane %v2718_v36, 4  ;;  %v4814_v25 = vld [vmem:[%s5156_s26 + $0x68] sm:$0x1]  ;;  %v455_v31 = vld [vmem:[%s5156_s26 + $0x60] sm:$0xf]  ;;  %v5055_v33 = vld [vmem:[%s5156_s26 + $0x6c] sm:$0xff]  }
  0x99   : > { %v4673_v46 = vcombine.low %v5571_v30, %v2177_v42  ;;  %v2723_v48 = vrot.slane %v2721_v37, 5  ;;  %v5603_v61 = vrot.slane %v2727_v43, 5  ;;  %v2731_v62 = vshrl.u32 %v4749_v22, 16  ;;  %v456_v37 = vld [vmem:[%s5156_s26 + $0x64] sm:$0xf]  ;;  %417 = vst.msk [vmem:[#allocation2 + $0x10] sm:$0xff] %vm414_vm6, %v5061_v52 }
  0x9a   : > { %v2737_v63 = vshll.u32 %v4750_v35, 16  ;;  %v2742_v2 = vshrl.u32 %v4751_v38, 16  ;;  %v2745_v6 = vshll.u32 %v4751_v38, 16  ;;  %v2751_v7 = vshll.u32 %v4752_v44, 16  ;;  %418 = vst.msk [vmem:[#allocation2 + $0x18] sm:$0xff] %vm414_vm6, %v5063_v54  ;;  %419 = vst.msk [vmem:[#allocation2 + $0x20] sm:$0xff] %vm414_vm6, %v5069_v55 }
  0x9b   : > { %v2724_v3 = vor.u32 %v2723_v48, %v2720_v47  ;;  %v2755_v8 = vshrl.u32 %v4752_v44, 16  ;;  %1975 = vrot.lane.b32.xlu1 %v5591_v45, %s5103_s7  ;;  %2294 = vrot.lane.b32.xlu0 %v4672_v41, %s5100_s28  ;;  %v2733_v12 = vrot.slane %v2731_v62, 4  ;;  %v2761_v15 = vshll.u32 %v4753_v49, 16  ;;  %420 = vst.msk [vmem:[#allocation2 + $0x28] sm:$0xff] %vm414_vm6, %v5070_v56  ;;  %421 = vst.msk [vmem:[#allocation2 + $0x30] sm:$0xff] %vm414_vm6, %v5075_v59 }
  0x9c   : > { %v2739_v13 = vrot.slane %v2737_v63, 5  ;;  %v2744_v14 = vrot.slane %v2742_v2, 4  ;;  %v2747_v22 = vrot.slane %v2745_v6, 5  ;;  %v2753_v23 = vrot.slane %v2751_v7, 5  ;;  %v917_v26 = vpop.permute.xlu0 %916  ;;  %422 = vst.msk [vmem:[#allocation2 + $0x38] sm:$0xff] %vm414_vm6, %v5076_v10 }
  0x9d   : > { %v2725_v18 = vrot.slane %v2724_v3, 4  ;;  %v2757_v24 = vrot.slane %v2755_v8, 4  ;;  %v2734_v29 = vor.u32 %v2733_v12, %v5603_v61  ;;  %v2763_v30 = vrot.slane %v2761_v15, 5  ;;  %963 = vst.msk [vmem:[#allocation2] sm:$0xff] %vm962_vm7, %v5581_v39  ;;  %v457_v43 = vld [vmem:[%s5156_s26 + $0x68] sm:$0x1] }
  0x9e   : > { %v2748_v35 = vor.u32 %v2747_v22, %v2744_v14  ;;  %v4848_v40 = vrot.slane %v4812_v9, 9  ;;  %v3210_v41 = vrot.slane %v4813_v16, 5  ;;  %v3213_v42 = vrot.slane %v4814_v25, 5  ;;  %964 = vst.msk [vmem:[#allocation2 + $0x8] sm:$0xff] %vm962_vm7, %v917_v26  ;;  %v4815_v44 = vld [vmem:[%s5156_s26 + $0x6c] sm:$0xe] }
  0x9f   : > { %v2730_v34 = vsel %vm5199_vm5, %v2725_v18, %v5603_v61  ;;  %v2758_v36 = vor.u32 %v2757_v24, %v2753_v23  ;;  %2296 = vrot.lane.b32.xlu1 %v4673_v46, %s5100_s28  ;;  %2472 = vrot.lane.b32.xlu0 %v5054_v60, %s5104_s8  ;;  %v2735_v38 = vrot.slane %v2734_v29, 4  ;;  %1287 = vst.msk [vmem:[#allocation2] sm:$0xff] %vm1286_vm8, %v5551_v58  ;;  %v675_v46 = vshrl.u32 %v455_v31, 16  ;;  %v4816_v49 = vld [vmem:[%s5156_s26 + $0x70] sm:$0xf] }
  0xa0   : > { %v2749_v47 = vrot.slane %v2748_v35, 4  ;;  %v678_v48 = vshll.u32 %v455_v31, 16  ;;  %1288 = vst.msk [vmem:[#allocation2 + $0x8] sm:$0xff] %vm1286_vm8, %v5573_v32  ;;  %v458_v39 = vld [vmem:[%s5156_s26 + $0x6c] sm:$0xf]  ;;  %v3211_v52 = vsel %vm5158_vm2, %v4848_v40, %v3210_v41  ;;  %v3212_v54 = vrot.slane %v3210_v41, 4  ;;  %v5649_v56 = vpop.permute.xlu1 %1963 }
  0xa1   : > { %v2759_v21 = vrot.slane %v2758_v36, 4  ;;  %v2740_v51 = vsel %vm5199_vm5, %v2735_v38, %v2739_v13  ;;  %v684_v55 = vshll.u32 %v456_v37, 16  ;;  %v677_v60 = vrot.slane %v675_v46, 4  ;;  %v459_v3 = vld [vmem:[%s5156_s26 + $0x70] sm:$0xf]  ;;  %1466 = vst.msk [vmem:[#allocation2 + $0x8] sm:$0xff] %vm1464_vm9, %v5528_v19 }
  0xa2   : > { %v4784_v58 = vcombine.low %v2730_v34, %v2740_v51  ;;  %v2754_v59 = vsel %vm5199_vm5, %v2749_v47, %v2753_v23  ;;  %v3214_v62 = vsel %vm5158_vm2, %v3212_v54, %v3213_v42  ;;  %v680_v63 = vrot.slane %v678_v48, 5  ;;  %v460_v22 = vld [vmem:[%s5156_s26 + $0x74] sm:$0x1]  ;;  %v1003_v31 = vld [vmem:[%s5156_s26 + $0x60] sm:$0xe]  ;;  %1465 = vst.msk [vmem:[#allocation2] sm:$0xff] %vm1464_vm9, %v5533_v27 }
  0xa3   : > { %v2764_v32 = vsel %vm5199_vm5, %v2759_v21, %v2763_v30  ;;  %2474 = vrot.lane.b32.xlu1 %v5055_v33, %s5104_s8  ;;  %v686_v2 = vrot.slane %v684_v55, 5  ;;  %v4864_v7 = vcombine.low %v3211_v52, %v3214_v62  ;;  %v688_v8 = vshrl.u32 %v456_v37, 16  ;;  %v1004_v40 = vld [vmem:[%s5156_s26 + $0x64] sm:$0xf]  ;;  %v1008_v54 = vld [vmem:[%s5156_s26 + $0x74] sm:$0x1] }
  0xa4   : > { %v4785_v61 = vcombine.low %v2754_v59, %v2764_v32  ;;  %v1962_v6 = vpop.permute.xlu0 %1961  ;;  %3017 = vrot.lane.b32.xlu0 %v4784_v58, %s5105_s9  ;;  %v694_v9 = vshll.u32 %v457_v43, 16  ;;  %v4849_v10 = vrot.slane %v4815_v44, 9  ;;  %v681_v12 = vor.u32 %v680_v63, %v677_v60  ;;  %v5667_v34 = vpop.permute.xlu1 %2462  ;;  %v1005_v44 = vld [vmem:[%s5156_s26 + $0x68] sm:$0x1]  ;;  %2011 = vst.msk [vmem:[#allocation2 + $0x8] sm:$0xff] %vm2009_vm10, %v5649_v56 }
  0xa5   : > { %v3217_v13 = vrot.slane %v4816_v49, 5  ;;  %v3220_v14 = vrot.slane %v4817_v50, 5  ;;  %v699_v15 = vshrl.u32 %v458_v39, 16  ;;  %v690_v16 = vrot.slane %v688_v8, 4  ;;  %v1006_v49 = vld [vmem:[%s5156_s26 + $0x6c] sm:$0xe] }
  0xa6   : > { %v696_v18 = vrot.slane %v694_v9, 5  ;;  %v702_v23 = vshll.u32 %v458_v39, 16  ;;  %v708_v24 = vshll.u32 %v459_v3, 16  ;;  %v682_v25 = vrot.slane %v681_v12, 4  ;;  %v1007_v50 = vld [vmem:[%s5156_s26 + $0x70] sm:$0xf] }
  0xa7   : > { %3019 = vrot.lane.b32.xlu1 %v4785_v61, %s5105_s9  ;;  %v3218_v26 = vsel %vm5158_vm2, %v4849_v10, %v3217_v13  ;;  %v3219_v29 = vrot.slane %v3217_v13, 4  ;;  %v701_v30 = vrot.slane %v699_v15, 4  ;;  %v691_v35 = vor.u32 %v690_v16, %v686_v2  ;;  %2010 = vst.msk [vmem:[#allocation2] sm:$0xff] %vm2009_vm10, %v1962_v6  ;;  %v4564_v56 = vld [vmem:[%s5156_s26 + $0x74] sm:$0x1]  ;;  %v5081_v6 = vld [vmem:[%s5156_s26 + $0x60] sm:$0xff]  }
  0xa8   : > { %v5665_v33 = vpop.permute.xlu0 %2460  ;;  %3338 = vrot.lane.b32.xlu0 %v4864_v7, %s5106_s10  ;;  %v704_v36 = vrot.slane %v702_v23, 5  ;;  %v710_v37 = vrot.slane %v708_v24, 5  ;;  %v712_v38 = vshrl.u32 %v459_v3, 16  ;;  %v687_v41 = vsel %vm5199_vm5, %v682_v25, %v686_v2  ;;  %v4562_v2 = vld [vmem:[%s5156_s26 + $0x6c] sm:$0xf]  ;;  %2331 = vst.msk [vmem:[#allocation2] sm:$0xff] %vm2330_vm11, %v5554_v1 }
  0xa9   : > { %v3221_v42 = vsel %vm5158_vm2, %v3219_v29, %v3220_v14  ;;  %v718_v43 = vshll.u32 %v460_v22, 16  ;;  %v692_v47 = vrot.slane %v691_v35, 4  ;;  %v4466_v51 = vrot.slane %v1003_v31, 9  ;;  %v4563_v3 = vld [vmem:[%s5156_s26 + $0x70] sm:$0xf]  ;;  %2332 = vst.msk [vmem:[#allocation2 + $0x8] sm:$0xff] %vm2330_vm11, %v5611_v17 }
  0xaa   : > { %v4865_v21 = vcombine.low %v3218_v26, %v3221_v42  ;;  %v705_v46 = vor.u32 %v704_v36, %v701_v30  ;;  %v714_v48 = vrot.slane %v712_v38, 4  ;;  %v1136_v52 = vrot.slane %v1004_v40, 5  ;;  %v4565_v13 = vld [vmem:[%s5156_s26 + $0x78] sm:$0xf]  ;;  %v4566_v23 = vld [vmem:[%s5156_s26 + $0x7c] sm:$0xf] }
  0xab   : > { %v720_v39 = vrot.slane %v718_v43, 5  ;;  %v697_v58 = vsel %vm5199_vm5, %v692_v47, %v696_v18  ;;  %v1139_v27 = vrot.slane %v1005_v44, 5  ;;  %v4467_v62 = vrot.slane %v1006_v49, 9  ;;  %423 = vst.msk [vmem:[#allocation2 + $0x40] sm:$0xff] %vm414_vm6, %v5081_v6  ;;  %v4567_v30 = vld [vmem:[%s5156_s26 + $0x80] sm:$0x1] }
  0xac   : > { %v3006_v55 = vpop.permute.xlu0 %3005  ;;  %3340 = vrot.lane.b32.xlu0 %v4865_v21, %s5106_s10  ;;  %v706_v59 = vrot.slane %v705_v46, 4  ;;  %v715_v19 = vor.u32 %v714_v48, %v710_v37  ;;  %v4450_v32 = vcombine.low %v687_v41, %v697_v58  ;;  %v1137_v60 = vsel %vm5158_vm2, %v4466_v51, %v1136_v52  ;;  %2509 = vst.msk [vmem:[#allocation2] sm:$0xff] %vm2508_vm12, %v5665_v33  ;;  %v5082_v31 = vld [vmem:[%s5156_s26 + $0x6c] sm:$0xff]   ;;  %v4628_v49 = vld [vmem:[%s5156_s26 + $0x74] sm:$0x1] }
  0xad   : > { %v1138_v61 = vrot.slane %v1136_v52, 4  ;;  %v3008_v63 = vpop.permute.xlu1 %3007  ;;  %v1143_v9 = vrot.slane %v1007_v50, 5  ;;  %v1146_v10 = vrot.slane %v1008_v54, 5  ;;  %2510 = vst.msk [vmem:[#allocation2 + $0x8] sm:$0xff] %vm2508_vm12, %v5667_v34  ;;  %v1722_v25 = vshrl.u32 %v4562_v2, 16  ;;  %v5058_v17 = vld [vmem:[%s5156_s26 + $0x6c] sm:$0xff]  }
  0xae   : > { %v711_v7 = vsel %vm5199_vm5, %v706_v59, %v710_v37  ;;  %v716_v8 = vrot.slane %v715_v19, 4  ;;  %930 = vrot.lane.b32.xlu1 %v4450_v32, %s5102_s30  ;;  %v1725_v26 = vshll.u32 %v4562_v2, 16  ;;  %v1731_v29 = vshll.u32 %v4563_v3, 16  ;;  %3054 = vst.msk [vmem:[#allocation2] sm:$0xff] %vm3053_vm13, %v3006_v55  ;;  %3055 = vst.msk [vmem:[#allocation2 + $0x8] sm:$0xff] %vm3053_vm13, %v3008_v63  ;;  %v5059_v55 = vld [vmem:[%s5156_s26 + $0x78] sm:$0xff]  }
  0xaf   : > { %v1140_v12 = vsel %vm5158_vm2, %v1138_v61, %v1139_v27  ;;  %v1144_v18 = vsel %vm5158_vm2, %v4467_v62, %v1143_v9  ;;  %v1145_v22 = vrot.slane %v1143_v9, 4  ;;  %v1735_v33 = vshrl.u32 %v4563_v3, 16  ;;  %v4626_v37 = vld [vmem:[%s5156_s26 + $0x6c] sm:$0xe]  ;;  %v4627_v43 = vld [vmem:[%s5156_s26 + $0x70] sm:$0xf] }
  0xb0   : > { %v3327_v14 = vpop.permute.xlu0 %3326  ;;  %v721_v15 = vsel %vm5199_vm5, %v716_v8, %v720_v39  ;;  %v4482_v16 = vcombine.low %v1137_v60, %v1140_v12  ;;  %v1741_v35 = vshll.u32 %v4564_v56, 16  ;;  %v1746_v36 = vshrl.u32 %v4565_v13, 16  ;;  %424 = vst.msk [vmem:[#allocation2 + $0x48] sm:$0xff] %vm414_vm6, %v5082_v31  ;;  %v4629_v54 = vld [vmem:[%s5156_s26 + $0x78] sm:$0xe] }
  0xb1   : > { %v4451_v24 = vcombine.low %v711_v7, %v721_v15  ;;  %v1147_v1 = vsel %vm5158_vm2, %v1145_v22, %v1146_v10  ;;  %v1724_v40 = vrot.slane %v1722_v25, 4  ;;  %v1727_v41 = vrot.slane %v1725_v26, 5  ;;  %v4630_v27 = vld [vmem:[%s5156_s26 + $0x7c] sm:$0xf]  ;;  %3375 = vst.msk [vmem:[#allocation2] sm:$0xff] %vm3374_vm14, %v3327_v14 }
  0xb2   : > { %1254 = vrot.lane.b32.xlu0 %v4482_v16, %s5101_s29  ;;  %v4483_v38 = vcombine.low %v1144_v18, %v1147_v1  ;;  %v1733_v42 = vrot.slane %v1731_v29, 5  ;;  %v1737_v47 = vrot.slane %v1735_v33, 4  ;;  %v1743_v21 = vrot.slane %v1741_v35, 5  ;;  %v4631_v63 = vld [vmem:[%s5156_s26 + $0x80] sm:$0x1] }
  0xb3   : > { %v919_v34 = vpop.permute.xlu1 %918  ;;  %932 = vrot.lane.b32.xlu1 %v4451_v24, %s5102_s30  ;;  %v1748_v46 = vrot.slane %v1746_v36, 4  ;;  %v1749_v48 = vshll.u32 %v4565_v13, 16  ;;  %v1728_v50 = vor.u32 %v1727_v41, %v1724_v40  ;;  %v1755_v39 = vshll.u32 %v4566_v23, 16  ;;  %v5066_v2 = vld [vmem:[%s6615_s1 + $0x10] ss:$0 sps:$4 sm:$0x33]  }
  0xb4   : > { %965 = vst.msk [vmem:[#allocation2 + $0x10] sm:$0xff] %vm962_vm7, %v919_v34  ;;  %v3329_v44 = vpop.permute.xlu0 %3328  ;;  %v1759_v51 = vshrl.u32 %v4566_v23, 16  ;;  %v1765_v52 = vshll.u32 %v4567_v30, 16  ;;  %v1738_v58 = vor.u32 %v1737_v47, %v1733_v42  ;;  %v4658_v19 = vrot.slane %v4626_v37, 9  ;;  %v4754_v23 = vld [vmem:[%s5156_s26 + $0x78] sm:$0xf]  ;;  %5021 = vmatprep.subr.msk.bf16.mxu0 %vm3476_vm15, %v5066_v2 }
  0xb5   : > { %v1751_v59 = vrot.slane %v1749_v48, 5  ;;  %v1729_v32 = vrot.slane %v1728_v50, 4  ;;  %v1757_v60 = vrot.slane %v1755_v39, 5  ;;  %3376 = vst.msk [vmem:[#allocation2 + $0x8] sm:$0xff] %vm3374_vm14, %v3329_v44  ;;  %v2180_v8 = vrot.slane %v4627_v43, 5  ;;  %v5064_v50 = vld [vmem:[%s5156_s26 + $0x78] sm:$0xff]  }
  0xb6   : > { %1432 = vrot.lane.b32.xlu0 %v5058_v17, %s5099_s27  ;;  %v1761_v61 = vrot.slane %v1759_v51, 4  ;;  %v1767_v62 = vrot.slane %v1765_v52, 5  ;;  %v1739_v3 = vrot.slane %v1738_v58, 4  ;;  %v2183_v9 = vrot.slane %v4628_v49, 5  ;;  %v4755_v30 = vld [vmem:[%s5156_s26 + $0x7c] sm:$0xf] }
  0xb7   : > { %1256 = vrot.lane.b32.xlu1 %v4483_v38, %s5101_s29  ;;  %v1752_v7 = vor.u32 %v1751_v59, %v1748_v46  ;;  %v1734_v6 = vsel %vm5199_vm5, %v1729_v32, %v1733_v42  ;;  %v4659_v13 = vrot.slane %v4629_v54, 9  ;;  %v2187_v14 = vrot.slane %v4630_v27, 5  ;;  %v4756_v31 = vld [vmem:[%s5156_s26 + $0x80] sm:$0x1]  ;;  %v4757_v36 = vld [vmem:[%s5156_s26 + $0x84] sm:$0xf] }
  0xb8   : > { %v1243_v56 = vpop.permute.xlu0 %1242  ;;  %v1762_v12 = vor.u32 %v1761_v61, %v1757_v60  ;;  %v1744_v15 = vsel %vm5199_vm5, %v1739_v3, %v1743_v21  ;;  %v2181_v18 = vsel %vm5158_vm2, %v4658_v19, %v2180_v8  ;;  %v2182_v22 = vrot.slane %v2180_v8, 4  ;;  %v4758_v34 = vld [vmem:[%s5156_s26 + $0x88] sm:$0xf]  ;;  %v3391_v44 = vld [vmem:[#allocation2] sm:$0xff]  ;;  %v4759_v46 = vld [vmem:[%s5156_s26 + $0x8c] sm:$0x1] }
  0xb9   : > { %v921_v10 = vpop.permute.xlu1 %920  ;;  %1289 = vst.msk [vmem:[#allocation2 + $0x10] sm:$0xff] %vm1286_vm8, %v1243_v56  ;;  %v1753_v16 = vrot.slane %v1752_v7, 4  ;;  %v5750_v24 = vcombine.low %v1734_v6, %v1744_v15  ;;  %v2188_v26 = vsel %vm5158_vm2, %v4659_v13, %v2187_v14  ;;  %v2189_v29 = vrot.slane %v2187_v14, 4  ;;  %4955 = vmatprep.mubr.msk.bf16.mxu0 %vm3427_vm0, %v3391_v44  ;;  %v4818_v54 = vld [vmem:[%s5156_s26 + $0x78] sm:$0xe] }
  0xba   : > { %966 = vst.msk [vmem:[#allocation2 + $0x18] sm:$0xff] %vm962_vm7, %v921_v10  ;;  %v1763_v25 = vrot.slane %v1762_v12, 4  ;;  %v2184_v17 = vsel %vm5158_vm2, %v2182_v22, %v2183_v9  ;;  %v2190_v33 = vrot.slane %v4631_v63, 5  ;;  %v3478_v41 = vsel %vm3476_vm15, %v5066_v2, 0  ;;  %v4819_v32 = vld [vmem:[%s5156_s26 + $0x7c] sm:$0xf] }
  0xbb   : > { %1434 = vrot.lane.b32.xlu1 %v5059_v55, %s5099_s27  ;;  %v1758_v1 = vsel %vm5199_vm5, %v1753_v16, %v1757_v60  ;;  %1977 = vrot.lane.b32.xlu0 %v5750_v24, %s5103_s7  ;;  %v4674_v40 = vcombine.low %v2181_v18, %v2184_v17  ;;  %v2766_v47 = vshrl.u32 %v4754_v23, 16  ;;  %v2769_v21 = vshll.u32 %v4754_v23, 16  ;;  %v4820_v2 = vld [vmem:[%s5156_s26 + $0x80] sm:$0x1]  ;;  %v461_v56 = vld [vmem:[%s5156_s26 + $0x78] sm:$0xf] }
  0xbc   : > { %v1421_v37 = vpop.permute.xlu0 %1420  ;;  %v1768_v38 = vsel %vm5199_vm5, %v1763_v25, %v1767_v62  ;;  %v2191_v43 = vsel %vm5158_vm2, %v2189_v29, %v2190_v33  ;;  %4954 = vmatpush3.bf16.msra.mxu0 %v3478_v41  ;;  %v3392_v48 = vld [vmem:[#allocation2 + $0x8] sm:$0xff]  ;;  %v2775_v39 = vshll.u32 %v4755_v30, 16  ;;  %v2779_v51 = vshrl.u32 %v4755_v30, 16  ;;  %v462_v15 = vld [vmem:[%s5156_s26 + $0x7c] sm:$0xf] }
  0xbd   : > { %v1245_v35 = vpop.permute.xlu1 %1244  ;;  %1467 = vst.msk [vmem:[#allocation2 + $0x10] sm:$0xff] %vm1464_vm9, %v1421_v37  ;;  %v5770_v42 = vcombine.low %v1758_v1, %v1768_v38  ;;  %v4675_v49 = vcombine.low %v2188_v26, %v2191_v43  ;;  %v2785_v52 = vshll.u32 %v4756_v31, 16  ;;  %v2768_v55 = vrot.slane %v2766_v47, 4  ;;  %v5065_v16 = vld [vmem:[%s5156_s26 + $0x84] sm:$0xff]   ;;  %v463_v26 = vld [vmem:[%s5156_s26 + $0x80] sm:$0x1] }
  0xbe   : > { %1290 = vst.msk [vmem:[#allocation2 + $0x18] sm:$0xff] %vm1286_vm8, %v1245_v35  ;;  %v2771_v58 = vrot.slane %v2769_v21, 5  ;;  %v2790_v59 = vshrl.u32 %v4757_v36, 16  ;;  %v2793_v19 = vshll.u32 %v4757_v36, 16  ;;  %v2777_v60 = vrot.slane %v2775_v39, 5 }
  0xbf   : > { %1979 = vrot.lane.b32.xlu1 %v5770_v42, %s5103_s7  ;;  %2298 = vrot.lane.b32.xlu0 %v4674_v40, %s5100_s28  ;;  %v2781_v61 = vrot.slane %v2779_v51, 4  ;;  %v2787_v62 = vrot.slane %v2785_v52, 5  ;;  %v2799_v63 = vshll.u32 %v4758_v34, 16  ;;  %v2803_v10 = vshrl.u32 %v4758_v34, 16  ;;  %v4821_v33 = vld [vmem:[%s5156_s26 + $0x84] sm:$0xe] }
  0xc0   : > { %4956 = vmatmul.mubr.msk.bf16.vlgmr.msra.gmra.mrb[0].mxu0 %vm3427_vm0, %v3392_v48  ;;  %v2772_v7 = vor.u32 %v2771_v58, %v2768_v55  ;;  %v2792_v8 = vrot.slane %v2790_v59, 4  ;;  %v2795_v9 = vrot.slane %v2793_v19, 5  ;;  %v2809_v13 = vshll.u32 %v4759_v46, 16  ;;  %v5085_v40 = vld [vmem:[%s5156_s26 + $0x78] sm:$0xff]   ;;  %v4822_v21 = vld [vmem:[%s5156_s26 + $0x88] sm:$0xf] }
  0xc1   : > { %v1423_v27 = vpop.permute.xlu1 %1422  ;;  %v2782_v6 = vor.u32 %v2781_v61, %v2777_v60  ;;  %v2801_v12 = vrot.slane %v2799_v63, 5  ;;  %v4850_v14 = vrot.slane %v4818_v54, 9  ;;  %v2805_v23 = vrot.slane %v2803_v10, 4  ;;  %v4823_v39 = vld [vmem:[%s5156_s26 + $0x8c] sm:$0x1]  ;;  %425 = vst.msk [vmem:[#allocation2 + $0x50] sm:$0xff] %vm414_vm6, %v5085_v40 }
  0xc2   : > { %1468 = vst.msk [vmem:[#allocation2 + $0x18] sm:$0xff] %vm1464_vm9, %v1423_v27  ;;  %v1966_v3 = vpop.permute.xlu0 %1965  ;;  %v2773_v18 = vrot.slane %v2772_v7, 4  ;;  %v2796_v22 = vor.u32 %v2795_v9, %v2792_v8  ;;  %v3224_v25 = vrot.slane %v4819_v32, 5  ;;  %v2811_v31 = vrot.slane %v2809_v13, 5  ;;  %v464_v59 = vld [vmem:[%s5156_s26 + $0x84] sm:$0xf] }
  0xc3   : > { %2012 = vst.msk [vmem:[#allocation2 + $0x10] sm:$0xff] %vm2009_vm10, %v1966_v3  ;;  %2300 = vrot.lane.b32.xlu1 %v4675_v49, %s5100_s28  ;;  %2476 = vrot.lane.b32.xlu0 %v5064_v50, %s5104_s8  ;;  %v2783_v30 = vrot.slane %v2782_v6, 4  ;;  %v3227_v1 = vrot.slane %v4820_v2, 5  ;;  %v723_v17 = vshrl.u32 %v461_v56, 16  ;;  %v2806_v37 = vor.u32 %v2805_v23, %v2801_v12  ;;  %v466_v10 = vld [vmem:[%s5156_s26 + $0x8c] sm:$0x1] }
  0xc4   : > { %v2778_v36 = vsel %vm5199_vm5, %v2773_v18, %v2777_v60  ;;  %v2797_v34 = vrot.slane %v2796_v22, 4  ;;  %v3225_v38 = vsel %vm5158_vm2, %v4850_v14, %v3224_v25  ;;  %v3226_v43 = vrot.slane %v3224_v25, 4  ;;  %v1009_v18 = vld [vmem:[%s5156_s26 + $0x78] sm:$0xe]  ;;  %v5086_v22 = vld [vmem:[%s5156_s26 + $0x84] sm:$0xff]  }
  0xc5   : > { %v1968_v29 = vpop.permute.xlu1 %1967  ;;  %v2788_v41 = vsel %vm5199_vm5, %v2783_v30, %v2787_v62  ;;  %v725_v44 = vrot.slane %v723_v17, 4  ;;  %v726_v47 = vshll.u32 %v461_v56, 16  ;;  %v2807_v49 = vrot.slane %v2806_v37, 4  ;;  %v465_v62 = vld [vmem:[%s5156_s26 + $0x88] sm:$0xf]  ;;  %426 = vst.msk [vmem:[#allocation2 + $0x58] sm:$0xff] %vm414_vm6, %v5086_v22 }
  0xc6   : > { %2013 = vst.msk [vmem:[#allocation2 + $0x18] sm:$0xff] %vm2009_vm10, %v1968_v29  ;;  %v2287_v35 = vpop.permute.xlu0 %2286  ;;  %v4786_v46 = vcombine.low %v2778_v36, %v2788_v41  ;;  %v2802_v48 = vsel %vm5199_vm5, %v2797_v34, %v2801_v12  ;;  %v732_v50 = vshll.u32 %v462_v15, 16  ;;  %v3228_v52 = vsel %vm5158_vm2, %v3226_v43, %v3227_v1  ;;  %v1010_v30 = vld [vmem:[%s5156_s26 + $0x7c] sm:$0xf]  ;;  %v1011_v36 = vld [vmem:[%s5156_s26 + $0x80] sm:$0x1] }
  0xc7   : > { %2333 = vst.msk [vmem:[#allocation2 + $0x10] sm:$0xff] %vm2330_vm11, %v2287_v35  ;;  %2478 = vrot.lane.b32.xlu1 %v5065_v16, %s5104_s8  ;;  %v728_v54 = vrot.slane %v726_v47, 5  ;;  %v736_v55 = vshrl.u32 %v462_v15, 16  ;;  %v742_v58 = vshll.u32 %v463_v26, 16  ;;  %v2812_v27 = vsel %vm5199_vm5, %v2807_v49, %v2811_v31  ;;  %v1012_v41 = vld [vmem:[%s5156_s26 + $0x84] sm:$0xe] }
  0xc8   : > { %3021 = vrot.lane.b32.xlu0 %v4786_v46, %s5105_s9  ;;  %v4866_v32 = vcombine.low %v3225_v38, %v3228_v52  ;;  %v734_v60 = vrot.slane %v732_v50, 5  ;;  %v4851_v61 = vrot.slane %v4821_v33, 9  ;;  %v4787_v63 = vcombine.low %v2802_v48, %v2812_v27  ;;  %v1013_v43 = vld [vmem:[%s5156_s26 + $0x88] sm:$0xf]  ;;  %v1014_v49 = vld [vmem:[%s5156_s26 + $0x8c] sm:$0x1] }
  0xc9   : > { %v2289_v51 = vpop.permute.xlu1 %2288  ;;  %v729_v2 = vor.u32 %v728_v54, %v725_v44  ;;  %v738_v3 = vrot.slane %v736_v55, 4  ;;  %v744_v7 = vrot.slane %v742_v58, 5  ;;  %v3231_v8 = vrot.slane %v4822_v21, 5  ;;  %v4568_v50 = vld [vmem:[%s5156_s26 + $0x84] sm:$0xf] }
  0xca   : > { %2334 = vst.msk [vmem:[#allocation2 + $0x18] sm:$0xff] %vm2330_vm11, %v2289_v51  ;;  %v2465_v19 = vpop.permute.xlu0 %2464  ;;  %v3234_v9 = vrot.slane %v4823_v39, 5  ;;  %v747_v56 = vshrl.u32 %v464_v59, 16  ;;  %v750_v6 = vshll.u32 %v464_v59, 16  ;;  %v756_v15 = vshll.u32 %v465_v62, 16 }
  0xcb   : > { %2511 = vst.msk [vmem:[#allocation2 + $0x10] sm:$0xff] %vm2508_vm12, %v2465_v19  ;;  %3023 = vrot.lane.b32.xlu1 %v4787_v63, %s5105_s9  ;;  %v730_v13 = vrot.slane %v729_v2, 4  ;;  %v739_v14 = vor.u32 %v738_v3, %v734_v60  ;;  %v760_v16 = vshrl.u32 %v465_v62, 16  ;;  %v3232_v23 = vsel %vm5158_vm2, %v4851_v61, %v3231_v8  ;;  %v4569_v55 = vld [vmem:[%s5156_s26 + $0x88] sm:$0xf] }
  0xcc   : > { %3342 = vrot.lane.b32.xlu0 %v4866_v32, %s5106_s10  ;;  %v3233_v25 = vrot.slane %v3231_v8, 4  ;;  %v749_v26 = vrot.slane %v747_v56, 4  ;;  %v752_v29 = vrot.slane %v750_v6, 5  ;;  %v758_v33 = vrot.slane %v756_v15, 5  ;;  %v4573_v15 = vld [vmem:[%s5156_s26 + $0x98] sm:$0x1] }
  0xcd   : > { %v2467_v12 = vpop.permute.xlu1 %2466  ;;  %v735_v1 = vsel %vm5199_vm5, %v730_v13, %v734_v60  ;;  %v740_v17 = vrot.slane %v739_v14, 4  ;;  %v762_v35 = vrot.slane %v760_v16, 4  ;;  %v766_v38 = vshll.u32 %v466_v10, 16  ;;  %v4571_v10 = vld [vmem:[%s5156_s26 + $0x90] sm:$0xf] }
  0xce   : > { %2512 = vst.msk [vmem:[#allocation2 + $0x18] sm:$0xff] %vm2508_vm12, %v2467_v12  ;;  %v3010_v31 = vpop.permute.xlu0 %3009  ;;  %v3235_v34 = vsel %vm5158_vm2, %v3233_v25, %v3234_v9  ;;  %v753_v37 = vor.u32 %v752_v29, %v749_v26  ;;  %v4468_v40 = vrot.slane %v1009_v18, 9  ;;  %v1150_v48 = vrot.slane %v1010_v30, 5  ;;  %v4572_v14 = vld [vmem:[%s5156_s26 + $0x94] sm:$0xf] }
  0xcf   : > { %3056 = vst.msk [vmem:[#allocation2 + $0x10] sm:$0xff] %vm3053_vm13, %v3010_v31  ;;  %v745_v47 = vsel %vm5199_vm5, %v740_v17, %v744_v7  ;;  %v4867_v21 = vcombine.low %v3232_v23, %v3235_v34  ;;  %v763_v46 = vor.u32 %v762_v35, %v758_v33  ;;  %v768_v52 = vrot.slane %v766_v38, 5  ;;  %v4570_v7 = vld [vmem:[%s5156_s26 + $0x8c] sm:$0x1]  ;;  %v4632_v29 = vld [vmem:[%s5156_s26 + $0x84] sm:$0xe] }
  0xd0   : > { %v4452_v39 = vcombine.low %v735_v1, %v745_v47  ;;  %v754_v51 = vrot.slane %v753_v37, 4  ;;  %v1153_v54 = vrot.slane %v1011_v36, 5  ;;  %v1151_v19 = vsel %vm5158_vm2, %v4468_v40, %v1150_v48  ;;  %v5067_v31 = vld [vmem:[%s5156_s26 + $0x84] sm:$0xff]   ;;  %v4634_v40 = vld [vmem:[%s5156_s26 + $0x8c] sm:$0x1] }
  0xd1   : > { %v3012_v44 = vpop.permute.xlu1 %3011  ;;  %3344 = vrot.lane.b32.xlu0 %v4867_v21, %s5106_s10  ;;  %v764_v59 = vrot.slane %v763_v46, 4  ;;  %v1152_v27 = vrot.slane %v1150_v48, 4  ;;  %v4469_v32 = vrot.slane %v1012_v41, 9  ;;  %v1157_v61 = vrot.slane %v1013_v43, 5  ;;  %v4633_v35 = vld [vmem:[%s5156_s26 + $0x88] sm:$0xf] }
  0xd2   : > { %3057 = vst.msk [vmem:[#allocation2 + $0x18] sm:$0xff] %vm3053_vm13, %v3012_v44  ;;  %v3331_v58 = vpop.permute.xlu0 %3330  ;;  %934 = vrot.lane.b32.xlu1 %v4452_v39, %s5102_s30  ;;  %v759_v60 = vsel %vm5199_vm5, %v754_v51, %v758_v33  ;;  %v1160_v62 = vrot.slane %v1014_v49, 5  ;;  %v1770_v63 = vshrl.u32 %v4568_v50, 16  ;;  %v1773_v8 = vshll.u32 %v4568_v50, 16  ;;  %v4635_v21 = vld [vmem:[%s5156_s26 + $0x90] sm:$0xe] }
  0xd3   : > { %3377 = vst.msk [vmem:[#allocation2 + $0x10] sm:$0xff] %vm3374_vm14, %v3331_v58  ;;  %v769_v2 = vsel %vm5199_vm5, %v764_v59, %v768_v52  ;;  %v1154_v3 = vsel %vm5158_vm2, %v1152_v27, %v1153_v54  ;;  %v1779_v9 = vshll.u32 %v4569_v55, 16  ;;  %v1158_v12 = vsel %vm5158_vm2, %v4469_v32, %v1157_v61  ;;  %v4636_v46 = vld [vmem:[%s5156_s26 + $0x94] sm:$0xf]  ;;  %v4637_v48 = vld [vmem:[%s5156_s26 + $0x98] sm:$0x1] }
  0xd4   : > { %v4453_v56 = vcombine.low %v759_v60, %v769_v2  ;;  %v4484_v6 = vcombine.low %v1151_v19, %v1154_v3  ;;  %v1159_v13 = vrot.slane %v1157_v61, 4  ;;  %v1772_v22 = vrot.slane %v1770_v63, 4  ;;  %v5068_v54 = vld [vmem:[%s5156_s26 + $0x90] sm:$0xff]  }
  0xd5   : > { %v1775_v23 = vrot.slane %v1773_v8, 5  ;;  %v1781_v25 = vrot.slane %v1779_v9, 5  ;;  %v1783_v26 = vshrl.u32 %v4569_v55, 16  ;;  %v1789_v1 = vshll.u32 %v4570_v7, 16  ;;  %v4760_v9 = vld [vmem:[%s5156_s26 + $0x90] sm:$0xf] }
  0xd6   : > { %v3333_v18 = vpop.permute.xlu0 %3332  ;;  %936 = vrot.lane.b32.xlu1 %v4453_v56, %s5102_s30  ;;  %1258 = vrot.lane.b32.xlu0 %v4484_v6, %s5101_s29  ;;  %v1161_v30 = vsel %vm5158_vm2, %v1159_v13, %v1160_v62  ;;  %v1794_v17 = vshrl.u32 %v4571_v10, 16  ;;  %v1797_v33 = vshll.u32 %v4571_v10, 16  ;;  %v1803_v38 = vshll.u32 %v4572_v14, 16 }
  0xd7   : > { %v923_v16 = vpop.permute.xlu1 %922  ;;  %3378 = vst.msk [vmem:[#allocation2 + $0x18] sm:$0xff] %vm3374_vm14, %v3333_v18  ;;  %v4485_v36 = vcombine.low %v1158_v12, %v1161_v30  ;;  %v1776_v34 = vor.u32 %v1775_v23, %v1772_v22  ;;  %v1785_v37 = vrot.slane %v1783_v26, 4  ;;  %v1791_v41 = vrot.slane %v1789_v1, 5  ;;  %v4762_v23 = vld [vmem:[%s5156_s26 + $0x98] sm:$0x1] }
  0xd8   : > { %967 = vst.msk [vmem:[#allocation2 + $0x20] sm:$0xff] %vm962_vm7, %v923_v16  ;;  %v1796_v43 = vrot.slane %v1794_v17, 4  ;;  %v1799_v44 = vrot.slane %v1797_v33, 5  ;;  %v1807_v47 = vshrl.u32 %v4572_v14, 16  ;;  %v1805_v51 = vrot.slane %v1803_v38, 5 }
  0xd9   : > { %v1777_v50 = vrot.slane %v1776_v34, 4  ;;  %v1786_v39 = vor.u32 %v1785_v37, %v1781_v25  ;;  %v1813_v52 = vshll.u32 %v4573_v15, 16  ;;  %v4660_v59 = vrot.slane %v4632_v29, 9  ;;  %v4761_v14 = vld [vmem:[%s5156_s26 + $0x94] sm:$0xf] }
  0xda   : > { %v3393_v49 = vld [vmem:[#allocation2 + $0x10] sm:$0xff]  ;;  %1260 = vrot.lane.b32.xlu1 %v4485_v36, %s5101_s29  ;;  %1436 = vrot.lane.b32.xlu0 %v5067_v31, %s5099_s27  ;;  %v1800_v55 = vor.u32 %v1799_v44, %v1796_v43  ;;  %v1809_v58 = vrot.slane %v1807_v47, 4  ;;  %v2194_v19 = vrot.slane %v4633_v35, 5  ;;  %v2197_v62 = vrot.slane %v4634_v40, 5  ;;  %v4763_v17 = vld [vmem:[%s5156_s26 + $0x9c] sm:$0xf] }
  0xdb   : > { %4959 = vmatprep.mubr.msk.bf16.mxu0 %vm3427_vm0, %v3393_v49  ;;  %v1782_v32 = vsel %vm5199_vm5, %v1777_v50, %v1781_v25  ;;  %v1787_v60 = vrot.slane %v1786_v39, 4  ;;  %v1815_v61 = vrot.slane %v1813_v52, 5  ;;  %v4661_v6 = vrot.slane %v4635_v21, 9  ;;  %v4764_v33 = vld [vmem:[%s5156_s26 + $0xa0] sm:$0xf]  ;;  %v5071_v21 = vld [vmem:[%s5156_s26 + $0x90] sm:$0xff]  }
  0xdc   : > { %v1247_v27 = vpop.permute.xlu0 %1246  ;;  %v1801_v2 = vrot.slane %v1800_v55, 4  ;;  %v1810_v3 = vor.u32 %v1809_v58, %v1805_v51  ;;  %v2195_v7 = vsel %vm5158_vm2, %v4660_v59, %v2194_v19  ;;  %v2196_v8 = vrot.slane %v2194_v19, 4  ;;  %v4765_v44 = vld [vmem:[%s5156_s26 + $0xa4] sm:$0x1]  ;;  %v4824_v50 = vld [vmem:[%s5156_s26 + $0x90] sm:$0xe] }
  0xdd   : > { %v925_v63 = vpop.permute.xlu1 %924  ;;  %1291 = vst.msk [vmem:[#allocation2 + $0x20] sm:$0xff] %vm1286_vm8, %v1247_v27  ;;  %v1792_v56 = vsel %vm5199_vm5, %v1787_v60, %v1791_v41  ;;  %v2201_v12 = vrot.slane %v4636_v46, 5  ;;  %v2204_v13 = vrot.slane %v4637_v48, 5  ;;  %v2814_v1 = vshrl.u32 %v4760_v9, 16  ;;  %v4825_v58 = vld [vmem:[%s5156_s26 + $0x94] sm:$0xf] }
  0xde   : > { %968 = vst.msk [vmem:[#allocation2 + $0x28] sm:$0xff] %vm962_vm7, %v925_v63  ;;  %v3394_v10 = vld [vmem:[#allocation2 + $0x18] sm:$0xff]  ;;  %1438 = vrot.lane.b32.xlu1 %v5068_v54, %s5099_s27  ;;  %v5887_v15 = vcombine.low %v1782_v32, %v1792_v56  ;;  %v1806_v16 = vsel %vm5199_vm5, %v1801_v2, %v1805_v51  ;;  %v1811_v18 = vrot.slane %v1810_v3, 4  ;;  %v2198_v22 = vsel %vm5158_vm2, %v2196_v8, %v2197_v62  ;;  %v467_v62 = vld [vmem:[%s5156_s26 + $0x90] sm:$0xf] }
  0xdf   : > { %4960 = vmatmul.mubr.msk.bf16.gmra.mrb[4].mxu0 %vm3427_vm0, %v3394_v10  ;;  %v4676_v26 = vcombine.low %v2195_v7, %v2198_v22  ;;  %v2202_v29 = vsel %vm5158_vm2, %v4661_v6, %v2201_v12  ;;  %v2203_v30 = vrot.slane %v2201_v12, 4  ;;  %v2817_v36 = vshll.u32 %v4760_v9, 16  ;;  %v468_v8 = vld [vmem:[%s5156_s26 + $0x94] sm:$0xf]  ;;  %v469_v12 = vld [vmem:[%s5156_s26 + $0x98] sm:$0x1] }
  0xe0   : > { %v1425_v25 = vpop.permute.xlu0 %1424  ;;  %1981 = vrot.lane.b32.xlu0 %v5887_v15, %s5103_s7  ;;  %v1816_v35 = vsel %vm5199_vm5, %v1811_v18, %v1815_v61  ;;  %v2823_v34 = vshll.u32 %v4761_v14, 16  ;;  %v2827_v37 = vshrl.u32 %v4761_v14, 16  ;;  %v2816_v41 = vrot.slane %v2814_v1, 4  ;;  %v4826_v61 = vld [vmem:[%s5156_s26 + $0x98] sm:$0x1] }
  0xe1   : > { %v1249_v31 = vpop.permute.xlu1 %1248  ;;  %1469 = vst.msk [vmem:[#allocation2 + $0x20] sm:$0xff] %vm1464_vm9, %v1425_v25  ;;  %v5904_v38 = vcombine.low %v1806_v16, %v1816_v35  ;;  %v2205_v40 = vsel %vm5158_vm2, %v2203_v30, %v2204_v13  ;;  %v2833_v43 = vshll.u32 %v4762_v23, 16  ;;  %v2819_v46 = vrot.slane %v2817_v36, 5  ;;  %v5072_v13 = vld [vmem:[%s5156_s26 + $0x9c] sm:$0xff]  }
  0xe2   : > { %1292 = vst.msk [vmem:[#allocation2 + $0x28] sm:$0xff] %vm1286_vm8, %v1249_v31  ;;  %v4677_v47 = vcombine.low %v2202_v29, %v2205_v40  ;;  %v2825_v48 = vrot.slane %v2823_v34, 5  ;;  %v2829_v49 = vrot.slane %v2827_v37, 4  ;;  %v2838_v51 = vshrl.u32 %v4763_v17, 16  ;;  %v4827_v1 = vld [vmem:[%s5156_s26 + $0x9c] sm:$0xe] }
  0xe3   : > { %1983 = vrot.lane.b32.xlu1 %v5904_v38, %s5103_s7  ;;  %v2835_v39 = vrot.slane %v2833_v43, 5  ;;  %v2841_v52 = vshll.u32 %v4763_v17, 16  ;;  %v2847_v54 = vshll.u32 %v4764_v33, 16  ;;  %v2820_v19 = vor.u32 %v2819_v46, %v2816_v41  ;;  %v5087_v17 = vld [vmem:[%s5156_s26 + $0x90] sm:$0xff]  }
  0xe4   : > { %2302 = vrot.lane.b32.xlu0 %v4676_v26, %s5100_s28  ;;  %v2830_v27 = vor.u32 %v2829_v49, %v2825_v48  ;;  %v2851_v32 = vshrl.u32 %v4764_v33, 16  ;;  %v2857_v60 = vshll.u32 %v4765_v44, 16  ;;  %v2840_v63 = vrot.slane %v2838_v51, 4  ;;  %v4828_v44 = vld [vmem:[%s5156_s26 + $0xa0] sm:$0xf]  ;;  %427 = vst.msk [vmem:[#allocation2 + $0x60] sm:$0xff] %vm414_vm6, %v5087_v17 }
  0xe5   : > { %v1427_v55 = vpop.permute.xlu1 %1426  ;;  %v1970_v59 = vpop.permute.xlu0 %1969  ;;  %v2843_v2 = vrot.slane %v2841_v52, 5  ;;  %v2849_v3 = vrot.slane %v2847_v54, 5  ;;  %v4852_v7 = vrot.slane %v4824_v50, 9  ;;  %v2821_v9 = vrot.slane %v2820_v19, 4  ;;  %v4829_v49 = vld [vmem:[%s5156_s26 + $0xa4] sm:$0x1] }
  0xe6   : > { %1470 = vst.msk [vmem:[#allocation2 + $0x28] sm:$0xff] %vm1464_vm9, %v1427_v55  ;;  %v2831_v10 = vrot.slane %v2830_v27, 4  ;;  %v2853_v56 = vrot.slane %v2851_v32, 4  ;;  %v2859_v6 = vrot.slane %v2857_v60, 5  ;;  %v3238_v16 = vrot.slane %v4825_v58, 5  ;;  %v5088_v19 = vld [vmem:[%s5156_s26 + $0x9c] sm:$0xff]  }
  0xe7   : > { %2014 = vst.msk [vmem:[#allocation2 + $0x20] sm:$0xff] %vm2009_vm10, %v1970_v59  ;;  %2304 = vrot.lane.b32.xlu1 %v4677_v47, %s5100_s28  ;;  %v2844_v14 = vor.u32 %v2843_v2, %v2840_v63  ;;  %v3241_v18 = vrot.slane %v4826_v61, 5  ;;  %v771_v22 = vshrl.u32 %v467_v62, 16  ;;  %v2826_v26 = vsel %vm5199_vm5, %v2821_v9, %v2825_v48  ;;  %v470_v50 = vld [vmem:[%s5156_s26 + $0x9c] sm:$0xf] }
  0xe8   : > { %2480 = vrot.lane.b32.xlu0 %v5071_v21, %s5104_s8  ;;  %v2836_v29 = vsel %vm5199_vm5, %v2831_v10, %v2835_v39  ;;  %v2854_v30 = vor.u32 %v2853_v56, %v2849_v3  ;;  %v774_v31 = vshll.u32 %v467_v62, 16  ;;  %v3239_v36 = vsel %vm5158_vm2, %v4852_v7, %v3238_v16  ;;  %v471_v59 = vld [vmem:[%s5156_s26 + $0xa0] sm:$0xf]  ;;  %v472_v62 = vld [vmem:[%s5156_s26 + $0xa4] sm:$0x1]  ;;  %428 = vst.msk [vmem:[#allocation2 + $0x68] sm:$0xff] %vm414_vm6, %v5088_v19 }
  0xe9   : > { %v1972_v23 = vpop.permute.xlu1 %1971  ;;  %v2291_v25 = vpop.permute.xlu0 %2290  ;;  %v4788_v33 = vcombine.low %v2826_v26, %v2836_v29  ;;  %v2845_v35 = vrot.slane %v2844_v14, 4  ;;  %v3240_v34 = vrot.slane %v3238_v16, 4  ;;  %v773_v40 = vrot.slane %v771_v22, 4 }
  0xea   : > { %2015 = vst.msk [vmem:[#allocation2 + $0x28] sm:$0xff] %vm2009_vm10, %v1972_v23  ;;  %v2855_v37 = vrot.slane %v2854_v30, 4  ;;  %v776_v41 = vrot.slane %v774_v31, 5  ;;  %v780_v43 = vshll.u32 %v468_v8, 16  ;;  %v784_v46 = vshrl.u32 %v468_v8, 16 }
  0xeb   : > { %2335 = vst.msk [vmem:[#allocation2 + $0x20] sm:$0xff] %vm2330_vm11, %v2291_v25  ;;  %2482 = vrot.lane.b32.xlu1 %v5072_v13, %s5104_s8  ;;  %v2850_v47 = vsel %vm5199_vm5, %v2845_v35, %v2849_v3  ;;  %v3242_v21 = vsel %vm5158_vm2, %v3240_v34, %v3241_v18  ;;  %v790_v48 = vshll.u32 %v469_v12, 16  ;;  %v4853_v61 = vrot.slane %v4827_v1, 9  ;;  %v1015_v8 = vld [vmem:[%s5156_s26 + $0x90] sm:$0xe] }
  0xec   : > { %3025 = vrot.lane.b32.xlu0 %v4788_v33, %s5105_s9  ;;  %v2860_v52 = vsel %vm5199_vm5, %v2855_v37, %v2859_v6  ;;  %v4868_v54 = vcombine.low %v3239_v36, %v3242_v21  ;;  %v777_v55 = vor.u32 %v776_v41, %v773_v40  ;;  %v782_v58 = vrot.slane %v780_v43, 5  ;;  %v1016_v12 = vld [vmem:[%s5156_s26 + $0x94] sm:$0xf]  ;;  %v1017_v31 = vld [vmem:[%s5156_s26 + $0x98] sm:$0x1] }
  0xed   : > { %v2293_v39 = vpop.permute.xlu1 %2292  ;;  %v2469_v51 = vpop.permute.xlu0 %2468  ;;  %v4789_v27 = vcombine.low %v2850_v47, %v2860_v52  ;;  %v786_v32 = vrot.slane %v784_v46, 4  ;;  %v792_v60 = vrot.slane %v790_v48, 5  ;;  %v3245_v2 = vrot.slane %v4828_v44, 5  ;;  %v1018_v36 = vld [vmem:[%s5156_s26 + $0x9c] sm:$0xe] }
  0xee   : > { %2336 = vst.msk [vmem:[#allocation2 + $0x28] sm:$0xff] %vm2330_vm11, %v2293_v39  ;;  %v778_v63 = vrot.slane %v777_v55, 4  ;;  %v3248_v3 = vrot.slane %v4829_v49, 5  ;;  %v795_v7 = vshrl.u32 %v470_v50, 16  ;;  %v798_v10 = vshll.u32 %v470_v50, 16 }
  0xef   : > { %2513 = vst.msk [vmem:[#allocation2 + $0x20] sm:$0xff] %vm2508_vm12, %v2469_v51  ;;  %3027 = vrot.lane.b32.xlu1 %v4789_v27, %s5105_s9  ;;  %v787_v9 = vor.u32 %v786_v32, %v782_v58  ;;  %v804_v56 = vshll.u32 %v471_v59, 16  ;;  %v808_v6 = vshrl.u32 %v471_v59, 16  ;;  %v3246_v16 = vsel %vm5158_vm2, %v4853_v61, %v3245_v2  ;;  %v1019_v43 = vld [vmem:[%s5156_s26 + $0xa0] sm:$0xf] }
  0xf0   : > { %3346 = vrot.lane.b32.xlu0 %v4868_v54, %s5106_s10  ;;  %v783_v14 = vsel %vm5199_vm5, %v778_v63, %v782_v58  ;;  %v3247_v18 = vrot.slane %v3245_v2, 4  ;;  %v797_v22 = vrot.slane %v795_v7, 4  ;;  %v800_v26 = vrot.slane %v798_v10, 5  ;;  %v1020_v44 = vld [vmem:[%s5156_s26 + $0xa4] sm:$0x1] }
  0xf1   : > { %v2471_v13 = vpop.permute.xlu1 %2470  ;;  %v788_v25 = vrot.slane %v787_v9, 4  ;;  %v806_v29 = vrot.slane %v804_v56, 5  ;;  %v810_v30 = vrot.slane %v808_v6, 4  ;;  %v814_v17 = vshll.u32 %v472_v62, 16  ;;  %v4574_v21 = vld [vmem:[%s5156_s26 + $0x9c] sm:$0xf] }
  0xf2   : > { %2514 = vst.msk [vmem:[#allocation2 + $0x28] sm:$0xff] %vm2508_vm12, %v2471_v13  ;;  %v3014_v23 = vpop.permute.xlu0 %3013  ;;  %v3249_v1 = vsel %vm5158_vm2, %v3247_v18, %v3248_v3  ;;  %v4470_v33 = vrot.slane %v1015_v8, 9  ;;  %v1164_v35 = vrot.slane %v1016_v12, 5  ;;  %v801_v40 = vor.u32 %v800_v26, %v797_v22  ;;  %v4575_v39 = vld [vmem:[%s5156_s26 + $0xa0] sm:$0xf] }
  0xf3   : > { %3058 = vst.msk [vmem:[#allocation2 + $0x20] sm:$0xff] %vm3053_vm13, %v3014_v23  ;;  %v793_v34 = vsel %vm5199_vm5, %v788_v25, %v792_v60  ;;  %v4869_v37 = vcombine.low %v3246_v16, %v3249_v1  ;;  %v811_v41 = vor.u32 %v810_v30, %v806_v29  ;;  %v816_v48 = vrot.slane %v814_v17, 5  ;;  %v4576_v63 = vld [vmem:[%s5156_s26 + $0xa4] sm:$0x1]  ;;  %v4577_v3 = vld [vmem:[%s5156_s26 + $0xa8] sm:$0xf] }
  0xf4   : > { %v4454_v46 = vcombine.low %v783_v14, %v793_v34  ;;  %v1165_v49 = vsel %vm5158_vm2, %v4470_v33, %v1164_v35  ;;  %v1166_v50 = vrot.slane %v1164_v35, 4  ;;  %v802_v52 = vrot.slane %v801_v40, 4  ;;  %v4578_v56 = vld [vmem:[%s5156_s26 + $0xac] sm:$0xf]  ;;  %v4579_v6 = vld [vmem:[%s5156_s26 + $0xb0] sm:$0x1] }
  0xf5   : > { %v3016_v47 = vpop.permute.xlu1 %3015  ;;  %3348 = vrot.lane.b32.xlu0 %v4869_v37, %s5106_s10  ;;  %v812_v54 = vrot.slane %v811_v41, 4  ;;  %v1167_v55 = vrot.slane %v1017_v31, 5  ;;  %v4471_v58 = vrot.slane %v1018_v36, 9  ;;  %v1171_v59 = vrot.slane %v1019_v43, 5  ;;  %v4638_v23 = vld [vmem:[%s5156_s26 + $0x9c] sm:$0xe] }
  0xf6   : > { %3059 = vst.msk [vmem:[#allocation2 + $0x28] sm:$0xff] %vm3053_vm13, %v3016_v47  ;;  %v3335_v51 = vpop.permute.xlu0 %3334  ;;  %938 = vrot.lane.b32.xlu1 %v4454_v46, %s5102_s30  ;;  %v1174_v19 = vrot.slane %v1020_v44, 5  ;;  %v1818_v27 = vshrl.u32 %v4574_v21, 16  ;;  %v1821_v32 = vshll.u32 %v4574_v21, 16  ;;  %v807_v60 = vsel %vm5199_vm5, %v802_v52, %v806_v29  ;;  %v4639_v25 = vld [vmem:[%s5156_s26 + $0xa0] sm:$0xf] }
  0xf7   : > { %3379 = vst.msk [vmem:[#allocation2 + $0x20] sm:$0xff] %vm3374_vm14, %v3335_v51  ;;  %v817_v61 = vsel %vm5199_vm5, %v812_v54, %v816_v48  ;;  %v1168_v62 = vsel %vm5158_vm2, %v1166_v50, %v1167_v55  ;;  %v1827_v2 = vshll.u32 %v4575_v39, 16  ;;  %v1172_v9 = vsel %vm5158_vm2, %v4471_v58, %v1171_v59  ;;  %v5073_v29 = vld [vmem:[%s5156_s26 + $0x9c] sm:$0xff]   ;;  %v4640_v17 = vld [vmem:[%s5156_s26 + $0xa4] sm:$0x1] }
  0xf8   : > { %v4455_v7 = vcombine.low %v807_v60, %v817_v61  ;;  %v4486_v8 = vcombine.low %v1165_v49, %v1168_v62  ;;  %v1173_v10 = vrot.slane %v1171_v59, 4  ;;  %v1820_v14 = vrot.slane %v1818_v27, 4  ;;  %v4641_v44 = vld [vmem:[%s5156_s26 + $0xa8] sm:$0xe]  ;;  %v4642_v47 = vld [vmem:[%s5156_s26 + $0xac] sm:$0xf] }
  0xf9   : > { %v1823_v16 = vrot.slane %v1821_v32, 5  ;;  %v1829_v18 = vrot.slane %v1827_v2, 5  ;;  %v1831_v22 = vshrl.u32 %v4575_v39, 16  ;;  %v1837_v30 = vshll.u32 %v4576_v63, 16  ;;  %v5074_v39 = vld [vmem:[%s5156_s26 + $0xa8] sm:$0xff]  }
  0xfa   : > { %v3337_v13 = vpop.permute.xlu0 %3336  ;;  %940 = vrot.lane.b32.xlu1 %v4455_v7, %s5102_s30  ;;  %1262 = vrot.lane.b32.xlu0 %v4486_v8, %s5101_s29  ;;  %v1175_v26 = vsel %vm5158_vm2, %v1173_v10, %v1174_v19  ;;  %v1842_v31 = vshrl.u32 %v4577_v3, 16  ;;  %v1845_v1 = vshll.u32 %v4577_v3, 16  ;;  %v1851_v34 = vshll.u32 %v4578_v56, 16  ;;  %v4643_v58 = vld [vmem:[%s5156_s26 + $0xb0] sm:$0x1] }
  0xfb   : > { %v927_v12 = vpop.permute.xlu1 %926  ;;  %3380 = vst.msk [vmem:[#allocation2 + $0x28] sm:$0xff] %vm3374_vm14, %v3337_v13  ;;  %v4487_v33 = vcombine.low %v1172_v9, %v1175_v26  ;;  %v1824_v35 = vor.u32 %v1823_v16, %v1820_v14  ;;  %v1833_v36 = vrot.slane %v1831_v22, 4  ;;  %v1839_v37 = vrot.slane %v1837_v30, 5  ;;  %v4766_v7 = vld [vmem:[%s5156_s26 + $0xa8] sm:$0xf] }
  0xfc   : > { %969 = vst.msk [vmem:[#allocation2 + $0x30] sm:$0xff] %vm962_vm7, %v927_v12  ;;  %v1844_v40 = vrot.slane %v1842_v31, 4  ;;  %v1847_v41 = vrot.slane %v1845_v1, 5  ;;  %v1855_v43 = vshrl.u32 %v4578_v56, 16  ;;  %v1853_v49 = vrot.slane %v1851_v34, 5 }
  0xfd   : > { %v1825_v46 = vrot.slane %v1824_v35, 4  ;;  %v1834_v48 = vor.u32 %v1833_v36, %v1829_v18  ;;  %v1861_v50 = vshll.u32 %v4579_v6, 16  ;;  %v4662_v54 = vrot.slane %v4638_v23, 9  ;;  %v4767_v12 = vld [vmem:[%s5156_s26 + $0xac] sm:$0xf] }
  0xfe   : > { %v3395_v21 = vld [vmem:[#allocation2 + $0x20] sm:$0xff]  ;;  %1264 = vrot.lane.b32.xlu1 %v4487_v33, %s5101_s29  ;;  %1440 = vrot.lane.b32.xlu0 %v5073_v29, %s5099_s27  ;;  %v1848_v51 = vor.u32 %v1847_v41, %v1844_v40  ;;  %v1857_v52 = vrot.slane %v1855_v43, 4  ;;  %v2208_v55 = vrot.slane %v4639_v25, 5  ;;  %v2211_v60 = vrot.slane %v4640_v17, 5  ;;  %v4768_v22 = vld [vmem:[%s5156_s26 + $0xb0] sm:$0x1] }
  0xff   : > { %4963 = vmatprep.mubr.msk.bf16.mxu0 %vm3427_vm0, %v3395_v21  ;;  %v1830_v19 = vsel %vm5199_vm5, %v1825_v46, %v1829_v18  ;;  %v1835_v27 = vrot.slane %v1834_v48, 4  ;;  %v1863_v32 = vrot.slane %v1861_v50, 5  ;;  %v4663_v10 = vrot.slane %v4641_v44, 9  ;;  %v4769_v23 = vld [vmem:[%s5156_s26 + $0xb4] sm:$0xf]  ;;  %v5077_v46 = vld [vmem:[%s5156_s26 + $0xa8] sm:$0xff]  }
 0x100   : > { %v1251_v59 = vpop.permute.xlu0 %1250  ;;  %v1849_v62 = vrot.slane %v1848_v51, 4  ;;  %v1858_v63 = vor.u32 %v1857_v52, %v1853_v49  ;;  %v2209_v2 = vsel %vm5158_vm2, %v4662_v54, %v2208_v55  ;;  %v2210_v3 = vrot.slane %v2208_v55, 4  ;;  %v4770_v34 = vld [vmem:[%s5156_s26 + $0xb8] sm:$0xf]  ;;  %v4771_v44 = vld [vmem:[%s5156_s26 + $0xbc] sm:$0x1] }
 0x101   : > { %v929_v61 = vpop.permute.xlu1 %928  ;;  %1293 = vst.msk [vmem:[#allocation2 + $0x30] sm:$0xff] %vm1286_vm8, %v1251_v59  ;;  %v1840_v9 = vsel %vm5199_vm5, %v1835_v27, %v1839_v37  ;;  %v2215_v56 = vrot.slane %v4642_v47, 5  ;;  %v2218_v6 = vrot.slane %v4643_v58, 5  ;;  %v2862_v1 = vshrl.u32 %v4766_v7, 16  ;;  %v4830_v47 = vld [vmem:[%s5156_s26 + $0xa8] sm:$0xe] }
 0x102   : > { %970 = vst.msk [vmem:[#allocation2 + $0x38] sm:$0xff] %vm962_vm7, %v929_v61  ;;  %v3396_v8 = vld [vmem:[#allocation2 + $0x28] sm:$0xff]  ;;  %1442 = vrot.lane.b32.xlu1 %v5074_v39, %s5099_s27  ;;  %v6019_v13 = vcombine.low %v1830_v19, %v1840_v9  ;;  %v1854_v14 = vsel %vm5199_vm5, %v1849_v62, %v1853_v49  ;;  %v1859_v16 = vrot.slane %v1858_v63, 4  ;;  %v2212_v18 = vsel %vm5158_vm2, %v2210_v3, %v2211_v60  ;;  %v4832_v59 = vld [vmem:[%s5156_s26 + $0xb0] sm:$0x1]  ;;  %v5078_v63 = vld [vmem:[%s5156_s26 + $0xb4] sm:$0xff]  }
 0x103   : > { %4964 = vmatmul.mubr.msk.bf16.gmra.mrb[8].mxu0 %vm3427_vm0, %v3396_v8  ;;  %v4678_v26 = vcombine.low %v2209_v2, %v2212_v18  ;;  %v2216_v29 = vsel %vm5158_vm2, %v4663_v10, %v2215_v56  ;;  %v2217_v30 = vrot.slane %v2215_v56, 4  ;;  %v2865_v33 = vshll.u32 %v4766_v7, 16  ;;  %v4831_v39 = vld [vmem:[%s5156_s26 + $0xac] sm:$0xf]  ;;  %v473_v62 = vld [vmem:[%s5156_s26 + $0xa8] sm:$0xf] }
 0x104   : > { %v1429_v25 = vpop.permute.xlu0 %1428  ;;  %1985 = vrot.lane.b32.xlu0 %v6019_v13, %s5103_s7  ;;  %v1864_v17 = vsel %vm5199_vm5, %v1859_v16, %v1863_v32  ;;  %v2871_v35 = vshll.u32 %v4767_v12, 16  ;;  %v2875_v36 = vshrl.u32 %v4767_v12, 16  ;;  %v2864_v41 = vrot.slane %v2862_v1, 4  ;;  %v474_v9 = vld [vmem:[%s5156_s26 + $0xac] sm:$0xf] }
 0x105   : > { %v1253_v31 = vpop.permute.xlu1 %1252  ;;  %1471 = vst.msk [vmem:[#allocation2 + $0x30] sm:$0xff] %vm1464_vm9, %v1429_v25  ;;  %v6036_v37 = vcombine.low %v1854_v14, %v1864_v17  ;;  %v2219_v40 = vsel %vm5158_vm2, %v2217_v30, %v2218_v6  ;;  %v2881_v43 = vshll.u32 %v4768_v22, 16  ;;  %v2867_v48 = vrot.slane %v2865_v33, 5  ;;  %v475_v14 = vld [vmem:[%s5156_s26 + $0xb0] sm:$0x1] }
 0x106   : > { %1294 = vst.msk [vmem:[#allocation2 + $0x38] sm:$0xff] %vm1286_vm8, %v1253_v31  ;;  %v4679_v21 = vcombine.low %v2216_v29, %v2219_v40  ;;  %v2873_v49 = vrot.slane %v2871_v35, 5  ;;  %v2877_v50 = vrot.slane %v2875_v36, 4  ;;  %v2886_v52 = vshrl.u32 %v4769_v23, 16  ;;  %v5089_v29 = vld [vmem:[%s5156_s26 + $0xa8] sm:$0xff]  }
 0x107   : > { %1987 = vrot.lane.b32.xlu1 %v6036_v37, %s5103_s7  ;;  %v2883_v51 = vrot.slane %v2881_v43, 5  ;;  %v2889_v54 = vshll.u32 %v4769_v23, 16  ;;  %v2895_v55 = vshll.u32 %v4770_v34, 16  ;;  %v2868_v27 = vor.u32 %v2867_v48, %v2864_v41  ;;  %v4833_v40 = vld [vmem:[%s5156_s26 + $0xb4] sm:$0xe]  ;;  %429 = vst.msk [vmem:[#allocation2 + $0x70] sm:$0xff] %vm414_vm6, %v5089_v29 }
 0x108   : > { %2306 = vrot.lane.b32.xlu0 %v4678_v26, %s5100_s28  ;;  %v2878_v32 = vor.u32 %v2877_v50, %v2873_v49  ;;  %v2899_v60 = vshrl.u32 %v4770_v34, 16  ;;  %v2905_v61 = vshll.u32 %v4771_v44, 16  ;;  %v2888_v2 = vrot.slane %v2886_v52, 4  ;;  %v1023_v29 = vld [vmem:[%s5156_s26 + $0xb0] sm:$0x1] }
 0x109   : > { %v1431_v58 = vpop.permute.xlu1 %1430  ;;  %v1974_v19 = vpop.permute.xlu0 %1973  ;;  %v2891_v3 = vrot.slane %v2889_v54, 5  ;;  %v2897_v7 = vrot.slane %v2895_v55, 5  ;;  %v4854_v8 = vrot.slane %v4830_v47, 9  ;;  %v2869_v10 = vrot.slane %v2868_v27, 4  ;;  %v477_v27 = vld [vmem:[%s5156_s26 + $0xb8] sm:$0xf] }
 0x10a   : > { %1472 = vst.msk [vmem:[#allocation2 + $0x38] sm:$0xff] %vm1464_vm9, %v1431_v58  ;;  %v2879_v56 = vrot.slane %v2878_v32, 4  ;;  %v2901_v6 = vrot.slane %v2899_v60, 4  ;;  %v2907_v12 = vrot.slane %v2905_v61, 5  ;;  %v3252_v18 = vrot.slane %v4831_v39, 5  ;;  %v5090_v32 = vld [vmem:[%s5156_s26 + $0xb4] sm:$0xff]  }
 0x10b   : > { %2016 = vst.msk [vmem:[#allocation2 + $0x30] sm:$0xff] %vm2009_vm10, %v1974_v19  ;;  %2308 = vrot.lane.b32.xlu1 %v4679_v21, %s5100_s28  ;;  %v2892_v16 = vor.u32 %v2891_v3, %v2888_v2  ;;  %v3255_v22 = vrot.slane %v4832_v59, 5  ;;  %v819_v23 = vshrl.u32 %v473_v62, 16  ;;  %v2874_v30 = vsel %vm5199_vm5, %v2869_v10, %v2873_v49  ;;  %v4834_v21 = vld [vmem:[%s5156_s26 + $0xb8] sm:$0xf] }
 0x10c   : > { %2484 = vrot.lane.b32.xlu0 %v5077_v46, %s5104_s8  ;;  %v2884_v31 = vsel %vm5199_vm5, %v2879_v56, %v2883_v51  ;;  %v2902_v1 = vor.u32 %v2901_v6, %v2897_v7  ;;  %v822_v17 = vshll.u32 %v473_v62, 16  ;;  %v3253_v36 = vsel %vm5158_vm2, %v4854_v8, %v3252_v18  ;;  %v4835_v39 = vld [vmem:[%s5156_s26 + $0xbc] sm:$0x1]  ;;  %v476_v51 = vld [vmem:[%s5156_s26 + $0xb4] sm:$0xf]  ;;  %430 = vst.msk [vmem:[#allocation2 + $0x78] sm:$0xff] %vm414_vm6, %v5090_v32 }
 0x10d   : > { %v1976_v25 = vpop.permute.xlu1 %1975  ;;  %v2295_v26 = vpop.permute.xlu0 %2294  ;;  %v4790_v33 = vcombine.low %v2874_v30, %v2884_v31  ;;  %v2893_v35 = vrot.slane %v2892_v16, 4  ;;  %v3254_v34 = vrot.slane %v3252_v18, 4  ;;  %v821_v43 = vrot.slane %v819_v23, 4  ;;  %v478_v2 = vld [vmem:[%s5156_s26 + $0xbc] sm:$0x1] }
 0x10e   : > { %2017 = vst.msk [vmem:[#allocation2 + $0x38] sm:$0xff] %vm2009_vm10, %v1976_v25  ;;  %v2903_v41 = vrot.slane %v2902_v1, 4  ;;  %v824_v44 = vrot.slane %v822_v17, 5  ;;  %v828_v47 = vshll.u32 %v474_v9, 16  ;;  %v832_v49 = vshrl.u32 %v474_v9, 16 }
 0x10f   : > { %2337 = vst.msk [vmem:[#allocation2 + $0x30] sm:$0xff] %vm2330_vm11, %v2295_v26  ;;  %2486 = vrot.lane.b32.xlu1 %v5078_v63, %s5104_s8  ;;  %v2898_v46 = vsel %vm5199_vm5, %v2893_v35, %v2897_v7  ;;  %v3256_v48 = vsel %vm5158_vm2, %v3254_v34, %v3255_v22  ;;  %v838_v50 = vshll.u32 %v475_v14, 16  ;;  %v4855_v63 = vrot.slane %v4833_v40, 9  ;;  %v1021_v10 = vld [vmem:[%s5156_s26 + $0xa8] sm:$0xe] }
 0x110   : > { %3029 = vrot.lane.b32.xlu0 %v4790_v33, %s5105_s9  ;;  %v2908_v55 = vsel %vm5199_vm5, %v2903_v41, %v2907_v12  ;;  %v4870_v58 = vcombine.low %v3253_v36, %v3256_v48  ;;  %v825_v59 = vor.u32 %v824_v44, %v821_v43  ;;  %v830_v19 = vrot.slane %v828_v47, 5  ;;  %v1022_v16 = vld [vmem:[%s5156_s26 + $0xac] sm:$0xf]  ;;  %v1024_v30 = vld [vmem:[%s5156_s26 + $0xb4] sm:$0xe] }
 0x111   : > { %v2297_v52 = vpop.permute.xlu1 %2296  ;;  %v2473_v54 = vpop.permute.xlu0 %2472  ;;  %v4791_v60 = vcombine.low %v2898_v46, %v2908_v55  ;;  %v834_v61 = vrot.slane %v832_v49, 4  ;;  %v840_v62 = vrot.slane %v838_v50, 5  ;;  %v3259_v7 = vrot.slane %v4834_v21, 5  ;;  %v1025_v36 = vld [vmem:[%s5156_s26 + $0xb8] sm:$0xf] }
 0x112   : > { %2338 = vst.msk [vmem:[#allocation2 + $0x38] sm:$0xff] %vm2330_vm11, %v2297_v52  ;;  %v826_v3 = vrot.slane %v825_v59, 4  ;;  %v3262_v8 = vrot.slane %v4835_v39, 5  ;;  %v843_v9 = vshrl.u32 %v476_v51, 16  ;;  %v846_v6 = vshll.u32 %v476_v51, 16 }
 0x113   : > { %2515 = vst.msk [vmem:[#allocation2 + $0x30] sm:$0xff] %vm2508_vm12, %v2473_v54  ;;  %3031 = vrot.lane.b32.xlu1 %v4791_v60, %s5105_s9  ;;  %v835_v56 = vor.u32 %v834_v61, %v830_v19  ;;  %v852_v12 = vshll.u32 %v477_v27, 16  ;;  %v856_v14 = vshrl.u32 %v477_v27, 16  ;;  %v3260_v23 = vsel %vm5158_vm2, %v4855_v63, %v3259_v7  ;;  %v1026_v34 = vld [vmem:[%s5156_s26 + $0xbc] sm:$0x1] }
 0x114   : > { %3350 = vrot.lane.b32.xlu0 %v4870_v58, %s5106_s10  ;;  %v831_v22 = vsel %vm5199_vm5, %v826_v3, %v830_v19  ;;  %v3261_v25 = vrot.slane %v3259_v7, 4  ;;  %v845_v26 = vrot.slane %v843_v9, 4  ;;  %v848_v17 = vrot.slane %v846_v6, 5  ;;  %v4580_v40 = vld [vmem:[%s5156_s26 + $0xb4] sm:$0xf] }
 0x115   : > { %v2475_v18 = vpop.permute.xlu1 %2474  ;;  %v836_v1 = vrot.slane %v835_v56, 4  ;;  %v854_v33 = vrot.slane %v852_v12, 5  ;;  %v858_v35 = vrot.slane %v856_v14, 4  ;;  %v862_v43 = vshll.u32 %v478_v2, 16  ;;  %v4581_v21 = vld [vmem:[%s5156_s26 + $0xb8] sm:$0xf] }
 0x116   : > { %2516 = vst.msk [vmem:[#allocation2 + $0x38] sm:$0xff] %vm2508_vm12, %v2475_v18  ;;  %v3018_v31 = vpop.permute.xlu0 %3017  ;;  %v3263_v41 = vsel %vm5158_vm2, %v3261_v25, %v3262_v8  ;;  %v4472_v44 = vrot.slane %v1021_v10, 9  ;;  %v1178_v47 = vrot.slane %v1022_v16, 5  ;;  %v849_v49 = vor.u32 %v848_v17, %v845_v26  ;;  %v6107_v51 = vld [vmem:[%s6616_s2] sm:$0x3] }
 0x117   : > { %3060 = vst.msk [vmem:[#allocation2 + $0x30] sm:$0xff] %vm3053_vm13, %v3018_v31  ;;  %v841_v46 = vsel %vm5199_vm5, %v836_v1, %v840_v62  ;;  %v4871_v48 = vcombine.low %v3260_v23, %v3263_v41  ;;  %v859_v50 = vor.u32 %v858_v35, %v854_v33  ;;  %v864_v54 = vrot.slane %v862_v43, 5  ;;  %5022 = vmatprep.subr.msk.bf16.mxu1 %vm3476_vm15, %v6107_v51  ;;  %v4582_v61 = vld [vmem:[%s5156_s26 + $0xbc] sm:$0x1]  ;;  %v4583_v62 = vld [vmem:[%s5156_s26 + $0xc0] sm:$0xf] }
 0x118   : > { %v4456_v52 = vcombine.low %v831_v22, %v841_v46  ;;  %v1179_v55 = vsel %vm5158_vm2, %v4472_v44, %v1178_v47  ;;  %v1180_v58 = vrot.slane %v1178_v47, 4  ;;  %v850_v19 = vrot.slane %v849_v49, 4  ;;  %v4584_v8 = vld [vmem:[%s5156_s26 + $0xc4] sm:$0xf]  ;;  %v5079_v1 = vld [vmem:[%s5156_s26 + $0xb4] sm:$0xff]  }
 0x119   : > { %v3020_v39 = vpop.permute.xlu1 %3019  ;;  %3352 = vrot.lane.b32.xlu0 %v4871_v48, %s5106_s10  ;;  %v860_v27 = vrot.slane %v859_v50, 4  ;;  %v1181_v32 = vrot.slane %v1023_v29, 5  ;;  %v4473_v60 = vrot.slane %v1024_v30, 9  ;;  %v1185_v63 = vrot.slane %v1025_v36, 5  ;;  %v4585_v30 = vld [vmem:[%s5156_s26 + $0xc8] sm:$0x1] }
 0x11a   : > { %3061 = vst.msk [vmem:[#allocation2 + $0x38] sm:$0xff] %vm3053_vm13, %v3020_v39  ;;  %v3339_v59 = vpop.permute.xlu0 %3338  ;;  %942 = vrot.lane.b32.xlu1 %v4456_v52, %s5102_s30  ;;  %v1188_v2 = vrot.slane %v1026_v34, 5  ;;  %v1866_v3 = vshrl.u32 %v4580_v40, 16  ;;  %v1869_v7 = vshll.u32 %v4580_v40, 16  ;;  %v855_v9 = vsel %vm5199_vm5, %v850_v19, %v854_v33  ;;  %v4644_v36 = vld [vmem:[%s5156_s26 + $0xb4] sm:$0xe] }
 0x11b   : > { %3381 = vst.msk [vmem:[#allocation2 + $0x30] sm:$0xff] %vm3374_vm14, %v3339_v59  ;;  %v865_v10 = vsel %vm5199_vm5, %v860_v27, %v864_v54  ;;  %v1182_v56 = vsel %vm5158_vm2, %v1180_v58, %v1181_v32  ;;  %v1875_v6 = vshll.u32 %v4581_v21, 16  ;;  %v1186_v16 = vsel %vm5158_vm2, %v4473_v60, %v1185_v63  ;;  %v4645_v47 = vld [vmem:[%s5156_s26 + $0xb8] sm:$0xf]  ;;  %v4647_v39 = vld [vmem:[%s5156_s26 + $0xc0] sm:$0xe] }
 0x11c   : > { %v4457_v12 = vcombine.low %v855_v9, %v865_v10  ;;  %v4488_v14 = vcombine.low %v1179_v55, %v1182_v56  ;;  %v1187_v18 = vrot.slane %v1185_v63, 4  ;;  %v1868_v23 = vrot.slane %v1866_v3, 4  ;;  %v4648_v19 = vld [vmem:[%s5156_s26 + $0xc4] sm:$0xf]  ;;  %v4649_v63 = vld [vmem:[%s5156_s26 + $0xc8] sm:$0x1] }
 0x11d   : > { %v1871_v25 = vrot.slane %v1869_v7, 5  ;;  %v1877_v26 = vrot.slane %v1875_v6, 5  ;;  %v1879_v29 = vshrl.u32 %v4581_v21, 16  ;;  %v1885_v17 = vshll.u32 %v4582_v61, 16  ;;  %v4646_v21 = vld [vmem:[%s5156_s26 + $0xbc] sm:$0x1] }
 0x11e   : > { %v3341_v22 = vpop.permute.xlu0 %3340  ;;  %944 = vrot.lane.b32.xlu1 %v4457_v12, %s5102_s30  ;;  %1266 = vrot.lane.b32.xlu0 %v4488_v14, %s5101_s29  ;;  %v1189_v31 = vsel %vm5158_vm2, %v1187_v18, %v1188_v2  ;;  %v1890_v33 = vshrl.u32 %v4583_v62, 16  ;;  %v1893_v35 = vshll.u32 %v4583_v62, 16  ;;  %v1899_v43 = vshll.u32 %v4584_v8, 16  ;;  %v5080_v27 = vld [vmem:[%s5156_s26 + $0xc0] sm:$0xff]  }
 0x11f   : > { %3382 = vst.msk [vmem:[#allocation2 + $0x38] sm:$0xff] %vm3374_vm14, %v3341_v22  ;;  %v4489_v34 = vcombine.low %v1186_v16, %v1189_v31  ;;  %v1872_v40 = vor.u32 %v1871_v25, %v1868_v23  ;;  %v1881_v41 = vrot.slane %v1879_v29, 4  ;;  %v1887_v46 = vrot.slane %v1885_v17, 5  ;;  %v4772_v16 = vld [vmem:[%s5156_s26 + $0xc0] sm:$0xf] }
 0x120   : > { %v931_v44 = vpop.permute.xlu1 %930  ;;  %v1892_v48 = vrot.slane %v1890_v33, 4  ;;  %v1895_v49 = vrot.slane %v1893_v35, 5  ;;  %v1903_v50 = vshrl.u32 %v4584_v8, 16  ;;  %v1901_v58 = vrot.slane %v1899_v43, 5  ;;  %v4773_v29 = vld [vmem:[%s5156_s26 + $0xc4] sm:$0xf] }
 0x121   : > { %971 = vst.msk [vmem:[#allocation2 + $0x40] sm:$0xff] %vm962_vm7, %v931_v44  ;;  %v1873_v54 = vrot.slane %v1872_v40, 4  ;;  %v1882_v55 = vor.u32 %v1881_v41, %v1877_v26  ;;  %v1909_v59 = vshll.u32 %v4585_v30, 16  ;;  %v4664_v61 = vrot.slane %v4644_v36, 9  ;;  %v4774_v33 = vld [vmem:[%s5156_s26 + $0xc8] sm:$0x1] }
 0x122   : > { %v3397_v52 = vld [vmem:[#allocation2 + $0x30] sm:$0xff]  ;;  %1268 = vrot.lane.b32.xlu1 %v4489_v34, %s5101_s29  ;;  %1444 = vrot.lane.b32.xlu0 %v5079_v1, %s5099_s27  ;;  %v1896_v32 = vor.u32 %v1895_v49, %v1892_v48  ;;  %v1905_v60 = vrot.slane %v1903_v50, 4  ;;  %v2222_v62 = vrot.slane %v4645_v47, 5  ;;  %v2225_v9 = vrot.slane %v4646_v21, 5  ;;  %v4775_v44 = vld [vmem:[%s5156_s26 + $0xcc] sm:$0xf] }
 0x123   : > { %4967 = vmatprep.mubr.msk.bf16.mxu0 %vm3427_vm0, %v3397_v52  ;;  %v1878_v3 = vsel %vm5199_vm5, %v1873_v54, %v1877_v26  ;;  %v1883_v7 = vrot.slane %v1882_v55, 4  ;;  %v1911_v8 = vrot.slane %v1909_v59, 5  ;;  %v4665_v23 = vrot.slane %v4647_v39, 9  ;;  %v4776_v49 = vld [vmem:[%s5156_s26 + $0xd0] sm:$0xf]  ;;  %v5083_v59 = vld [vmem:[%s5156_s26 + $0xc0] sm:$0xff]  }
 0x124   : > { %v1255_v2 = vpop.permute.xlu0 %1254  ;;  %v1897_v56 = vrot.slane %v1896_v32, 4  ;;  %v1906_v6 = vor.u32 %v1905_v60, %v1901_v58  ;;  %v2223_v12 = vsel %vm5158_vm2, %v4664_v61, %v2222_v62  ;;  %v2224_v14 = vrot.slane %v2222_v62, 4  ;;  %v4777_v55 = vld [vmem:[%s5156_s26 + $0xd4] sm:$0x1]  ;;  %v4836_v60 = vld [vmem:[%s5156_s26 + $0xc0] sm:$0xe] }
 0x125   : > { %v933_v10 = vpop.permute.xlu1 %932  ;;  %1295 = vst.msk [vmem:[#allocation2 + $0x40] sm:$0xff] %vm1286_vm8, %v1255_v2  ;;  %v1888_v22 = vsel %vm5199_vm5, %v1883_v7, %v1887_v46  ;;  %v2229_v25 = vrot.slane %v4648_v19, 5  ;;  %v2232_v26 = vrot.slane %v4649_v63, 5  ;;  %v2910_v43 = vshrl.u32 %v4772_v16, 16  ;;  %v4837_v7 = vld [vmem:[%s5156_s26 + $0xc4] sm:$0xf] }
 0x126   : > { %972 = vst.msk [vmem:[#allocation2 + $0x48] sm:$0xff] %vm962_vm7, %v933_v10  ;;  %v3398_v18 = vld [vmem:[#allocation2 + $0x38] sm:$0xff]  ;;  %1446 = vrot.lane.b32.xlu1 %v5080_v27, %s5099_s27  ;;  %v6158_v30 = vcombine.low %v1878_v3, %v1888_v22  ;;  %v1902_v31 = vsel %vm5199_vm5, %v1897_v56, %v1901_v58  ;;  %v1907_v1 = vrot.slane %v1906_v6, 4  ;;  %v2226_v17 = vsel %vm5158_vm2, %v2224_v14, %v2225_v9  ;;  %v4838_v6 = vld [vmem:[%s5156_s26 + $0xc8] sm:$0x1]  ;;  %s6394_s27 = scalar_lea.vmem %s6619_s5, %s4911_s19 }
 0x127   : > { %4968 = vmatmul.mubr.msk.bf16.gmra.mrb[12].mxu0 %vm3427_vm0, %v3398_v18  ;;  %v4680_v36 = vcombine.low %v2223_v12, %v2226_v17  ;;  %v2230_v34 = vsel %vm5158_vm2, %v4665_v23, %v2229_v25  ;;  %v2231_v40 = vrot.slane %v2229_v25, 4  ;;  %v2913_v21 = vshll.u32 %v4772_v16, 16  ;;  %v4839_v12 = vld [vmem:[%s5156_s26 + $0xcc] sm:$0xe]  ;;  %v4840_v23 = vld [vmem:[%s5156_s26 + $0xd0] sm:$0xf] }
 0x128   : > { %v1433_v35 = vpop.permute.xlu0 %1432  ;;  %1989 = vrot.lane.b32.xlu0 %v6158_v30, %s5103_s7  ;;  %v1912_v47 = vsel %vm5199_vm5, %v1907_v1, %v1911_v8  ;;  %v2919_v46 = vshll.u32 %v4773_v29, 16  ;;  %v2923_v48 = vshrl.u32 %v4773_v29, 16  ;;  %v2912_v52 = vrot.slane %v2910_v43, 4  ;;  %v5084_v17 = vld [vmem:[%s5156_s26 + $0xcc] sm:$0xff]  }
 0x129   : > { %v1257_v41 = vpop.permute.xlu1 %1256  ;;  %1473 = vst.msk [vmem:[#allocation2 + $0x40] sm:$0xff] %vm1464_vm9, %v1433_v35  ;;  %v6175_v50 = vcombine.low %v1902_v31, %v1912_v47  ;;  %v2233_v39 = vsel %vm5158_vm2, %v2231_v40, %v2232_v26  ;;  %v2929_v54 = vshll.u32 %v4774_v33, 16  ;;  %v2915_v19 = vrot.slane %v2913_v21, 5 }
 0x12a   : > { %1296 = vst.msk [vmem:[#allocation2 + $0x48] sm:$0xff] %vm1286_vm8, %v1257_v41  ;;  %v4681_v58 = vcombine.low %v2230_v34, %v2233_v39  ;;  %v2921_v27 = vrot.slane %v2919_v46, 5  ;;  %v2925_v32 = vrot.slane %v2923_v48, 4  ;;  %v2934_v62 = vshrl.u32 %v4775_v44, 16  ;;  %v4841_v34 = vld [vmem:[%s5156_s26 + $0xd4] sm:$0x1] }
 0x12b   : > { %1991 = vrot.lane.b32.xlu1 %v6175_v50, %s5103_s7  ;;  %v2931_v61 = vrot.slane %v2929_v54, 5  ;;  %v2937_v63 = vshll.u32 %v4775_v44, 16  ;;  %v2943_v2 = vshll.u32 %v4776_v49, 16  ;;  %v2916_v8 = vor.u32 %v2915_v19, %v2912_v52 }
 0x12c   : > { %2310 = vrot.lane.b32.xlu0 %v4680_v36, %s5100_s28  ;;  %v2926_v9 = vor.u32 %v2925_v32, %v2921_v27  ;;  %v2947_v10 = vshrl.u32 %v4776_v49, 16  ;;  %v2953_v56 = vshll.u32 %v4777_v55, 16  ;;  %v2936_v14 = vrot.slane %v2934_v62, 4 }
 0x12d   : > { %v1435_v3 = vpop.permute.xlu1 %1434  ;;  %v2939_v16 = vrot.slane %v2937_v63, 5  ;;  %v2945_v18 = vrot.slane %v2943_v2, 5  ;;  %v4856_v22 = vrot.slane %v4836_v60, 9  ;;  %v1978_v25 = vpop.permute.xlu0 %1977  ;;  %v2917_v26 = vrot.slane %v2916_v8, 4 }
 0x12e   : > { %1474 = vst.msk [vmem:[#allocation2 + $0x48] sm:$0xff] %vm1464_vm9, %v1435_v3  ;;  %v2927_v29 = vrot.slane %v2926_v9, 4  ;;  %v2949_v31 = vrot.slane %v2947_v10, 4  ;;  %v2955_v1 = vrot.slane %v2953_v56, 5  ;;  %v3266_v35 = vrot.slane %v4837_v7, 5 }
 0x12f   : > { %2018 = vst.msk [vmem:[#allocation2 + $0x40] sm:$0xff] %vm2009_vm10, %v1978_v25  ;;  %2312 = vrot.lane.b32.xlu1 %v4681_v58, %s5100_s28  ;;  %v2940_v33 = vor.u32 %v2939_v16, %v2936_v14  ;;  %v3269_v36 = vrot.slane %v4838_v6, 5  ;;  %v4857_v40 = vrot.slane %v4839_v12, 9  ;;  %v2922_v41 = vsel %vm5199_vm5, %v2917_v26, %v2921_v27  ;;  %s4422_s28 = sshll.u32 %s6626_s22, 1 }
 0x130   : > { %2488 = vrot.lane.b32.xlu0 %v5083_v59, %s5104_s8  ;;  %v2932_v43 = vsel %vm5199_vm5, %v2927_v29, %v2931_v61  ;;  %v2950_v44 = vor.u32 %v2949_v31, %v2945_v18  ;;  %v3273_v47 = vrot.slane %v4840_v23, 5  ;;  %v3267_v49 = vsel %vm5158_vm2, %v4856_v22, %v3266_v35  ;;  %s284_s7 = scalar_lea.vmem %s6620_s6, %s4422_s28 }
 0x131   : > { %v1980_v21 = vpop.permute.xlu1 %1979  ;;  %v4792_v46 = vcombine.low %v2922_v41, %v2932_v43  ;;  %v2941_v48 = vrot.slane %v2940_v33, 4  ;;  %v3268_v39 = vrot.slane %v3266_v35, 4  ;;  %v2299_v52 = vpop.permute.xlu0 %2298  ;;  %v3276_v58 = vrot.slane %v4841_v34, 5 }
 0x132   : > { %2019 = vst.msk [vmem:[#allocation2 + $0x48] sm:$0xff] %vm2009_vm10, %v1980_v21  ;;  %v2951_v54 = vrot.slane %v2950_v44, 4  ;;  %v3275_v55 = vrot.slane %v3273_v47, 4  ;;  %v3274_v27 = vsel %vm5158_vm2, %v4857_v40, %v3273_v47  ;;  %v3897_v32 = vsel %vm3476_vm15, %v6107_v51, 0 }
 0x133   : > { %2339 = vst.msk [vmem:[#allocation2 + $0x40] sm:$0xff] %vm2330_vm11, %v2299_v52  ;;  %2490 = vrot.lane.b32.xlu1 %v5084_v17, %s5104_s8  ;;  %v2946_v59 = vsel %vm5199_vm5, %v2941_v48, %v2945_v18  ;;  %v3270_v19 = vsel %vm5158_vm2, %v3268_v39, %v3269_v36  ;;  %4988 = vmatpush3.bf16.msra.mxu1 %v3897_v32 }
 0x134   : > { %3033 = vrot.lane.b32.xlu0 %v4792_v46, %s5105_s9  ;;  %v2956_v60 = vsel %vm5199_vm5, %v2951_v54, %v2955_v1  ;;  %v4872_v61 = vcombine.low %v3267_v49, %v3270_v19  ;;  %v3277_v62 = vsel %vm5158_vm2, %v3275_v55, %v3276_v58  ;;  %vm3844_vm2 = vcmask 57344  }
 0x135   : > { %v2301_v63 = vpop.permute.xlu1 %2300  ;;  %v4793_v2 = vcombine.low %v2946_v59, %v2956_v60  ;;  %v2477_v3 = vpop.permute.xlu0 %2476  ;;  %v4873_v51 = vcombine.low %v3274_v27, %v3277_v62 }
 0x136   : > { %2340 = vst.msk [vmem:[#allocation2 + $0x48] sm:$0xff] %vm2330_vm11, %v2301_v63  ;;  %4990 = vmatmul.mubr.msk.bf16.vlgmr.msra.gmra.mrb[0].mxu1 %vm414_vm6, %v5235_v5 }
 0x137   : > { %2517 = vst.msk [vmem:[#allocation2 + $0x40] sm:$0xff] %vm2508_vm12, %v2477_v3  ;;  %3035 = vrot.lane.b32.xlu1 %v4793_v2, %s5105_s9  ;;  %4993 = vmatprep.mubr.msk.bf16.mxu1 %vm414_vm6, %v5339_v57 }
 0x138   : > { %3354 = vrot.lane.b32.xlu0 %v4872_v61, %s5106_s10 }
 0x139   : > { %v2479_v53 = vpop.permute.xlu1 %2478 }
 0x13a   : > { %2518 = vst.msk [vmem:[#allocation2 + $0x48] sm:$0xff] %vm2508_vm12, %v2479_v53  ;;  %v3022_v0 = vpop.permute.xlu0 %3021 }
 0x13b   : > { %3356 = vrot.lane.b32.xlu1 %v4873_v51, %s5106_s10  ;;  %3062 = vst.msk [vmem:[#allocation2 + $0x40] sm:$0xff] %vm3053_vm13, %v3022_v0  ;;  %s275_s10 = scalar_lea.vmem %s6618_s4, %s4422_s28 }
 0x13d   : > { %v3024_v7 = vpop.permute.xlu1 %3023 }
 0x13e   : > { %3063 = vst.msk [vmem:[#allocation2 + $0x48] sm:$0xff] %vm3053_vm13, %v3024_v7  ;;  %v3343_v8 = vpop.permute.xlu0 %3342  ;;  %4994 = vmatmul.mubr.msk.bf16.gmra.mrb[4].mxu1 %vm414_vm6, %v5358_v11 }
 0x13f   : > { %3383 = vst.msk [vmem:[#allocation2 + $0x40] sm:$0xff] %vm3374_vm14, %v3343_v8  ;;  %4997 = vmatprep.mubr.msk.bf16.mxu1 %vm414_vm6, %v5450_v4 }
 0x143   : > { %v3345_v5 = vpop.permute.xlu0 %3344 }
 0x144   : > { %v935_v57 = vpop.permute.xlu1 %934  ;;  %3384 = vst.msk [vmem:[#allocation2 + $0x48] sm:$0xff] %vm3374_vm14, %v3345_v5 }
 0x145   : > { %973 = vst.msk [vmem:[#allocation2 + $0x50] sm:$0xff] %vm962_vm7, %v935_v57 }
 0x146   : > { %v3399_v9 = vld [vmem:[#allocation2 + $0x40] sm:$0xff]  ;;  %4998 = vmatmul.mubr.msk.bf16.gmra.mrb[8].mxu1 %vm414_vm6, %v5467_v20 }
 0x147   : > { %4971 = vmatprep.mubr.msk.bf16.mxu0 %vm3427_vm0, %v3399_v9  ;;  %5001 = vmatprep.mubr.msk.bf16.mxu1 %vm414_vm6, %v5567_v28 }
 0x148   : > { %v937_v10 = vpop.permute.xlu1 %936  ;;  %v1259_v56 = vpop.permute.xlu0 %1258 }
 0x149   : > { %974 = vst.msk [vmem:[#allocation2 + $0x58] sm:$0xff] %vm962_vm7, %v937_v10 }
 0x14a   : > { %1297 = vst.msk [vmem:[#allocation2 + $0x50] sm:$0xff] %vm1286_vm8, %v1259_v56 }
 0x14b   : > { %v3400_v11 = vld [vmem:[#allocation2 + $0x48] sm:$0xff] }
 0x14c   : > { %v1261_v4 = vpop.permute.xlu1 %1260  ;;  %v1437_v6 = vpop.permute.xlu0 %1436  ;;  %4972 = vmatmul.mubr.msk.bf16.gmra.mrb[16].mxu0 %vm3427_vm0, %v3400_v11 }
 0x14d   : > { %1298 = vst.msk [vmem:[#allocation2 + $0x58] sm:$0xff] %vm1286_vm8, %v1261_v4 }
 0x14e   : > { %1475 = vst.msk [vmem:[#allocation2 + $0x50] sm:$0xff] %vm1464_vm9, %v1437_v6  ;;  %5002 = vmatmul.mubr.msk.bf16.gmra.mrb[12].mxu1 %vm414_vm6, %v5591_v45 }
 0x14f   : > { %5005 = vmatprep.mubr.msk.bf16.mxu1 %vm414_vm6, %v5750_v24 }
 0x150   : > { %v1439_v20 = vpop.permute.xlu1 %1438 }
 0x151   : > { %1476 = vst.msk [vmem:[#allocation2 + $0x58] sm:$0xff] %vm1464_vm9, %v1439_v20 }
 0x152   : > { %v1982_v28 = vpop.permute.xlu0 %1981 }
 0x153   : > { %2020 = vst.msk [vmem:[#allocation2 + $0x50] sm:$0xff] %vm2009_vm10, %v1982_v28 }
 0x155   : > { %v1984_v12 = vpop.permute.xlu1 %1983 }
 0x156   : > { %2021 = vst.msk [vmem:[#allocation2 + $0x58] sm:$0xff] %vm2009_vm10, %v1984_v12  ;;  %v2303_v14 = vpop.permute.xlu0 %2302  ;;  %5006 = vmatmul.mubr.msk.bf16.gmra.mrb[16].mxu1 %vm414_vm6, %v5770_v42 }
 0x157   : > { %2341 = vst.msk [vmem:[#allocation2 + $0x50] sm:$0xff] %vm2330_vm11, %v2303_v14  ;;  %5009 = vmatprep.mubr.msk.bf16.mxu1 %vm414_vm6, %v5887_v15 }
 0x159   : > { %v2305_v45 = vpop.permute.xlu1 %2304 }
 0x15a   : > { %2342 = vst.msk [vmem:[#allocation2 + $0x58] sm:$0xff] %vm2330_vm11, %v2305_v45  ;;  %v2481_v24 = vpop.permute.xlu0 %2480 }
 0x15b   : > { %2519 = vst.msk [vmem:[#allocation2 + $0x50] sm:$0xff] %vm2508_vm12, %v2481_v24 }
 0x15d   : > { %v2483_v16 = vpop.permute.xlu1 %2482 }
 0x15e   : > { %2520 = vst.msk [vmem:[#allocation2 + $0x58] sm:$0xff] %vm2508_vm12, %v2483_v16  ;;  %v3026_v18 = vpop.permute.xlu0 %3025  ;;  %5010 = vmatmul.mubr.msk.bf16.gmra.mrb[20].mxu1 %vm414_vm6, %v5904_v38 }
 0x15f   : > { %3064 = vst.msk [vmem:[#allocation2 + $0x50] sm:$0xff] %vm3053_vm13, %v3026_v18  ;;  %5013 = vmatprep.mubr.msk.bf16.mxu1 %vm414_vm6, %v6019_v13 }
 0x161   : > { %v3028_v42 = vpop.permute.xlu1 %3027 }
 0x162   : > { %3065 = vst.msk [vmem:[#allocation2 + $0x58] sm:$0xff] %vm3053_vm13, %v3028_v42  ;;  %v3347_v15 = vpop.permute.xlu0 %3346 }
 0x163   : > { %3385 = vst.msk [vmem:[#allocation2 + $0x50] sm:$0xff] %vm3374_vm14, %v3347_v15 }
 0x166   : > { %5014 = vmatmul.mubr.msk.bf16.gmra.mrb[24].mxu1 %vm414_vm6, %v6036_v37 }
 0x167   : > { %v3349_v22 = vpop.permute.xlu0 %3348  ;;  %5017 = vmatprep.mubr.msk.bf16.mxu1 %vm414_vm6, %v6158_v30 }
 0x168   : > { %v939_v23 = vpop.permute.xlu1 %938  ;;  %3386 = vst.msk [vmem:[#allocation2 + $0x58] sm:$0xff] %vm3374_vm14, %v3349_v22 }
 0x169   : > { %975 = vst.msk [vmem:[#allocation2 + $0x60] sm:$0xff] %vm962_vm7, %v939_v23 }
 0x16a   : > { %v3401_v38 = vld [vmem:[#allocation2 + $0x50] sm:$0xff] }
 0x16b   : > { %4975 = vmatprep.mubr.msk.bf16.mxu0 %vm3427_vm0, %v3401_v38 }
 0x16c   : > { %v941_v13 = vpop.permute.xlu1 %940  ;;  %v1263_v25 = vpop.permute.xlu0 %1262 }
 0x16d   : > { %976 = vst.msk [vmem:[#allocation2 + $0x68] sm:$0xff] %vm962_vm7, %v941_v13 }
 0x16e   : > { %1299 = vst.msk [vmem:[#allocation2 + $0x60] sm:$0xff] %vm1286_vm8, %v1263_v25  ;;  %5018 = vmatmul.mubr.msk.bf16.gmra.mrb[28].mxu1 %vm414_vm6, %v6175_v50 }
 0x16f   : > { %v3402_v26 = vld [vmem:[#allocation2 + $0x58] sm:$0xff] }
 0x170   : > { %v1265_v37 = vpop.permute.xlu1 %1264  ;;  %v1441_v29 = vpop.permute.xlu0 %1440  ;;  %4976 = vmatmul.mubr.msk.bf16.gmra.mrb[20].mxu0 %vm3427_vm0, %v3402_v26 }
 0x171   : > { %1300 = vst.msk [vmem:[#allocation2 + $0x68] sm:$0xff] %vm1286_vm8, %v1265_v37 }
 0x172   : > { %1477 = vst.msk [vmem:[#allocation2 + $0x60] sm:$0xff] %vm1464_vm9, %v1441_v29 }
 0x174   : > { %v1443_v30 = vpop.permute.xlu1 %1442 }
 0x175   : > { %1478 = vst.msk [vmem:[#allocation2 + $0x68] sm:$0xff] %vm1464_vm9, %v1443_v30 }
 0x176   : > { %v1986_v31 = vpop.permute.xlu0 %1985 }
 0x177   : > { %2022 = vst.msk [vmem:[#allocation2 + $0x60] sm:$0xff] %vm2009_vm10, %v1986_v31 }
 0x179   : > { %v1988_v1 = vpop.permute.xlu1 %1987 }
 0x17a   : > { %2023 = vst.msk [vmem:[#allocation2 + $0x68] sm:$0xff] %vm2009_vm10, %v1988_v1  ;;  %v2307_v17 = vpop.permute.xlu0 %2306 }
 0x17b   : > { %2343 = vst.msk [vmem:[#allocation2 + $0x60] sm:$0xff] %vm2330_vm11, %v2307_v17 }
 0x17d   : > { %v2309_v50 = vpop.permute.xlu1 %2308 }
 0x17e   : > { %2344 = vst.msk [vmem:[#allocation2 + $0x68] sm:$0xff] %vm2330_vm11, %v2309_v50  ;;  %v2485_v33 = vpop.permute.xlu0 %2484 }
 0x17f   : > { %2521 = vst.msk [vmem:[#allocation2 + $0x60] sm:$0xff] %vm2508_vm12, %v2485_v33 }
 0x181   : > { %v2487_v35 = vpop.permute.xlu1 %2486 }
 0x182   : > { %2522 = vst.msk [vmem:[#allocation2 + $0x68] sm:$0xff] %vm2508_vm12, %v2487_v35  ;;  %v3030_v36 = vpop.permute.xlu0 %3029 }
 0x183   : > { %3066 = vst.msk [vmem:[#allocation2 + $0x60] sm:$0xff] %vm3053_vm13, %v3030_v36 }
 0x185   : > { %v3032_v34 = vpop.permute.xlu1 %3031 }
 0x186   : > { %3067 = vst.msk [vmem:[#allocation2 + $0x68] sm:$0xff] %vm3053_vm13, %v3032_v34  ;;  %v3351_v40 = vpop.permute.xlu0 %3350 }
 0x187   : > { %3387 = vst.msk [vmem:[#allocation2 + $0x60] sm:$0xff] %vm3374_vm14, %v3351_v40 }
 0x18b   : > { %v3353_v41 = vpop.permute.xlu0 %3352 }
 0x18c   : > { %v943_v43 = vpop.permute.xlu1 %942  ;;  %3388 = vst.msk [vmem:[#allocation2 + $0x68] sm:$0xff] %vm3374_vm14, %v3353_v41 }
 0x18d   : > { %977 = vst.msk [vmem:[#allocation2 + $0x70] sm:$0xff] %vm962_vm7, %v943_v43 }
 0x18e   : > { %v3403_v44 = vld [vmem:[#allocation2 + $0x60] sm:$0xff] }
 0x18f   : > { %4979 = vmatprep.mubr.msk.bf16.mxu0 %vm3427_vm0, %v3403_v44 }
 0x190   : > { %v945_v47 = vpop.permute.xlu1 %944  ;;  %v1267_v21 = vpop.permute.xlu0 %1266 }
 0x191   : > { %978 = vst.msk [vmem:[#allocation2 + $0x78] sm:$0xff] %vm962_vm7, %v945_v47 }
 0x192   : > { %1301 = vst.msk [vmem:[#allocation2 + $0x70] sm:$0xff] %vm1286_vm8, %v1267_v21 }
 0x193   : > { %v4957_v46 = vpop.f32.mrb[0].mxu0  ;;  %v3404_v48 = vld [vmem:[#allocation2 + $0x68] sm:$0xff] }
 0x194   : > { %3644 = vst.msk [vmem:[%s6301_s24 + $0x10] sm:$0xff] %vm3641_vm1, %v4957_v46  ;;  %v3514_v49 = vpop.f32.mrb[1].mxu0  ;;  %v1269_v39 = vpop.permute.xlu1 %1268  ;;  %4980 = vmatmul.mubr.msk.bf16.gmra.mrb[24].mxu0 %vm3427_vm0, %v3404_v48  ;;  %v3745_v59 = vmul.f32 %v4957_v46, %v4957_v46  ;;  %v3677_v62 = vsel %vm3641_vm1, %v4957_v46, 0.0 }
 0x195   : > { %v1445_v52 = vpop.permute.xlu0 %1444  ;;  %3642 = vst.msk [vmem:[%s6301_s24] sm:$0xff] %vm3641_vm1, %v3514_v49  ;;  %v3743_v54 = vmul.f32 %v3514_v49, %v3514_v49  ;;  %v4958_v55 = vpop.f32.mrb[2].mxu0  ;;  %v3674_v19 = vsel %vm3641_vm1, %v3514_v49, 0.0 }
 0x196   : > { %1302 = vst.msk [vmem:[#allocation2 + $0x78] sm:$0xff] %vm1286_vm8, %v1269_v39  ;;  %v3517_v58 = vpop.f32.mrb[3].mxu0  ;;  %v3746_v2 = vmul.f32 %v4958_v55, %v4958_v55  ;;  %v3778_v7 = vsel %vm3641_vm1, %v3745_v59, 0.0  ;;  %v3679_v8 = vsel %vm3641_vm1, %v4958_v55, 0.0 }
 0x197   : > { %1479 = vst.msk [vmem:[#allocation2 + $0x70] sm:$0xff] %vm1464_vm9, %v1445_v52  ;;  %v3675_v27 = vsel %vm3641_vm1, %v3517_v58, 0.0  ;;  %v3744_v32 = vmul.f32 %v3517_v58, %v3517_v58  ;;  %v3775_v63 = vsel %vm3641_vm1, %v3743_v54, 0.0 }
 0x198   : > { %3645 = vst.msk [vmem:[%s6301_s24 + $0x18] sm:$0xff] %vm3641_vm1, %v4958_v55  ;;  %3643 = vst.msk [vmem:[%s6301_s24 + $0x8] sm:$0xff] %vm3641_vm1, %v3517_v58  ;;  %v1447_v60 = vpop.permute.xlu1 %1446  ;;  %v3676_v61 = vadd.f32 %v3675_v27, %v3674_v19  ;;  %v3780_v10 = vsel %vm3641_vm1, %v3746_v2, 0.0 }
 0x199   : > { %1480 = vst.msk [vmem:[#allocation2 + $0x78] sm:$0xff] %vm1464_vm9, %v1447_v60  ;;  %v3776_v3 = vsel %vm3641_vm1, %v3744_v32, 0.0 }
 0x19a   : > { %v1990_v51 = vpop.permute.xlu0 %1989  ;;  %v3678_v53 = vadd.f32 %v3677_v62, %v3676_v61  ;;  %v3777_v0 = vadd.f32 %v3776_v3, %v3775_v63 }
 0x19b   : > { %2024 = vst.msk [vmem:[#allocation2 + $0x70] sm:$0xff] %vm2009_vm10, %v1990_v51 }
 0x19c   : > { %v3779_v5 = vadd.f32 %v3778_v7, %v3777_v0  ;;  %v3680_v57 = vadd.f32 %v3679_v8, %v3678_v53 }
 0x19d   : > { %v1992_v9 = vpop.permute.xlu1 %1991 }
 0x19e   : > { %2025 = vst.msk [vmem:[#allocation2 + $0x78] sm:$0xff] %vm2009_vm10, %v1992_v9  ;;  %v2311_v56 = vpop.permute.xlu0 %2310  ;;  %v3781_v11 = vadd.f32 %v3780_v10, %v3779_v5 }
 0x19f   : > { %2345 = vst.msk [vmem:[#allocation2 + $0x70] sm:$0xff] %vm2330_vm11, %v2311_v56 }
 0x1a1   : > { %v2313_v4 = vpop.permute.xlu1 %2312 }
 0x1a2   : > { %2346 = vst.msk [vmem:[#allocation2 + $0x78] sm:$0xff] %vm2330_vm11, %v2313_v4  ;;  %v2489_v6 = vpop.permute.xlu0 %2488 }
 0x1a3   : > { %2523 = vst.msk [vmem:[#allocation2 + $0x70] sm:$0xff] %vm2508_vm12, %v2489_v6 }
 0x1a5   : > { %v2491_v20 = vpop.permute.xlu1 %2490 }
 0x1a6   : > { %2524 = vst.msk [vmem:[#allocation2 + $0x78] sm:$0xff] %vm2508_vm12, %v2491_v20  ;;  %v3034_v28 = vpop.permute.xlu0 %3033 }
 0x1a7   : > { %3068 = vst.msk [vmem:[#allocation2 + $0x70] sm:$0xff] %vm3053_vm13, %v3034_v28 }
 0x1a9   : > { %v3036_v12 = vpop.permute.xlu1 %3035 }
 0x1aa   : > { %3069 = vst.msk [vmem:[#allocation2 + $0x78] sm:$0xff] %vm3053_vm13, %v3036_v12  ;;  %v3355_v14 = vpop.permute.xlu0 %3354 }
 0x1ab   : > { %3389 = vst.msk [vmem:[#allocation2 + $0x70] sm:$0xff] %vm3374_vm14, %v3355_v14 }
 0x1ad   : > { %v3357_v45 = vpop.permute.xlu1 %3356 }
 0x1ae   : > { %3390 = vst.msk [vmem:[#allocation2 + $0x78] sm:$0xff] %vm3374_vm14, %v3357_v45 }
 0x1b2   : > { %v4961_v24 = vpop.f32.mrb[4].mxu0  ;;  %v3405_v18 = vld [vmem:[#allocation2 + $0x70] sm:$0xff] }
 0x1b3   : > { %3648 = vst.msk [vmem:[%s6301_s24 + $0x30] sm:$0xff] %vm3641_vm1, %v4961_v24  ;;  %v3530_v16 = vpop.f32.mrb[5].mxu0  ;;  %4983 = vmatprep.mubr.msk.bf16.mxu0 %vm3427_vm0, %v3405_v18  ;;  %v3749_v13 = vmul.f32 %v4961_v24, %v4961_v24  ;;  %v3685_v1 = vsel %vm3641_vm1, %v4961_v24, 0.0 }
 0x1b4   : > { %3646 = vst.msk [vmem:[%s6301_s24 + $0x20] sm:$0xff] %vm3641_vm1, %v3530_v16  ;;  %v3681_v42 = vsel %vm3641_vm1, %v3530_v16, 0.0  ;;  %v3747_v15 = vmul.f32 %v3530_v16, %v3530_v16  ;;  %v4962_v22 = vpop.f32.mrb[6].mxu0 }
 0x1b5   : > { %v3682_v23 = vadd.f32 %v3681_v42, %v3680_v57  ;;  %3649 = vst.msk [vmem:[%s6301_s24 + $0x38] sm:$0xff] %vm3641_vm1, %v4962_v22  ;;  %v3533_v38 = vpop.f32.mrb[7].mxu0  ;;  %v3406_v29 = vld [vmem:[#allocation2 + $0x78] sm:$0xff]  ;;  %v3750_v17 = vmul.f32 %v4962_v22, %v4962_v22  ;;  %v3786_v36 = vsel %vm3641_vm1, %v3749_v13, 0.0  ;;  %v3687_v34 = vsel %vm3641_vm1, %v4962_v22, 0.0 }
 0x1b6   : > { %v3782_v25 = vsel %vm3641_vm1, %v3747_v15, 0.0  ;;  %3647 = vst.msk [vmem:[%s6301_s24 + $0x28] sm:$0xff] %vm3641_vm1, %v3533_v38  ;;  %v3683_v26 = vsel %vm3641_vm1, %v3533_v38, 0.0  ;;  %v3748_v37 = vmul.f32 %v3533_v38, %v3533_v38  ;;  %4984 = vmatmul.mubr.msk.bf16.gmra.mrb[28].mxu0 %vm3427_vm0, %v3406_v29 }
 0x1b7   : > { %v3783_v30 = vadd.f32 %v3782_v25, %v3781_v11  ;;  %v3684_v31 = vadd.f32 %v3683_v26, %v3682_v23  ;;  %v3788_v43 = vsel %vm3641_vm1, %v3750_v17, 0.0 }
 0x1b8   : > { %v3784_v50 = vsel %vm3641_vm1, %v3748_v37, 0.0 }
 0x1b9   : > { %v3686_v33 = vadd.f32 %v3685_v1, %v3684_v31  ;;  %v3785_v35 = vadd.f32 %v3784_v50, %v3783_v30 }
 0x1bb   : > { %v3787_v40 = vadd.f32 %v3786_v36, %v3785_v35  ;;  %v3688_v41 = vadd.f32 %v3687_v34, %v3686_v33 }
 0x1bd   : > { %v3789_v44 = vadd.f32 %v3788_v43, %v3787_v40 }
 0x1d6   : > { %v4965_v47 = vpop.f32.mrb[8].mxu0 }
 0x1d7   : > { %3652 = vst.msk [vmem:[%s6301_s24 + $0x50] sm:$0xff] %vm3641_vm1, %v4965_v47  ;;  %v3546_v21 = vpop.f32.mrb[9].mxu0  ;;  %v3753_v54 = vmul.f32 %v4965_v47, %v4965_v47  ;;  %v3693_v32 = vsel %vm3641_vm1, %v4965_v47, 0.0 }
 0x1d8   : > { %3650 = vst.msk [vmem:[%s6301_s24 + $0x40] sm:$0xff] %vm3641_vm1, %v3546_v21  ;;  %v3689_v46 = vsel %vm3641_vm1, %v3546_v21, 0.0  ;;  %v3751_v48 = vmul.f32 %v3546_v21, %v3546_v21  ;;  %v4966_v49 = vpop.f32.mrb[10].mxu0 }
 0x1d9   : > { %v3690_v39 = vadd.f32 %v3689_v46, %v3688_v41  ;;  %3653 = vst.msk [vmem:[%s6301_s24 + $0x58] sm:$0xff] %vm3641_vm1, %v4966_v49  ;;  %v3549_v52 = vpop.f32.mrb[11].mxu0  ;;  %v3754_v60 = vmul.f32 %v4966_v49, %v4966_v49  ;;  %v3794_v2 = vsel %vm3641_vm1, %v3753_v54, 0.0  ;;  %v3695_v3 = vsel %vm3641_vm1, %v4966_v49, 0.0 }
 0x1da   : > { %v3790_v55 = vsel %vm3641_vm1, %v3751_v48, 0.0  ;;  %3651 = vst.msk [vmem:[%s6301_s24 + $0x48] sm:$0xff] %vm3641_vm1, %v3549_v52  ;;  %v3691_v58 = vsel %vm3641_vm1, %v3549_v52, 0.0  ;;  %v3752_v59 = vmul.f32 %v3549_v52, %v3549_v52 }
 0x1db   : > { %v3791_v19 = vadd.f32 %v3790_v55, %v3789_v44  ;;  %v3692_v27 = vadd.f32 %v3691_v58, %v3690_v39  ;;  %v3796_v0 = vsel %vm3641_vm1, %v3754_v60, 0.0 }
 0x1dc   : > { %v3792_v61 = vsel %vm3641_vm1, %v3752_v59, 0.0 }
 0x1dd   : > { %v3694_v62 = vadd.f32 %v3693_v32, %v3692_v27  ;;  %v3793_v63 = vadd.f32 %v3792_v61, %v3791_v19 }
 0x1df   : > { %v3795_v51 = vadd.f32 %v3794_v2, %v3793_v63  ;;  %v3696_v53 = vadd.f32 %v3695_v3, %v3694_v62 }
 0x1e1   : > { %v3797_v7 = vadd.f32 %v3796_v0, %v3795_v51 }
 0x1fa   : > { %v4969_v8 = vpop.f32.mrb[12].mxu0 }
 0x1fb   : > { %3656 = vst.msk [vmem:[%s6301_s24 + $0x70] sm:$0xff] %vm3641_vm1, %v4969_v8  ;;  %v3562_v5 = vpop.f32.mrb[13].mxu0  ;;  %v3757_v4 = vmul.f32 %v4969_v8, %v4969_v8  ;;  %v3701_v45 = vsel %vm3641_vm1, %v4969_v8, 0.0 }
 0x1fc   : > { %3654 = vst.msk [vmem:[%s6301_s24 + $0x60] sm:$0xff] %vm3641_vm1, %v3562_v5  ;;  %v3697_v57 = vsel %vm3641_vm1, %v3562_v5, 0.0  ;;  %v3755_v9 = vmul.f32 %v3562_v5, %v3562_v5  ;;  %v4970_v10 = vpop.f32.mrb[14].mxu0 }
 0x1fd   : > { %v3698_v56 = vadd.f32 %v3697_v57, %v3696_v53  ;;  %3657 = vst.msk [vmem:[%s6301_s24 + $0x78] sm:$0xff] %vm3641_vm1, %v4970_v10  ;;  %v3565_v11 = vpop.f32.mrb[15].mxu0  ;;  %v3758_v24 = vmul.f32 %v4970_v10, %v4970_v10  ;;  %v3802_v15 = vsel %vm3641_vm1, %v3757_v4, 0.0  ;;  %v3703_v22 = vsel %vm3641_vm1, %v4970_v10, 0.0 }
 0x1fe   : > { %v3798_v6 = vsel %vm3641_vm1, %v3755_v9, 0.0  ;;  %3655 = vst.msk [vmem:[%s6301_s24 + $0x68] sm:$0xff] %vm3641_vm1, %v3565_v11  ;;  %v3699_v20 = vsel %vm3641_vm1, %v3565_v11, 0.0  ;;  %v3756_v28 = vmul.f32 %v3565_v11, %v3565_v11 }
 0x1ff   : > { %v3799_v12 = vadd.f32 %v3798_v6, %v3797_v7  ;;  %v3700_v14 = vadd.f32 %v3699_v20, %v3698_v56  ;;  %v3804_v13 = vsel %vm3641_vm1, %v3758_v24, 0.0 }
 0x200   : > { %v3800_v16 = vsel %vm3641_vm1, %v3756_v28, 0.0 }
 0x201   : > { %v3702_v18 = vadd.f32 %v3701_v45, %v3700_v14  ;;  %v3801_v42 = vadd.f32 %v3800_v16, %v3799_v12 }
 0x203   : > { %v3803_v23 = vadd.f32 %v3802_v15, %v3801_v42  ;;  %v6384_v38 = vadd.f32 %v3703_v22, %v3702_v18 }
 0x205   : > { %v6387_v25 = vadd.f32 %v3804_v13, %v3803_v23 }
 0x209   : > { %v4991_v26 = vpop.f32.mrb[0].mxu1 }
 0x20a   : > { %4062 = vst.msk [vmem:[%s6394_s27 + $0x10] sm:$0xff] %vm3641_vm1, %v4991_v26  ;;  %v3933_v37 = vpop.f32.mrb[1].mxu1  ;;  %v4163_v29 = vmul.f32 %v4991_v26, %v4991_v26  ;;  %v4095_v17 = vsel %vm3641_vm1, %v4991_v26, 0.0 }
 0x20b   : > { %4060 = vst.msk [vmem:[%s6394_s27] sm:$0xff] %vm3641_vm1, %v3933_v37  ;;  %v4092_v30 = vsel %vm3641_vm1, %v3933_v37, 0.0  ;;  %v4161_v31 = vmul.f32 %v3933_v37, %v3933_v37  ;;  %v4992_v1 = vpop.f32.mrb[2].mxu1 }
 0x20c   : > { %4063 = vst.msk [vmem:[%s6394_s27 + $0x18] sm:$0xff] %vm3641_vm1, %v4992_v1  ;;  %v3936_v50 = vpop.f32.mrb[3].mxu1  ;;  %v4164_v35 = vmul.f32 %v4992_v1, %v4992_v1  ;;  %v4196_v41 = vsel %vm3641_vm1, %v4163_v29, 0.0  ;;  %v4097_v43 = vsel %vm3641_vm1, %v4992_v1, 0.0 }
 0x20d   : > { %v4193_v33 = vsel %vm3641_vm1, %v4161_v31, 0.0  ;;  %4061 = vst.msk [vmem:[%s6394_s27 + $0x8] sm:$0xff] %vm3641_vm1, %v3936_v50  ;;  %v4093_v36 = vsel %vm3641_vm1, %v3936_v50, 0.0  ;;  %v4162_v34 = vmul.f32 %v3936_v50, %v3936_v50 }
 0x20e   : > { %v4094_v40 = vadd.f32 %v4093_v36, %v4092_v30  ;;  %v4198_v46 = vsel %vm3641_vm1, %v4164_v35, 0.0 }
 0x20f   : > { %v4194_v44 = vsel %vm3641_vm1, %v4162_v34, 0.0 }
 0x210   : > { %v4096_v47 = vadd.f32 %v4095_v17, %v4094_v40  ;;  %v4195_v21 = vadd.f32 %v4194_v44, %v4193_v33 }
 0x211   : > { %v4995_v48 = vpop.f32.mrb[4].mxu1 }
 0x212   : > { %v4197_v49 = vadd.f32 %v4196_v41, %v4195_v21  ;;  %4066 = vst.msk [vmem:[%s6394_s27 + $0x30] sm:$0xff] %vm3641_vm1, %v4995_v48  ;;  %v3949_v39 = vpop.f32.mrb[5].mxu1  ;;  %v4098_v52 = vadd.f32 %v4097_v43, %v4096_v47  ;;  %v4167_v54 = vmul.f32 %v4995_v48, %v4995_v48  ;;  %v4103_v19 = vsel %vm3641_vm1, %v4995_v48, 0.0 }
 0x213   : > { %4064 = vst.msk [vmem:[%s6394_s27 + $0x20] sm:$0xff] %vm3641_vm1, %v3949_v39  ;;  %v4099_v55 = vsel %vm3641_vm1, %v3949_v39, 0.0  ;;  %v4165_v58 = vmul.f32 %v3949_v39, %v3949_v39  ;;  %v4996_v59 = vpop.f32.mrb[6].mxu1 }
 0x214   : > { %v4100_v27 = vadd.f32 %v4099_v55, %v4098_v52  ;;  %v4199_v32 = vadd.f32 %v4198_v46, %v4197_v49  ;;  %4067 = vst.msk [vmem:[%s6394_s27 + $0x38] sm:$0xff] %vm3641_vm1, %v4996_v59  ;;  %v3952_v60 = vpop.f32.mrb[7].mxu1  ;;  %v4168_v62 = vmul.f32 %v4996_v59, %v4996_v59  ;;  %v4204_v53 = vsel %vm3641_vm1, %v4167_v54, 0.0 }
 0x215   : > { %v4200_v61 = vsel %vm3641_vm1, %v4165_v58, 0.0  ;;  %4065 = vst.msk [vmem:[%s6394_s27 + $0x28] sm:$0xff] %vm3641_vm1, %v3952_v60  ;;  %v4101_v63 = vsel %vm3641_vm1, %v3952_v60, 0.0  ;;  %v4166_v2 = vmul.f32 %v3952_v60, %v3952_v60  ;;  %v4105_v0 = vsel %vm3641_vm1, %v4996_v59, 0.0 }
 0x216   : > { %v4201_v3 = vadd.f32 %v4200_v61, %v4199_v32  ;;  %v4102_v51 = vadd.f32 %v4101_v63, %v4100_v27  ;;  %v4206_v57 = vsel %vm3641_vm1, %v4168_v62, 0.0 }
 0x217   : > { %v4202_v7 = vsel %vm3641_vm1, %v4166_v2, 0.0 }
 0x218   : > { %v4104_v8 = vadd.f32 %v4103_v19, %v4102_v51  ;;  %v4203_v5 = vadd.f32 %v4202_v7, %v4201_v3 }
 0x219   : > { %v4999_v9 = vpop.f32.mrb[8].mxu1 }
 0x21a   : > { %v4205_v10 = vadd.f32 %v4204_v53, %v4203_v5  ;;  %4070 = vst.msk [vmem:[%s6394_s27 + $0x50] sm:$0xff] %vm3641_vm1, %v4999_v9  ;;  %v3965_v56 = vpop.f32.mrb[9].mxu1  ;;  %v4106_v11 = vadd.f32 %v4105_v0, %v4104_v8  ;;  %v4171_v4 = vmul.f32 %v4999_v9, %v4999_v9  ;;  %v4111_v12 = vsel %vm3641_vm1, %v4999_v9, 0.0 }
 0x21b   : > { %4068 = vst.msk [vmem:[%s6394_s27 + $0x40] sm:$0xff] %vm3641_vm1, %v3965_v56  ;;  %v4107_v6 = vsel %vm3641_vm1, %v3965_v56, 0.0  ;;  %v4169_v20 = vmul.f32 %v3965_v56, %v3965_v56  ;;  %v5000_v28 = vpop.f32.mrb[10].mxu1 }
 0x21c   : > { %v4108_v14 = vadd.f32 %v4107_v6, %v4106_v11  ;;  %v4207_v45 = vadd.f32 %v4206_v57, %v4205_v10  ;;  %4071 = vst.msk [vmem:[%s6394_s27 + $0x58] sm:$0xff] %vm3641_vm1, %v5000_v28  ;;  %v3968_v24 = vpop.f32.mrb[11].mxu1  ;;  %v4172_v18 = vmul.f32 %v5000_v28, %v5000_v28  ;;  %v4212_v29 = vsel %vm3641_vm1, %v4171_v4, 0.0 }
 0x21d   : > { %v4208_v16 = vsel %vm3641_vm1, %v4169_v20, 0.0  ;;  %4069 = vst.msk [vmem:[%s6394_s27 + $0x48] sm:$0xff] %vm3641_vm1, %v3968_v24  ;;  %v4109_v42 = vsel %vm3641_vm1, %v3968_v24, 0.0  ;;  %v4170_v15 = vmul.f32 %v3968_v24, %v3968_v24  ;;  %v4113_v40 = vsel %vm3641_vm1, %v5000_v28, 0.0 }
 0x21e   : > { %v4209_v23 = vadd.f32 %v4208_v16, %v4207_v45  ;;  %v4110_v13 = vadd.f32 %v4109_v42, %v4108_v14  ;;  %v4214_v41 = vsel %vm3641_vm1, %v4172_v18, 0.0 }
 0x21f   : > { %v4973_v22 = vpop.f32.mrb[16].mxu0  ;;  %v4210_v30 = vsel %vm3641_vm1, %v4170_v15, 0.0 }
 0x220   : > { %3660 = vst.msk [vmem:[%s6301_s24 + $0x90] sm:$0xff] %vm3641_vm1, %v4973_v22  ;;  %v3761_v26 = vmul.f32 %v4973_v22, %v4973_v22  ;;  %v3578_v37 = vpop.f32.mrb[17].mxu0  ;;  %v4112_v50 = vadd.f32 %v4111_v12, %v4110_v13  ;;  %v4211_v33 = vadd.f32 %v4210_v30, %v4209_v23  ;;  %v3709_v48 = vsel %vm3641_vm1, %v4973_v22, 0.0 }
 0x221   : > { %3658 = vst.msk [vmem:[%s6301_s24 + $0x80] sm:$0xff] %vm3641_vm1, %v3578_v37  ;;  %v3705_v31 = vsel %vm3641_vm1, %v3578_v37, 0.0  ;;  %v3759_v1 = vmul.f32 %v3578_v37, %v3578_v37  ;;  %v4974_v17 = vpop.f32.mrb[18].mxu0  ;;  %v5003_v43 = vpop.f32.mrb[12].mxu1 }
 0x222   : > { %v3706_v35 = vadd.f32 %v3705_v31, %v6384_v38  ;;  %3661 = vst.msk [vmem:[%s6301_s24 + $0x98] sm:$0xff] %vm3641_vm1, %v4974_v17  ;;  %v3762_v36 = vmul.f32 %v4974_v17, %v4974_v17  ;;  %v3581_v34 = vpop.f32.mrb[19].mxu0  ;;  %v4213_v46 = vadd.f32 %v4212_v29, %v4211_v33  ;;  %4074 = vst.msk [vmem:[%s6394_s27 + $0x70] sm:$0xff] %vm3641_vm1, %v5003_v43  ;;  %v3981_v38 = vpop.f32.mrb[13].mxu1  ;;  %v3810_v49 = vsel %vm3641_vm1, %v3761_v26, 0.0 }
 0x223   : > { %v3806_v44 = vsel %vm3641_vm1, %v3759_v1, 0.0  ;;  %3659 = vst.msk [vmem:[%s6301_s24 + $0x88] sm:$0xff] %vm3641_vm1, %v3581_v34  ;;  %v3707_v47 = vsel %vm3641_vm1, %v3581_v34, 0.0  ;;  %v3760_v21 = vmul.f32 %v3581_v34, %v3581_v34  ;;  %4072 = vst.msk [vmem:[%s6394_s27 + $0x60] sm:$0xff] %vm3641_vm1, %v3981_v38  ;;  %v5004_v54 = vpop.f32.mrb[14].mxu1  ;;  %v3711_v55 = vsel %vm3641_vm1, %v4974_v17, 0.0 }
 0x224   : > { %v3807_v39 = vadd.f32 %v3806_v44, %v6387_v25  ;;  %v3708_v52 = vadd.f32 %v3707_v47, %v3706_v35  ;;  %v4114_v59 = vadd.f32 %v4113_v40, %v4112_v50  ;;  %v4115_v19 = vsel %vm3641_vm1, %v3981_v38, 0.0  ;;  %4075 = vst.msk [vmem:[%s6394_s27 + $0x78] sm:$0xff] %vm3641_vm1, %v5004_v54  ;;  %v3984_v27 = vpop.f32.mrb[15].mxu1 }
 0x225   : > { %v3808_v58 = vsel %vm3641_vm1, %v3760_v21, 0.0  ;;  %v4173_v61 = vmul.f32 %v3981_v38, %v3981_v38  ;;  %v4215_v62 = vadd.f32 %v4214_v41, %v4213_v46  ;;  %4073 = vst.msk [vmem:[%s6394_s27 + $0x68] sm:$0xff] %vm3641_vm1, %v3984_v27  ;;  %v3812_v25 = vsel %vm3641_vm1, %v3762_v36, 0.0 }
 0x226   : > { %v3710_v32 = vadd.f32 %v3709_v48, %v3708_v52  ;;  %v3809_v60 = vadd.f32 %v3808_v58, %v3807_v39  ;;  %v4119_v63 = vsel %vm3641_vm1, %v5003_v43, 0.0  ;;  %v4175_v2 = vmul.f32 %v5003_v43, %v5003_v43 }
 0x227   : > { %v4116_v3 = vadd.f32 %v4115_v19, %v4114_v59  ;;  %v4216_v0 = vsel %vm3641_vm1, %v4173_v61, 0.0  ;;  %v4117_v7 = vsel %vm3641_vm1, %v3984_v27, 0.0  ;;  %v4176_v5 = vmul.f32 %v5004_v54, %v5004_v54 }
 0x228   : > { %v3811_v51 = vadd.f32 %v3810_v49, %v3809_v60  ;;  %v6472_v53 = vadd.f32 %v3711_v55, %v3710_v32  ;;  %v4217_v8 = vadd.f32 %v4216_v0, %v4215_v62  ;;  %v4174_v9 = vmul.f32 %v3984_v27, %v3984_v27 }
 0x229   : > { %v4118_v57 = vadd.f32 %v4117_v7, %v4116_v3  ;;  %v4121_v56 = vsel %vm3641_vm1, %v5004_v54, 0.0  ;;  %v5007_v11 = vpop.f32.mrb[16].mxu1  ;;  %v4220_v4 = vsel %vm3641_vm1, %v4175_v2, 0.0  ;;  %v4222_v16 = vsel %vm3641_vm1, %v4176_v5, 0.0 }
 0x22a   : > { %v6476_v10 = vadd.f32 %v3812_v25, %v3811_v51  ;;  %v4218_v20 = vsel %vm3641_vm1, %v4174_v9, 0.0  ;;  %4078 = vst.msk [vmem:[%s6394_s27 + $0x90] sm:$0xff] %vm3641_vm1, %v5007_v11  ;;  %v3997_v28 = vpop.f32.mrb[17].mxu1  ;;  %v4179_v13 = vmul.f32 %v5007_v11, %v5007_v11  ;;  %v4127_v29 = vsel %vm3641_vm1, %v5007_v11, 0.0 }
 0x22b   : > { %v4120_v6 = vadd.f32 %v4119_v63, %v4118_v57  ;;  %v4219_v12 = vadd.f32 %v4218_v20, %v4217_v8  ;;  %4076 = vst.msk [vmem:[%s6394_s27 + $0x80] sm:$0xff] %vm3641_vm1, %v3997_v28  ;;  %v4123_v14 = vsel %vm3641_vm1, %v3997_v28, 0.0  ;;  %v4177_v45 = vmul.f32 %v3997_v28, %v3997_v28  ;;  %v5008_v24 = vpop.f32.mrb[18].mxu1 }
 0x22c   : > { %4079 = vst.msk [vmem:[%s6394_s27 + $0x98] sm:$0xff] %vm3641_vm1, %v5008_v24  ;;  %v4000_v42 = vpop.f32.mrb[19].mxu1  ;;  %v4180_v31 = vmul.f32 %v5008_v24, %v5008_v24  ;;  %v4129_v33 = vsel %vm3641_vm1, %v5008_v24, 0.0  ;;  %v4228_v36 = vsel %vm3641_vm1, %v4179_v13, 0.0 }
 0x22d   : > { %v4122_v18 = vadd.f32 %v4121_v56, %v4120_v6  ;;  %v4221_v15 = vadd.f32 %v4220_v4, %v4219_v12  ;;  %4077 = vst.msk [vmem:[%s6394_s27 + $0x88] sm:$0xff] %vm3641_vm1, %v4000_v42  ;;  %v4125_v22 = vsel %vm3641_vm1, %v4000_v42, 0.0  ;;  %v4178_v23 = vmul.f32 %v4000_v42, %v4000_v42 }
 0x22e   : > { %v4224_v37 = vsel %vm3641_vm1, %v4177_v45, 0.0  ;;  %v4230_v21 = vsel %vm3641_vm1, %v4180_v31, 0.0 }
 0x22f   : > { %v4124_v26 = vadd.f32 %v4123_v14, %v4122_v18  ;;  %v4223_v30 = vadd.f32 %v4222_v16, %v4221_v15  ;;  %v4226_v17 = vsel %vm3641_vm1, %v4178_v23, 0.0 }
 0x231   : > { %v4126_v1 = vadd.f32 %v4125_v22, %v4124_v26  ;;  %v4225_v50 = vadd.f32 %v4224_v37, %v4223_v30  ;;  %v5011_v35 = vpop.f32.mrb[20].mxu1 }
 0x232   : > { %4082 = vst.msk [vmem:[%s6394_s27 + $0xb0] sm:$0xff] %vm3641_vm1, %v5011_v35  ;;  %v4013_v40 = vpop.f32.mrb[21].mxu1  ;;  %v4183_v52 = vmul.f32 %v5011_v35, %v5011_v35  ;;  %v4135_v58 = vsel %vm3641_vm1, %v5011_v35, 0.0 }
 0x233   : > { %v4128_v34 = vadd.f32 %v4127_v29, %v4126_v1  ;;  %v4227_v41 = vadd.f32 %v4226_v17, %v4225_v50  ;;  %4080 = vst.msk [vmem:[%s6394_s27 + $0xa0] sm:$0xff] %vm3641_vm1, %v4013_v40  ;;  %v4131_v43 = vsel %vm3641_vm1, %v4013_v40, 0.0  ;;  %v4181_v44 = vmul.f32 %v4013_v40, %v4013_v40  ;;  %v5012_v47 = vpop.f32.mrb[22].mxu1 }
 0x234   : > { %4083 = vst.msk [vmem:[%s6394_s27 + $0xb8] sm:$0xff] %vm3641_vm1, %v5012_v47  ;;  %v4016_v38 = vpop.f32.mrb[23].mxu1  ;;  %v4184_v19 = vmul.f32 %v5012_v47, %v5012_v47  ;;  %v4137_v61 = vsel %vm3641_vm1, %v5012_v47, 0.0  ;;  %v4236_v25 = vsel %vm3641_vm1, %v4183_v52, 0.0 }
 0x235   : > { %v4130_v46 = vadd.f32 %v4129_v33, %v4128_v34  ;;  %v4229_v48 = vadd.f32 %v4228_v36, %v4227_v41  ;;  %4081 = vst.msk [vmem:[%s6394_s27 + $0xa8] sm:$0xff] %vm3641_vm1, %v4016_v38  ;;  %v4133_v49 = vsel %vm3641_vm1, %v4016_v38, 0.0  ;;  %v4182_v39 = vmul.f32 %v4016_v38, %v4016_v38 }
 0x236   : > { %v4232_v55 = vsel %vm3641_vm1, %v4181_v44, 0.0  ;;  %v4238_v8 = vsel %vm3641_vm1, %v4184_v19, 0.0 }
 0x237   : > { %v4132_v54 = vadd.f32 %v4131_v43, %v4130_v46  ;;  %v4231_v59 = vadd.f32 %v4230_v21, %v4229_v48  ;;  %v4234_v32 = vsel %vm3641_vm1, %v4182_v39, 0.0 }
 0x239   : > { %v4134_v27 = vadd.f32 %v4133_v49, %v4132_v54  ;;  %v4233_v60 = vadd.f32 %v4232_v55, %v4231_v59  ;;  %v5015_v62 = vpop.f32.mrb[24].mxu1 }
 0x23a   : > { %4086 = vst.msk [vmem:[%s6394_s27 + $0xd0] sm:$0xff] %vm3641_vm1, %v5015_v62  ;;  %v4029_v2 = vpop.f32.mrb[25].mxu1  ;;  %v4143_v20 = vsel %vm3641_vm1, %v5015_v62, 0.0  ;;  %v4187_v28 = vmul.f32 %v5015_v62, %v5015_v62 }
 0x23b   : > { %v4136_v63 = vadd.f32 %v4135_v58, %v4134_v27  ;;  %v4235_v3 = vadd.f32 %v4234_v32, %v4233_v60  ;;  %4084 = vst.msk [vmem:[%s6394_s27 + $0xc0] sm:$0xff] %vm3641_vm1, %v4029_v2  ;;  %v4139_v51 = vsel %vm3641_vm1, %v4029_v2, 0.0  ;;  %v4185_v0 = vmul.f32 %v4029_v2, %v4029_v2  ;;  %v5016_v7 = vpop.f32.mrb[26].mxu1 }
 0x23c   : > { %4087 = vst.msk [vmem:[%s6394_s27 + $0xd8] sm:$0xff] %vm3641_vm1, %v5016_v7  ;;  %v4032_v57 = vpop.f32.mrb[27].mxu1  ;;  %v4188_v14 = vmul.f32 %v5016_v7, %v5016_v7  ;;  %v4145_v18 = vsel %vm3641_vm1, %v5016_v7, 0.0  ;;  %v4244_v37 = vsel %vm3641_vm1, %v4187_v28, 0.0 }
 0x23d   : > { %v4138_v5 = vadd.f32 %v4137_v61, %v4136_v63  ;;  %v4237_v9 = vadd.f32 %v4236_v25, %v4235_v3  ;;  %4085 = vst.msk [vmem:[%s6394_s27 + $0xc8] sm:$0xff] %vm3641_vm1, %v4032_v57  ;;  %v4141_v56 = vsel %vm3641_vm1, %v4032_v57, 0.0  ;;  %v4186_v11 = vmul.f32 %v4032_v57, %v4032_v57 }
 0x23e   : > { %v4240_v6 = vsel %vm3641_vm1, %v4185_v0, 0.0  ;;  %v4246_v29 = vsel %vm3641_vm1, %v4188_v14, 0.0 }
 0x23f   : > { %v4140_v4 = vadd.f32 %v4139_v51, %v4138_v5  ;;  %v4239_v12 = vadd.f32 %v4238_v8, %v4237_v9  ;;  %v4242_v24 = vsel %vm3641_vm1, %v4186_v11, 0.0 }
 0x241   : > { %v4142_v45 = vadd.f32 %v4141_v56, %v4140_v4  ;;  %v4241_v16 = vadd.f32 %v4240_v6, %v4239_v12  ;;  %v5019_v42 = vpop.f32.mrb[28].mxu1 }
 0x242   : > { %4090 = vst.msk [vmem:[%s6394_s27 + $0xf0] sm:$0xff] %vm3641_vm1, %v5019_v42  ;;  %v4045_v23 = vpop.f32.mrb[29].mxu1  ;;  %v4151_v43 = vsel %vm3641_vm1, %v5019_v42, 0.0  ;;  %v4191_v44 = vmul.f32 %v5019_v42, %v5019_v42 }
 0x243   : > { %v4977_v15 = vpop.f32.mrb[20].mxu0  ;;  %v4144_v22 = vadd.f32 %v4143_v20, %v4142_v45  ;;  %v4243_v30 = vadd.f32 %v4242_v24, %v4241_v16  ;;  %4088 = vst.msk [vmem:[%s6394_s27 + $0xe0] sm:$0xff] %vm3641_vm1, %v4045_v23  ;;  %v5020_v31 = vpop.f32.mrb[30].mxu1  ;;  %v4147_v35 = vsel %vm3641_vm1, %v4045_v23, 0.0  ;;  %v4189_v55 = vmul.f32 %v4045_v23, %v4045_v23 }
 0x244   : > { %3664 = vst.msk [vmem:[%s6301_s24 + $0xb0] sm:$0xff] %vm3641_vm1, %v4977_v15  ;;  %v3765_v13 = vmul.f32 %v4977_v15, %v4977_v15  ;;  %v3594_v26 = vpop.f32.mrb[21].mxu0  ;;  %4091 = vst.msk [vmem:[%s6394_s27 + $0xf8] sm:$0xff] %vm3641_vm1, %v5020_v31  ;;  %v4048_v36 = vpop.f32.mrb[31].mxu1  ;;  %v3717_v34 = vsel %vm3641_vm1, %v4977_v15, 0.0  ;;  %v4192_v61 = vmul.f32 %v5020_v31, %v5020_v31  ;;  %v4153_v3 = vsel %vm3641_vm1, %v5020_v31, 0.0 }
 0x245   : > { %3662 = vst.msk [vmem:[%s6301_s24 + $0xa0] sm:$0xff] %vm3641_vm1, %v3594_v26  ;;  %v3713_v1 = vsel %vm3641_vm1, %v3594_v26, 0.0  ;;  %v3763_v17 = vmul.f32 %v3594_v26, %v3594_v26  ;;  %v4978_v50 = vpop.f32.mrb[22].mxu0  ;;  %v4146_v33 = vadd.f32 %v4145_v18, %v4144_v22  ;;  %4089 = vst.msk [vmem:[%s6394_s27 + $0xe8] sm:$0xff] %vm3641_vm1, %v4048_v36  ;;  %v4245_v38 = vadd.f32 %v4244_v37, %v4243_v30 }
 0x246   : > { %v3714_v40 = vadd.f32 %v3713_v1, %v6472_v53  ;;  %3665 = vst.msk [vmem:[%s6301_s24 + $0xb8] sm:$0xff] %vm3641_vm1, %v4978_v50  ;;  %v3597_v41 = vpop.f32.mrb[23].mxu0  ;;  %v3818_v48 = vsel %vm3641_vm1, %v3765_v13, 0.0  ;;  %v3766_v52 = vmul.f32 %v4978_v50, %v4978_v50  ;;  %v3719_v59 = vsel %vm3641_vm1, %v4978_v50, 0.0 }
 0x247   : > { %v3814_v47 = vsel %vm3641_vm1, %v3763_v17, 0.0  ;;  %3663 = vst.msk [vmem:[%s6301_s24 + $0xa8] sm:$0xff] %vm3641_vm1, %v3597_v41  ;;  %v3715_v21 = vsel %vm3641_vm1, %v3597_v41, 0.0  ;;  %v3764_v46 = vmul.f32 %v3597_v41, %v3597_v41  ;;  %v4148_v39 = vadd.f32 %v4147_v35, %v4146_v33 }
 0x248   : > { %v3815_v53 = vadd.f32 %v3814_v47, %v6476_v10  ;;  %v3716_v49 = vadd.f32 %v3715_v21, %v3714_v40  ;;  %v4247_v58 = vadd.f32 %v4246_v29, %v4245_v38  ;;  %v4149_v32 = vsel %vm3641_vm1, %v4048_v36, 0.0 }
 0x249   : > { %v3816_v54 = vsel %vm3641_vm1, %v3764_v46, 0.0  ;;  %v4248_v60 = vsel %vm3641_vm1, %v4189_v55, 0.0  ;;  %v4150_v62 = vadd.f32 %v4149_v32, %v4148_v39  ;;  %v4190_v25 = vmul.f32 %v4048_v36, %v4048_v36 }
 0x24a   : > { %v3718_v19 = vadd.f32 %v3717_v34, %v3716_v49  ;;  %v3817_v27 = vadd.f32 %v3816_v54, %v3815_v53  ;;  %v4249_v2 = vadd.f32 %v4248_v60, %v4247_v58  ;;  %v3820_v51 = vsel %vm3641_vm1, %v3766_v52, 0.0 }
 0x24b   : > { %v4252_v0 = vsel %vm3641_vm1, %v4191_v44, 0.0  ;;  %v4152_v7 = vadd.f32 %v4151_v43, %v4150_v62  ;;  %v4250_v8 = vsel %vm3641_vm1, %v4190_v25, 0.0  ;;  %v4254_v9 = vsel %vm3641_vm1, %v4192_v61, 0.0 }
 0x24c   : > { %v3819_v63 = vadd.f32 %v3818_v48, %v3817_v27  ;;  %v3720_v10 = vadd.f32 %v3719_v59, %v3718_v19  ;;  %v4251_v57 = vadd.f32 %v4250_v8, %v4249_v2 }
 0x24d   : > { %v4154_v56 = vadd.f32 %v4153_v3, %v4152_v7 }
 0x24e   : > { %v3821_v5 = vadd.f32 %v3820_v51, %v3819_v63  ;;  %v4253_v11 = vadd.f32 %v4252_v0, %v4251_v57 }
 0x24f   : > { %v4155_v4 = vrot.slane %v4154_v56, 4 }
 0x250   : > { %v4255_v6 = vadd.f32 %v4254_v9, %v4253_v11 }
 0x251   : > { %v4156_v20 = vadd.f32 %v4155_v4, %v4154_v56 }
 0x252   : > { %v4256_v28 = vrot.slane %v4255_v6, 4 }
 0x253   : > { %v4157_v12 = vrot.slane %v4156_v20, 2 }
 0x254   : > { %v4257_v14 = vadd.f32 %v4256_v28, %v4255_v6 }
 0x255   : > { %v4158_v45 = vadd.f32 %v4157_v12, %v4156_v20 }
 0x256   : > { %v4258_v24 = vrot.slane %v4257_v14, 2 }
 0x257   : > { %v4159_v16 = vrot.slane %v4158_v45, 1 }
 0x258   : > { %v4259_v18 = vadd.f32 %v4258_v24, %v4257_v14 }
 0x259   : > { %v4160_v42 = vadd.f32 %v4159_v16, %v4158_v45 }
 0x25a   : > { %v4260_v15 = vrot.slane %v4259_v18, 1 }
 0x25b   : > { %4262 = vst.msk [vmem:[%s284_s7] sm:$0x1] %vm3844_vm2, %v4160_v42 }
 0x25c   : > { %v4261_v22 = vadd.f32 %v4260_v15, %v4259_v18 }
 0x25e   : > { %4263 = vst.msk [vmem:[%s284_s7 + $0x1] sm:$0x1] %vm3844_vm2, %v4261_v22 }
 0x267   : > { %v4981_v23 = vpop.f32.mrb[24].mxu0 }
 0x268   : > { %3668 = vst.msk [vmem:[%s6301_s24 + $0xd0] sm:$0xff] %vm3641_vm1, %v4981_v23  ;;  %v3610_v13 = vpop.f32.mrb[25].mxu0  ;;  %v3769_v1 = vmul.f32 %v4981_v23, %v4981_v23  ;;  %v3725_v34 = vsel %vm3641_vm1, %v4981_v23, 0.0 }
 0x269   : > { %3666 = vst.msk [vmem:[%s6301_s24 + $0xc0] sm:$0xff] %vm3641_vm1, %v3610_v13  ;;  %v3721_v26 = vsel %vm3641_vm1, %v3610_v13, 0.0  ;;  %v3767_v37 = vmul.f32 %v3610_v13, %v3610_v13  ;;  %v4982_v29 = vpop.f32.mrb[26].mxu0 }
 0x26a   : > { %v3722_v30 = vadd.f32 %v3721_v26, %v3720_v10  ;;  %3669 = vst.msk [vmem:[%s6301_s24 + $0xd8] sm:$0xff] %vm3641_vm1, %v4982_v29  ;;  %v3613_v31 = vpop.f32.mrb[27].mxu0  ;;  %v3770_v40 = vmul.f32 %v4982_v29, %v4982_v29  ;;  %v3826_v47 = vsel %vm3641_vm1, %v3769_v1, 0.0  ;;  %v3727_v21 = vsel %vm3641_vm1, %v4982_v29, 0.0 }
 0x26b   : > { %v3822_v17 = vsel %vm3641_vm1, %v3767_v37, 0.0  ;;  %3667 = vst.msk [vmem:[%s6301_s24 + $0xc8] sm:$0xff] %vm3641_vm1, %v3613_v31  ;;  %v3723_v50 = vsel %vm3641_vm1, %v3613_v31, 0.0  ;;  %v3768_v33 = vmul.f32 %v3613_v31, %v3613_v31 }
 0x26c   : > { %v3823_v35 = vadd.f32 %v3822_v17, %v3821_v5  ;;  %v3724_v36 = vadd.f32 %v3723_v50, %v3722_v30  ;;  %v3828_v48 = vsel %vm3641_vm1, %v3770_v40, 0.0 }
 0x26d   : > { %v3824_v41 = vsel %vm3641_vm1, %v3768_v33, 0.0 }
 0x26e   : > { %v3726_v43 = vadd.f32 %v3725_v34, %v3724_v36  ;;  %v3825_v44 = vadd.f32 %v3824_v41, %v3823_v35 }
 0x270   : > { %v3827_v46 = vadd.f32 %v3826_v47, %v3825_v44  ;;  %v3728_v38 = vadd.f32 %v3727_v21, %v3726_v43 }
 0x272   : > { %v3829_v53 = vadd.f32 %v3828_v48, %v3827_v46 }
 0x289   : > { %v4985_v49 = vpop.f32.mrb[28].mxu0 }
 0x28a   : > { %3672 = vst.msk [vmem:[%s6301_s24 + $0xf0] sm:$0xff] %vm3641_vm1, %v4985_v49  ;;  %v3626_v39 = vpop.f32.mrb[29].mxu0  ;;  %v3773_v19 = vmul.f32 %v4985_v49, %v4985_v49  ;;  %v3733_v25 = vsel %vm3641_vm1, %v4985_v49, 0.0 }
 0x28b   : > { %3670 = vst.msk [vmem:[%s6301_s24 + $0xe0] sm:$0xff] %vm3641_vm1, %v3626_v39  ;;  %v3729_v52 = vsel %vm3641_vm1, %v3626_v39, 0.0  ;;  %v3771_v54 = vmul.f32 %v3626_v39, %v3626_v39  ;;  %v4986_v55 = vpop.f32.mrb[30].mxu0 }
 0x28c   : > { %v3730_v58 = vadd.f32 %v3729_v52, %v3728_v38  ;;  %3673 = vst.msk [vmem:[%s6301_s24 + $0xf8] sm:$0xff] %vm3641_vm1, %v4986_v55  ;;  %v3629_v59 = vpop.f32.mrb[31].mxu0  ;;  %v3774_v63 = vmul.f32 %v4986_v55, %v4986_v55  ;;  %v3834_v51 = vsel %vm3641_vm1, %v3773_v19, 0.0  ;;  %v3735_v0 = vsel %vm3641_vm1, %v4986_v55, 0.0 }
 0x28d   : > { %v3830_v27 = vsel %vm3641_vm1, %v3771_v54, 0.0  ;;  %3671 = vst.msk [vmem:[%s6301_s24 + $0xe8] sm:$0xff] %vm3641_vm1, %v3629_v59  ;;  %v3731_v32 = vsel %vm3641_vm1, %v3629_v59, 0.0  ;;  %v3772_v60 = vmul.f32 %v3629_v59, %v3629_v59 }
 0x28e   : > { %v3831_v61 = vadd.f32 %v3830_v27, %v3829_v53  ;;  %v3732_v62 = vadd.f32 %v3731_v32, %v3730_v58  ;;  %v3836_v5 = vsel %vm3641_vm1, %v3774_v63, 0.0 }
 0x28f   : > { %v3832_v10 = vsel %vm3641_vm1, %v3772_v60, 0.0 }
 0x290   : > { %v3734_v2 = vadd.f32 %v3733_v25, %v3732_v62  ;;  %v3833_v3 = vadd.f32 %v3832_v10, %v3831_v61 }
 0x292   : > { %v3736_v7 = vadd.f32 %v3735_v0, %v3734_v2  ;;  %v3835_v8 = vadd.f32 %v3834_v51, %v3833_v3 }
 0x294   : > { %v3737_v57 = vrot.slane %v3736_v7, 4  ;;  %v3837_v9 = vadd.f32 %v3836_v5, %v3835_v8 }
 0x296   : > { %v3738_v56 = vadd.f32 %v3737_v57, %v3736_v7  ;;  %v3838_v11 = vrot.slane %v3837_v9, 4 }
 0x298   : > { %v3739_v4 = vrot.slane %v3738_v56, 2  ;;  %v3839_v6 = vadd.f32 %v3838_v11, %v3837_v9 }
 0x29a   : > { %v3740_v20 = vadd.f32 %v3739_v4, %v3738_v56  ;;  %v3840_v28 = vrot.slane %v3839_v6, 2 }
 0x29c   : > { %v3741_v12 = vrot.slane %v3740_v20, 1  ;;  %v3841_v14 = vadd.f32 %v3840_v28, %v3839_v6 }
 0x29e   : > { %v3742_v45 = vadd.f32 %v3741_v12, %v3740_v20  ;;  %v3842_v24 = vrot.slane %v3841_v14, 1 }
 0x2a0   : > { %v3843_v16 = vadd.f32 %v3842_v24, %v3841_v14  ;;  %3845 = vst.msk [vmem:[%s275_s10] sm:$0x1] %vm3844_vm2, %v3742_v45 }
 0x2a2   : > { %3846 = vst.msk [vmem:[%s275_s10 + $0x1] sm:$0x1] %vm3844_vm2, %v3843_v16 }
 0x2a3 PF: > { %s17_s21 = sadd.s32 1, %s5097_s21  }
 0x2a4   : > { %p14_p4 = scmp.ge.s32.totalorder %s17_s21, 4  }
 0x2a6   :  { %16 = sbr.rel (!%p14_p4) target bundleno = 1 (0x1), region = 100 }

</bundles_post_ra>
